<compile_context>
chip_gen: v6e
topology: v6e:2x2x1
jax: 0.10.0
libtpu: 0.0.40
codegen_flags: <defaults>
</compile_context>

<pallas_src>
import functools

import jax
import jax.numpy as jnp
import numpy as np
from jax import lax
from jax.experimental import pallas as pl
from jax.experimental.pallas import tpu as pltpu


_VMEM_LIMIT = 48 * 1024 * 1024    # scoped limit: safe on v7x (64 MiB phys), > defaults on v5e/v6e
_VMEM_BUDGET = 28 * 1024 * 1024   # target double-buffered working set per pallas_call


def _round_up(x, m):
    return ((x + m - 1) // m) * m


def _cdiv(a, b):
    return -(-a // b)


def _choose_tile(P, D, Cout, has_residual):
    """Pick a P-tile (multiple of 16) so double-buffered blocks fit the VMEM budget."""
    p16 = _round_up(max(P, 16), 16)
    row_a = 2 * (D * 2 + Cout * 2)                      # bf16 patches + y, double-buffered
    row_b = 2 * Cout * 2 * (3 if has_residual else 2)   # norm pass: y + out (+ residual)
    row = max(row_a, row_b) + 8
    fixed = 2 * (D * Cout * 2) + (1 << 16)               # weights (2 buffers) + misc slack
    tp = min(p16, 1024)
    tp = max(16, (tp // 16) * 16)
    while tp > 16 and fixed + tp * row > _VMEM_BUDGET:
        tp = max(16, ((tp // 2) // 16) * 16)
    n_tiles = _cdiv(P, tp)
    tp = _round_up(_cdiv(P, n_tiles), 16)     # rebalance so padding waste stays small
    return tp, n_tiles, tp * n_tiles


# ----------------------------------------------------------------------------
# Pass A: (im2col patches) @ W + b, optionally accumulating per-channel sum / sumsq
# ----------------------------------------------------------------------------
def _make_conv_kernel(*, compute_stats, tp, p_valid, p_pad):
    needs_mask = p_pad != p_valid

    def kernel(x_ref, w_ref, b_ref, y_ref, *stats):
        # bf16 x bf16 matmul with f32 accumulation on the MXU
        y = jnp.dot(x_ref[0], w_ref[...], preferred_element_type=jnp.float32)
        y = y + b_ref[...]
        y_ref[0] = y.astype(y_ref.dtype)

        if compute_stats:
            stats_ref = stats[0]                       # (1, 2, Cout) f32 resident accumulator
            p = pl.program_id(1)

            @pl.when(p == 0)
            def _():
                stats_ref[...] = jnp.zeros_like(stats_ref)

            if needs_mask:
                row = lax.broadcasted_iota(jnp.int32, (tp, 1), 0) + p * tp
                yv = y * (row < p_valid).astype(jnp.float32)
            else:
                yv = y
            s = jnp.sum(yv, axis=0, keepdims=True)          # (1, Cout)
            sq = jnp.sum(yv * yv, axis=0, keepdims=True)    # (1, Cout)
            stats_ref[0] = stats_ref[0] + jnp.concatenate([s, sq], axis=0)

    return kernel


# ----------------------------------------------------------------------------
# Pass B: affine InstanceNorm (from accumulated stats) + ReLU + residual add
# ----------------------------------------------------------------------------
def _make_norm_kernel(*, p_valid, relu, residual, eps=1e-5):
    def kernel(*refs):
        i = 0
        y_ref = refs[i]; i += 1          # (1, TP, C)
        st_ref = refs[i]; i += 1         # (1, 2, C) f32  [sum, sumsq]
        g_ref = refs[i]; i += 1          # (1, C) f32
        bt_ref = refs[i]; i += 1         # (1, C) f32
        res_ref = None
        if residual:
            res_ref = refs[i]; i += 1    # (1, TP, C)
        o_ref = refs[i]

        y = y_ref[0].astype(jnp.float32)
        st = st_ref[0]                   # (2, C)
        inv_p = jnp.float32(1.0 / p_valid)
        mean = st[0:1, :] * inv_p
        var = jnp.maximum(st[1:2, :] * inv_p - mean * mean, 0.0)
        scale = lax.rsqrt(var + eps) * g_ref[...]
        out = (y - mean) * scale + bt_ref[...]
        if relu:
            out = jnp.maximum(out, 0.0)
        if residual:
            out = out + res_ref[0].astype(jnp.float32)
        o_ref[0] = out.astype(o_ref.dtype)

    return kernel


# ----------------------------------------------------------------------------
# Wrapper: ReflectionPad2d + (optional nearest upsample) + Conv2d + IN + ReLU + residual
# ----------------------------------------------------------------------------
def conv_block(x, weight, bias, *, kernel_size, stride=1, upsample=None,
               gamma=None, beta=None, relu=False, residual=None,
               out_dtype=jnp.bfloat16, pad_cout_to=None, eps=1e-5):
    """x: (N, H, W, Cin) NHWC.  weight: (Cout, Cin, K, K) (PyTorch layout)."""
    x = x.astype(jnp.bfloat16)

    # nn.functional.interpolate(mode='nearest', scale_factor=upsample)
    if upsample:
        x = jnp.repeat(jnp.repeat(x, upsample, axis=1), upsample, axis=2)

    # nn.ReflectionPad2d(kernel_size // 2)
    pad = kernel_size // 2
    if pad > 0:
        x = jnp.pad(x, ((0, 0), (pad, pad), (pad, pad), (0, 0)), mode="reflect")

    N, Hp, Wp, Cin = x.shape
    K = kernel_size
    Ho = (Hp - K) // stride + 1
    Wo = (Wp - K) // stride + 1
    P = Ho * Wo
    D = K * K * Cin

    # im2col via static strided slices (pure data movement, stays in XLA); order (kh, kw, cin).
    # TODO(synk): for the 3x3 Cin=Cout=128 layers a direct (no-im2col) kernel accumulating the
    #             K*K shifted slices inside Pallas would cut activation HBM reads ~9x.
    slices = []
    for kh in range(K):
        for kw in range(K):
            slices.append(x[:, kh:kh + (Ho - 1) * stride + 1:stride,
                               kw:kw + (Wo - 1) * stride + 1:stride, :])
    patches = jnp.stack(slices, axis=3).reshape(N, P, D)

    Cout = weight.shape[0]
    Cout_p = max(Cout, pad_cout_to) if pad_cout_to else Cout

    # (Cout, Cin, K, K) -> (K, K, Cin, Cout) -> (D, Cout); matches (kh, kw, cin) patch order
    w_mat = jnp.transpose(weight, (2, 3, 1, 0)).reshape(D, Cout).astype(jnp.float32)
    b_vec = bias.reshape(1, Cout).astype(jnp.float32)

    # Pad the contraction dim to a multiple of 128 when cheap (first layer: 243 -> 256).
    D_p = _round_up(D, 128)
    if D_p != D and (D_p - D) * 8 <= D:
        patches = jnp.pad(patches, ((0, 0), (0, 0), (0, D_p - D)))
        w_mat = jnp.pad(w_mat, ((0, D_p - D), (0, 0)))
        D = D_p

    # Lane-dense output: pad Cout (e.g. final conv 3 -> 128), slice back afterwards.
    if Cout_p != Cout:
        w_mat = jnp.pad(w_mat, ((0, 0), (0, Cout_p - Cout)))
        b_vec = jnp.pad(b_vec, ((0, 0), (0, Cout_p - Cout)))

    w_mat = w_mat.astype(jnp.bfloat16)

    norm = gamma is not None
    use_res = residual is not None

    TP, n_tiles, P_pad = _choose_tile(P, D, Cout_p, use_res)
    if P_pad != P:
        patches = jnp.pad(patches, ((0, 0), (0, P_pad - P), (0, 0)))

    # ---------------- pass A: conv matmul (+ per-channel sum / sumsq accumulation) ----------
    a_in_specs = [
        pl.BlockSpec((1, TP, D), lambda n, p: (n, p, 0)),
        pl.BlockSpec((D, Cout_p), lambda n, p: (0, 0)),
        pl.BlockSpec((1, Cout_p), lambda n, p: (0, 0)),
    ]
    y_dtype = jnp.bfloat16 if norm else out_dtype
    if norm:
        a_out_shape = (jax.ShapeDtypeStruct((N, P_pad, Cout_p), y_dtype),
                       jax.ShapeDtypeStruct((N, 2, Cout_p), jnp.float32))
        a_out_specs = (pl.BlockSpec((1, TP, Cout_p), lambda n, p: (n, p, 0)),
                       pl.BlockSpec((1, 2, Cout_p), lambda n, p: (n, 0, 0)))
        a_sem = ("parallel", "arbitrary")     # stats accumulator couples the P axis
    else:
        a_out_shape = jax.ShapeDtypeStruct((N, P_pad, Cout_p), y_dtype)
        a_out_specs = pl.BlockSpec((1, TP, Cout_p), lambda n, p: (n, p, 0))
        a_sem = ("parallel", "parallel")

    conv_out = pl.pallas_call(
        _make_conv_kernel(compute_stats=norm, tp=TP, p_valid=P, p_pad=P_pad),
        out_shape=a_out_shape,
        grid=(N, n_tiles),
        in_specs=a_in_specs,
        out_specs=a_out_specs,
        compiler_params=pltpu.CompilerParams(
            dimension_semantics=a_sem, vmem_limit_bytes=_VMEM_LIMIT),
    )(patches, w_mat, b_vec)

    if not norm:
        out = conv_out
    else:
        # ---------------- pass B: normalize + affine + ReLU + residual ----------------------
        y_pad, stats = conv_out
        g_vec = gamma.reshape(1, Cout).astype(jnp.float32)
        bt_vec = beta.reshape(1, Cout).astype(jnp.float32)
        if Cout_p != Cout:
            g_vec = jnp.pad(g_vec, ((0, 0), (0, Cout_p - Cout)), constant_values=1.0)
            bt_vec = jnp.pad(bt_vec, ((0, 0), (0, Cout_p - Cout)))

        b_inputs = [y_pad, stats, g_vec, bt_vec]
        b_specs = [
            pl.BlockSpec((1, TP, Cout_p), lambda n, p: (n, p, 0)),
            pl.BlockSpec((1, 2, Cout_p), lambda n, p: (n, 0, 0)),
            pl.BlockSpec((1, Cout_p), lambda n, p: (0, 0)),
            pl.BlockSpec((1, Cout_p), lambda n, p: (0, 0)),
        ]
        if use_res:
            res = residual.astype(jnp.bfloat16).reshape(N, P, Cout)
            if Cout_p != Cout:
                res = jnp.pad(res, ((0, 0), (0, 0), (0, Cout_p - Cout)))
            if P_pad != P:
                res = jnp.pad(res, ((0, 0), (0, P_pad - P), (0, 0)))
            b_inputs.append(res)
            b_specs.append(pl.BlockSpec((1, TP, Cout_p), lambda n, p: (n, p, 0)))

        out = pl.pallas_call(
            _make_norm_kernel(p_valid=P, relu=relu, residual=use_res, eps=eps),
            out_shape=jax.ShapeDtypeStruct((N, P_pad, Cout_p), out_dtype),
            grid=(N, n_tiles),
            in_specs=b_specs,
            out_specs=pl.BlockSpec((1, TP, Cout_p), lambda n, p: (n, p, 0)),
            compiler_params=pltpu.CompilerParams(
                dimension_semantics=("parallel", "parallel"),
                vmem_limit_bytes=_VMEM_LIMIT),
        )(*b_inputs)

    return out[:, :P, :Cout].reshape(N, Ho, Wo, Cout)


# ----------------------------------------------------------------------------
# Deterministic parameter construction (mimics nn.Conv2d default init shapes)
# ----------------------------------------------------------------------------
def _init_conv(key, cout, cin, k):
    wkey, bkey = jax.random.split(key)
    bound = 1.0 / np.sqrt(cin * k * k)
    w = jax.random.uniform(wkey, (cout, cin, k, k), jnp.float32, -bound, bound)
    b = jax.random.uniform(bkey, (cout,), jnp.float32, -bound, bound)
    return w, b


def init_params(key, downsample_layers, num_residual_blocks, upsample_layers):
    params = {"down": [], "res": [], "up": []}
    config = {"down": [], "up": []}
    cnt = [0]

    def next_key():
        cnt[0] += 1
        return jax.random.fold_in(key, cnt[0])

    # down path: Conv(k, s) + InstanceNorm + ReLU
    for i in range(1, len(downsample_layers)):
        cin, k, s = downsample_layers[i - 1]
        cout = downsample_layers[i][0]
        w, b = _init_conv(next_key(), cout, cin, k)
        params["down"].append(dict(w=w, b=b,
                                   gamma=jnp.ones((cout,), jnp.float32),
                                   beta=jnp.zeros((cout,), jnp.float32)))
        config["down"].append(dict(k=k, s=s))

    # residual blocks (InstanceNorm variant; batch_norm=False default)
    ch = upsample_layers[0][0]
    for _ in range(num_residual_blocks):
        blk = []
        for _ in range(2):
            w, b = _init_conv(next_key(), ch, ch, 3)
            blk.append(dict(w=w, b=b,
                            gamma=jnp.ones((ch,), jnp.float32),
                            beta=jnp.zeros((ch,), jnp.float32)))
        params["res"].append(blk)

    # up path: Upsample+Conv+IN+ReLU, final layer is a plain conv (no upsample/norm/relu)
    for i in range(1, len(upsample_layers)):
        cin, k = upsample_layers[i - 1][0], upsample_layers[i - 1][1]
        cout = upsample_layers[i][0]
        w, b = _init_conv(next_key(), cout, cin, k)
        if i < len(upsample_layers) - 1:
            params["up"].append(dict(w=w, b=b,
                                     gamma=jnp.ones((cout,), jnp.float32),
                                     beta=jnp.zeros((cout,), jnp.float32)))
            config["up"].append(dict(k=k, upsample=upsample_layers[i - 1][2], norm=True))
        else:
            params["up"].append(dict(w=w, b=b))
            config["up"].append(dict(k=k, upsample=None, norm=False))
    return params, config


# ----------------------------------------------------------------------------
# Full DeepStyleX forward (batch_norm=False / InstanceNorm path, default config)
# ----------------------------------------------------------------------------
# TODO(synk): batch_norm=True variant (nn.BatchNorm2d with batch statistics) is not exercised
#             by the default config and is not implemented here.
def deepstylex_forward(params, x_nchw, *, config):
    y = jnp.transpose(x_nchw, (0, 2, 3, 1)).astype(jnp.bfloat16)   # NCHW -> NHWC, bf16

    # down layers: Conv -> InstanceNorm -> ReLU
    for p, c in zip(params["down"], config["down"]):
        y = conv_block(y, p["w"], p["b"], kernel_size=c["k"], stride=c["s"],
                       gamma=p["gamma"], beta=p["beta"], relu=True)

    # residual blocks: IN(conv) -> ReLU -> IN(conv) + x
    for blk in params["res"]:
        p1, p2 = blk
        h = conv_block(y, p1["w"], p1["b"], kernel_size=3, stride=1,
                       gamma=p1["gamma"], beta=p1["beta"], relu=True)
        y = conv_block(h, p2["w"], p2["b"], kernel_size=3, stride=1,
                       gamma=p2["gamma"], beta=p2["beta"], relu=False, residual=y)

    # up layers: (nearest upsample ->) Conv -> [IN -> ReLU]; final conv is plain, Cout padded
    for p, c in zip(params["up"], config["up"]):
        if c["norm"]:
            y = conv_block(y, p["w"], p["b"], kernel_size=c["k"], stride=1,
                           upsample=c["upsample"],
                           gamma=p["gamma"], beta=p["beta"], relu=True)
        else:
            y = conv_block(y, p["w"], p["b"], kernel_size=c["k"], stride=1,
                           upsample=c["upsample"],
                           out_dtype=jnp.float32, pad_cout_to=128)

    return jnp.transpose(y, (0, 3, 1, 2)).astype(jnp.float32)      # NHWC -> NCHW


if __name__ == "__main__":
    # Default DeepStyleX config
    downsample_layers = [(3, 9, 1), (32, 3, 2), (64, 3, 2), (128,)]
    upsample_layers = [(128, 3, 2), (64, 3, 2), (32, 9, 2), (3,)]
    num_residual_blocks = 5

    params, config = init_params(jax.random.PRNGKey(42),
                                 downsample_layers, num_residual_blocks, upsample_layers)

    # Small deterministic input: batch=2, RGB, 16x16 (NCHW like the PyTorch module)
    x = jax.random.normal(jax.random.PRNGKey(0), (2, 3, 16, 16), jnp.float32)

    fwd = jax.jit(functools.partial(deepstylex_forward, config=config))
    out = jax.block_until_ready(fwd(params, x))

    assert out.shape == (2, 3, 16, 16), out.shape
    assert bool(jnp.all(jnp.isfinite(out)))
    print("KERNEL_OK")
</pallas_src>

<mosaic_0001>
module attributes {stable_mosaic.version = 11 : i64} {
  func.func @kernel(%arg0: i32, %arg1: i32, %arg2: memref<1x256x256xbf16, #tpu.memory_space<vmem>>, %arg3: memref<256x32xbf16, #tpu.memory_space<vmem>>, %arg4: memref<1x32xf32, #tpu.memory_space<vmem>>, %arg5: memref<1x256x32xbf16, #tpu.memory_space<vmem>>, %arg6: memref<1x2x32xf32, #tpu.memory_space<vmem>>) attributes {dimension_semantics = [#tpu.dimension_semantics<parallel>, #tpu.dimension_semantics<arbitrary>], iteration_bounds = array<i64: 2, 1>, scalar_prefetch = 0 : i64, scratch_operands = 0 : i64, tpu.core_type = #tpu.core_type<tc>, window_params = [{transform_indices = @transform_0, window_bounds = array<i64: 1, 256, 256>}, {pipeline_mode = #tpu.pipeline_mode<synchronous>, transform_indices = @transform_1, window_bounds = array<i64: 256, 32>}, {pipeline_mode = #tpu.pipeline_mode<synchronous>, transform_indices = @transform_2, window_bounds = array<i64: 1, 32>}, {transform_indices = @transform_3, window_bounds = array<i64: 1, 256, 32>}, {transform_indices = @transform_4, window_bounds = array<i64: 1, 2, 32>}]} {
    %c0 = arith.constant 0 : index
    %c0_0 = arith.constant 0 : index
    %c0_1 = arith.constant 0 : index
    %0 = vector.load %arg2[%c0, %c0_0, %c0_1] : memref<1x256x256xbf16, #tpu.memory_space<vmem>>, vector<1x256x256xbf16>
    %1 = vector.shape_cast %0 : vector<1x256x256xbf16> to vector<256x256xbf16>
    %c0_2 = arith.constant 0 : index
    %c0_3 = arith.constant 0 : index
    %2 = vector.load %arg3[%c0_2, %c0_3] : memref<256x32xbf16, #tpu.memory_space<vmem>>, vector<256x32xbf16>
    %cst = arith.constant dense<0.000000e+00> : vector<256x32xf32>
    %3 = tpu.matmul %1, %2, %cst {dimension_numbers = #tpu.dot_dimension_numbers<[1], [0], [0], [1], [0, 0, 1, 1], [], []>} : vector<256x256xbf16>, vector<256x32xbf16>, vector<256x32xf32> -> vector<256x32xf32>
    %c0_4 = arith.constant 0 : index
    %c0_5 = arith.constant 0 : index
    %4 = vector.load %arg4[%c0_4, %c0_5] : memref<1x32xf32, #tpu.memory_space<vmem>>, vector<1x32xf32>
    %5 = vector.broadcast %4 : vector<1x32xf32> to vector<256x32xf32>
    %6 = arith.addf %3, %5 : vector<256x32xf32>
    %7 = arith.truncf %6 : vector<256x32xf32> to vector<256x32xbf16>
    %c0_6 = arith.constant 0 : index
    %c0_7 = arith.constant 0 : index
    %c0_8 = arith.constant 0 : index
    %8 = vector.load %arg5[%c0_6, %c0_7, %c0_8] : memref<1x256x32xbf16, #tpu.memory_space<vmem>>, vector<1x256x32xbf16>
    %9 = vector.shape_cast %8 : vector<1x256x32xbf16> to vector<256x32xbf16>
    %10 = vector.shape_cast %7 : vector<256x32xbf16> to vector<1x256x32xbf16>
    tpu.vector_store %arg5[%c0_6, %c0_7, %c0_8], %10 {strides = array<i32>} : memref<1x256x32xbf16, #tpu.memory_space<vmem>>, vector<1x256x32xbf16>,
    %c0_i32 = arith.constant 0 : i32
    %11 = arith.cmpi eq, %arg1, %c0_i32 : i32
    %12 = arith.extui %11 : i1 to i32
    %c0_i32_9 = arith.constant 0 : i32
    %13 = arith.cmpi ne, %12, %c0_i32_9 : i32
    scf.if %13 {
      %cst_18 = arith.constant 0.000000e+00 : f32
      %26 = vector.broadcast %cst_18 : f32 to vector<1x2x32xf32>
      %c0_19 = arith.constant 0 : index
      %c0_20 = arith.constant 0 : index
      %c0_21 = arith.constant 0 : index
      %27 = vector.load %arg6[%c0_19, %c0_20, %c0_21] : memref<1x2x32xf32, #tpu.memory_space<vmem>>, vector<1x2x32xf32>
      tpu.vector_store %arg6[%c0_19, %c0_20, %c0_21], %26 {strides = array<i32>} : memref<1x2x32xf32, #tpu.memory_space<vmem>>, vector<1x2x32xf32>,
    } else {
    }
    %cst_10 = arith.constant dense<0.000000e+00> : vector<32xf32>
    %14 = vector.multi_reduction <add>, %6, %cst_10 [0] : vector<256x32xf32> to vector<32xf32>
    %15 = vector.shape_cast %14 : vector<32xf32> to vector<1x32xf32>
    %16 = arith.mulf %6, %6 : vector<256x32xf32>
    %cst_11 = arith.constant dense<0.000000e+00> : vector<32xf32>
    %17 = vector.multi_reduction <add>, %16, %cst_11 [0] : vector<256x32xf32> to vector<32xf32>
    %18 = vector.shape_cast %17 : vector<32xf32> to vector<1x32xf32>
    %c0_12 = arith.constant 0 : index
    %c0_13 = arith.constant 0 : index
    %c0_14 = arith.constant 0 : index
    %19 = vector.load %arg6[%c0_12, %c0_13, %c0_14] : memref<1x2x32xf32, #tpu.memory_space<vmem>>, vector<1x2x32xf32>
    %20 = vector.shape_cast %19 : vector<1x2x32xf32> to vector<2x32xf32>
    %21 = tpu.concatenate %15, %18 in 0 : vector<1x32xf32>, vector<1x32xf32> -> vector<2x32xf32>
    %22 = arith.addf %20, %21 : vector<2x32xf32>
    %c0_15 = arith.constant 0 : index
    %c0_16 = arith.constant 0 : index
    %c0_17 = arith.constant 0 : index
    %23 = vector.load %arg6[%c0_15, %c0_16, %c0_17] : memref<1x2x32xf32, #tpu.memory_space<vmem>>, vector<1x2x32xf32>
    %24 = vector.shape_cast %23 : vector<1x2x32xf32> to vector<2x32xf32>
    %25 = vector.shape_cast %22 : vector<2x32xf32> to vector<1x2x32xf32>
    tpu.vector_store %arg6[%c0_15, %c0_16, %c0_17], %25 {strides = array<i32>} : memref<1x2x32xf32, #tpu.memory_space<vmem>>, vector<1x2x32xf32>,
    return
  }
  func.func @transform_0(%arg0: i32, %arg1: i32) -> (i32, i32, i32) {
    %c0_i32 = arith.constant 0 : i32
    %c0_i32_0 = arith.constant 0 : i32
    return %arg0, %arg1, %c0_i32 : i32, i32, i32
  }
  func.func @transform_1(%arg0: i32, %arg1: i32) -> (i32, i32) {
    %c0_i32 = arith.constant 0 : i32
    %c0_i32_0 = arith.constant 0 : i32
    %c0_i32_1 = arith.constant 0 : i32
    return %c0_i32, %c0_i32_0 : i32, i32
  }
  func.func @transform_2(%arg0: i32, %arg1: i32) -> (i32, i32) {
    %c0_i32 = arith.constant 0 : i32
    %c0_i32_0 = arith.constant 0 : i32
    %c0_i32_1 = arith.constant 0 : i32
    return %c0_i32, %c0_i32_0 : i32, i32
  }
  func.func @transform_3(%arg0: i32, %arg1: i32) -> (i32, i32, i32) {
    %c0_i32 = arith.constant 0 : i32
    %c0_i32_0 = arith.constant 0 : i32
    return %arg0, %arg1, %c0_i32 : i32, i32, i32
  }
  func.func @transform_4(%arg0: i32, %arg1: i32) -> (i32, i32, i32) {
    %c0_i32 = arith.constant 0 : i32
    %c0_i32_0 = arith.constant 0 : i32
    %c0_i32_1 = arith.constant 0 : i32
    return %arg0, %c0_i32, %c0_i32_0 : i32, i32, i32
  }
}

module attributes {stable_mosaic.version = 11 : i64} {
  func.func @kernel(%arg0: i32, %arg1: i32, %arg2: memref<1x256x32xbf16, #tpu.memory_space<vmem>>, %arg3: memref<1x2x32xf32, #tpu.memory_space<vmem>>, %arg4: memref<1x32xf32, #tpu.memory_space<vmem>>, %arg5: memref<1x32xf32, #tpu.memory_space<vmem>>, %arg6: memref<1x256x32xbf16, #tpu.memory_space<vmem>>) attributes {dimension_semantics = [#tpu.dimension_semantics<parallel>, #tpu.dimension_semantics<parallel>], iteration_bounds = array<i64: 2, 1>, scalar_prefetch = 0 : i64, scratch_operands = 0 : i64, tpu.core_type = #tpu.core_type<tc>, window_params = [{transform_indices = @transform_0, window_bounds = array<i64: 1, 256, 32>}, {transform_indices = @transform_1, window_bounds = array<i64: 1, 2, 32>}, {pipeline_mode = #tpu.pipeline_mode<synchronous>, transform_indices = @transform_2, window_bounds = array<i64: 1, 32>}, {pipeline_mode = #tpu.pipeline_mode<synchronous>, transform_indices = @transform_3, window_bounds = array<i64: 1, 32>}, {transform_indices = @transform_4, window_bounds = array<i64: 1, 256, 32>}]} {
    %c0 = arith.constant 0 : index
    %c0_0 = arith.constant 0 : index
    %c0_1 = arith.constant 0 : index
    %0 = vector.load %arg2[%c0, %c0_0, %c0_1] : memref<1x256x32xbf16, #tpu.memory_space<vmem>>, vector<1x256x32xbf16>
    %1 = vector.shape_cast %0 : vector<1x256x32xbf16> to vector<256x32xbf16>
    %2 = arith.extf %1 : vector<256x32xbf16> to vector<256x32xf32>
    %c0_2 = arith.constant 0 : index
    %c0_3 = arith.constant 0 : index
    %c0_4 = arith.constant 0 : index
    %3 = vector.load %arg3[%c0_2, %c0_3, %c0_4] : memref<1x2x32xf32, #tpu.memory_space<vmem>>, vector<1x2x32xf32>
    %4 = vector.shape_cast %3 : vector<1x2x32xf32> to vector<2x32xf32>
    %5 = vector.extract_strided_slice %4 {offsets = [0, 0], sizes = [1, 32], strides = [1, 1]} : vector<2x32xf32> to vector<1x32xf32>
    %cst = arith.constant 3.906250e-03 : f32
    %6 = vector.broadcast %cst : f32 to vector<1x32xf32>
    %7 = arith.mulf %5, %6 : vector<1x32xf32>
    %8 = vector.extract_strided_slice %4 {offsets = [1, 0], sizes = [1, 32], strides = [1, 1]} : vector<2x32xf32> to vector<1x32xf32>
    %cst_5 = arith.constant 3.906250e-03 : f32
    %9 = vector.broadcast %cst_5 : f32 to vector<1x32xf32>
    %10 = arith.mulf %8, %9 : vector<1x32xf32>
    %11 = arith.mulf %7, %7 : vector<1x32xf32>
    %12 = arith.subf %10, %11 : vector<1x32xf32>
    %cst_6 = arith.constant 0.000000e+00 : f32
    %13 = vector.broadcast %cst_6 : f32 to vector<1x32xf32>
    %14 = arith.maximumf %12, %13 : vector<1x32xf32>
    %cst_7 = arith.constant 9.99999974E-6 : f32
    %15 = vector.broadcast %cst_7 : f32 to vector<1x32xf32>
    %16 = arith.addf %14, %15 : vector<1x32xf32>
    %17 = math.rsqrt %16 : vector<1x32xf32>
    %c0_8 = arith.constant 0 : index
    %c0_9 = arith.constant 0 : index
    %18 = vector.load %arg4[%c0_8, %c0_9] : memref<1x32xf32, #tpu.memory_space<vmem>>, vector<1x32xf32>
    %19 = arith.mulf %17, %18 : vector<1x32xf32>
    %20 = vector.broadcast %7 : vector<1x32xf32> to vector<256x32xf32>
    %21 = arith.subf %2, %20 : vector<256x32xf32>
    %22 = vector.broadcast %19 : vector<1x32xf32> to vector<256x32xf32>
    %23 = arith.mulf %21, %22 : vector<256x32xf32>
    %c0_10 = arith.constant 0 : index
    %c0_11 = arith.constant 0 : index
    %24 = vector.load %arg5[%c0_10, %c0_11] : memref<1x32xf32, #tpu.memory_space<vmem>>, vector<1x32xf32>
    %25 = vector.broadcast %24 : vector<1x32xf32> to vector<256x32xf32>
    %26 = arith.addf %23, %25 : vector<256x32xf32>
    %cst_12 = arith.constant 0.000000e+00 : f32
    %27 = vector.broadcast %cst_12 : f32 to vector<256x32xf32>
    %28 = arith.maximumf %26, %27 : vector<256x32xf32>
    %29 = arith.truncf %28 : vector<256x32xf32> to vector<256x32xbf16>
    %c0_13 = arith.constant 0 : index
    %c0_14 = arith.constant 0 : index
    %c0_15 = arith.constant 0 : index
    %30 = vector.load %arg6[%c0_13, %c0_14, %c0_15] : memref<1x256x32xbf16, #tpu.memory_space<vmem>>, vector<1x256x32xbf16>
    %31 = vector.shape_cast %30 : vector<1x256x32xbf16> to vector<256x32xbf16>
    %32 = vector.shape_cast %29 : vector<256x32xbf16> to vector<1x256x32xbf16>
    tpu.vector_store %arg6[%c0_13, %c0_14, %c0_15], %32 {strides = array<i32>} : memref<1x256x32xbf16, #tpu.memory_space<vmem>>, vector<1x256x32xbf16>,
    return
  }
  func.func @transform_0(%arg0: i32, %arg1: i32) -> (i32, i32, i32) {
    %c0_i32 = arith.constant 0 : i32
    %c0_i32_0 = arith.constant 0 : i32
    return %arg0, %arg1, %c0_i32 : i32, i32, i32
  }
  func.func @transform_1(%arg0: i32, %arg1: i32) -> (i32, i32, i32) {
    %c0_i32 = arith.constant 0 : i32
    %c0_i32_0 = arith.constant 0 : i32
    %c0_i32_1 = arith.constant 0 : i32
    return %arg0, %c0_i32, %c0_i32_0 : i32, i32, i32
  }
  func.func @transform_2(%arg0: i32, %arg1: i32) -> (i32, i32) {
    %c0_i32 = arith.constant 0 : i32
    %c0_i32_0 = arith.constant 0 : i32
    %c0_i32_1 = arith.constant 0 : i32
    return %c0_i32, %c0_i32_0 : i32, i32
  }
  func.func @transform_3(%arg0: i32, %arg1: i32) -> (i32, i32) {
    %c0_i32 = arith.constant 0 : i32
    %c0_i32_0 = arith.constant 0 : i32
    %c0_i32_1 = arith.constant 0 : i32
    return %c0_i32, %c0_i32_0 : i32, i32
  }
  func.func @transform_4(%arg0: i32, %arg1: i32) -> (i32, i32, i32) {
    %c0_i32 = arith.constant 0 : i32
    %c0_i32_0 = arith.constant 0 : i32
    return %arg0, %arg1, %c0_i32 : i32, i32, i32
  }
}

module attributes {stable_mosaic.version = 11 : i64} {
  func.func @kernel(%arg0: i32, %arg1: i32, %arg2: memref<1x64x288xbf16, #tpu.memory_space<vmem>>, %arg3: memref<288x64xbf16, #tpu.memory_space<vmem>>, %arg4: memref<1x64xf32, #tpu.memory_space<vmem>>, %arg5: memref<1x64x64xbf16, #tpu.memory_space<vmem>>, %arg6: memref<1x2x64xf32, #tpu.memory_space<vmem>>) attributes {dimension_semantics = [#tpu.dimension_semantics<parallel>, #tpu.dimension_semantics<arbitrary>], iteration_bounds = array<i64: 2, 1>, scalar_prefetch = 0 : i64, scratch_operands = 0 : i64, tpu.core_type = #tpu.core_type<tc>, window_params = [{transform_indices = @transform_0, window_bounds = array<i64: 1, 64, 288>}, {pipeline_mode = #tpu.pipeline_mode<synchronous>, transform_indices = @transform_1, window_bounds = array<i64: 288, 64>}, {pipeline_mode = #tpu.pipeline_mode<synchronous>, transform_indices = @transform_2, window_bounds = array<i64: 1, 64>}, {transform_indices = @transform_3, window_bounds = array<i64: 1, 64, 64>}, {transform_indices = @transform_4, window_bounds = array<i64: 1, 2, 64>}]} {
    %c0 = arith.constant 0 : index
    %c0_0 = arith.constant 0 : index
    %c0_1 = arith.constant 0 : index
    %0 = vector.load %arg2[%c0, %c0_0, %c0_1] : memref<1x64x288xbf16, #tpu.memory_space<vmem>>, vector<1x64x288xbf16>
    %1 = vector.shape_cast %0 : vector<1x64x288xbf16> to vector<64x288xbf16>
    %c0_2 = arith.constant 0 : index
    %c0_3 = arith.constant 0 : index
    %2 = vector.load %arg3[%c0_2, %c0_3] : memref<288x64xbf16, #tpu.memory_space<vmem>>, vector<288x64xbf16>
    %cst = arith.constant dense<0.000000e+00> : vector<64x64xf32>
    %3 = tpu.matmul %1, %2, %cst {dimension_numbers = #tpu.dot_dimension_numbers<[1], [0], [0], [1], [0, 0, 1, 1], [], []>} : vector<64x288xbf16>, vector<288x64xbf16>, vector<64x64xf32> -> vector<64x64xf32>
    %c0_4 = arith.constant 0 : index
    %c0_5 = arith.constant 0 : index
    %4 = vector.load %arg4[%c0_4, %c0_5] : memref<1x64xf32, #tpu.memory_space<vmem>>, vector<1x64xf32>
    %5 = vector.broadcast %4 : vector<1x64xf32> to vector<64x64xf32>
    %6 = arith.addf %3, %5 : vector<64x64xf32>
    %7 = arith.truncf %6 : vector<64x64xf32> to vector<64x64xbf16>
    %c0_6 = arith.constant 0 : index
    %c0_7 = arith.constant 0 : index
    %c0_8 = arith.constant 0 : index
    %8 = vector.load %arg5[%c0_6, %c0_7, %c0_8] : memref<1x64x64xbf16, #tpu.memory_space<vmem>>, vector<1x64x64xbf16>
    %9 = vector.shape_cast %8 : vector<1x64x64xbf16> to vector<64x64xbf16>
    %10 = vector.shape_cast %7 : vector<64x64xbf16> to vector<1x64x64xbf16>
    tpu.vector_store %arg5[%c0_6, %c0_7, %c0_8], %10 {strides = array<i32>} : memref<1x64x64xbf16, #tpu.memory_space<vmem>>, vector<1x64x64xbf16>,
    %c0_i32 = arith.constant 0 : i32
    %11 = arith.cmpi eq, %arg1, %c0_i32 : i32
    %12 = arith.extui %11 : i1 to i32
    %c0_i32_9 = arith.constant 0 : i32
    %13 = arith.cmpi ne, %12, %c0_i32_9 : i32
    scf.if %13 {
      %cst_18 = arith.constant 0.000000e+00 : f32
      %26 = vector.broadcast %cst_18 : f32 to vector<1x2x64xf32>
      %c0_19 = arith.constant 0 : index
      %c0_20 = arith.constant 0 : index
      %c0_21 = arith.constant 0 : index
      %27 = vector.load %arg6[%c0_19, %c0_20, %c0_21] : memref<1x2x64xf32, #tpu.memory_space<vmem>>, vector<1x2x64xf32>
      tpu.vector_store %arg6[%c0_19, %c0_20, %c0_21], %26 {strides = array<i32>} : memref<1x2x64xf32, #tpu.memory_space<vmem>>, vector<1x2x64xf32>,
    } else {
    }
    %cst_10 = arith.constant dense<0.000000e+00> : vector<64xf32>
    %14 = vector.multi_reduction <add>, %6, %cst_10 [0] : vector<64x64xf32> to vector<64xf32>
    %15 = vector.shape_cast %14 : vector<64xf32> to vector<1x64xf32>
    %16 = arith.mulf %6, %6 : vector<64x64xf32>
    %cst_11 = arith.constant dense<0.000000e+00> : vector<64xf32>
    %17 = vector.multi_reduction <add>, %16, %cst_11 [0] : vector<64x64xf32> to vector<64xf32>
    %18 = vector.shape_cast %17 : vector<64xf32> to vector<1x64xf32>
    %c0_12 = arith.constant 0 : index
    %c0_13 = arith.constant 0 : index
    %c0_14 = arith.constant 0 : index
    %19 = vector.load %arg6[%c0_12, %c0_13, %c0_14] : memref<1x2x64xf32, #tpu.memory_space<vmem>>, vector<1x2x64xf32>
    %20 = vector.shape_cast %19 : vector<1x2x64xf32> to vector<2x64xf32>
    %21 = tpu.concatenate %15, %18 in 0 : vector<1x64xf32>, vector<1x64xf32> -> vector<2x64xf32>
    %22 = arith.addf %20, %21 : vector<2x64xf32>
    %c0_15 = arith.constant 0 : index
    %c0_16 = arith.constant 0 : index
    %c0_17 = arith.constant 0 : index
    %23 = vector.load %arg6[%c0_15, %c0_16, %c0_17] : memref<1x2x64xf32, #tpu.memory_space<vmem>>, vector<1x2x64xf32>
    %24 = vector.shape_cast %23 : vector<1x2x64xf32> to vector<2x64xf32>
    %25 = vector.shape_cast %22 : vector<2x64xf32> to vector<1x2x64xf32>
    tpu.vector_store %arg6[%c0_15, %c0_16, %c0_17], %25 {strides = array<i32>} : memref<1x2x64xf32, #tpu.memory_space<vmem>>, vector<1x2x64xf32>,
    return
  }
  func.func @transform_0(%arg0: i32, %arg1: i32) -> (i32, i32, i32) {
    %c0_i32 = arith.constant 0 : i32
    %c0_i32_0 = arith.constant 0 : i32
    return %arg0, %arg1, %c0_i32 : i32, i32, i32
  }
  func.func @transform_1(%arg0: i32, %arg1: i32) -> (i32, i32) {
    %c0_i32 = arith.constant 0 : i32
    %c0_i32_0 = arith.constant 0 : i32
    %c0_i32_1 = arith.constant 0 : i32
    return %c0_i32, %c0_i32_0 : i32, i32
  }
  func.func @transform_2(%arg0: i32, %arg1: i32) -> (i32, i32) {
    %c0_i32 = arith.constant 0 : i32
    %c0_i32_0 = arith.constant 0 : i32
    %c0_i32_1 = arith.constant 0 : i32
    return %c0_i32, %c0_i32_0 : i32, i32
  }
  func.func @transform_3(%arg0: i32, %arg1: i32) -> (i32, i32, i32) {
    %c0_i32 = arith.constant 0 : i32
    %c0_i32_0 = arith.constant 0 : i32
    return %arg0, %arg1, %c0_i32 : i32, i32, i32
  }
  func.func @transform_4(%arg0: i32, %arg1: i32) -> (i32, i32, i32) {
    %c0_i32 = arith.constant 0 : i32
    %c0_i32_0 = arith.constant 0 : i32
    %c0_i32_1 = arith.constant 0 : i32
    return %arg0, %c0_i32, %c0_i32_0 : i32, i32, i32
  }
}

module attributes {stable_mosaic.version = 11 : i64} {
  func.func @kernel(%arg0: i32, %arg1: i32, %arg2: memref<1x64x64xbf16, #tpu.memory_space<vmem>>, %arg3: memref<1x2x64xf32, #tpu.memory_space<vmem>>, %arg4: memref<1x64xf32, #tpu.memory_space<vmem>>, %arg5: memref<1x64xf32, #tpu.memory_space<vmem>>, %arg6: memref<1x64x64xbf16, #tpu.memory_space<vmem>>) attributes {dimension_semantics = [#tpu.dimension_semantics<parallel>, #tpu.dimension_semantics<parallel>], iteration_bounds = array<i64: 2, 1>, scalar_prefetch = 0 : i64, scratch_operands = 0 : i64, tpu.core_type = #tpu.core_type<tc>, window_params = [{transform_indices = @transform_0, window_bounds = array<i64: 1, 64, 64>}, {transform_indices = @transform_1, window_bounds = array<i64: 1, 2, 64>}, {pipeline_mode = #tpu.pipeline_mode<synchronous>, transform_indices = @transform_2, window_bounds = array<i64: 1, 64>}, {pipeline_mode = #tpu.pipeline_mode<synchronous>, transform_indices = @transform_3, window_bounds = array<i64: 1, 64>}, {transform_indices = @transform_4, window_bounds = array<i64: 1, 64, 64>}]} {
    %c0 = arith.constant 0 : index
    %c0_0 = arith.constant 0 : index
    %c0_1 = arith.constant 0 : index
    %0 = vector.load %arg2[%c0, %c0_0, %c0_1] : memref<1x64x64xbf16, #tpu.memory_space<vmem>>, vector<1x64x64xbf16>
    %1 = vector.shape_cast %0 : vector<1x64x64xbf16> to vector<64x64xbf16>
    %2 = arith.extf %1 : vector<64x64xbf16> to vector<64x64xf32>
    %c0_2 = arith.constant 0 : index
    %c0_3 = arith.constant 0 : index
    %c0_4 = arith.constant 0 : index
    %3 = vector.load %arg3[%c0_2, %c0_3, %c0_4] : memref<1x2x64xf32, #tpu.memory_space<vmem>>, vector<1x2x64xf32>
    %4 = vector.shape_cast %3 : vector<1x2x64xf32> to vector<2x64xf32>
    %5 = vector.extract_strided_slice %4 {offsets = [0, 0], sizes = [1, 64], strides = [1, 1]} : vector<2x64xf32> to vector<1x64xf32>
    %cst = arith.constant 1.562500e-02 : f32
    %6 = vector.broadcast %cst : f32 to vector<1x64xf32>
    %7 = arith.mulf %5, %6 : vector<1x64xf32>
    %8 = vector.extract_strided_slice %4 {offsets = [1, 0], sizes = [1, 64], strides = [1, 1]} : vector<2x64xf32> to vector<1x64xf32>
    %cst_5 = arith.constant 1.562500e-02 : f32
    %9 = vector.broadcast %cst_5 : f32 to vector<1x64xf32>
    %10 = arith.mulf %8, %9 : vector<1x64xf32>
    %11 = arith.mulf %7, %7 : vector<1x64xf32>
    %12 = arith.subf %10, %11 : vector<1x64xf32>
    %cst_6 = arith.constant 0.000000e+00 : f32
    %13 = vector.broadcast %cst_6 : f32 to vector<1x64xf32>
    %14 = arith.maximumf %12, %13 : vector<1x64xf32>
    %cst_7 = arith.constant 9.99999974E-6 : f32
    %15 = vector.broadcast %cst_7 : f32 to vector<1x64xf32>
    %16 = arith.addf %14, %15 : vector<1x64xf32>
    %17 = math.rsqrt %16 : vector<1x64xf32>
    %c0_8 = arith.constant 0 : index
    %c0_9 = arith.constant 0 : index
    %18 = vector.load %arg4[%c0_8, %c0_9] : memref<1x64xf32, #tpu.memory_space<vmem>>, vector<1x64xf32>
    %19 = arith.mulf %17, %18 : vector<1x64xf32>
    %20 = vector.broadcast %7 : vector<1x64xf32> to vector<64x64xf32>
    %21 = arith.subf %2, %20 : vector<64x64xf32>
    %22 = vector.broadcast %19 : vector<1x64xf32> to vector<64x64xf32>
    %23 = arith.mulf %21, %22 : vector<64x64xf32>
    %c0_10 = arith.constant 0 : index
    %c0_11 = arith.constant 0 : index
    %24 = vector.load %arg5[%c0_10, %c0_11] : memref<1x64xf32, #tpu.memory_space<vmem>>, vector<1x64xf32>
    %25 = vector.broadcast %24 : vector<1x64xf32> to vector<64x64xf32>
    %26 = arith.addf %23, %25 : vector<64x64xf32>
    %cst_12 = arith.constant 0.000000e+00 : f32
    %27 = vector.broadcast %cst_12 : f32 to vector<64x64xf32>
    %28 = arith.maximumf %26, %27 : vector<64x64xf32>
    %29 = arith.truncf %28 : vector<64x64xf32> to vector<64x64xbf16>
    %c0_13 = arith.constant 0 : index
    %c0_14 = arith.constant 0 : index
    %c0_15 = arith.constant 0 : index
    %30 = vector.load %arg6[%c0_13, %c0_14, %c0_15] : memref<1x64x64xbf16, #tpu.memory_space<vmem>>, vector<1x64x64xbf16>
    %31 = vector.shape_cast %30 : vector<1x64x64xbf16> to vector<64x64xbf16>
    %32 = vector.shape_cast %29 : vector<64x64xbf16> to vector<1x64x64xbf16>
    tpu.vector_store %arg6[%c0_13, %c0_14, %c0_15], %32 {strides = array<i32>} : memref<1x64x64xbf16, #tpu.memory_space<vmem>>, vector<1x64x64xbf16>,
    return
  }
  func.func @transform_0(%arg0: i32, %arg1: i32) -> (i32, i32, i32) {
    %c0_i32 = arith.constant 0 : i32
    %c0_i32_0 = arith.constant 0 : i32
    return %arg0, %arg1, %c0_i32 : i32, i32, i32
  }
  func.func @transform_1(%arg0: i32, %arg1: i32) -> (i32, i32, i32) {
    %c0_i32 = arith.constant 0 : i32
    %c0_i32_0 = arith.constant 0 : i32
    %c0_i32_1 = arith.constant 0 : i32
    return %arg0, %c0_i32, %c0_i32_0 : i32, i32, i32
  }
  func.func @transform_2(%arg0: i32, %arg1: i32) -> (i32, i32) {
    %c0_i32 = arith.constant 0 : i32
    %c0_i32_0 = arith.constant 0 : i32
    %c0_i32_1 = arith.constant 0 : i32
    return %c0_i32, %c0_i32_0 : i32, i32
  }
  func.func @transform_3(%arg0: i32, %arg1: i32) -> (i32, i32) {
    %c0_i32 = arith.constant 0 : i32
    %c0_i32_0 = arith.constant 0 : i32
    %c0_i32_1 = arith.constant 0 : i32
    return %c0_i32, %c0_i32_0 : i32, i32
  }
  func.func @transform_4(%arg0: i32, %arg1: i32) -> (i32, i32, i32) {
    %c0_i32 = arith.constant 0 : i32
    %c0_i32_0 = arith.constant 0 : i32
    return %arg0, %arg1, %c0_i32 : i32, i32, i32
  }
}

module attributes {stable_mosaic.version = 11 : i64} {
  func.func @kernel(%arg0: i32, %arg1: i32, %arg2: memref<1x16x640xbf16, #tpu.memory_space<vmem>>, %arg3: memref<640x128xbf16, #tpu.memory_space<vmem>>, %arg4: memref<1x128xf32, #tpu.memory_space<vmem>>, %arg5: memref<1x16x128xbf16, #tpu.memory_space<vmem>>, %arg6: memref<1x2x128xf32, #tpu.memory_space<vmem>>) attributes {dimension_semantics = [#tpu.dimension_semantics<parallel>, #tpu.dimension_semantics<arbitrary>], iteration_bounds = array<i64: 2, 1>, scalar_prefetch = 0 : i64, scratch_operands = 0 : i64, tpu.core_type = #tpu.core_type<tc>, window_params = [{transform_indices = @transform_0, window_bounds = array<i64: 1, 16, 640>}, {pipeline_mode = #tpu.pipeline_mode<synchronous>, transform_indices = @transform_1, window_bounds = array<i64: 640, 128>}, {pipeline_mode = #tpu.pipeline_mode<synchronous>, transform_indices = @transform_2, window_bounds = array<i64: 1, 128>}, {transform_indices = @transform_3, window_bounds = array<i64: 1, 16, 128>}, {transform_indices = @transform_4, window_bounds = array<i64: 1, 2, 128>}]} {
    %c0 = arith.constant 0 : index
    %c0_0 = arith.constant 0 : index
    %c0_1 = arith.constant 0 : index
    %0 = vector.load %arg2[%c0, %c0_0, %c0_1] : memref<1x16x640xbf16, #tpu.memory_space<vmem>>, vector<1x16x640xbf16>
    %1 = vector.shape_cast %0 : vector<1x16x640xbf16> to vector<16x640xbf16>
    %c0_2 = arith.constant 0 : index
    %c0_3 = arith.constant 0 : index
    %2 = vector.load %arg3[%c0_2, %c0_3] : memref<640x128xbf16, #tpu.memory_space<vmem>>, vector<640x128xbf16>
    %cst = arith.constant dense<0.000000e+00> : vector<16x128xf32>
    %3 = tpu.matmul %1, %2, %cst {dimension_numbers = #tpu.dot_dimension_numbers<[1], [0], [0], [1], [0, 0, 1, 1], [], []>} : vector<16x640xbf16>, vector<640x128xbf16>, vector<16x128xf32> -> vector<16x128xf32>
    %c0_4 = arith.constant 0 : index
    %c0_5 = arith.constant 0 : index
    %4 = vector.load %arg4[%c0_4, %c0_5] : memref<1x128xf32, #tpu.memory_space<vmem>>, vector<1x128xf32>
    %5 = vector.broadcast %4 : vector<1x128xf32> to vector<16x128xf32>
    %6 = arith.addf %3, %5 : vector<16x128xf32>
    %7 = arith.truncf %6 : vector<16x128xf32> to vector<16x128xbf16>
    %c0_6 = arith.constant 0 : index
    %c0_7 = arith.constant 0 : index
    %c0_8 = arith.constant 0 : index
    %8 = vector.load %arg5[%c0_6, %c0_7, %c0_8] : memref<1x16x128xbf16, #tpu.memory_space<vmem>>, vector<1x16x128xbf16>
    %9 = vector.shape_cast %8 : vector<1x16x128xbf16> to vector<16x128xbf16>
    %10 = vector.shape_cast %7 : vector<16x128xbf16> to vector<1x16x128xbf16>
    tpu.vector_store %arg5[%c0_6, %c0_7, %c0_8], %10 {strides = array<i32>} : memref<1x16x128xbf16, #tpu.memory_space<vmem>>, vector<1x16x128xbf16>,
    %c0_i32 = arith.constant 0 : i32
    %11 = arith.cmpi eq, %arg1, %c0_i32 : i32
    %12 = arith.extui %11 : i1 to i32
    %c0_i32_9 = arith.constant 0 : i32
    %13 = arith.cmpi ne, %12, %c0_i32_9 : i32
    scf.if %13 {
      %cst_18 = arith.constant 0.000000e+00 : f32
      %26 = vector.broadcast %cst_18 : f32 to vector<1x2x128xf32>
      %c0_19 = arith.constant 0 : index
      %c0_20 = arith.constant 0 : index
      %c0_21 = arith.constant 0 : index
      %27 = vector.load %arg6[%c0_19, %c0_20, %c0_21] : memref<1x2x128xf32, #tpu.memory_space<vmem>>, vector<1x2x128xf32>
      tpu.vector_store %arg6[%c0_19, %c0_20, %c0_21], %26 {strides = array<i32>} : memref<1x2x128xf32, #tpu.memory_space<vmem>>, vector<1x2x128xf32>,
    } else {
    }
    %cst_10 = arith.constant dense<0.000000e+00> : vector<128xf32>
    %14 = vector.multi_reduction <add>, %6, %cst_10 [0] : vector<16x128xf32> to vector<128xf32>
    %15 = vector.shape_cast %14 : vector<128xf32> to vector<1x128xf32>
    %16 = arith.mulf %6, %6 : vector<16x128xf32>
    %cst_11 = arith.constant dense<0.000000e+00> : vector<128xf32>
    %17 = vector.multi_reduction <add>, %16, %cst_11 [0] : vector<16x128xf32> to vector<128xf32>
    %18 = vector.shape_cast %17 : vector<128xf32> to vector<1x128xf32>
    %c0_12 = arith.constant 0 : index
    %c0_13 = arith.constant 0 : index
    %c0_14 = arith.constant 0 : index
    %19 = vector.load %arg6[%c0_12, %c0_13, %c0_14] : memref<1x2x128xf32, #tpu.memory_space<vmem>>, vector<1x2x128xf32>
    %20 = vector.shape_cast %19 : vector<1x2x128xf32> to vector<2x128xf32>
    %21 = tpu.concatenate %15, %18 in 0 : vector<1x128xf32>, vector<1x128xf32> -> vector<2x128xf32>
    %22 = arith.addf %20, %21 : vector<2x128xf32>
    %c0_15 = arith.constant 0 : index
    %c0_16 = arith.constant 0 : index
    %c0_17 = arith.constant 0 : index
    %23 = vector.load %arg6[%c0_15, %c0_16, %c0_17] : memref<1x2x128xf32, #tpu.memory_space<vmem>>, vector<1x2x128xf32>
    %24 = vector.shape_cast %23 : vector<1x2x128xf32> to vector<2x128xf32>
    %25 = vector.shape_cast %22 : vector<2x128xf32> to vector<1x2x128xf32>
    tpu.vector_store %arg6[%c0_15, %c0_16, %c0_17], %25 {strides = array<i32>} : memref<1x2x128xf32, #tpu.memory_space<vmem>>, vector<1x2x128xf32>,
    return
  }
  func.func @transform_0(%arg0: i32, %arg1: i32) -> (i32, i32, i32) {
    %c0_i32 = arith.constant 0 : i32
    %c0_i32_0 = arith.constant 0 : i32
    return %arg0, %arg1, %c0_i32 : i32, i32, i32
  }
  func.func @transform_1(%arg0: i32, %arg1: i32) -> (i32, i32) {
    %c0_i32 = arith.constant 0 : i32
    %c0_i32_0 = arith.constant 0 : i32
    %c0_i32_1 = arith.constant 0 : i32
    return %c0_i32, %c0_i32_0 : i32, i32
  }
  func.func @transform_2(%arg0: i32, %arg1: i32) -> (i32, i32) {
    %c0_i32 = arith.constant 0 : i32
    %c0_i32_0 = arith.constant 0 : i32
    %c0_i32_1 = arith.constant 0 : i32
    return %c0_i32, %c0_i32_0 : i32, i32
  }
  func.func @transform_3(%arg0: i32, %arg1: i32) -> (i32, i32, i32) {
    %c0_i32 = arith.constant 0 : i32
    %c0_i32_0 = arith.constant 0 : i32
    return %arg0, %arg1, %c0_i32 : i32, i32, i32
  }
  func.func @transform_4(%arg0: i32, %arg1: i32) -> (i32, i32, i32) {
    %c0_i32 = arith.constant 0 : i32
    %c0_i32_0 = arith.constant 0 : i32
    %c0_i32_1 = arith.constant 0 : i32
    return %arg0, %c0_i32, %c0_i32_0 : i32, i32, i32
  }
}

module attributes {stable_mosaic.version = 11 : i64} {
  func.func @kernel(%arg0: i32, %arg1: i32, %arg2: memref<1x16x128xbf16, #tpu.memory_space<vmem>>, %arg3: memref<1x2x128xf32, #tpu.memory_space<vmem>>, %arg4: memref<1x128xf32, #tpu.memory_space<vmem>>, %arg5: memref<1x128xf32, #tpu.memory_space<vmem>>, %arg6: memref<1x16x128xbf16, #tpu.memory_space<vmem>>) attributes {dimension_semantics = [#tpu.dimension_semantics<parallel>, #tpu.dimension_semantics<parallel>], iteration_bounds = array<i64: 2, 1>, scalar_prefetch = 0 : i64, scratch_operands = 0 : i64, tpu.core_type = #tpu.core_type<tc>, window_params = [{transform_indices = @transform_0, window_bounds = array<i64: 1, 16, 128>}, {transform_indices = @transform_1, window_bounds = array<i64: 1, 2, 128>}, {pipeline_mode = #tpu.pipeline_mode<synchronous>, transform_indices = @transform_2, window_bounds = array<i64: 1, 128>}, {pipeline_mode = #tpu.pipeline_mode<synchronous>, transform_indices = @transform_3, window_bounds = array<i64: 1, 128>}, {transform_indices = @transform_4, window_bounds = array<i64: 1, 16, 128>}]} {
    %c0 = arith.constant 0 : index
    %c0_0 = arith.constant 0 : index
    %c0_1 = arith.constant 0 : index
    %0 = vector.load %arg2[%c0, %c0_0, %c0_1] : memref<1x16x128xbf16, #tpu.memory_space<vmem>>, vector<1x16x128xbf16>
    %1 = vector.shape_cast %0 : vector<1x16x128xbf16> to vector<16x128xbf16>
    %2 = arith.extf %1 : vector<16x128xbf16> to vector<16x128xf32>
    %c0_2 = arith.constant 0 : index
    %c0_3 = arith.constant 0 : index
    %c0_4 = arith.constant 0 : index
    %3 = vector.load %arg3[%c0_2, %c0_3, %c0_4] : memref<1x2x128xf32, #tpu.memory_space<vmem>>, vector<1x2x128xf32>
    %4 = vector.shape_cast %3 : vector<1x2x128xf32> to vector<2x128xf32>
    %5 = vector.extract_strided_slice %4 {offsets = [0, 0], sizes = [1, 128], strides = [1, 1]} : vector<2x128xf32> to vector<1x128xf32>
    %cst = arith.constant 6.250000e-02 : f32
    %6 = vector.broadcast %cst : f32 to vector<1x128xf32>
    %7 = arith.mulf %5, %6 : vector<1x128xf32>
    %8 = vector.extract_strided_slice %4 {offsets = [1, 0], sizes = [1, 128], strides = [1, 1]} : vector<2x128xf32> to vector<1x128xf32>
    %cst_5 = arith.constant 6.250000e-02 : f32
    %9 = vector.broadcast %cst_5 : f32 to vector<1x128xf32>
    %10 = arith.mulf %8, %9 : vector<1x128xf32>
    %11 = arith.mulf %7, %7 : vector<1x128xf32>
    %12 = arith.subf %10, %11 : vector<1x128xf32>
    %cst_6 = arith.constant 0.000000e+00 : f32
    %13 = vector.broadcast %cst_6 : f32 to vector<1x128xf32>
    %14 = arith.maximumf %12, %13 : vector<1x128xf32>
    %cst_7 = arith.constant 9.99999974E-6 : f32
    %15 = vector.broadcast %cst_7 : f32 to vector<1x128xf32>
    %16 = arith.addf %14, %15 : vector<1x128xf32>
    %17 = math.rsqrt %16 : vector<1x128xf32>
    %c0_8 = arith.constant 0 : index
    %c0_9 = arith.constant 0 : index
    %18 = vector.load %arg4[%c0_8, %c0_9] : memref<1x128xf32, #tpu.memory_space<vmem>>, vector<1x128xf32>
    %19 = arith.mulf %17, %18 : vector<1x128xf32>
    %20 = vector.broadcast %7 : vector<1x128xf32> to vector<16x128xf32>
    %21 = arith.subf %2, %20 : vector<16x128xf32>
    %22 = vector.broadcast %19 : vector<1x128xf32> to vector<16x128xf32>
    %23 = arith.mulf %21, %22 : vector<16x128xf32>
    %c0_10 = arith.constant 0 : index
    %c0_11 = arith.constant 0 : index
    %24 = vector.load %arg5[%c0_10, %c0_11] : memref<1x128xf32, #tpu.memory_space<vmem>>, vector<1x128xf32>
    %25 = vector.broadcast %24 : vector<1x128xf32> to vector<16x128xf32>
    %26 = arith.addf %23, %25 : vector<16x128xf32>
    %cst_12 = arith.constant 0.000000e+00 : f32
    %27 = vector.broadcast %cst_12 : f32 to vector<16x128xf32>
    %28 = arith.maximumf %26, %27 : vector<16x128xf32>
    %29 = arith.truncf %28 : vector<16x128xf32> to vector<16x128xbf16>
    %c0_13 = arith.constant 0 : index
    %c0_14 = arith.constant 0 : index
    %c0_15 = arith.constant 0 : index
    %30 = vector.load %arg6[%c0_13, %c0_14, %c0_15] : memref<1x16x128xbf16, #tpu.memory_space<vmem>>, vector<1x16x128xbf16>
    %31 = vector.shape_cast %30 : vector<1x16x128xbf16> to vector<16x128xbf16>
    %32 = vector.shape_cast %29 : vector<16x128xbf16> to vector<1x16x128xbf16>
    tpu.vector_store %arg6[%c0_13, %c0_14, %c0_15], %32 {strides = array<i32>} : memref<1x16x128xbf16, #tpu.memory_space<vmem>>, vector<1x16x128xbf16>,
    return
  }
  func.func @transform_0(%arg0: i32, %arg1: i32) -> (i32, i32, i32) {
    %c0_i32 = arith.constant 0 : i32
    %c0_i32_0 = arith.constant 0 : i32
    return %arg0, %arg1, %c0_i32 : i32, i32, i32
  }
  func.func @transform_1(%arg0: i32, %arg1: i32) -> (i32, i32, i32) {
    %c0_i32 = arith.constant 0 : i32
    %c0_i32_0 = arith.constant 0 : i32
    %c0_i32_1 = arith.constant 0 : i32
    return %arg0, %c0_i32, %c0_i32_0 : i32, i32, i32
  }
  func.func @transform_2(%arg0: i32, %arg1: i32) -> (i32, i32) {
    %c0_i32 = arith.constant 0 : i32
    %c0_i32_0 = arith.constant 0 : i32
    %c0_i32_1 = arith.constant 0 : i32
    return %c0_i32, %c0_i32_0 : i32, i32
  }
  func.func @transform_3(%arg0: i32, %arg1: i32) -> (i32, i32) {
    %c0_i32 = arith.constant 0 : i32
    %c0_i32_0 = arith.constant 0 : i32
    %c0_i32_1 = arith.constant 0 : i32
    return %c0_i32, %c0_i32_0 : i32, i32
  }
  func.func @transform_4(%arg0: i32, %arg1: i32) -> (i32, i32, i32) {
    %c0_i32 = arith.constant 0 : i32
    %c0_i32_0 = arith.constant 0 : i32
    return %arg0, %arg1, %c0_i32 : i32, i32, i32
  }
}

module attributes {stable_mosaic.version = 11 : i64} {
  func.func @kernel(%arg0: i32, %arg1: i32, %arg2: memref<1x16x1152xbf16, #tpu.memory_space<vmem>>, %arg3: memref<1152x128xbf16, #tpu.memory_space<vmem>>, %arg4: memref<1x128xf32, #tpu.memory_space<vmem>>, %arg5: memref<1x16x128xbf16, #tpu.memory_space<vmem>>, %arg6: memref<1x2x128xf32, #tpu.memory_space<vmem>>) attributes {dimension_semantics = [#tpu.dimension_semantics<parallel>, #tpu.dimension_semantics<arbitrary>], iteration_bounds = array<i64: 2, 1>, scalar_prefetch = 0 : i64, scratch_operands = 0 : i64, tpu.core_type = #tpu.core_type<tc>, window_params = [{transform_indices = @transform_0, window_bounds = array<i64: 1, 16, 1152>}, {pipeline_mode = #tpu.pipeline_mode<synchronous>, transform_indices = @transform_1, window_bounds = array<i64: 1152, 128>}, {pipeline_mode = #tpu.pipeline_mode<synchronous>, transform_indices = @transform_2, window_bounds = array<i64: 1, 128>}, {transform_indices = @transform_3, window_bounds = array<i64: 1, 16, 128>}, {transform_indices = @transform_4, window_bounds = array<i64: 1, 2, 128>}]} {
    %c0 = arith.constant 0 : index
    %c0_0 = arith.constant 0 : index
    %c0_1 = arith.constant 0 : index
    %0 = vector.load %arg2[%c0, %c0_0, %c0_1] : memref<1x16x1152xbf16, #tpu.memory_space<vmem>>, vector<1x16x1152xbf16>
    %1 = vector.shape_cast %0 : vector<1x16x1152xbf16> to vector<16x1152xbf16>
    %c0_2 = arith.constant 0 : index
    %c0_3 = arith.constant 0 : index
    %2 = vector.load %arg3[%c0_2, %c0_3] : memref<1152x128xbf16, #tpu.memory_space<vmem>>, vector<1152x128xbf16>
    %cst = arith.constant dense<0.000000e+00> : vector<16x128xf32>
    %3 = tpu.matmul %1, %2, %cst {dimension_numbers = #tpu.dot_dimension_numbers<[1], [0], [0], [1], [0, 0, 1, 1], [], []>} : vector<16x1152xbf16>, vector<1152x128xbf16>, vector<16x128xf32> -> vector<16x128xf32>
    %c0_4 = arith.constant 0 : index
    %c0_5 = arith.constant 0 : index
    %4 = vector.load %arg4[%c0_4, %c0_5] : memref<1x128xf32, #tpu.memory_space<vmem>>, vector<1x128xf32>
    %5 = vector.broadcast %4 : vector<1x128xf32> to vector<16x128xf32>
    %6 = arith.addf %3, %5 : vector<16x128xf32>
    %7 = arith.truncf %6 : vector<16x128xf32> to vector<16x128xbf16>
    %c0_6 = arith.constant 0 : index
    %c0_7 = arith.constant 0 : index
    %c0_8 = arith.constant 0 : index
    %8 = vector.load %arg5[%c0_6, %c0_7, %c0_8] : memref<1x16x128xbf16, #tpu.memory_space<vmem>>, vector<1x16x128xbf16>
    %9 = vector.shape_cast %8 : vector<1x16x128xbf16> to vector<16x128xbf16>
    %10 = vector.shape_cast %7 : vector<16x128xbf16> to vector<1x16x128xbf16>
    tpu.vector_store %arg5[%c0_6, %c0_7, %c0_8], %10 {strides = array<i32>} : memref<1x16x128xbf16, #tpu.memory_space<vmem>>, vector<1x16x128xbf16>,
    %c0_i32 = arith.constant 0 : i32
    %11 = arith.cmpi eq, %arg1, %c0_i32 : i32
    %12 = arith.extui %11 : i1 to i32
    %c0_i32_9 = arith.constant 0 : i32
    %13 = arith.cmpi ne, %12, %c0_i32_9 : i32
    scf.if %13 {
      %cst_18 = arith.constant 0.000000e+00 : f32
      %26 = vector.broadcast %cst_18 : f32 to vector<1x2x128xf32>
      %c0_19 = arith.constant 0 : index
      %c0_20 = arith.constant 0 : index
      %c0_21 = arith.constant 0 : index
      %27 = vector.load %arg6[%c0_19, %c0_20, %c0_21] : memref<1x2x128xf32, #tpu.memory_space<vmem>>, vector<1x2x128xf32>
      tpu.vector_store %arg6[%c0_19, %c0_20, %c0_21], %26 {strides = array<i32>} : memref<1x2x128xf32, #tpu.memory_space<vmem>>, vector<1x2x128xf32>,
    } else {
    }
    %cst_10 = arith.constant dense<0.000000e+00> : vector<128xf32>
    %14 = vector.multi_reduction <add>, %6, %cst_10 [0] : vector<16x128xf32> to vector<128xf32>
    %15 = vector.shape_cast %14 : vector<128xf32> to vector<1x128xf32>
    %16 = arith.mulf %6, %6 : vector<16x128xf32>
    %cst_11 = arith.constant dense<0.000000e+00> : vector<128xf32>
    %17 = vector.multi_reduction <add>, %16, %cst_11 [0] : vector<16x128xf32> to vector<128xf32>
    %18 = vector.shape_cast %17 : vector<128xf32> to vector<1x128xf32>
    %c0_12 = arith.constant 0 : index
    %c0_13 = arith.constant 0 : index
    %c0_14 = arith.constant 0 : index
    %19 = vector.load %arg6[%c0_12, %c0_13, %c0_14] : memref<1x2x128xf32, #tpu.memory_space<vmem>>, vector<1x2x128xf32>
    %20 = vector.shape_cast %19 : vector<1x2x128xf32> to vector<2x128xf32>
    %21 = tpu.concatenate %15, %18 in 0 : vector<1x128xf32>, vector<1x128xf32> -> vector<2x128xf32>
    %22 = arith.addf %20, %21 : vector<2x128xf32>
    %c0_15 = arith.constant 0 : index
    %c0_16 = arith.constant 0 : index
    %c0_17 = arith.constant 0 : index
    %23 = vector.load %arg6[%c0_15, %c0_16, %c0_17] : memref<1x2x128xf32, #tpu.memory_space<vmem>>, vector<1x2x128xf32>
    %24 = vector.shape_cast %23 : vector<1x2x128xf32> to vector<2x128xf32>
    %25 = vector.shape_cast %22 : vector<2x128xf32> to vector<1x2x128xf32>
    tpu.vector_store %arg6[%c0_15, %c0_16, %c0_17], %25 {strides = array<i32>} : memref<1x2x128xf32, #tpu.memory_space<vmem>>, vector<1x2x128xf32>,
    return
  }
  func.func @transform_0(%arg0: i32, %arg1: i32) -> (i32, i32, i32) {
    %c0_i32 = arith.constant 0 : i32
    %c0_i32_0 = arith.constant 0 : i32
    return %arg0, %arg1, %c0_i32 : i32, i32, i32
  }
  func.func @transform_1(%arg0: i32, %arg1: i32) -> (i32, i32) {
    %c0_i32 = arith.constant 0 : i32
    %c0_i32_0 = arith.constant 0 : i32
    %c0_i32_1 = arith.constant 0 : i32
    return %c0_i32, %c0_i32_0 : i32, i32
  }
  func.func @transform_2(%arg0: i32, %arg1: i32) -> (i32, i32) {
    %c0_i32 = arith.constant 0 : i32
    %c0_i32_0 = arith.constant 0 : i32
    %c0_i32_1 = arith.constant 0 : i32
    return %c0_i32, %c0_i32_0 : i32, i32
  }
  func.func @transform_3(%arg0: i32, %arg1: i32) -> (i32, i32, i32) {
    %c0_i32 = arith.constant 0 : i32
    %c0_i32_0 = arith.constant 0 : i32
    return %arg0, %arg1, %c0_i32 : i32, i32, i32
  }
  func.func @transform_4(%arg0: i32, %arg1: i32) -> (i32, i32, i32) {
    %c0_i32 = arith.constant 0 : i32
    %c0_i32_0 = arith.constant 0 : i32
    %c0_i32_1 = arith.constant 0 : i32
    return %arg0, %c0_i32, %c0_i32_0 : i32, i32, i32
  }
}

module attributes {stable_mosaic.version = 11 : i64} {
  func.func @kernel(%arg0: i32, %arg1: i32, %arg2: memref<1x16x128xbf16, #tpu.memory_space<vmem>>, %arg3: memref<1x2x128xf32, #tpu.memory_space<vmem>>, %arg4: memref<1x128xf32, #tpu.memory_space<vmem>>, %arg5: memref<1x128xf32, #tpu.memory_space<vmem>>, %arg6: memref<1x16x128xbf16, #tpu.memory_space<vmem>>, %arg7: memref<1x16x128xbf16, #tpu.memory_space<vmem>>) attributes {dimension_semantics = [#tpu.dimension_semantics<parallel>, #tpu.dimension_semantics<parallel>], iteration_bounds = array<i64: 2, 1>, scalar_prefetch = 0 : i64, scratch_operands = 0 : i64, tpu.core_type = #tpu.core_type<tc>, window_params = [{transform_indices = @transform_0, window_bounds = array<i64: 1, 16, 128>}, {transform_indices = @transform_1, window_bounds = array<i64: 1, 2, 128>}, {pipeline_mode = #tpu.pipeline_mode<synchronous>, transform_indices = @transform_2, window_bounds = array<i64: 1, 128>}, {pipeline_mode = #tpu.pipeline_mode<synchronous>, transform_indices = @transform_3, window_bounds = array<i64: 1, 128>}, {transform_indices = @transform_4, window_bounds = array<i64: 1, 16, 128>}, {transform_indices = @transform_5, window_bounds = array<i64: 1, 16, 128>}]} {
    %c0 = arith.constant 0 : index
    %c0_0 = arith.constant 0 : index
    %c0_1 = arith.constant 0 : index
    %0 = vector.load %arg2[%c0, %c0_0, %c0_1] : memref<1x16x128xbf16, #tpu.memory_space<vmem>>, vector<1x16x128xbf16>
    %1 = vector.shape_cast %0 : vector<1x16x128xbf16> to vector<16x128xbf16>
    %2 = arith.extf %1 : vector<16x128xbf16> to vector<16x128xf32>
    %c0_2 = arith.constant 0 : index
    %c0_3 = arith.constant 0 : index
    %c0_4 = arith.constant 0 : index
    %3 = vector.load %arg3[%c0_2, %c0_3, %c0_4] : memref<1x2x128xf32, #tpu.memory_space<vmem>>, vector<1x2x128xf32>
    %4 = vector.shape_cast %3 : vector<1x2x128xf32> to vector<2x128xf32>
    %5 = vector.extract_strided_slice %4 {offsets = [0, 0], sizes = [1, 128], strides = [1, 1]} : vector<2x128xf32> to vector<1x128xf32>
    %cst = arith.constant 6.250000e-02 : f32
    %6 = vector.broadcast %cst : f32 to vector<1x128xf32>
    %7 = arith.mulf %5, %6 : vector<1x128xf32>
    %8 = vector.extract_strided_slice %4 {offsets = [1, 0], sizes = [1, 128], strides = [1, 1]} : vector<2x128xf32> to vector<1x128xf32>
    %cst_5 = arith.constant 6.250000e-02 : f32
    %9 = vector.broadcast %cst_5 : f32 to vector<1x128xf32>
    %10 = arith.mulf %8, %9 : vector<1x128xf32>
    %11 = arith.mulf %7, %7 : vector<1x128xf32>
    %12 = arith.subf %10, %11 : vector<1x128xf32>
    %cst_6 = arith.constant 0.000000e+00 : f32
    %13 = vector.broadcast %cst_6 : f32 to vector<1x128xf32>
    %14 = arith.maximumf %12, %13 : vector<1x128xf32>
    %cst_7 = arith.constant 9.99999974E-6 : f32
    %15 = vector.broadcast %cst_7 : f32 to vector<1x128xf32>
    %16 = arith.addf %14, %15 : vector<1x128xf32>
    %17 = math.rsqrt %16 : vector<1x128xf32>
    %c0_8 = arith.constant 0 : index
    %c0_9 = arith.constant 0 : index
    %18 = vector.load %arg4[%c0_8, %c0_9] : memref<1x128xf32, #tpu.memory_space<vmem>>, vector<1x128xf32>
    %19 = arith.mulf %17, %18 : vector<1x128xf32>
    %20 = vector.broadcast %7 : vector<1x128xf32> to vector<16x128xf32>
    %21 = arith.subf %2, %20 : vector<16x128xf32>
    %22 = vector.broadcast %19 : vector<1x128xf32> to vector<16x128xf32>
    %23 = arith.mulf %21, %22 : vector<16x128xf32>
    %c0_10 = arith.constant 0 : index
    %c0_11 = arith.constant 0 : index
    %24 = vector.load %arg5[%c0_10, %c0_11] : memref<1x128xf32, #tpu.memory_space<vmem>>, vector<1x128xf32>
    %25 = vector.broadcast %24 : vector<1x128xf32> to vector<16x128xf32>
    %26 = arith.addf %23, %25 : vector<16x128xf32>
    %c0_12 = arith.constant 0 : index
    %c0_13 = arith.constant 0 : index
    %c0_14 = arith.constant 0 : index
    %27 = vector.load %arg6[%c0_12, %c0_13, %c0_14] : memref<1x16x128xbf16, #tpu.memory_space<vmem>>, vector<1x16x128xbf16>
    %28 = vector.shape_cast %27 : vector<1x16x128xbf16> to vector<16x128xbf16>
    %29 = arith.extf %28 : vector<16x128xbf16> to vector<16x128xf32>
    %30 = arith.addf %26, %29 : vector<16x128xf32>
    %31 = arith.truncf %30 : vector<16x128xf32> to vector<16x128xbf16>
    %c0_15 = arith.constant 0 : index
    %c0_16 = arith.constant 0 : index
    %c0_17 = arith.constant 0 : index
    %32 = vector.load %arg7[%c0_15, %c0_16, %c0_17] : memref<1x16x128xbf16, #tpu.memory_space<vmem>>, vector<1x16x128xbf16>
    %33 = vector.shape_cast %32 : vector<1x16x128xbf16> to vector<16x128xbf16>
    %34 = vector.shape_cast %31 : vector<16x128xbf16> to vector<1x16x128xbf16>
    tpu.vector_store %arg7[%c0_15, %c0_16, %c0_17], %34 {strides = array<i32>} : memref<1x16x128xbf16, #tpu.memory_space<vmem>>, vector<1x16x128xbf16>,
    return
  }
  func.func @transform_0(%arg0: i32, %arg1: i32) -> (i32, i32, i32) {
    %c0_i32 = arith.constant 0 : i32
    %c0_i32_0 = arith.constant 0 : i32
    return %arg0, %arg1, %c0_i32 : i32, i32, i32
  }
  func.func @transform_1(%arg0: i32, %arg1: i32) -> (i32, i32, i32) {
    %c0_i32 = arith.constant 0 : i32
    %c0_i32_0 = arith.constant 0 : i32
    %c0_i32_1 = arith.constant 0 : i32
    return %arg0, %c0_i32, %c0_i32_0 : i32, i32, i32
  }
  func.func @transform_2(%arg0: i32, %arg1: i32) -> (i32, i32) {
    %c0_i32 = arith.constant 0 : i32
    %c0_i32_0 = arith.constant 0 : i32
    %c0_i32_1 = arith.constant 0 : i32
    return %c0_i32, %c0_i32_0 : i32, i32
  }
  func.func @transform_3(%arg0: i32, %arg1: i32) -> (i32, i32) {
    %c0_i32 = arith.constant 0 : i32
    %c0_i32_0 = arith.constant 0 : i32
    %c0_i32_1 = arith.constant 0 : i32
    return %c0_i32, %c0_i32_0 : i32, i32
  }
  func.func @transform_4(%arg0: i32, %arg1: i32) -> (i32, i32, i32) {
    %c0_i32 = arith.constant 0 : i32
    %c0_i32_0 = arith.constant 0 : i32
    return %arg0, %arg1, %c0_i32 : i32, i32, i32
  }
  func.func @transform_5(%arg0: i32, %arg1: i32) -> (i32, i32, i32) {
    %c0_i32 = arith.constant 0 : i32
    %c0_i32_0 = arith.constant 0 : i32
    return %arg0, %arg1, %c0_i32 : i32, i32, i32
  }
}

module attributes {stable_mosaic.version = 11 : i64} {
  func.func @kernel(%arg0: i32, %arg1: i32, %arg2: memref<1x64x1152xbf16, #tpu.memory_space<vmem>>, %arg3: memref<1152x64xbf16, #tpu.memory_space<vmem>>, %arg4: memref<1x64xf32, #tpu.memory_space<vmem>>, %arg5: memref<1x64x64xbf16, #tpu.memory_space<vmem>>, %arg6: memref<1x2x64xf32, #tpu.memory_space<vmem>>) attributes {dimension_semantics = [#tpu.dimension_semantics<parallel>, #tpu.dimension_semantics<arbitrary>], iteration_bounds = array<i64: 2, 1>, scalar_prefetch = 0 : i64, scratch_operands = 0 : i64, tpu.core_type = #tpu.core_type<tc>, window_params = [{transform_indices = @transform_0, window_bounds = array<i64: 1, 64, 1152>}, {pipeline_mode = #tpu.pipeline_mode<synchronous>, transform_indices = @transform_1, window_bounds = array<i64: 1152, 64>}, {pipeline_mode = #tpu.pipeline_mode<synchronous>, transform_indices = @transform_2, window_bounds = array<i64: 1, 64>}, {transform_indices = @transform_3, window_bounds = array<i64: 1, 64, 64>}, {transform_indices = @transform_4, window_bounds = array<i64: 1, 2, 64>}]} {
    %c0 = arith.constant 0 : index
    %c0_0 = arith.constant 0 : index
    %c0_1 = arith.constant 0 : index
    %0 = vector.load %arg2[%c0, %c0_0, %c0_1] : memref<1x64x1152xbf16, #tpu.memory_space<vmem>>, vector<1x64x1152xbf16>
    %1 = vector.shape_cast %0 : vector<1x64x1152xbf16> to vector<64x1152xbf16>
    %c0_2 = arith.constant 0 : index
    %c0_3 = arith.constant 0 : index
    %2 = vector.load %arg3[%c0_2, %c0_3] : memref<1152x64xbf16, #tpu.memory_space<vmem>>, vector<1152x64xbf16>
    %cst = arith.constant dense<0.000000e+00> : vector<64x64xf32>
    %3 = tpu.matmul %1, %2, %cst {dimension_numbers = #tpu.dot_dimension_numbers<[1], [0], [0], [1], [0, 0, 1, 1], [], []>} : vector<64x1152xbf16>, vector<1152x64xbf16>, vector<64x64xf32> -> vector<64x64xf32>
    %c0_4 = arith.constant 0 : index
    %c0_5 = arith.constant 0 : index
    %4 = vector.load %arg4[%c0_4, %c0_5] : memref<1x64xf32, #tpu.memory_space<vmem>>, vector<1x64xf32>
    %5 = vector.broadcast %4 : vector<1x64xf32> to vector<64x64xf32>
    %6 = arith.addf %3, %5 : vector<64x64xf32>
    %7 = arith.truncf %6 : vector<64x64xf32> to vector<64x64xbf16>
    %c0_6 = arith.constant 0 : index
    %c0_7 = arith.constant 0 : index
    %c0_8 = arith.constant 0 : index
    %8 = vector.load %arg5[%c0_6, %c0_7, %c0_8] : memref<1x64x64xbf16, #tpu.memory_space<vmem>>, vector<1x64x64xbf16>
    %9 = vector.shape_cast %8 : vector<1x64x64xbf16> to vector<64x64xbf16>
    %10 = vector.shape_cast %7 : vector<64x64xbf16> to vector<1x64x64xbf16>
    tpu.vector_store %arg5[%c0_6, %c0_7, %c0_8], %10 {strides = array<i32>} : memref<1x64x64xbf16, #tpu.memory_space<vmem>>, vector<1x64x64xbf16>,
    %c0_i32 = arith.constant 0 : i32
    %11 = arith.cmpi eq, %arg1, %c0_i32 : i32
    %12 = arith.extui %11 : i1 to i32
    %c0_i32_9 = arith.constant 0 : i32
    %13 = arith.cmpi ne, %12, %c0_i32_9 : i32
    scf.if %13 {
      %cst_18 = arith.constant 0.000000e+00 : f32
      %26 = vector.broadcast %cst_18 : f32 to vector<1x2x64xf32>
      %c0_19 = arith.constant 0 : index
      %c0_20 = arith.constant 0 : index
      %c0_21 = arith.constant 0 : index
      %27 = vector.load %arg6[%c0_19, %c0_20, %c0_21] : memref<1x2x64xf32, #tpu.memory_space<vmem>>, vector<1x2x64xf32>
      tpu.vector_store %arg6[%c0_19, %c0_20, %c0_21], %26 {strides = array<i32>} : memref<1x2x64xf32, #tpu.memory_space<vmem>>, vector<1x2x64xf32>,
    } else {
    }
    %cst_10 = arith.constant dense<0.000000e+00> : vector<64xf32>
    %14 = vector.multi_reduction <add>, %6, %cst_10 [0] : vector<64x64xf32> to vector<64xf32>
    %15 = vector.shape_cast %14 : vector<64xf32> to vector<1x64xf32>
    %16 = arith.mulf %6, %6 : vector<64x64xf32>
    %cst_11 = arith.constant dense<0.000000e+00> : vector<64xf32>
    %17 = vector.multi_reduction <add>, %16, %cst_11 [0] : vector<64x64xf32> to vector<64xf32>
    %18 = vector.shape_cast %17 : vector<64xf32> to vector<1x64xf32>
    %c0_12 = arith.constant 0 : index
    %c0_13 = arith.constant 0 : index
    %c0_14 = arith.constant 0 : index
    %19 = vector.load %arg6[%c0_12, %c0_13, %c0_14] : memref<1x2x64xf32, #tpu.memory_space<vmem>>, vector<1x2x64xf32>
    %20 = vector.shape_cast %19 : vector<1x2x64xf32> to vector<2x64xf32>
    %21 = tpu.concatenate %15, %18 in 0 : vector<1x64xf32>, vector<1x64xf32> -> vector<2x64xf32>
    %22 = arith.addf %20, %21 : vector<2x64xf32>
    %c0_15 = arith.constant 0 : index
    %c0_16 = arith.constant 0 : index
    %c0_17 = arith.constant 0 : index
    %23 = vector.load %arg6[%c0_15, %c0_16, %c0_17] : memref<1x2x64xf32, #tpu.memory_space<vmem>>, vector<1x2x64xf32>
    %24 = vector.shape_cast %23 : vector<1x2x64xf32> to vector<2x64xf32>
    %25 = vector.shape_cast %22 : vector<2x64xf32> to vector<1x2x64xf32>
    tpu.vector_store %arg6[%c0_15, %c0_16, %c0_17], %25 {strides = array<i32>} : memref<1x2x64xf32, #tpu.memory_space<vmem>>, vector<1x2x64xf32>,
    return
  }
  func.func @transform_0(%arg0: i32, %arg1: i32) -> (i32, i32, i32) {
    %c0_i32 = arith.constant 0 : i32
    %c0_i32_0 = arith.constant 0 : i32
    return %arg0, %arg1, %c0_i32 : i32, i32, i32
  }
  func.func @transform_1(%arg0: i32, %arg1: i32) -> (i32, i32) {
    %c0_i32 = arith.constant 0 : i32
    %c0_i32_0 = arith.constant 0 : i32
    %c0_i32_1 = arith.constant 0 : i32
    return %c0_i32, %c0_i32_0 : i32, i32
  }
  func.func @transform_2(%arg0: i32, %arg1: i32) -> (i32, i32) {
    %c0_i32 = arith.constant 0 : i32
    %c0_i32_0 = arith.constant 0 : i32
    %c0_i32_1 = arith.constant 0 : i32
    return %c0_i32, %c0_i32_0 : i32, i32
  }
  func.func @transform_3(%arg0: i32, %arg1: i32) -> (i32, i32, i32) {
    %c0_i32 = arith.constant 0 : i32
    %c0_i32_0 = arith.constant 0 : i32
    return %arg0, %arg1, %c0_i32 : i32, i32, i32
  }
  func.func @transform_4(%arg0: i32, %arg1: i32) -> (i32, i32, i32) {
    %c0_i32 = arith.constant 0 : i32
    %c0_i32_0 = arith.constant 0 : i32
    %c0_i32_1 = arith.constant 0 : i32
    return %arg0, %c0_i32, %c0_i32_0 : i32, i32, i32
  }
}

module attributes {stable_mosaic.version = 11 : i64} {
  func.func @kernel(%arg0: i32, %arg1: i32, %arg2: memref<1x256x640xbf16, #tpu.memory_space<vmem>>, %arg3: memref<640x32xbf16, #tpu.memory_space<vmem>>, %arg4: memref<1x32xf32, #tpu.memory_space<vmem>>, %arg5: memref<1x256x32xbf16, #tpu.memory_space<vmem>>, %arg6: memref<1x2x32xf32, #tpu.memory_space<vmem>>) attributes {dimension_semantics = [#tpu.dimension_semantics<parallel>, #tpu.dimension_semantics<arbitrary>], iteration_bounds = array<i64: 2, 1>, scalar_prefetch = 0 : i64, scratch_operands = 0 : i64, tpu.core_type = #tpu.core_type<tc>, window_params = [{transform_indices = @transform_0, window_bounds = array<i64: 1, 256, 640>}, {pipeline_mode = #tpu.pipeline_mode<synchronous>, transform_indices = @transform_1, window_bounds = array<i64: 640, 32>}, {pipeline_mode = #tpu.pipeline_mode<synchronous>, transform_indices = @transform_2, window_bounds = array<i64: 1, 32>}, {transform_indices = @transform_3, window_bounds = array<i64: 1, 256, 32>}, {transform_indices = @transform_4, window_bounds = array<i64: 1, 2, 32>}]} {
    %c0 = arith.constant 0 : index
    %c0_0 = arith.constant 0 : index
    %c0_1 = arith.constant 0 : index
    %0 = vector.load %arg2[%c0, %c0_0, %c0_1] : memref<1x256x640xbf16, #tpu.memory_space<vmem>>, vector<1x256x640xbf16>
    %1 = vector.shape_cast %0 : vector<1x256x640xbf16> to vector<256x640xbf16>
    %c0_2 = arith.constant 0 : index
    %c0_3 = arith.constant 0 : index
    %2 = vector.load %arg3[%c0_2, %c0_3] : memref<640x32xbf16, #tpu.memory_space<vmem>>, vector<640x32xbf16>
    %cst = arith.constant dense<0.000000e+00> : vector<256x32xf32>
    %3 = tpu.matmul %1, %2, %cst {dimension_numbers = #tpu.dot_dimension_numbers<[1], [0], [0], [1], [0, 0, 1, 1], [], []>} : vector<256x640xbf16>, vector<640x32xbf16>, vector<256x32xf32> -> vector<256x32xf32>
    %c0_4 = arith.constant 0 : index
    %c0_5 = arith.constant 0 : index
    %4 = vector.load %arg4[%c0_4, %c0_5] : memref<1x32xf32, #tpu.memory_space<vmem>>, vector<1x32xf32>
    %5 = vector.broadcast %4 : vector<1x32xf32> to vector<256x32xf32>
    %6 = arith.addf %3, %5 : vector<256x32xf32>
    %7 = arith.truncf %6 : vector<256x32xf32> to vector<256x32xbf16>
    %c0_6 = arith.constant 0 : index
    %c0_7 = arith.constant 0 : index
    %c0_8 = arith.constant 0 : index
    %8 = vector.load %arg5[%c0_6, %c0_7, %c0_8] : memref<1x256x32xbf16, #tpu.memory_space<vmem>>, vector<1x256x32xbf16>
    %9 = vector.shape_cast %8 : vector<1x256x32xbf16> to vector<256x32xbf16>
    %10 = vector.shape_cast %7 : vector<256x32xbf16> to vector<1x256x32xbf16>
    tpu.vector_store %arg5[%c0_6, %c0_7, %c0_8], %10 {strides = array<i32>} : memref<1x256x32xbf16, #tpu.memory_space<vmem>>, vector<1x256x32xbf16>,
    %c0_i32 = arith.constant 0 : i32
    %11 = arith.cmpi eq, %arg1, %c0_i32 : i32
    %12 = arith.extui %11 : i1 to i32
    %c0_i32_9 = arith.constant 0 : i32
    %13 = arith.cmpi ne, %12, %c0_i32_9 : i32
    scf.if %13 {
      %cst_18 = arith.constant 0.000000e+00 : f32
      %26 = vector.broadcast %cst_18 : f32 to vector<1x2x32xf32>
      %c0_19 = arith.constant 0 : index
      %c0_20 = arith.constant 0 : index
      %c0_21 = arith.constant 0 : index
      %27 = vector.load %arg6[%c0_19, %c0_20, %c0_21] : memref<1x2x32xf32, #tpu.memory_space<vmem>>, vector<1x2x32xf32>
      tpu.vector_store %arg6[%c0_19, %c0_20, %c0_21], %26 {strides = array<i32>} : memref<1x2x32xf32, #tpu.memory_space<vmem>>, vector<1x2x32xf32>,
    } else {
    }
    %cst_10 = arith.constant dense<0.000000e+00> : vector<32xf32>
    %14 = vector.multi_reduction <add>, %6, %cst_10 [0] : vector<256x32xf32> to vector<32xf32>
    %15 = vector.shape_cast %14 : vector<32xf32> to vector<1x32xf32>
    %16 = arith.mulf %6, %6 : vector<256x32xf32>
    %cst_11 = arith.constant dense<0.000000e+00> : vector<32xf32>
    %17 = vector.multi_reduction <add>, %16, %cst_11 [0] : vector<256x32xf32> to vector<32xf32>
    %18 = vector.shape_cast %17 : vector<32xf32> to vector<1x32xf32>
    %c0_12 = arith.constant 0 : index
    %c0_13 = arith.constant 0 : index
    %c0_14 = arith.constant 0 : index
    %19 = vector.load %arg6[%c0_12, %c0_13, %c0_14] : memref<1x2x32xf32, #tpu.memory_space<vmem>>, vector<1x2x32xf32>
    %20 = vector.shape_cast %19 : vector<1x2x32xf32> to vector<2x32xf32>
    %21 = tpu.concatenate %15, %18 in 0 : vector<1x32xf32>, vector<1x32xf32> -> vector<2x32xf32>
    %22 = arith.addf %20, %21 : vector<2x32xf32>
    %c0_15 = arith.constant 0 : index
    %c0_16 = arith.constant 0 : index
    %c0_17 = arith.constant 0 : index
    %23 = vector.load %arg6[%c0_15, %c0_16, %c0_17] : memref<1x2x32xf32, #tpu.memory_space<vmem>>, vector<1x2x32xf32>
    %24 = vector.shape_cast %23 : vector<1x2x32xf32> to vector<2x32xf32>
    %25 = vector.shape_cast %22 : vector<2x32xf32> to vector<1x2x32xf32>
    tpu.vector_store %arg6[%c0_15, %c0_16, %c0_17], %25 {strides = array<i32>} : memref<1x2x32xf32, #tpu.memory_space<vmem>>, vector<1x2x32xf32>,
    return
  }
  func.func @transform_0(%arg0: i32, %arg1: i32) -> (i32, i32, i32) {
    %c0_i32 = arith.constant 0 : i32
    %c0_i32_0 = arith.constant 0 : i32
    return %arg0, %arg1, %c0_i32 : i32, i32, i32
  }
  func.func @transform_1(%arg0: i32, %arg1: i32) -> (i32, i32) {
    %c0_i32 = arith.constant 0 : i32
    %c0_i32_0 = arith.constant 0 : i32
    %c0_i32_1 = arith.constant 0 : i32
    return %c0_i32, %c0_i32_0 : i32, i32
  }
  func.func @transform_2(%arg0: i32, %arg1: i32) -> (i32, i32) {
    %c0_i32 = arith.constant 0 : i32
    %c0_i32_0 = arith.constant 0 : i32
    %c0_i32_1 = arith.constant 0 : i32
    return %c0_i32, %c0_i32_0 : i32, i32
  }
  func.func @transform_3(%arg0: i32, %arg1: i32) -> (i32, i32, i32) {
    %c0_i32 = arith.constant 0 : i32
    %c0_i32_0 = arith.constant 0 : i32
    return %arg0, %arg1, %c0_i32 : i32, i32, i32
  }
  func.func @transform_4(%arg0: i32, %arg1: i32) -> (i32, i32, i32) {
    %c0_i32 = arith.constant 0 : i32
    %c0_i32_0 = arith.constant 0 : i32
    %c0_i32_1 = arith.constant 0 : i32
    return %arg0, %c0_i32, %c0_i32_0 : i32, i32, i32
  }
}

module attributes {stable_mosaic.version = 11 : i64} {
  func.func @kernel(%arg0: i32, %arg1: i32, %arg2: memref<1x256x2688xbf16, #tpu.memory_space<vmem>>, %arg3: memref<2688x128xbf16, #tpu.memory_space<vmem>>, %arg4: memref<1x128xf32, #tpu.memory_space<vmem>>, %arg5: memref<1x256x128xf32, #tpu.memory_space<vmem>>) attributes {dimension_semantics = [#tpu.dimension_semantics<parallel>, #tpu.dimension_semantics<parallel>], iteration_bounds = array<i64: 2, 1>, scalar_prefetch = 0 : i64, scratch_operands = 0 : i64, tpu.core_type = #tpu.core_type<tc>, window_params = [{transform_indices = @transform_0, window_bounds = array<i64: 1, 256, 2688>}, {pipeline_mode = #tpu.pipeline_mode<synchronous>, transform_indices = @transform_1, window_bounds = array<i64: 2688, 128>}, {pipeline_mode = #tpu.pipeline_mode<synchronous>, transform_indices = @transform_2, window_bounds = array<i64: 1, 128>}, {transform_indices = @transform_3, window_bounds = array<i64: 1, 256, 128>}]} {
    %c0 = arith.constant 0 : index
    %c0_0 = arith.constant 0 : index
    %c0_1 = arith.constant 0 : index
    %0 = vector.load %arg2[%c0, %c0_0, %c0_1] : memref<1x256x2688xbf16, #tpu.memory_space<vmem>>, vector<1x256x2688xbf16>
    %1 = vector.shape_cast %0 : vector<1x256x2688xbf16> to vector<256x2688xbf16>
    %c0_2 = arith.constant 0 : index
    %c0_3 = arith.constant 0 : index
    %2 = vector.load %arg3[%c0_2, %c0_3] : memref<2688x128xbf16, #tpu.memory_space<vmem>>, vector<2688x128xbf16>
    %cst = arith.constant dense<0.000000e+00> : vector<256x128xf32>
    %3 = tpu.matmul %1, %2, %cst {dimension_numbers = #tpu.dot_dimension_numbers<[1], [0], [0], [1], [0, 0, 1, 1], [], []>} : vector<256x2688xbf16>, vector<2688x128xbf16>, vector<256x128xf32> -> vector<256x128xf32>
    %c0_4 = arith.constant 0 : index
    %c0_5 = arith.constant 0 : index
    %4 = vector.load %arg4[%c0_4, %c0_5] : memref<1x128xf32, #tpu.memory_space<vmem>>, vector<1x128xf32>
    %5 = vector.broadcast %4 : vector<1x128xf32> to vector<256x128xf32>
    %6 = arith.addf %3, %5 : vector<256x128xf32>
    %c0_6 = arith.constant 0 : index
    %c0_7 = arith.constant 0 : index
    %c0_8 = arith.constant 0 : index
    %7 = vector.load %arg5[%c0_6, %c0_7, %c0_8] : memref<1x256x128xf32, #tpu.memory_space<vmem>>, vector<1x256x128xf32>
    %8 = vector.shape_cast %7 : vector<1x256x128xf32> to vector<256x128xf32>
    %9 = vector.shape_cast %6 : vector<256x128xf32> to vector<1x256x128xf32>
    tpu.vector_store %arg5[%c0_6, %c0_7, %c0_8], %9 {strides = array<i32>} : memref<1x256x128xf32, #tpu.memory_space<vmem>>, vector<1x256x128xf32>,
    return
  }
  func.func @transform_0(%arg0: i32, %arg1: i32) -> (i32, i32, i32) {
    %c0_i32 = arith.constant 0 : i32
    %c0_i32_0 = arith.constant 0 : i32
    return %arg0, %arg1, %c0_i32 : i32, i32, i32
  }
  func.func @transform_1(%arg0: i32, %arg1: i32) -> (i32, i32) {
    %c0_i32 = arith.constant 0 : i32
    %c0_i32_0 = arith.constant 0 : i32
    %c0_i32_1 = arith.constant 0 : i32
    return %c0_i32, %c0_i32_0 : i32, i32
  }
  func.func @transform_2(%arg0: i32, %arg1: i32) -> (i32, i32) {
    %c0_i32 = arith.constant 0 : i32
    %c0_i32_0 = arith.constant 0 : i32
    %c0_i32_1 = arith.constant 0 : i32
    return %c0_i32, %c0_i32_0 : i32, i32
  }
  func.func @transform_3(%arg0: i32, %arg1: i32) -> (i32, i32, i32) {
    %c0_i32 = arith.constant 0 : i32
    %c0_i32_0 = arith.constant 0 : i32
    return %arg0, %arg1, %c0_i32 : i32, i32, i32
  }
}

</mosaic_0001>

<bundles_post_ra>
// kernel: deepstylex_forward.32
= control target key start
LH: loop header
LB: loop body
LE: loop exit
PB: predicated region body
PF: predicated region fallthrough
CT: control target
= control target key end

     0   :  { %s973_s15 = smov 0   ;;  %s975_s16 = smov 0   ;;  %s1302_s0 = inlined_call_operand.vmem [shape: bf16[2,256,32], index: 0, kind: input, shape index: {}]   ;;  %s1303_s1 = inlined_call_operand.vmem [shape: f32[2,2,32], index: 1, kind: input, shape index: {}]   ;;  %s1304_s2 = inlined_call_operand.vmem [shape: f32[1,32], index: 2, kind: input, shape index: {}]   ;;  %s1305_s3 = inlined_call_operand.vmem [shape: f32[1,32], index: 3, kind: input, shape index: {}]   ;;  %s1306_s4 = inlined_call_operand.vmem [shape: bf16[2,256,32], index: 4, kind: output, shape index: {}]  }
   0x1   :  { %s977_s17 = smov 0  }
   0x2 LB: > { %s26_s18 = sadd.s32 1, %s942_s16  ;;  %p743_p0 = scmp.ge.s32.totalorder %s946_s17, 1  ;;  %s946_s17 = sphi %s977_s17, %s14_s17   ;;  %s942_s16 = sphi %s975_s16, %s1308_s16   ;;  %s938_s15 = sphi %s973_s15, %s1307_s15  }
   0x3   : > { %p28_p1 = scmp.ge.s32.totalorder %s26_s18, 2  ;;  %p192_p2 = scmp.lt.s32.totalorder %s946_s17, 3 }
   0x5   : > { %s1310_s18 = smov (%p28_p1, %s26_s18), 0  ;;  %p193_p3 = pnand %p743_p0, %p192_p2 }
   0x6   : > { %p231_p4 = scmp.lt.s32.totalorder (!%p193_p3), %s938_s15, 1 }
   0x7   : > { %196 = sbr.rel (%p193_p3) target bundleno = 85 (0x55), region = 36 }
   0xc   : > { %s1312_s15 = smov (!%p231_p4, %s938_s15), 1  ;;  %v336_v2 = vlaneseq  ;;  %vm607_vm0 = vcmask 257024  }
   0xd   : > { %s746_s19 = sshll.u32 %s1312_s15, 1  ;;  %s785_s23 = sshll.u32 %s1312_s15, 7 }
   0xe   : > { %s243_s22 = scalar_lea.vmem %s1303_s1, %s746_s19  ;;  %v998_v5 = vshrl.u32 %v336_v2, 7  ;;  %s1005_s26 = scalar_lea.vmem %s1302_s0, %s785_s23  ;;  %v749_v2 = vld [vmem:[%s1304_s2] ss:$0 sm:$0xff] }
   0xf   : > { %v318_v0 = vld [vmem:[%s243_s22] sm:$0x3]  ;;  %v883_v11 = vld [vmem:[%s1005_s26 + $0x8] sm:$0xff]   ;;  %v884_v12 = vld [vmem:[%s1005_s26 + $0x10] sm:$0xff]   ;;  %s1155_s7 = scalar_lea.vmem %s1306_s4, %s785_s23 }
  0x10   : > { %v319_v1 = vmul.f32 0.00390625, %v318_v0  ;;  %v338_v8 = vsub.s32 0, %v998_v5  ;;  %v820_v9 = vld [vmem:[%s1005_s26] sm:$0xff]   ;;  %v885_v15 = vld [vmem:[%s1005_s26 + $0x18] sm:$0xff]   ;;  %v825_v18 = vunpack.c.l.bf16 %v883_v11  ;;  %v826_v19 = vunpack.c.h.bf16 %v883_v11  ;;  %v887_v20 = vld [vmem:[%s1005_s26 + $0x28] sm:$0xff]  }
  0x11   : > { %v821_v13 = vunpack.c.l.bf16 %v820_v9  ;;  %v886_v16 = vld [vmem:[%s1005_s26 + $0x20] sm:$0xff]   ;;  %v822_v17 = vunpack.c.h.bf16 %v820_v9  ;;  %v888_v21 = vld [vmem:[%s1005_s26 + $0x30] sm:$0xff]   ;;  %v374_v22 = vsub.s32 1, %v998_v5  ;;  %v829_v23 = vunpack.c.l.bf16 %v884_v12  ;;  %v889_v29 = vld [vmem:[%s1005_s26 + $0x38] sm:$0xff]  }
  0x12   : > { %v320_v3 = vmul.f32 %v319_v1, %v319_v1  ;;  %v1011_v14 = vrot.slane %v319_v1, %v338_v8  ;;  %v830_v24 = vunpack.c.h.bf16 %v884_v12  ;;  %v833_v25 = vunpack.c.l.bf16 %v885_v15  ;;  %v890_v30 = vld [vmem:[%s1005_s26 + $0x40] sm:$0xff]   ;;  %v891_v43 = vld [vmem:[%s1005_s26 + $0x48] sm:$0xff]   ;;  %v892_v48 = vld [vmem:[%s1005_s26 + $0x50] sm:$0xff]  }
  0x13   : > { %v834_v26 = vunpack.c.h.bf16 %v885_v15  ;;  %v837_v27 = vunpack.c.l.bf16 %v886_v16  ;;  %v838_v28 = vunpack.c.h.bf16 %v886_v16  ;;  %v841_v32 = vunpack.c.l.bf16 %v887_v20  ;;  %v893_v53 = vld [vmem:[%s1005_s26 + $0x58] sm:$0xff]   ;;  %v894_v54 = vld [vmem:[%s1005_s26 + $0x60] sm:$0xff]   ;;  %v895_v59 = vld [vmem:[%s1005_s26 + $0x68] sm:$0xff]  }
  0x14   : > { %v322_v4 = vrot.slane %v320_v3, 7  ;;  %v1021_v31 = vsub.f32 %v821_v13, %v1011_v14  ;;  %v842_v33 = vunpack.c.h.bf16 %v887_v20  ;;  %v845_v34 = vunpack.c.l.bf16 %v888_v21  ;;  %v896_v0 = vld [vmem:[%s1005_s26 + $0x70] sm:$0xff]  }
  0x15   : > { %v1024_v35 = vsub.f32 %v822_v17, %v1011_v14  ;;  %v1027_v36 = vsub.f32 %v825_v18, %v1011_v14  ;;  %v1030_v37 = vsub.f32 %v826_v19, %v1011_v14  ;;  %v846_v38 = vunpack.c.h.bf16 %v888_v21 }
  0x16   : > { %v324_v6 = vsub.f32 %v319_v1, %v322_v4  ;;  %v1033_v39 = vsub.f32 %v829_v23, %v1011_v14  ;;  %v849_v40 = vunpack.c.l.bf16 %v889_v29  ;;  %v850_v41 = vunpack.c.h.bf16 %v889_v29  ;;  %v897_v1 = vld [vmem:[%s1005_s26 + $0x78] sm:$0xff]  }
  0x17   : > { %v853_v42 = vunpack.c.l.bf16 %v890_v30  ;;  %v345_v44 = vsub.f32 %v830_v24, %v1011_v14  ;;  %v346_v45 = vsub.f32 %v833_v25, %v1011_v14  ;;  %v347_v46 = vsub.f32 %v834_v26, %v1011_v14 }
  0x18   : > { %v325_v7 = vmax.f32 %v324_v6, 0.0  ;;  %v1040_v47 = vsub.f32 %v837_v27, %v1011_v14  ;;  %v1044_v49 = vsub.f32 %v838_v28, %v1011_v14  ;;  %v1047_v50 = vsub.f32 %v841_v32, %v1011_v14  ;;  %v1115_v32 = vld [vmem:[%s1305_s3] ss:$0 sm:$0xff] }
  0x19   : > { %v1050_v51 = vsub.f32 %v842_v33, %v1011_v14  ;;  %v854_v52 = vunpack.c.h.bf16 %v890_v30  ;;  %v1055_v55 = vsub.f32 %v845_v34, %v1011_v14  ;;  %v1058_v56 = vsub.f32 %v846_v38, %v1011_v14 }
  0x1a   : > { %v326_v10 = vadd.f32 1e-05, %v325_v7  ;;  %v857_v57 = vunpack.c.l.bf16 %v891_v43  ;;  %v858_v58 = vunpack.c.h.bf16 %v891_v43  ;;  %v1062_v60 = vsub.f32 %v849_v40, %v1011_v14 }
  0x1b   : > { %v1065_v61 = vsub.f32 %v850_v41, %v1011_v14  ;;  %v1068_v62 = vsub.f32 %v853_v42, %v1011_v14  ;;  %v861_v63 = vunpack.c.l.bf16 %v892_v48  ;;  %v862_v3 = vunpack.c.h.bf16 %v892_v48 }
  0x1c   : > { %922 = vrsqrt.f32 %v326_v10  ;;  %v865_v4 = vunpack.c.l.bf16 %v893_v53  ;;  %v866_v6 = vunpack.c.h.bf16 %v893_v53  ;;  %v869_v7 = vunpack.c.l.bf16 %v894_v54 }
  0x1d   : > { %v1076_v8 = vsub.f32 %v854_v52, %v1011_v14  ;;  %v870_v9 = vunpack.c.h.bf16 %v894_v54  ;;  %v873_v10 = vunpack.c.l.bf16 %v895_v59  ;;  %v874_v11 = vunpack.c.h.bf16 %v895_v59 }
  0x1e   : > { %v877_v13 = vunpack.c.l.bf16 %v896_v0  ;;  %v878_v15 = vunpack.c.h.bf16 %v896_v0  ;;  %v881_v16 = vunpack.c.l.bf16 %v897_v1  ;;  %v882_v17 = vunpack.c.h.bf16 %v897_v1 }
  0x1f   : > { %v1079_v19 = vsub.f32 %v857_v57, %v1011_v14  ;;  %v1082_v20 = vsub.f32 %v858_v58, %v1011_v14  ;;  %v1085_v21 = vsub.f32 %v861_v63, %v1011_v14  ;;  %v1088_v23 = vsub.f32 %v862_v3, %v1011_v14 }
  0x20   : > { %v1091_v24 = vsub.f32 %v865_v4, %v1011_v14  ;;  %v1094_v25 = vsub.f32 %v866_v6, %v1011_v14  ;;  %v1097_v26 = vsub.f32 %v869_v7, %v1011_v14  ;;  %v1104_v28 = vsub.f32 %v870_v9, %v1011_v14 }
  0x21   : > { %v1107_v29 = vsub.f32 %v873_v10, %v1011_v14  ;;  %v1110_v30 = vsub.f32 %v874_v11, %v1011_v14  ;;  %v1118_v33 = vsub.f32 %v877_v13, %v1011_v14  ;;  %v1121_v5 = vsub.f32 %v878_v15, %v1011_v14 }
  0x22   : > { %v1127_v34 = vsub.f32 %v882_v17, %v1011_v14 }
  0x29   : > { %v923_v12 = vpop.eup %922 }
  0x2a   : > { %v335_v18 = vmul.f32 %v923_v12, %v749_v2 }
  0x2c   : > { %v1101_v27 = vrot.slane %v335_v18, %v374_v22  ;;  %v1124_v22 = vsub.f32 %v881_v16, %v1011_v14 }
  0x2e   : > { %v376_v38 = vmul.f32 %v1101_v27, %v1021_v31  ;;  %v377_v40 = vmul.f32 %v1101_v27, %v1024_v35  ;;  %v378_v41 = vmul.f32 %v1101_v27, %v1027_v36  ;;  %v379_v42 = vmul.f32 %v1101_v27, %v1030_v37 }
  0x2f   : > { %v380_v43 = vmul.f32 %v1101_v27, %v1033_v39  ;;  %v381_v48 = vmul.f32 %v1101_v27, %v345_v44  ;;  %v382_v14 = vmul.f32 %v1101_v27, %v346_v45  ;;  %v383_v52 = vmul.f32 %v1101_v27, %v347_v46 }
  0x30   : > { %v415_v31 = vadd.f32 %v1115_v32, %v376_v38  ;;  %v416_v35 = vadd.f32 %v1115_v32, %v377_v40  ;;  %v417_v53 = vadd.f32 %v1115_v32, %v378_v41  ;;  %v418_v36 = vadd.f32 %v1115_v32, %v379_v42 }
  0x31   : > { %v419_v37 = vadd.f32 %v1115_v32, %v380_v43  ;;  %v420_v54 = vadd.f32 %v1115_v32, %v381_v48  ;;  %v421_v39 = vadd.f32 %v1115_v32, %v382_v14  ;;  %v422_v44 = vadd.f32 %v1115_v32, %v383_v52 }
  0x32   : > { %v447_v57 = vmax.f32 %v415_v31, 0.0  ;;  %v448_v45 = vmax.f32 %v416_v35, 0.0  ;;  %v449_v58 = vmax.f32 %v417_v53, 0.0  ;;  %v450_v46 = vmax.f32 %v418_v36, 0.0 }
  0x33   : > { %v451_v59 = vmax.f32 %v419_v37, 0.0  ;;  %v452_v63 = vmax.f32 %v420_v54, 0.0  ;;  %v453_v0 = vmax.f32 %v421_v39, 0.0  ;;  %v454_v1 = vmax.f32 %v422_v44, 0.0 }
  0x34   : > { %v787_v2 = vpack.c.bf16 %v447_v57, %v447_v57  ;;  %v788_v3 = vpack.c.bf16 %v448_v45, %v448_v45  ;;  %v789_v4 = vpack.c.bf16 %v449_v58, %v449_v58  ;;  %v790_v6 = vpack.c.bf16 %v450_v46, %v450_v46 }
  0x35   : > { %v791_v7 = vpack.c.bf16 %v451_v59, %v451_v59  ;;  %v792_v9 = vpack.c.bf16 %v452_v63, %v452_v63  ;;  %v793_v10 = vpack.c.bf16 %v453_v0, %v453_v0  ;;  %v794_v11 = vpack.c.bf16 %v454_v1, %v454_v1 }
  0x36   : > { %608 = vst.msk [vmem:[%s1155_s7] sm:$0xf] %vm607_vm0, %v787_v2  ;;  %609 = vst.msk [vmem:[%s1155_s7 + $0x4] sm:$0xf] %vm607_vm0, %v788_v3  ;;  %v384_v12 = vmul.f32 %v1101_v27, %v1040_v47  ;;  %v385_v13 = vmul.f32 %v1101_v27, %v1044_v49  ;;  %v386_v15 = vmul.f32 %v1101_v27, %v1047_v50 }
  0x37   : > { %610 = vst.msk [vmem:[%s1155_s7 + $0x8] sm:$0xf] %vm607_vm0, %v789_v4  ;;  %611 = vst.msk [vmem:[%s1155_s7 + $0xc] sm:$0xf] %vm607_vm0, %v790_v6  ;;  %v387_v16 = vmul.f32 %v1101_v27, %v1050_v51  ;;  %v388_v47 = vmul.f32 %v1101_v27, %v1055_v55  ;;  %v389_v49 = vmul.f32 %v1101_v27, %v1058_v56 }
  0x38   : > { %612 = vst.msk [vmem:[%s1155_s7 + $0x10] sm:$0xf] %vm607_vm0, %v791_v7  ;;  %613 = vst.msk [vmem:[%s1155_s7 + $0x14] sm:$0xf] %vm607_vm0, %v792_v9  ;;  %v390_v50 = vmul.f32 %v1101_v27, %v1062_v60  ;;  %v391_v51 = vmul.f32 %v1101_v27, %v1065_v61  ;;  %v423_v17 = vadd.f32 %v1115_v32, %v384_v12 }
  0x39   : > { %614 = vst.msk [vmem:[%s1155_s7 + $0x18] sm:$0xf] %vm607_vm0, %v793_v10  ;;  %615 = vst.msk [vmem:[%s1155_s7 + $0x1c] sm:$0xf] %vm607_vm0, %v794_v11  ;;  %v424_v18 = vadd.f32 %v1115_v32, %v385_v13  ;;  %v425_v38 = vadd.f32 %v1115_v32, %v386_v15  ;;  %v426_v40 = vadd.f32 %v1115_v32, %v387_v16 }
  0x3a   : > { %v427_v41 = vadd.f32 %v1115_v32, %v388_v47  ;;  %v428_v55 = vadd.f32 %v1115_v32, %v389_v49  ;;  %v429_v56 = vadd.f32 %v1115_v32, %v390_v50  ;;  %v430_v42 = vadd.f32 %v1115_v32, %v391_v51 }
  0x3b   : > { %v455_v60 = vmax.f32 %v423_v17, 0.0  ;;  %v456_v43 = vmax.f32 %v424_v18, 0.0  ;;  %v457_v61 = vmax.f32 %v425_v38, 0.0  ;;  %v458_v48 = vmax.f32 %v426_v40, 0.0 }
  0x3c   : > { %v459_v14 = vmax.f32 %v427_v41, 0.0  ;;  %v460_v52 = vmax.f32 %v428_v55, 0.0  ;;  %v461_v31 = vmax.f32 %v429_v56, 0.0  ;;  %v462_v35 = vmax.f32 %v430_v42, 0.0 }
  0x3d   : > { %v795_v53 = vpack.c.bf16 %v455_v60, %v455_v60  ;;  %v796_v36 = vpack.c.bf16 %v456_v43, %v456_v43  ;;  %v797_v37 = vpack.c.bf16 %v457_v61, %v457_v61  ;;  %v798_v54 = vpack.c.bf16 %v458_v48, %v458_v48 }
  0x3e   : > { %v799_v39 = vpack.c.bf16 %v459_v14, %v459_v14  ;;  %v800_v44 = vpack.c.bf16 %v460_v52, %v460_v52  ;;  %v801_v57 = vpack.c.bf16 %v461_v31, %v461_v31  ;;  %v802_v45 = vpack.c.bf16 %v462_v35, %v462_v35 }
  0x3f   : > { %616 = vst.msk [vmem:[%s1155_s7 + $0x20] sm:$0xf] %vm607_vm0, %v795_v53  ;;  %617 = vst.msk [vmem:[%s1155_s7 + $0x24] sm:$0xf] %vm607_vm0, %v796_v36  ;;  %v392_v58 = vmul.f32 %v1101_v27, %v1068_v62  ;;  %v393_v46 = vmul.f32 %v1101_v27, %v1076_v8  ;;  %v394_v59 = vmul.f32 %v1101_v27, %v1079_v19 }
  0x40   : > { %618 = vst.msk [vmem:[%s1155_s7 + $0x28] sm:$0xf] %vm607_vm0, %v797_v37  ;;  %619 = vst.msk [vmem:[%s1155_s7 + $0x2c] sm:$0xf] %vm607_vm0, %v798_v54  ;;  %v395_v63 = vmul.f32 %v1101_v27, %v1082_v20  ;;  %v396_v62 = vmul.f32 %v1101_v27, %v1085_v21  ;;  %v397_v8 = vmul.f32 %v1101_v27, %v1088_v23 }
  0x41   : > { %620 = vst.msk [vmem:[%s1155_s7 + $0x30] sm:$0xf] %vm607_vm0, %v799_v39  ;;  %621 = vst.msk [vmem:[%s1155_s7 + $0x34] sm:$0xf] %vm607_vm0, %v800_v44  ;;  %v398_v19 = vmul.f32 %v1101_v27, %v1091_v24  ;;  %v399_v20 = vmul.f32 %v1101_v27, %v1094_v25  ;;  %v431_v0 = vadd.f32 %v1115_v32, %v392_v58 }
  0x42   : > { %622 = vst.msk [vmem:[%s1155_s7 + $0x38] sm:$0xf] %vm607_vm0, %v801_v57  ;;  %623 = vst.msk [vmem:[%s1155_s7 + $0x3c] sm:$0xf] %vm607_vm0, %v802_v45  ;;  %v432_v1 = vadd.f32 %v1115_v32, %v393_v46  ;;  %v433_v2 = vadd.f32 %v1115_v32, %v394_v59  ;;  %v434_v3 = vadd.f32 %v1115_v32, %v395_v63 }
  0x43   : > { %v435_v4 = vadd.f32 %v1115_v32, %v396_v62  ;;  %v436_v21 = vadd.f32 %v1115_v32, %v397_v8  ;;  %v437_v23 = vadd.f32 %v1115_v32, %v398_v19  ;;  %v438_v6 = vadd.f32 %v1115_v32, %v399_v20 }
  0x44   : > { %v463_v24 = vmax.f32 %v431_v0, 0.0  ;;  %v464_v7 = vmax.f32 %v432_v1, 0.0  ;;  %v465_v25 = vmax.f32 %v433_v2, 0.0  ;;  %v466_v9 = vmax.f32 %v434_v3, 0.0 }
  0x45   : > { %v467_v10 = vmax.f32 %v435_v4, 0.0  ;;  %v468_v11 = vmax.f32 %v436_v21, 0.0  ;;  %v469_v12 = vmax.f32 %v437_v23, 0.0  ;;  %v470_v13 = vmax.f32 %v438_v6, 0.0 }
  0x46   : > { %v803_v15 = vpack.c.bf16 %v463_v24, %v463_v24  ;;  %v804_v16 = vpack.c.bf16 %v464_v7, %v464_v7  ;;  %v805_v47 = vpack.c.bf16 %v465_v25, %v465_v25  ;;  %v806_v49 = vpack.c.bf16 %v466_v9, %v466_v9 }
  0x47   : > { %v807_v50 = vpack.c.bf16 %v467_v10, %v467_v10  ;;  %v808_v51 = vpack.c.bf16 %v468_v11, %v468_v11  ;;  %v809_v17 = vpack.c.bf16 %v469_v12, %v469_v12  ;;  %v810_v18 = vpack.c.bf16 %v470_v13, %v470_v13 }
  0x48   : > { %624 = vst.msk [vmem:[%s1155_s7 + $0x40] sm:$0xf] %vm607_vm0, %v803_v15  ;;  %625 = vst.msk [vmem:[%s1155_s7 + $0x44] sm:$0xf] %vm607_vm0, %v804_v16  ;;  %v400_v38 = vmul.f32 %v1101_v27, %v1097_v26  ;;  %v401_v40 = vmul.f32 %v1101_v27, %v1104_v28  ;;  %v402_v41 = vmul.f32 %v1101_v27, %v1107_v29 }
  0x49   : > { %626 = vst.msk [vmem:[%s1155_s7 + $0x48] sm:$0xf] %vm607_vm0, %v805_v47  ;;  %627 = vst.msk [vmem:[%s1155_s7 + $0x4c] sm:$0xf] %vm607_vm0, %v806_v49  ;;  %v403_v55 = vmul.f32 %v1101_v27, %v1110_v30  ;;  %v404_v26 = vmul.f32 %v1101_v27, %v1118_v33  ;;  %v405_v28 = vmul.f32 %v1101_v27, %v1121_v5 }
  0x4a   : > { %628 = vst.msk [vmem:[%s1155_s7 + $0x50] sm:$0xf] %vm607_vm0, %v807_v50  ;;  %629 = vst.msk [vmem:[%s1155_s7 + $0x54] sm:$0xf] %vm607_vm0, %v808_v51  ;;  %v406_v29 = vmul.f32 %v1101_v27, %v1124_v22  ;;  %v407_v30 = vmul.f32 %v1101_v27, %v1127_v34  ;;  %v439_v56 = vadd.f32 %v1115_v32, %v400_v38 }
  0x4b   : > { %630 = vst.msk [vmem:[%s1155_s7 + $0x58] sm:$0xf] %vm607_vm0, %v809_v17  ;;  %631 = vst.msk [vmem:[%s1155_s7 + $0x5c] sm:$0xf] %vm607_vm0, %v810_v18  ;;  %v440_v42 = vadd.f32 %v1115_v32, %v401_v40  ;;  %v441_v60 = vadd.f32 %v1115_v32, %v402_v41  ;;  %v442_v43 = vadd.f32 %v1115_v32, %v403_v55 }
  0x4c   : > { %v443_v61 = vadd.f32 %v1115_v32, %v404_v26  ;;  %v444_v33 = vadd.f32 %v1115_v32, %v405_v28  ;;  %v445_v5 = vadd.f32 %v1115_v32, %v406_v29  ;;  %v446_v48 = vadd.f32 %v1115_v32, %v407_v30 }
  0x4d   : > { %v471_v22 = vmax.f32 %v439_v56, 0.0  ;;  %v472_v14 = vmax.f32 %v440_v42, 0.0  ;;  %v473_v27 = vmax.f32 %v441_v60, 0.0  ;;  %v474_v34 = vmax.f32 %v442_v43, 0.0 }
  0x4e   : > { %v475_v52 = vmax.f32 %v443_v61, 0.0  ;;  %v476_v31 = vmax.f32 %v444_v33, 0.0  ;;  %v477_v35 = vmax.f32 %v445_v5, 0.0  ;;  %v478_v53 = vmax.f32 %v446_v48, 0.0 }
  0x4f   : > { %v811_v36 = vpack.c.bf16 %v471_v22, %v471_v22  ;;  %v812_v37 = vpack.c.bf16 %v472_v14, %v472_v14  ;;  %v813_v54 = vpack.c.bf16 %v473_v27, %v473_v27  ;;  %v814_v32 = vpack.c.bf16 %v474_v34, %v474_v34 }
  0x50   : > { %v815_v39 = vpack.c.bf16 %v475_v52, %v475_v52  ;;  %v816_v44 = vpack.c.bf16 %v476_v31, %v476_v31  ;;  %v817_v57 = vpack.c.bf16 %v477_v35, %v477_v35  ;;  %v818_v45 = vpack.c.bf16 %v478_v53, %v478_v53 }
  0x51   : > { %632 = vst.msk [vmem:[%s1155_s7 + $0x60] sm:$0xf] %vm607_vm0, %v811_v36  ;;  %633 = vst.msk [vmem:[%s1155_s7 + $0x64] sm:$0xf] %vm607_vm0, %v812_v37 }
  0x52   : > { %634 = vst.msk [vmem:[%s1155_s7 + $0x68] sm:$0xf] %vm607_vm0, %v813_v54  ;;  %635 = vst.msk [vmem:[%s1155_s7 + $0x6c] sm:$0xf] %vm607_vm0, %v814_v32 }
  0x53   : > { %636 = vst.msk [vmem:[%s1155_s7 + $0x70] sm:$0xf] %vm607_vm0, %v815_v39  ;;  %637 = vst.msk [vmem:[%s1155_s7 + $0x74] sm:$0xf] %vm607_vm0, %v816_v44 }
  0x54   : > { %638 = vst.msk [vmem:[%s1155_s7 + $0x78] sm:$0xf] %vm607_vm0, %v817_v57  ;;  %639 = vst.msk [vmem:[%s1155_s7 + $0x7c] sm:$0xf] %vm607_vm0, %v818_v45 }
  0x55 PF: > { %s14_s17 = sadd.s32 1, %s946_s17   ;;  %s1307_s15 = smov %s942_s16 }
  0x56   : > { %p11_p5 = scmp.ge.s32.totalorder %s14_s17, 4   ;;  %s1308_s16 = smov %s1310_s18 }
  0x58   :  { %13 = sbr.rel (!%p11_p5) target bundleno = 2 (0x2), region = 69 }

// kernel: deepstylex_forward.31
= control target key start
LH: loop header
LB: loop body
LE: loop exit
PB: predicated region body
PF: predicated region fallthrough
CT: control target
= control target key end

     0   :  { %s1599_s15 = smov 0   ;;  %s1601_s16 = smov 0   ;;  %s2078_s0 = inlined_call_operand.vmem [shape: bf16[2,256,256], index: 0, kind: input, shape index: {}]   ;;  %s2079_s1 = inlined_call_operand.vmem [shape: bf16[256,32], index: 1, kind: input, shape index: {}]   ;;  %s2080_s2 = inlined_call_operand.vmem [shape: f32[1,32], index: 2, kind: input, shape index: {}]   ;;  %s2081_s3 = inlined_call_operand.vmem [shape: bf16[2,256,32], index: 3, kind: output, shape index: {0}]   ;;  %s2082_s4 = inlined_call_operand.vmem [shape: f32[2,2,32], index: 4, kind: output, shape index: {1}]  }
   0x1   :  { %s1603_s17 = smov 0  }
   0x2 LB: > { %s27_s18 = sadd.s32 1, %s1567_s16  ;;  %p1209_p0 = scmp.ge.s32.totalorder %s1571_s17, 1  ;;  %s1571_s17 = sphi %s1603_s17, %s15_s17   ;;  %s1567_s16 = sphi %s1601_s16, %s2084_s16   ;;  %s1563_s15 = sphi %s1599_s15, %s2083_s15  }
   0x3   : > { %p29_p1 = scmp.ge.s32.totalorder %s27_s18, 2  ;;  %p187_p2 = scmp.lt.s32.totalorder %s1571_s17, 3 }
   0x5   : > { %s2086_s18 = smov (%p29_p1, %s27_s18), 0  ;;  %p188_p3 = pnand %p1209_p0, %p187_p2 }
   0x6   : > { %p227_p4 = scmp.lt.s32.totalorder (!%p188_p3), %s1563_s15, 1 }
   0x7   : > { %191 = sbr.rel (%p188_p3) target bundleno = 357 (0x165), region = 32 }
   0xc   : > { %v1485_v0 = vld [vmem:[%s2079_s1 + $0x78] sm:$0xff]   ;;  %v1487_v2 = vld [vmem:[%s2079_s1 + $0x70] sm:$0xff]   ;;  %v1489_v4 = vld [vmem:[%s2079_s1 + $0x68] sm:$0xff]   ;;  %s2088_s15 = smov (!%p227_p4, %s1563_s15), 1  ;;  %vm905_vm0 = vcmask 254976   ;;  %v1573_v48 = vmov 0.0  }
   0xd   : > { %v1486_v1 = vld [vmem:[%s2079_s1 + $0x38] sm:$0xff]   ;;  %1332 = vmatprep.subr.bf16.mxu0 %v1485_v0  ;;  %1444 = vmatprep.subr.bf16.mxu1 %v1485_v0  ;;  %v1488_v3 = vld [vmem:[%s2079_s1 + $0x30] sm:$0xff]   ;;  %v1490_v5 = vld [vmem:[%s2079_s1 + $0x28] sm:$0xff]   ;;  %s1298_s9 = sshll.u32 %s2088_s15, 8  ;;  %s1214_s7 = sshll.u32 %s2088_s15, 1  ;;  %vm868_vm1 = vcmask 257024  }
   0xe   : > { %1333 = vmatpush3.bf16.msra.mxu0 %v1486_v1  ;;  %1452 = vmatpush3.bf16.msra.mxu1 %v1486_v1  ;;  %v1491_v6 = vld [vmem:[%s2079_s1 + $0x60] sm:$0xff]   ;;  %v1493_v8 = vld [vmem:[%s2079_s1 + $0x58] sm:$0xff]   ;;  %s1650_s14 = scalar_lea.vmem %s2078_s0, %s1298_s9  ;;  %v1495_v10 = vld [vmem:[%s2079_s1 + $0x50] sm:$0xff]   ;;  %s1709_s10 = scalar_lea.vmem %s2082_s4, %s1214_s7  ;;  %vm907_vm2 = vcmask 261120   ;;  %vm1079_vm3 = vcmask 1040384  }
   0xf   : > { %1334 = vmatprep.subr.bf16.mxu0 %v1487_v2  ;;  %1445 = vmatprep.subr.bf16.mxu1 %v1487_v2  ;;  %v1492_v7 = vld [vmem:[%s2079_s1 + $0x20] sm:$0xff]   ;;  %v1494_v9 = vld [vmem:[%s2079_s1 + $0x18] sm:$0xff]   ;;  %v1496_v12 = vld [vmem:[%s2079_s1 + $0x10] sm:$0xff]   ;;  %906 = vst.msk [vmem:[%s1709_s10] sm:$0x3] %vm905_vm0, %v1573_v48  ;;  %s1299_s13 = sshll.u32 %s2088_s15, 7 }
  0x10   : > { %v1503_v11 = vld [vmem:[%s1650_s14 + $0x4] ss:$8 sps:$4 sm:$0xff]   ;;  %v1501_v18 = vld [vmem:[%s1650_s14] ss:$8 sps:$4 sm:$0xff]   ;;  %v1504_v19 = vld [vmem:[%s1650_s14 + $0x14] ss:$8 sps:$4 sm:$0xff]   ;;  %s1725_s20 = scalar_lea.vmem %s2081_s3, %s1299_s13 }
  0x11   : > { %611 = vmatprep.mubr.bf16.mxu0 %v1503_v11  ;;  %v1497_v13 = vld [vmem:[%s2079_s1 + $0x48] sm:$0xff]   ;;  %v1499_v16 = vld [vmem:[%s2079_s1 + $0x40] sm:$0xff]   ;;  %v1519_v21 = vld [vmem:[%s1650_s14 + $0x94] ss:$8 sps:$4 sm:$0xff]  }
  0x12   : > { %1335 = vmatpush3.bf16.msra.mxu0 %v1488_v3  ;;  %1453 = vmatpush3.bf16.msra.mxu1 %v1488_v3  ;;  %v1515_v14 = vld [vmem:[%s1650_s14 + $0x84] ss:$8 sps:$4 sm:$0xff]   ;;  %v1513_v20 = vld [vmem:[%s1650_s14 + $0x80] ss:$8 sps:$4 sm:$0xff]   ;;  %v1506_v22 = vld [vmem:[%s1650_s14 + $0x10] ss:$8 sps:$4 sm:$0xff]  }
  0x13   : > { %1336 = vmatprep.subr.bf16.mxu0 %v1489_v4  ;;  %1446 = vmatprep.subr.bf16.mxu1 %v1489_v4  ;;  %v1498_v15 = vld [vmem:[%s2079_s1 + $0x8] sm:$0xff]   ;;  %v1500_v17 = vld [vmem:[%s2079_s1] sm:$0xff]   ;;  %v1521_v24 = vld [vmem:[%s1650_s14 + $0x90] ss:$8 sps:$4 sm:$0xff]  }
  0x14   : > { %675 = vmatprep.mubr.bf16.mxu1 %v1515_v14  ;;  %v1507_v23 = vld [vmem:[%s1650_s14 + $0x24] ss:$8 sps:$4 sm:$0xff]   ;;  %v1509_v26 = vld [vmem:[%s1650_s14 + $0x20] ss:$8 sps:$4 sm:$0xff]   ;;  %v1510_v27 = vld [vmem:[%s1650_s14 + $0x34] ss:$8 sps:$4 sm:$0xff]  }
  0x15   : > { %v1525_v25 = vld [vmem:[%s1650_s14 + $0xa4] ss:$8 sps:$4 sm:$0xff]   ;;  %v1527_v28 = vld [vmem:[%s1650_s14 + $0xa0] ss:$8 sps:$4 sm:$0xff]   ;;  %v1531_v29 = vld [vmem:[%s1650_s14 + $0xb4] ss:$8 sps:$4 sm:$0xff]  }
  0x16   : > { %1337 = vmatpush3.bf16.msra.mxu0 %v1490_v5  ;;  %1454 = vmatpush3.bf16.msra.mxu1 %v1490_v5  ;;  %v1512_v30 = vld [vmem:[%s1650_s14 + $0x30] ss:$8 sps:$4 sm:$0xff]   ;;  %v1516_v31 = vld [vmem:[%s1650_s14 + $0x44] ss:$8 sps:$4 sm:$0xff]   ;;  %v1518_v34 = vld [vmem:[%s1650_s14 + $0x40] ss:$8 sps:$4 sm:$0xff]  }
  0x17   : > { %1338 = vmatprep.subr.bf16.mxu0 %v1491_v6  ;;  %1447 = vmatprep.subr.bf16.mxu1 %v1491_v6  ;;  %v1533_v32 = vld [vmem:[%s1650_s14 + $0xb0] ss:$8 sps:$4 sm:$0xff]   ;;  %v1537_v33 = vld [vmem:[%s1650_s14 + $0xc4] ss:$8 sps:$4 sm:$0xff]   ;;  %v1522_v35 = vld [vmem:[%s1650_s14 + $0x54] ss:$8 sps:$4 sm:$0xff]  }
  0x18   : > { %v1539_v36 = vld [vmem:[%s1650_s14 + $0xc0] ss:$8 sps:$4 sm:$0xff]   ;;  %v1540_v37 = vld [vmem:[%s1650_s14 + $0xd4] ss:$8 sps:$4 sm:$0xff]   ;;  %v1524_v38 = vld [vmem:[%s1650_s14 + $0x50] ss:$8 sps:$4 sm:$0xff]  }
  0x19   : > { %v1528_v39 = vld [vmem:[%s1650_s14 + $0x64] ss:$8 sps:$4 sm:$0xff]   ;;  %v1542_v40 = vld [vmem:[%s1650_s14 + $0xd0] ss:$8 sps:$4 sm:$0xff]   ;;  %v1530_v42 = vld [vmem:[%s1650_s14 + $0x60] ss:$8 sps:$4 sm:$0xff]  }
  0x1a   : > { %1339 = vmatpush3.bf16.msra.mxu0 %v1492_v7  ;;  %1455 = vmatpush3.bf16.msra.mxu1 %v1492_v7  ;;  %v1543_v41 = vld [vmem:[%s1650_s14 + $0xe4] ss:$8 sps:$4 sm:$0xff]   ;;  %v1534_v43 = vld [vmem:[%s1650_s14 + $0x74] ss:$8 sps:$4 sm:$0xff]   ;;  %v1545_v44 = vld [vmem:[%s1650_s14 + $0xe0] ss:$8 sps:$4 sm:$0xff]  }
  0x1b   : > { %1340 = vmatprep.subr.bf16.mxu0 %v1493_v8  ;;  %1448 = vmatprep.subr.bf16.mxu1 %v1493_v8  ;;  %v1546_v45 = vld [vmem:[%s1650_s14 + $0xf4] ss:$8 sps:$4 sm:$0xff]   ;;  %v1536_v46 = vld [vmem:[%s1650_s14 + $0x70] ss:$8 sps:$4 sm:$0xff]   ;;  %v1716_v51 = vld [vmem:[%s2080_s2] ss:$0 sm:$0xff] }
  0x1c   : > { %v1548_v47 = vld [vmem:[%s1650_s14 + $0xf0] ss:$8 sps:$4 sm:$0xff]  }
  0x1e   : > { %1341 = vmatpush3.bf16.msra.mxu0 %v1494_v9  ;;  %1456 = vmatpush3.bf16.msra.mxu1 %v1494_v9 }
  0x1f   : > { %1342 = vmatprep.subr.bf16.mxu0 %v1495_v10  ;;  %1449 = vmatprep.subr.bf16.mxu1 %v1495_v10 }
  0x22   : > { %1343 = vmatpush3.bf16.msra.mxu0 %v1496_v12  ;;  %1457 = vmatpush3.bf16.msra.mxu1 %v1496_v12 }
  0x23   : > { %1344 = vmatprep.subr.bf16.mxu0 %v1497_v13  ;;  %1450 = vmatprep.subr.bf16.mxu1 %v1497_v13 }
  0x26   : > { %1345 = vmatpush3.bf16.msra.mxu0 %v1498_v15  ;;  %1458 = vmatpush3.bf16.msra.mxu1 %v1498_v15 }
  0x27   : > { %1346 = vmatprep.subr.bf16.mxu0 %v1499_v16  ;;  %1451 = vmatprep.subr.bf16.mxu1 %v1499_v16 }
  0x2a   : > { %1347 = vmatpush3.bf16.msra.mxu0 %v1500_v17  ;;  %1459 = vmatpush3.bf16.msra.mxu1 %v1500_v17 }
  0x2d   : > { %612 = vmatmul.mubr.bf16.vlgmr.msra.gmra.mxu0 %v1501_v18  ;;  %676 = vmatmul.mubr.bf16.vlgmr.msra.gmra.mxu1 %v1513_v20 }
  0x2e   : > { %619 = vmatprep.mubr.bf16.mxu0 %v1504_v19  ;;  %683 = vmatprep.mubr.bf16.mxu1 %v1519_v21 }
  0x35   : > { %620 = vmatmul.mubr.bf16.gmra.mxu0 %v1506_v22  ;;  %684 = vmatmul.mubr.bf16.gmra.mxu1 %v1521_v24 }
  0x36   : > { %627 = vmatprep.mubr.bf16.mxu0 %v1507_v23  ;;  %691 = vmatprep.mubr.bf16.mxu1 %v1525_v25 }
  0x3d   : > { %628 = vmatmul.mubr.bf16.gmra.mxu0 %v1509_v26  ;;  %692 = vmatmul.mubr.bf16.gmra.mxu1 %v1527_v28 }
  0x3e   : > { %635 = vmatprep.mubr.bf16.mxu0 %v1510_v27  ;;  %699 = vmatprep.mubr.bf16.mxu1 %v1531_v29 }
  0x45   : > { %636 = vmatmul.mubr.bf16.gmra.mxu0 %v1512_v30  ;;  %700 = vmatmul.mubr.bf16.gmra.mxu1 %v1533_v32 }
  0x46   : > { %643 = vmatprep.mubr.bf16.mxu0 %v1516_v31  ;;  %707 = vmatprep.mubr.bf16.mxu1 %v1537_v33 }
  0x4d   : > { %644 = vmatmul.mubr.bf16.gmra.mxu0 %v1518_v34  ;;  %708 = vmatmul.mubr.bf16.gmra.mxu1 %v1539_v36 }
  0x4e   : > { %651 = vmatprep.mubr.bf16.mxu0 %v1522_v35  ;;  %715 = vmatprep.mubr.bf16.mxu1 %v1540_v37 }
  0x55   : > { %652 = vmatmul.mubr.bf16.gmra.mxu0 %v1524_v38  ;;  %716 = vmatmul.mubr.bf16.gmra.mxu1 %v1542_v40 }
  0x56   : > { %659 = vmatprep.mubr.bf16.mxu0 %v1528_v39  ;;  %723 = vmatprep.mubr.bf16.mxu1 %v1543_v41 }
  0x5d   : > { %660 = vmatmul.mubr.bf16.gmra.mxu0 %v1530_v42  ;;  %724 = vmatmul.mubr.bf16.gmra.mxu1 %v1545_v44 }
  0x5e   : > { %667 = vmatprep.mubr.bf16.mxu0 %v1534_v43  ;;  %731 = vmatprep.mubr.bf16.mxu1 %v1546_v45 }
  0x65   : > { %668 = vmatmul.mubr.bf16.gmra.mxu0 %v1536_v46  ;;  %732 = vmatmul.mubr.bf16.gmra.mxu1 %v1548_v47 }
  0xed   : > { %v1348_v49 = vpop.f32.mrf.mxu0  ;;  %v1396_v50 = vpop.f32.mrf.mxu1 }
  0xef   : > { %v1349_v52 = vpop.f32.mrf.mxu0  ;;  %v1397_v54 = vpop.f32.mrf.mxu1 }
  0xf0   : > { %v1350_v53 = vadd.f32 %v1349_v52, %v1348_v49  ;;  %v1398_v56 = vadd.f32 %v1397_v54, %v1396_v50 }
  0xf1   : > { %v1351_v55 = vpop.f32.mrf.mxu0  ;;  %v1399_v58 = vpop.f32.mrf.mxu1 }
  0xf2   : > { %v1720_v57 = vadd.f32 %v1350_v53, %v1716_v51  ;;  %v1728_v60 = vadd.f32 %v1398_v56, %v1716_v51 }
  0xf3   : > { %v1352_v59 = vpop.f32.mrf.mxu0  ;;  %v1400_v63 = vpop.f32.mrf.mxu1 }
  0xf4   : > { %v1300_v61 = vpack.c.bf16 %v1720_v57, %v1720_v57  ;;  %v1353_v62 = vadd.f32 %v1352_v59, %v1351_v55  ;;  %v1316_v1 = vpack.c.bf16 %v1728_v60, %v1728_v60  ;;  %v1401_v2 = vadd.f32 %v1400_v63, %v1399_v58 }
  0xf5   : > { %v1354_v0 = vpop.f32.mrf.mxu0  ;;  %v1402_v4 = vpop.f32.mrf.mxu1 }
  0xf6   : > { %869 = vst.msk [vmem:[%s1725_s20] sm:$0xf] %vm868_vm1, %v1300_v61  ;;  %v1737_v3 = vadd.f32 %v1353_v62, %v1716_v51  ;;  %885 = vst.msk [vmem:[%s1725_s20 + $0x40] sm:$0xf] %vm868_vm1, %v1316_v1  ;;  %v1742_v6 = vadd.f32 %v1401_v2, %v1716_v51 }
  0xf7   : > { %v1355_v5 = vpop.f32.mrf.mxu0  ;;  %v1403_v9 = vpop.f32.mrf.mxu1 }
  0xf8   : > { %v1301_v7 = vpack.c.bf16 %v1737_v3, %v1737_v3  ;;  %v1356_v8 = vadd.f32 %v1355_v5, %v1354_v0  ;;  %v1317_v11 = vpack.c.bf16 %v1742_v6, %v1742_v6  ;;  %v1404_v13 = vadd.f32 %v1403_v9, %v1402_v4 }
  0xf9   : > { %v1357_v10 = vpop.f32.mrf.mxu0  ;;  %v1405_v14 = vpop.f32.mrf.mxu1 }
  0xfa   : > { %870 = vst.msk [vmem:[%s1725_s20 + $0x4] sm:$0xf] %vm868_vm1, %v1301_v7  ;;  %v1751_v12 = vadd.f32 %v1356_v8, %v1716_v51  ;;  %886 = vst.msk [vmem:[%s1725_s20 + $0x44] sm:$0xf] %vm868_vm1, %v1317_v11  ;;  %v1758_v20 = vadd.f32 %v1404_v13, %v1716_v51  ;;  %v978_v7 = vmul.f32 %v1737_v3, %v1737_v3 }
  0xfb   : > { %v1358_v15 = vpop.f32.mrf.mxu0  ;;  %v1406_v18 = vpop.f32.mrf.mxu1  ;;  %v977_v11 = vmul.f32 %v1720_v57, %v1720_v57 }
  0xfc   : > { %v1302_v16 = vpack.c.bf16 %v1751_v12, %v1751_v12  ;;  %v1359_v17 = vadd.f32 %v1358_v15, %v1357_v10  ;;  %v1407_v21 = vadd.f32 %v1406_v18, %v1405_v14  ;;  %v1318_v25 = vpack.c.bf16 %v1758_v20, %v1758_v20 }
  0xfd   : > { %v1360_v19 = vpop.f32.mrf.mxu0  ;;  %v1408_v23 = vpop.f32.mrf.mxu1 }
  0xfe   : > { %871 = vst.msk [vmem:[%s1725_s20 + $0x8] sm:$0xf] %vm868_vm1, %v1302_v16  ;;  %v1763_v22 = vadd.f32 %v1359_v17, %v1716_v51  ;;  %887 = vst.msk [vmem:[%s1725_s20 + $0x48] sm:$0xf] %vm868_vm1, %v1318_v25  ;;  %v1772_v30 = vadd.f32 %v1407_v21, %v1716_v51  ;;  %v909_v16 = vsel %vm907_vm2, %v1737_v3, 0.0  ;;  %v979_v17 = vmul.f32 %v1751_v12, %v1751_v12 }
  0xff   : > { %v1361_v24 = vpop.f32.mrf.mxu0  ;;  %v1409_v28 = vpop.f32.mrf.mxu1  ;;  %v908_v21 = vsel %vm907_vm2, %v1720_v57, 0.0  ;;  %v1010_v25 = vsel %vm907_vm2, %v978_v7, 0.0  ;;  %v1009_v57 = vsel %vm907_vm2, %v977_v11, 0.0 }
 0x100   : > { %v1303_v26 = vpack.c.bf16 %v1763_v22, %v1763_v22  ;;  %v1362_v27 = vadd.f32 %v1361_v24, %v1360_v19  ;;  %v1410_v31 = vadd.f32 %v1409_v28, %v1408_v23  ;;  %v1319_v35 = vpack.c.bf16 %v1772_v30, %v1772_v30 }
 0x101   : > { %v1363_v29 = vpop.f32.mrf.mxu0  ;;  %v1411_v33 = vpop.f32.mrf.mxu1  ;;  %v980_v23 = vmul.f32 %v1763_v22, %v1763_v22 }
 0x102   : > { %872 = vst.msk [vmem:[%s1725_s20 + $0xc] sm:$0xf] %vm868_vm1, %v1303_v26  ;;  %v1777_v32 = vadd.f32 %v1362_v27, %v1716_v51  ;;  %888 = vst.msk [vmem:[%s1725_s20 + $0x4c] sm:$0xf] %vm868_vm1, %v1319_v35  ;;  %v1786_v40 = vadd.f32 %v1410_v31, %v1716_v51  ;;  %v911_v26 = vsel %vm907_vm2, %v1751_v12, 0.0  ;;  %v910_v31 = vadd.f32 %v909_v16, %v908_v21 }
 0x103   : > { %v1364_v34 = vpop.f32.mrf.mxu0  ;;  %v1412_v38 = vpop.f32.mrf.mxu1  ;;  %v913_v12 = vsel %vm907_vm2, %v1763_v22, 0.0 }
 0x104   : > { %v1304_v36 = vpack.c.bf16 %v1777_v32, %v1777_v32  ;;  %v1365_v37 = vadd.f32 %v1364_v34, %v1363_v29  ;;  %v1413_v41 = vadd.f32 %v1412_v38, %v1411_v33  ;;  %v1320_v45 = vpack.c.bf16 %v1786_v40, %v1786_v40 }
 0x105   : > { %v1366_v39 = vpop.f32.mrf.mxu0  ;;  %v1414_v43 = vpop.f32.mrf.mxu1  ;;  %v915_v22 = vsel %vm907_vm2, %v1777_v32, 0.0 }
 0x106   : > { %873 = vst.msk [vmem:[%s1725_s20 + $0x10] sm:$0xf] %vm868_vm1, %v1304_v36  ;;  %v1791_v42 = vadd.f32 %v1365_v37, %v1716_v51  ;;  %889 = vst.msk [vmem:[%s1725_s20 + $0x50] sm:$0xf] %vm868_vm1, %v1320_v45  ;;  %v1800_v50 = vadd.f32 %v1413_v41, %v1716_v51  ;;  %v1012_v36 = vsel %vm907_vm2, %v979_v17, 0.0  ;;  %v981_v37 = vmul.f32 %v1777_v32, %v1777_v32 }
 0x107   : > { %v1367_v44 = vpop.f32.mrf.mxu0  ;;  %v1415_v48 = vpop.f32.mrf.mxu1  ;;  %v1011_v41 = vadd.f32 %v1010_v25, %v1009_v57 }
 0x108   : > { %v1305_v46 = vpack.c.bf16 %v1791_v42, %v1791_v42  ;;  %v1368_v47 = vadd.f32 %v1367_v44, %v1366_v39  ;;  %v1416_v52 = vadd.f32 %v1415_v48, %v1414_v43  ;;  %v1321_v56 = vpack.c.bf16 %v1800_v50, %v1800_v50 }
 0x109   : > { %v1369_v49 = vpop.f32.mrf.mxu0  ;;  %v1417_v54 = vpop.f32.mrf.mxu1  ;;  %v912_v43 = vadd.f32 %v911_v26, %v910_v31  ;;  %v1014_v44 = vsel %vm907_vm2, %v980_v23, 0.0  ;;  %v917_v32 = vsel %vm907_vm2, %v1791_v42, 0.0 }
 0x10a   : > { %874 = vst.msk [vmem:[%s1725_s20 + $0x14] sm:$0xf] %vm868_vm1, %v1305_v46  ;;  %v1805_v53 = vadd.f32 %v1368_v47, %v1716_v51  ;;  %890 = vst.msk [vmem:[%s1725_s20 + $0x54] sm:$0xf] %vm868_vm1, %v1321_v56  ;;  %v1814_v63 = vadd.f32 %v1416_v52, %v1716_v51  ;;  %v982_v47 = vmul.f32 %v1791_v42, %v1791_v42 }
 0x10b   : > { %v1370_v55 = vpop.f32.mrf.mxu0  ;;  %v1418_v61 = vpop.f32.mrf.mxu1 }
 0x10c   : > { %v1306_v58 = vpack.c.bf16 %v1805_v53, %v1805_v53  ;;  %v1371_v59 = vadd.f32 %v1370_v55, %v1369_v49  ;;  %v1419_v0 = vadd.f32 %v1418_v61, %v1417_v54  ;;  %v1322_v5 = vpack.c.bf16 %v1814_v63, %v1814_v63 }
 0x10d   : > { %v1372_v62 = vpop.f32.mrf.mxu0  ;;  %v1420_v2 = vpop.f32.mrf.mxu1  ;;  %v1013_v54 = vadd.f32 %v1012_v36, %v1011_v41  ;;  %v914_v55 = vadd.f32 %v913_v12, %v912_v43  ;;  %v1016_v61 = vsel %vm907_vm2, %v981_v37, 0.0  ;;  %v1018_v42 = vsel %vm907_vm2, %v982_v47, 0.0 }
 0x10e   : > { %875 = vst.msk [vmem:[%s1725_s20 + $0x18] sm:$0xf] %vm868_vm1, %v1306_v58  ;;  %v1819_v1 = vadd.f32 %v1371_v59, %v1716_v51  ;;  %891 = vst.msk [vmem:[%s1725_s20 + $0x58] sm:$0xf] %vm868_vm1, %v1322_v5  ;;  %v1832_v14 = vadd.f32 %v1419_v0, %v1716_v51 }
 0x10f   : > { %v1373_v4 = vpop.f32.mrf.mxu0  ;;  %v1421_v10 = vpop.f32.mrf.mxu1  ;;  %v916_v5 = vadd.f32 %v915_v22, %v914_v55 }
 0x110   : > { %v1307_v8 = vpack.c.bf16 %v1819_v1, %v1819_v1  ;;  %v1374_v9 = vadd.f32 %v1373_v4, %v1372_v62  ;;  %v1422_v15 = vadd.f32 %v1421_v10, %v1420_v2  ;;  %v1323_v3 = vpack.c.bf16 %v1832_v14, %v1832_v14 }
 0x111   : > { %v1375_v13 = vpop.f32.mrf.mxu0  ;;  %v1423_v19 = vpop.f32.mrf.mxu1  ;;  %v983_v62 = vmul.f32 %v1805_v53, %v1805_v53  ;;  %v1015_v4 = vadd.f32 %v1014_v44, %v1013_v54  ;;  %v984_v7 = vmul.f32 %v1819_v1, %v1819_v1  ;;  %v919_v10 = vsel %vm907_vm2, %v1805_v53, 0.0 }
 0x112   : > { %876 = vst.msk [vmem:[%s1725_s20 + $0x1c] sm:$0xf] %vm868_vm1, %v1307_v8  ;;  %v1841_v18 = vadd.f32 %v1374_v9, %v1716_v51  ;;  %892 = vst.msk [vmem:[%s1725_s20 + $0x5c] sm:$0xf] %vm868_vm1, %v1323_v3  ;;  %v1858_v34 = vadd.f32 %v1422_v15, %v1716_v51  ;;  %v918_v17 = vadd.f32 %v917_v32, %v916_v5  ;;  %v921_v3 = vsel %vm907_vm2, %v1819_v1, 0.0 }
 0x113   : > { %v1376_v24 = vpop.f32.mrf.mxu0  ;;  %v1424_v29 = vpop.f32.mrf.mxu1  ;;  %v1017_v16 = vadd.f32 %v1016_v61, %v1015_v4 }
 0x114   : > { %v1308_v27 = vpack.c.bf16 %v1841_v18, %v1841_v18  ;;  %v1377_v28 = vadd.f32 %v1376_v24, %v1375_v13  ;;  %v1425_v35 = vadd.f32 %v1424_v29, %v1423_v19  ;;  %v1324_v46 = vpack.c.bf16 %v1858_v34, %v1858_v34 }
 0x115   : > { %v1378_v33 = vpop.f32.mrf.mxu0  ;;  %v1426_v39 = vpop.f32.mrf.mxu1  ;;  %v1020_v24 = vsel %vm907_vm2, %v983_v62, 0.0  ;;  %v985_v53 = vmul.f32 %v1841_v18, %v1841_v18  ;;  %v1022_v29 = vsel %vm907_vm2, %v984_v7, 0.0  ;;  %v923_v1 = vsel %vm907_vm2, %v1841_v18, 0.0 }
 0x116   : > { %877 = vst.msk [vmem:[%s1725_s20 + $0x20] sm:$0xf] %vm868_vm1, %v1308_v27  ;;  %v1868_v38 = vadd.f32 %v1377_v28, %v1716_v51  ;;  %893 = vst.msk [vmem:[%s1725_s20 + $0x60] sm:$0xf] %vm868_vm1, %v1324_v46  ;;  %v1882_v58 = vadd.f32 %v1425_v35, %v1716_v51  ;;  %v1019_v27 = vadd.f32 %v1018_v42, %v1017_v16 }
 0x117   : > { %v1379_v45 = vpop.f32.mrf.mxu0  ;;  %v1427_v52 = vpop.f32.mrf.mxu1  ;;  %v920_v28 = vadd.f32 %v919_v10, %v918_v17 }
 0x118   : > { %v1309_v48 = vpack.c.bf16 %v1868_v38, %v1868_v38  ;;  %v1380_v49 = vadd.f32 %v1379_v45, %v1378_v33  ;;  %v1428_v59 = vadd.f32 %v1427_v52, %v1426_v39  ;;  %v1325_v9 = vpack.c.bf16 %v1882_v58, %v1882_v58 }
 0x119   : > { %v1381_v56 = vpop.f32.mrf.mxu0  ;;  %v1429_v2 = vpop.f32.mrf.mxu1  ;;  %v986_v33 = vmul.f32 %v1868_v38, %v1868_v38  ;;  %v1021_v37 = vadd.f32 %v1020_v24, %v1019_v27  ;;  %v922_v39 = vadd.f32 %v921_v3, %v920_v28  ;;  %v1024_v45 = vsel %vm907_vm2, %v985_v53, 0.0 }
 0x11a   : > { %878 = vst.msk [vmem:[%s1725_s20 + $0x24] sm:$0xf] %vm868_vm1, %v1309_v48  ;;  %v654_v0 = vadd.f32 %v1380_v49, %v1716_v51  ;;  %894 = vst.msk [vmem:[%s1725_s20 + $0x64] sm:$0xf] %vm868_vm1, %v1325_v9  ;;  %v1902_v21 = vadd.f32 %v1428_v59, %v1716_v51  ;;  %v925_v18 = vsel %vm907_vm2, %v1868_v38, 0.0 }
 0x11b   : > { %v1382_v8 = vpop.f32.mrf.mxu0  ;;  %v1430_v15 = vpop.f32.mrf.mxu1  ;;  %v1023_v48 = vadd.f32 %v1022_v29, %v1021_v37  ;;  %v924_v49 = vadd.f32 %v923_v1, %v922_v39 }
 0x11c   : > { %v1310_v11 = vpack.c.bf16 %v654_v0, %v654_v0  ;;  %v1383_v13 = vadd.f32 %v1382_v8, %v1381_v56  ;;  %v1431_v23 = vadd.f32 %v1430_v15, %v1429_v2  ;;  %v1326_v31 = vpack.c.bf16 %v1902_v21, %v1902_v21 }
 0x11d   : > { %v1384_v19 = vpop.f32.mrf.mxu0  ;;  %v1432_v26 = vpop.f32.mrf.mxu1  ;;  %v987_v46 = vmul.f32 %v654_v0, %v654_v0  ;;  %v1026_v56 = vsel %vm907_vm2, %v986_v33, 0.0  ;;  %v927_v59 = vsel %vm907_vm2, %v654_v0, 0.0  ;;  %v1025_v62 = vadd.f32 %v1024_v45, %v1023_v48 }
 0x11e   : > { %879 = vst.msk [vmem:[%s1725_s20 + $0x28] sm:$0xf] %vm868_vm1, %v1310_v11  ;;  %v657_v25 = vadd.f32 %v1383_v13, %v1716_v51  ;;  %895 = vst.msk [vmem:[%s1725_s20 + $0x68] sm:$0xf] %vm868_vm1, %v1326_v31  ;;  %v1922_v43 = vadd.f32 %v1431_v23, %v1716_v51  ;;  %v926_v2 = vadd.f32 %v925_v18, %v924_v49 }
 0x11f   : > { %v1385_v57 = vpop.f32.mrf.mxu0  ;;  %v1433_v12 = vpop.f32.mrf.mxu1  ;;  %v1028_v8 = vsel %vm907_vm2, %v987_v46, 0.0  ;;  %v1027_v11 = vadd.f32 %v1026_v56, %v1025_v62 }
 0x120   : > { %v1311_v35 = vpack.c.bf16 %v657_v25, %v657_v25  ;;  %v1386_v36 = vadd.f32 %v1385_v57, %v1384_v19  ;;  %v1434_v44 = vadd.f32 %v1433_v12, %v1432_v26  ;;  %v988_v52 = vmul.f32 %v657_v25, %v657_v25 }
 0x121   : > { %v1387_v41 = vpop.f32.mrf.mxu0  ;;  %v1435_v47 = vpop.f32.mrf.mxu1  ;;  %v1327_v55 = vpack.c.bf16 %v1922_v43, %v1922_v43  ;;  %v929_v9 = vsel %vm907_vm2, %v657_v25, 0.0  ;;  %v928_v13 = vadd.f32 %v927_v59, %v926_v2  ;;  %v1029_v25 = vadd.f32 %v1028_v8, %v1027_v11 }
 0x122   : > { %880 = vst.msk [vmem:[%s1725_s20 + $0x2c] sm:$0xf] %vm868_vm1, %v1311_v35  ;;  %v662_v22 = vadd.f32 %v1386_v36, %v1716_v51  ;;  %v1937_v5 = vadd.f32 %v1434_v44, %v1716_v51  ;;  %v1030_v15 = vsel %vm907_vm2, %v988_v52, 0.0  ;;  %v939_v8 = vsel %vm907_vm2, %v1728_v60, 0.0 }
 0x123   : > { %v1388_v54 = vpop.f32.mrf.mxu0  ;;  %v1436_v32 = vpop.f32.mrf.mxu1  ;;  %896 = vst.msk [vmem:[%s1725_s20 + $0x6c] sm:$0xf] %vm868_vm1, %v1327_v55  ;;  %v930_v26 = vadd.f32 %v929_v9, %v928_v13  ;;  %v1031_v35 = vadd.f32 %v1030_v15, %v1029_v25  ;;  %v993_v55 = vmul.f32 %v1728_v60, %v1728_v60  ;;  %v994_v9 = vmul.f32 %v1742_v6, %v1742_v6 }
 0x124   : > { %v1312_v38 = vpack.c.bf16 %v662_v22, %v662_v22  ;;  %v1389_v61 = vadd.f32 %v1388_v54, %v1387_v41  ;;  %v1437_v7 = vadd.f32 %v1436_v32, %v1435_v47  ;;  %v989_v42 = vmul.f32 %v662_v22, %v662_v22 }
 0x125   : > { %v1390_v4 = vpop.f32.mrf.mxu0  ;;  %v1438_v10 = vpop.f32.mrf.mxu1  ;;  %v1328_v17 = vpack.c.bf16 %v1937_v5, %v1937_v5  ;;  %v931_v19 = vsel %vm907_vm2, %v662_v22, 0.0  ;;  %v1040_v11 = vsel %vm907_vm2, %v993_v55, 0.0  ;;  %v941_v13 = vsel %vm907_vm2, %v1742_v6, 0.0 }
 0x126   : > { %881 = vst.msk [vmem:[%s1725_s20 + $0x30] sm:$0xf] %vm868_vm1, %v1312_v38  ;;  %v665_v0 = vadd.f32 %v1389_v61, %v1716_v51  ;;  %v1951_v28 = vadd.f32 %v1437_v7, %v1716_v51  ;;  %v1032_v57 = vsel %vm907_vm2, %v989_v42, 0.0  ;;  %v932_v36 = vadd.f32 %v931_v19, %v930_v26 }
 0x127   : > { %v1391_v16 = vpop.f32.mrf.mxu0  ;;  %v1439_v53 = vpop.f32.mrf.mxu1  ;;  %897 = vst.msk [vmem:[%s1725_s20 + $0x70] sm:$0xf] %vm868_vm1, %v1328_v17  ;;  %v1033_v22 = vadd.f32 %v1032_v57, %v1031_v35  ;;  %v995_v60 = vmul.f32 %v1758_v20, %v1758_v20  ;;  %v1042_v17 = vsel %vm907_vm2, %v994_v9, 0.0  ;;  %v943_v19 = vsel %vm907_vm2, %v1758_v20, 0.0 }
 0x128   : > { %v1313_v23 = vpack.c.bf16 %v665_v0, %v665_v0  ;;  %v990_v24 = vmul.f32 %v665_v0, %v665_v0  ;;  %v1392_v3 = vadd.f32 %v1391_v16, %v1390_v4  ;;  %v1440_v29 = vadd.f32 %v1439_v53, %v1438_v10 }
 0x129   : > { %v1393_v27 = vpop.f32.mrf.mxu0  ;;  %v933_v31 = vsel %vm907_vm2, %v665_v0, 0.0  ;;  %v1441_v33 = vpop.f32.mrf.mxu1  ;;  %v1329_v39 = vpack.c.bf16 %v1951_v28, %v1951_v28  ;;  %v1044_v53 = vsel %vm907_vm2, %v995_v60, 0.0  ;;  %v945_v6 = vsel %vm907_vm2, %v1772_v30, 0.0 }
 0x12a   : > { %882 = vst.msk [vmem:[%s1725_s20 + $0x34] sm:$0xf] %vm868_vm1, %v1313_v23  ;;  %v670_v1 = vadd.f32 %v1392_v3, %v1716_v51  ;;  %v1034_v12 = vsel %vm907_vm2, %v990_v24, 0.0  ;;  %v934_v47 = vadd.f32 %v933_v31, %v932_v36  ;;  %v1965_v48 = vadd.f32 %v1440_v29, %v1716_v51 }
 0x12b   : > { %v1394_v37 = vpop.f32.mrf.mxu0  ;;  %v1442_v46 = vpop.f32.mrf.mxu1  ;;  %898 = vst.msk [vmem:[%s1725_s20 + $0x74] sm:$0xf] %vm868_vm1, %v1329_v39  ;;  %v1035_v56 = vadd.f32 %v1034_v12, %v1033_v22  ;;  %v996_v23 = vmul.f32 %v1772_v30, %v1772_v30  ;;  %v997_v25 = vmul.f32 %v1786_v40, %v1786_v40  ;;  %v947_v20 = vsel %vm907_vm2, %v1786_v40, 0.0 }
 0x12c   : > { %v1314_v41 = vpack.c.bf16 %v670_v1, %v670_v1  ;;  %v935_v44 = vsel %vm907_vm2, %v670_v1, 0.0  ;;  %v991_v45 = vmul.f32 %v670_v1, %v670_v1  ;;  %v1395_v18 = vadd.f32 %v1394_v37, %v1393_v27 }
 0x12d   : > { %v1443_v49 = vadd.f32 %v1442_v46, %v1441_v33  ;;  %v936_v59 = vadd.f32 %v935_v44, %v934_v47  ;;  %v1330_v38 = vpack.c.bf16 %v1965_v48, %v1965_v48  ;;  %v1046_v29 = vsel %vm907_vm2, %v996_v23, 0.0 }
 0x12e   : > { %883 = vst.msk [vmem:[%s1725_s20 + $0x38] sm:$0xf] %vm868_vm1, %v1314_v41  ;;  %v1036_v52 = vsel %vm907_vm2, %v991_v45, 0.0  ;;  %v673_v54 = vadd.f32 %v1395_v18, %v1716_v51  ;;  %v998_v57 = vmul.f32 %v1800_v50, %v1800_v50  ;;  %v1048_v33 = vsel %vm907_vm2, %v997_v25, 0.0 }
 0x12f   : > { %v1977_v2 = vadd.f32 %v1443_v49, %v1716_v51  ;;  %v1037_v4 = vadd.f32 %v1036_v52, %v1035_v56  ;;  %899 = vst.msk [vmem:[%s1725_s20 + $0x78] sm:$0xf] %vm868_vm1, %v1330_v38  ;;  %v949_v30 = vsel %vm907_vm2, %v1800_v50, 0.0  ;;  %v999_v35 = vmul.f32 %v1814_v63, %v1814_v63 }
 0x130   : > { %v1315_v61 = vpack.c.bf16 %v673_v54, %v673_v54  ;;  %v937_v32 = vsel %vm907_vm2, %v673_v54, 0.0  ;;  %v992_v62 = vmul.f32 %v673_v54, %v673_v54  ;;  %v1050_v37 = vsel %vm907_vm2, %v998_v57, 0.0 }
 0x131   : > { %v938_v7 = vadd.f32 %v937_v32, %v936_v59  ;;  %v1331_v0 = vpack.c.bf16 %v1977_v2, %v1977_v2  ;;  %v951_v40 = vsel %vm907_vm2, %v1814_v63, 0.0  ;;  %v1000_v39 = vmul.f32 %v1832_v14, %v1832_v14 }
 0x132   : > { %884 = vst.msk [vmem:[%s1725_s20 + $0x3c] sm:$0xf] %vm868_vm1, %v1315_v61  ;;  %v1038_v42 = vsel %vm907_vm2, %v992_v62, 0.0  ;;  %v1052_v45 = vsel %vm907_vm2, %v999_v35, 0.0  ;;  %v953_v50 = vsel %vm907_vm2, %v1832_v14, 0.0  ;;  %v1001_v18 = vmul.f32 %v1858_v34, %v1858_v34 }
 0x133   : > { %v940_v10 = vadd.f32 %v939_v8, %v938_v7  ;;  %v1039_v51 = vadd.f32 %v1038_v42, %v1037_v4  ;;  %900 = vst.msk [vmem:[%s1725_s20 + $0x7c] sm:$0xf] %vm868_vm1, %v1331_v0  ;;  %v1054_v47 = vsel %vm907_vm2, %v1000_v39, 0.0  ;;  %v955_v63 = vsel %vm907_vm2, %v1858_v34, 0.0 }
 0x134   : > { %v1002_v49 = vmul.f32 %v1882_v58, %v1882_v58  ;;  %v1056_v55 = vsel %vm907_vm2, %v1001_v18, 0.0  ;;  %v957_v14 = vsel %vm907_vm2, %v1882_v58, 0.0  ;;  %v1003_v56 = vmul.f32 %v1902_v21, %v1902_v21 }
 0x135   : > { %v942_v15 = vadd.f32 %v941_v13, %v940_v10  ;;  %v1041_v16 = vadd.f32 %v1040_v11, %v1039_v51  ;;  %v959_v34 = vsel %vm907_vm2, %v1902_v21, 0.0  ;;  %v1004_v32 = vmul.f32 %v1922_v43, %v1922_v43 }
 0x136   : > { %v1058_v61 = vsel %vm907_vm2, %v1002_v49, 0.0  ;;  %v1060_v7 = vsel %vm907_vm2, %v1003_v56, 0.0  ;;  %v961_v58 = vsel %vm907_vm2, %v1922_v43, 0.0  ;;  %v1005_v8 = vmul.f32 %v1937_v5, %v1937_v5 }
 0x137   : > { %v944_v24 = vadd.f32 %v943_v19, %v942_v15  ;;  %v1043_v3 = vadd.f32 %v1042_v17, %v1041_v16  ;;  %v1062_v0 = vsel %vm907_vm2, %v1004_v32, 0.0  ;;  %v963_v21 = vsel %vm907_vm2, %v1937_v5, 0.0 }
 0x138   : > { %v1006_v10 = vmul.f32 %v1951_v28, %v1951_v28  ;;  %v1064_v13 = vsel %vm907_vm2, %v1005_v8, 0.0  ;;  %v965_v43 = vsel %vm907_vm2, %v1951_v28, 0.0  ;;  %v1007_v60 = vmul.f32 %v1965_v48, %v1965_v48 }
 0x139   : > { %v946_v26 = vadd.f32 %v945_v6, %v944_v24  ;;  %v1045_v27 = vadd.f32 %v1044_v53, %v1043_v3  ;;  %v967_v5 = vsel %vm907_vm2, %v1965_v48, 0.0  ;;  %v1008_v19 = vmul.f32 %v1977_v2, %v1977_v2 }
 0x13a   : > { %v1066_v17 = vsel %vm907_vm2, %v1006_v10, 0.0  ;;  %v1068_v3 = vsel %vm907_vm2, %v1007_v60, 0.0  ;;  %v969_v28 = vsel %vm907_vm2, %v1977_v2, 0.0 }
 0x13b   : > { %v1047_v31 = vadd.f32 %v1046_v29, %v1045_v27  ;;  %v948_v1 = vadd.f32 %v947_v20, %v946_v26  ;;  %v1070_v25 = vsel %vm907_vm2, %v1008_v19, 0.0 }
 0x13d   : > { %v950_v36 = vadd.f32 %v949_v30, %v948_v1  ;;  %v1049_v12 = vadd.f32 %v1048_v33, %v1047_v31 }
 0x13f   : > { %v952_v41 = vadd.f32 %v951_v40, %v950_v36  ;;  %v1051_v44 = vadd.f32 %v1050_v37, %v1049_v12  ;;  %v1078_v12 = vld [vmem:[%s1709_s10] sm:$0x3] }
 0x141   : > { %v954_v46 = vadd.f32 %v953_v50, %v952_v41  ;;  %v1053_v22 = vadd.f32 %v1052_v45, %v1051_v44 }
 0x143   : > { %v956_v52 = vadd.f32 %v955_v63, %v954_v46  ;;  %v1055_v54 = vadd.f32 %v1054_v47, %v1053_v22 }
 0x145   : > { %v958_v59 = vadd.f32 %v957_v14, %v956_v52  ;;  %v1057_v38 = vadd.f32 %v1056_v55, %v1055_v54 }
 0x147   : > { %v1059_v62 = vadd.f32 %v1058_v61, %v1057_v38  ;;  %v960_v4 = vadd.f32 %v959_v34, %v958_v59 }
 0x149   : > { %v1061_v9 = vadd.f32 %v1060_v7, %v1059_v62  ;;  %v962_v42 = vadd.f32 %v961_v58, %v960_v4 }
 0x14b   : > { %v1063_v51 = vadd.f32 %v1062_v0, %v1061_v9  ;;  %v964_v11 = vadd.f32 %v963_v21, %v962_v42 }
 0x14d   : > { %v1065_v15 = vadd.f32 %v1064_v13, %v1063_v51  ;;  %v966_v16 = vadd.f32 %v965_v43, %v964_v11 }
 0x14f   : > { %v1067_v23 = vadd.f32 %v1066_v17, %v1065_v15  ;;  %v968_v24 = vadd.f32 %v967_v5, %v966_v16 }
 0x151   : > { %v1069_v53 = vadd.f32 %v1068_v3, %v1067_v23  ;;  %v970_v6 = vadd.f32 %v969_v28, %v968_v24 }
 0x153   : > { %v971_v26 = vrot.slane %v970_v6, 4  ;;  %v1071_v27 = vadd.f32 %v1070_v25, %v1069_v53 }
 0x155   : > { %v972_v29 = vadd.f32 %v971_v26, %v970_v6  ;;  %v1072_v48 = vrot.slane %v1071_v27, 4 }
 0x157   : > { %v973_v20 = vrot.slane %v972_v29, 2  ;;  %v1073_v57 = vadd.f32 %v1072_v48, %v1071_v27 }
 0x159   : > { %v974_v31 = vadd.f32 %v973_v20, %v972_v29  ;;  %v1074_v1 = vrot.slane %v1073_v57, 2 }
 0x15b   : > { %v975_v33 = vrot.slane %v974_v31, 1  ;;  %v1075_v30 = vadd.f32 %v1074_v1, %v1073_v57 }
 0x15d   : > { %v1076_v35 = vrot.slane %v1075_v30, 1  ;;  %v976_v36 = vadd.f32 %v975_v33, %v974_v31 }
 0x15f   : > { %v1077_v2 = vadd.f32 %v1076_v35, %v1075_v30 }
 0x161   : > { %v1080_v37 = vsel %vm1079_vm3, %v976_v36, %v1077_v2 }
 0x162   : > { %v1081_v40 = vadd.f32 %v1080_v37, %v1078_v12 }
 0x164   : > { %1083 = vst.msk [vmem:[%s1709_s10] sm:$0x3] %vm905_vm0, %v1081_v40 }
 0x165 PF: > { %s15_s17 = sadd.s32 1, %s1571_s17   ;;  %s2083_s15 = smov %s1567_s16 }
 0x166   : > { %p12_p5 = scmp.ge.s32.totalorder %s15_s17, 4   ;;  %s2084_s16 = smov %s2086_s18 }
 0x168   :  { %14 = sbr.rel (!%p12_p5) target bundleno = 2 (0x2), region = 78 }

// kernel: deepstylex_forward.33
= control target key start
LH: loop header
LB: loop body
LE: loop exit
PB: predicated region body
PF: predicated region fallthrough
CT: control target
= control target key end

     0   :  { %s1094_s15 = smov 0   ;;  %s1096_s16 = smov 0   ;;  %s1261_s0 = inlined_call_operand.vmem [shape: bf16[2,64,288], index: 0, kind: input, shape index: {}]   ;;  %s1262_s1 = inlined_call_operand.vmem [shape: bf16[288,64], index: 1, kind: input, shape index: {}]   ;;  %s1263_s2 = inlined_call_operand.vmem [shape: f32[1,64], index: 2, kind: input, shape index: {}]   ;;  %s1264_s3 = inlined_call_operand.vmem [shape: bf16[2,64,64], index: 3, kind: output, shape index: {0}]   ;;  %s1265_s4 = inlined_call_operand.vmem [shape: f32[2,2,64], index: 4, kind: output, shape index: {1}]  }
   0x1   :  { %s1098_s17 = smov 0  }
   0x2 LB: > { %s27_s18 = sadd.s32 1, %s1062_s16  ;;  %p851_p0 = scmp.ge.s32.totalorder %s1066_s17, 1  ;;  %s1066_s17 = sphi %s1098_s17, %s15_s17   ;;  %s1062_s16 = sphi %s1096_s16, %s1267_s16   ;;  %s1058_s15 = sphi %s1094_s15, %s1266_s15  }
   0x3   : > { %p29_p1 = scmp.ge.s32.totalorder %s27_s18, 2  ;;  %p187_p2 = scmp.lt.s32.totalorder %s1066_s17, 3 }
   0x5   : > { %s1269_s18 = smov (%p29_p1, %s27_s18), 0  ;;  %p188_p3 = pnand %p851_p0, %p187_p2 }
   0x6   : > { %p227_p4 = scmp.lt.s32.totalorder (!%p188_p3), %s1058_s15, 1 }
   0x7   : > { %191 = sbr.rel (%p188_p3) target bundleno = 291 (0x123), region = 32 }
   0xc   : > { %v1010_v0 = vld [vmem:[%s1262_s1 + $0x78] sm:$0xff]   ;;  %v1012_v2 = vld [vmem:[%s1262_s1 + $0x70] sm:$0xff]   ;;  %v1014_v4 = vld [vmem:[%s1262_s1 + $0x68] sm:$0xff]   ;;  %s1271_s15 = smov (!%p227_p4, %s1058_s15), 1  ;;  %vm479_vm0 = vcmask 261120   ;;  %vm667_vm1 = vcmask 517120  }
   0xd   : > { %v1011_v1 = vld [vmem:[%s1262_s1 + $0x38] sm:$0xff]   ;;  %910 = vmatprep.subr.bf16.mxu0 %v1010_v0  ;;  %968 = vmatprep.subr.bf16.mxu1 %v1010_v0  ;;  %v1013_v3 = vld [vmem:[%s1262_s1 + $0x30] sm:$0xff]   ;;  %v1015_v5 = vld [vmem:[%s1262_s1 + $0x28] sm:$0xff]   ;;  %s984_s7 = smul.u32 96, %s1271_s15  ;;  %s855_s11 = sshll.u32 %s1271_s15, 1  ;;  %v1068_v30 = vmov 0.0  }
   0xe   : > { %911 = vmatpush3.bf16.msra.mxu0 %v1011_v1  ;;  %976 = vmatpush3.bf16.msra.mxu1 %v1011_v1  ;;  %v1016_v6 = vld [vmem:[%s1262_s1 + $0x60] sm:$0xff]   ;;  %v1018_v8 = vld [vmem:[%s1262_s1 + $0x58] sm:$0xff]   ;;  %v1020_v10 = vld [vmem:[%s1262_s1 + $0x50] sm:$0xff]   ;;  %s1194_s19 = scalar_lea.vmem %s1265_s4, %s855_s11  ;;  %s901_s21 = sshll.u32 %s1271_s15, 5  ;;  %vm654_vm2 = vcmask 519168   ;;  %vm669_vm3 = vcmask 523264  }
   0xf   : > { %912 = vmatprep.subr.bf16.mxu0 %v1012_v2  ;;  %969 = vmatprep.subr.bf16.mxu1 %v1012_v2  ;;  %v1017_v7 = vld [vmem:[%s1262_s1 + $0x20] sm:$0xff]   ;;  %s1145_s14 = scalar_lea.vmem %s1261_s0, %s984_s7  ;;  %v1019_v9 = vld [vmem:[%s1262_s1 + $0x18] sm:$0xff]   ;;  %v1021_v13 = vld [vmem:[%s1262_s1 + $0x10] sm:$0xff]   ;;  %668 = vst.msk [vmem:[%s1194_s19] sm:$0x3] %vm667_vm1, %v1068_v30  ;;  %s1208_s24 = scalar_lea.vmem %s1264_s3, %s901_s21  ;;  %vm721_vm4 = vcmask 1040384  }
  0x10   : > { %v1028_v11 = vld [vmem:[%s1145_s14 + $0x4] ss:$12 sps:$4 sm:$0xff]   ;;  %v1031_v12 = vld [vmem:[%s1145_s14 + $0x4c] ss:$12 sps:$4 sm:$0xff]   ;;  %v1029_v20 = vld [vmem:[%s1145_s14 + $0x48] ss:$12 sps:$4 sm:$0xff]  }
  0x11   : > { %v1022_v14 = vld [vmem:[%s1262_s1 + $0x48] sm:$0xff]   ;;  %524 = vmatprep.mubr.bf16.mxu0 %v1028_v11  ;;  %548 = vmatprep.mubr.bf16.mxu1 %v1031_v12  ;;  %v1024_v16 = vld [vmem:[%s1262_s1 + $0x40] sm:$0xff]   ;;  %v1042_v28 = vld [vmem:[%s1145_s14 + $0x30] ss:$12 sps:$4 sm:$0xff]  }
  0x12   : > { %913 = vmatpush3.bf16.msra.mxu0 %v1013_v3  ;;  %977 = vmatpush3.bf16.msra.mxu1 %v1013_v3  ;;  %v1023_v15 = vld [vmem:[%s1262_s1 + $0x8] sm:$0xff]   ;;  %v1025_v17 = vld [vmem:[%s1262_s1] sm:$0xff]   ;;  %v1043_v29 = vld [vmem:[%s1145_s14 + $0x50] ss:$12 sps:$4 sm:$0xff]  }
  0x13   : > { %914 = vmatprep.subr.bf16.mxu0 %v1014_v4  ;;  %970 = vmatprep.subr.bf16.mxu1 %v1014_v4  ;;  %v1032_v18 = vld [vmem:[%s1262_s1 + $0x88] sm:$0xff]   ;;  %v1033_v22 = vld [vmem:[%s1262_s1 + $0x80] sm:$0xff]  }
  0x14   : > { %v1026_v19 = vld [vmem:[%s1145_s14] ss:$12 sps:$4 sm:$0xff]   ;;  %v1034_v21 = vld [vmem:[%s1145_s14 + $0x1c] ss:$12 sps:$4 sm:$0xff]   ;;  %v1037_v24 = vld [vmem:[%s1145_s14 + $0x18] ss:$12 sps:$4 sm:$0xff]  }
  0x15   : > { %v1036_v23 = vld [vmem:[%s1145_s14 + $0x8] ss:$12 sps:$4 sm:$0xff]   ;;  %v1038_v25 = vld [vmem:[%s1145_s14 + $0x20] ss:$12 sps:$4 sm:$0xff]   ;;  %v1041_v27 = vld [vmem:[%s1145_s14 + $0x38] ss:$12 sps:$4 sm:$0xff]  }
  0x16   : > { %915 = vmatpush3.bf16.msra.mxu0 %v1015_v5  ;;  %978 = vmatpush3.bf16.msra.mxu1 %v1015_v5  ;;  %v1039_v26 = vld [vmem:[%s1145_s14 + $0x34] ss:$12 sps:$4 sm:$0xff]  }
  0x17   : > { %916 = vmatprep.subr.bf16.mxu0 %v1016_v6  ;;  %971 = vmatprep.subr.bf16.mxu1 %v1016_v6  ;;  %v1201_v40 = vld [vmem:[%s1263_s2] ss:$0 sm:$0xff] }
  0x1a   : > { %917 = vmatpush3.bf16.msra.mxu0 %v1017_v7  ;;  %979 = vmatpush3.bf16.msra.mxu1 %v1017_v7 }
  0x1b   : > { %918 = vmatprep.subr.bf16.mxu0 %v1018_v8  ;;  %972 = vmatprep.subr.bf16.mxu1 %v1018_v8 }
  0x1e   : > { %919 = vmatpush3.bf16.msra.mxu0 %v1019_v9  ;;  %980 = vmatpush3.bf16.msra.mxu1 %v1019_v9 }
  0x1f   : > { %920 = vmatprep.subr.bf16.mxu0 %v1020_v10  ;;  %973 = vmatprep.subr.bf16.mxu1 %v1020_v10 }
  0x22   : > { %921 = vmatpush3.bf16.msra.mxu0 %v1021_v13  ;;  %981 = vmatpush3.bf16.msra.mxu1 %v1021_v13 }
  0x23   : > { %922 = vmatprep.subr.bf16.mxu0 %v1022_v14  ;;  %974 = vmatprep.subr.bf16.mxu1 %v1022_v14 }
  0x26   : > { %923 = vmatpush3.bf16.msra.mxu0 %v1023_v15  ;;  %982 = vmatpush3.bf16.msra.mxu1 %v1023_v15 }
  0x27   : > { %924 = vmatprep.subr.bf16.mxu0 %v1024_v16  ;;  %975 = vmatprep.subr.bf16.mxu1 %v1024_v16 }
  0x2a   : > { %925 = vmatpush3.bf16.msra.mxu0 %v1025_v17  ;;  %983 = vmatpush3.bf16.msra.mxu1 %v1025_v17 }
  0x2b   : > { %956 = vmatprep.subr.bf16.mxu1 %v1032_v18 }
  0x2d   : > { %525 = vmatmul.mubr.bf16.vlgmr.msra.gmra.mxu0 %v1026_v19  ;;  %549 = vmatmul.mubr.bf16.vlgmr.msra.gmra.mxu1 %v1029_v20 }
  0x2e   : > { %957 = vmatpush3.bf16.msra.mxu1 %v1032_v18  ;;  %532 = vmatprep.mubr.bf16.mxu0 %v1034_v21 }
  0x2f   : > { %958 = vmatprep.subr.bf16.mxu1 %v1033_v22  ;;  %960 = vmatprep.mubr.msk.bf16.mxu1 %vm479_vm0, %v1036_v23 }
  0x32   : > { %959 = vmatpush3.bf16.msra.mxu1 %v1033_v22 }
  0x35   : > { %533 = vmatmul.mubr.bf16.gmra.mxu0 %v1037_v24  ;;  %961 = vmatmul.mubr.msk.bf16.vlgmr.msra.gmra.mxu1 %vm479_vm0, %v1038_v25 }
  0x36   : > { %540 = vmatprep.mubr.bf16.mxu0 %v1039_v26  ;;  %964 = vmatprep.mubr.msk.bf16.mxu1 %vm479_vm0, %v1041_v27 }
  0x3d   : > { %541 = vmatmul.mubr.bf16.gmra.mxu0 %v1042_v28  ;;  %965 = vmatmul.mubr.msk.bf16.gmra.mxu1 %vm479_vm0, %v1043_v29 }
  0xed   : > { %v926_v31 = vpop.f32.mrf.mxu0  ;;  %v944_v32 = vpop.f32.mrf.mxu1 }
  0xef   : > { %v927_v33 = vpop.f32.mrf.mxu0  ;;  %v945_v34 = vpop.f32.mrf.mxu1 }
  0xf0   : > { %v928_v37 = vadd.f32 %v927_v33, %v926_v31  ;;  %v946_v49 = vadd.f32 %v945_v34, %v944_v32 }
  0xf1   : > { %v929_v35 = vpop.f32.mrf.mxu0  ;;  %v947_v36 = vpop.f32.mrf.mxu1 }
  0xf2   : > { %v527_v44 = vadd.f32 %v928_v37, %v1201_v40  ;;  %v551_v63 = vadd.f32 %v946_v49, %v1201_v40 }
  0xf3   : > { %v930_v38 = vpop.f32.mrf.mxu0  ;;  %v948_v39 = vpop.f32.mrf.mxu1 }
  0xf4   : > { %v931_v43 = vadd.f32 %v930_v38, %v929_v35  ;;  %v949_v60 = vadd.f32 %v948_v39, %v947_v36 }
  0xf5   : > { %v932_v41 = vpop.f32.mrf.mxu0  ;;  %v962_v42 = vpop.f32.mrf.mxu1 }
  0xf6   : > { %v530_v54 = vadd.f32 %v931_v43, %v1201_v40  ;;  %v554_v18 = vadd.f32 %v949_v60, %v1201_v40 }
  0xf7   : > { %v933_v45 = vpop.f32.mrf.mxu0  ;;  %v591_v46 = vpop.f32.mrf.mxu1 }
  0xf8   : > { %v934_v47 = vadd.f32 %v933_v45, %v932_v41  ;;  %v592_v48 = vadd.f32 %v591_v46, %v527_v44 }
  0xf9   : > { %v935_v50 = vpop.f32.mrf.mxu0  ;;  %v963_v51 = vpop.f32.mrf.mxu1 }
  0xfa   : > { %v535_v52 = vadd.f32 %v934_v47, %v1201_v40  ;;  %v902_v53 = vpack.c.bf16 %v592_v48, %v592_v48  ;;  %v691_v61 = vmul.f32 %v592_v48, %v592_v48  ;;  %v670_v4 = vsel %vm669_vm3, %v592_v48, 0.0 }
  0xfb   : > { %v936_v55 = vpop.f32.mrf.mxu0  ;;  %v594_v56 = vpop.f32.mrf.mxu1 }
  0xfc   : > { %v600_v57 = vadd.f32 %v962_v42, %v535_v52  ;;  %655 = vst.msk [vmem:[%s1208_s24] sm:$0xf] %vm654_vm2, %v902_v53  ;;  %v937_v58 = vadd.f32 %v936_v55, %v935_v50  ;;  %v595_v59 = vadd.f32 %v594_v56, %v530_v54  ;;  %v699_v14 = vsel %vm669_vm3, %v691_v61, 0.0 }
  0xfd   : > { %v938_v62 = vpop.f32.mrf.mxu0  ;;  %v966_v0 = vpop.f32.mrf.mxu1 }
  0xfe   : > { %v904_v1 = vpack.c.bf16 %v600_v57, %v600_v57  ;;  %v538_v2 = vadd.f32 %v937_v58, %v1201_v40  ;;  %v903_v3 = vpack.c.bf16 %v595_v59, %v595_v59  ;;  %v671_v5 = vsel %vm669_vm3, %v595_v59, 0.0 }
  0xff   : > { %v692_v6 = vmul.f32 %v595_v59, %v595_v59  ;;  %v616_v7 = vadd.f32 %v966_v0, %v551_v63  ;;  %v939_v8 = vpop.f32.mrf.mxu0  ;;  %v607_v9 = vpop.f32.mrf.mxu1  ;;  %v693_v10 = vmul.f32 %v600_v57, %v600_v57  ;;  %v672_v12 = vadd.f32 %v671_v5, %v670_v4 }
 0x100   : > { %657 = vst.msk [vmem:[%s1208_s24 + $0x8] sm:$0xf] %vm654_vm2, %v904_v1  ;;  %v603_v11 = vadd.f32 %v963_v51, %v538_v2  ;;  %656 = vst.msk [vmem:[%s1208_s24 + $0x4] sm:$0xf] %vm654_vm2, %v903_v3  ;;  %v940_v13 = vadd.f32 %v939_v8, %v938_v62  ;;  %v673_v22 = vsel %vm669_vm3, %v600_v57, 0.0 }
 0x101   : > { %v700_v15 = vsel %vm669_vm3, %v692_v6, 0.0  ;;  %v908_v16 = vpack.c.bf16 %v616_v7, %v616_v7  ;;  %v941_v17 = vpop.f32.mrf.mxu0  ;;  %v967_v19 = vpop.f32.mrf.mxu1  ;;  %v674_v24 = vadd.f32 %v673_v22, %v672_v12  ;;  %v702_v28 = vsel %vm669_vm3, %v693_v10, 0.0  ;;  %v720_v10 = vld [vmem:[%s1194_s19] sm:$0x3] }
 0x102   : > { %v905_v20 = vpack.c.bf16 %v603_v11, %v603_v11  ;;  %v694_v21 = vmul.f32 %v603_v11, %v603_v11  ;;  %v701_v23 = vadd.f32 %v700_v15, %v699_v14  ;;  %v543_v25 = vadd.f32 %v940_v13, %v1201_v40 }
 0x103   : > { %661 = vst.msk [vmem:[%s1208_s24 + $0x18] sm:$0xf] %vm654_vm2, %v908_v16  ;;  %v619_v26 = vadd.f32 %v967_v19, %v554_v18  ;;  %v942_v27 = vpop.f32.mrf.mxu0  ;;  %v675_v29 = vsel %vm669_vm3, %v603_v11, 0.0  ;;  %v610_v41 = vpop.f32.mrf.mxu1  ;;  %v697_v46 = vmul.f32 %v616_v7, %v616_v7  ;;  %v681_v51 = vsel %vm669_vm3, %v616_v7, 0.0 }
 0x104   : > { %658 = vst.msk [vmem:[%s1208_s24 + $0xc] sm:$0xf] %vm654_vm2, %v905_v20  ;;  %v943_v30 = vadd.f32 %v942_v27, %v941_v17  ;;  %v703_v31 = vadd.f32 %v702_v28, %v701_v23  ;;  %v608_v32 = vadd.f32 %v607_v9, %v543_v25  ;;  %v704_v34 = vsel %vm669_vm3, %v694_v21, 0.0 }
 0x105   : > { %v909_v33 = vpack.c.bf16 %v619_v26, %v619_v26  ;;  %v676_v37 = vadd.f32 %v675_v29, %v674_v24  ;;  %v698_v52 = vmul.f32 %v619_v26, %v619_v26  ;;  %v710_v56 = vsel %vm669_vm3, %v697_v46, 0.0 }
 0x106   : > { %v546_v35 = vadd.f32 %v943_v30, %v1201_v40  ;;  %v906_v36 = vpack.c.bf16 %v608_v32, %v608_v32  ;;  %v677_v38 = vsel %vm669_vm3, %v608_v32, 0.0  ;;  %v695_v39 = vmul.f32 %v608_v32, %v608_v32 }
 0x107   : > { %662 = vst.msk [vmem:[%s1208_s24 + $0x1c] sm:$0xf] %vm654_vm2, %v909_v33  ;;  %v678_v43 = vadd.f32 %v677_v38, %v676_v37  ;;  %v705_v44 = vadd.f32 %v704_v34, %v703_v31  ;;  %v683_v57 = vsel %vm669_vm3, %v619_v26, 0.0  ;;  %v712_v60 = vsel %vm669_vm3, %v698_v52, 0.0 }
 0x108   : > { %v611_v42 = vadd.f32 %v610_v41, %v546_v35  ;;  %659 = vst.msk [vmem:[%s1208_s24 + $0x10] sm:$0xf] %vm654_vm2, %v906_v36  ;;  %v706_v45 = vsel %vm669_vm3, %v695_v39, 0.0 }
 0x109   : > { %v707_v49 = vadd.f32 %v706_v45, %v705_v44 }
 0x10a   : > { %v907_v47 = vpack.c.bf16 %v611_v42, %v611_v42  ;;  %v679_v40 = vsel %vm669_vm3, %v611_v42, 0.0  ;;  %v696_v48 = vmul.f32 %v611_v42, %v611_v42 }
 0x10b   : > { %v680_v50 = vadd.f32 %v679_v40, %v678_v43 }
 0x10c   : > { %660 = vst.msk [vmem:[%s1208_s24 + $0x14] sm:$0xf] %vm654_vm2, %v907_v47  ;;  %v708_v53 = vsel %vm669_vm3, %v696_v48, 0.0 }
 0x10d   : > { %v682_v54 = vadd.f32 %v681_v51, %v680_v50  ;;  %v709_v55 = vadd.f32 %v708_v53, %v707_v49 }
 0x10f   : > { %v684_v58 = vadd.f32 %v683_v57, %v682_v54  ;;  %v711_v59 = vadd.f32 %v710_v56, %v709_v55 }
 0x111   : > { %v685_v61 = vrot.slane %v684_v58, 4  ;;  %v713_v62 = vadd.f32 %v712_v60, %v711_v59 }
 0x113   : > { %v686_v63 = vadd.f32 %v685_v61, %v684_v58  ;;  %v714_v0 = vrot.slane %v713_v62, 4 }
 0x115   : > { %v687_v1 = vrot.slane %v686_v63, 2  ;;  %v715_v2 = vadd.f32 %v714_v0, %v713_v62 }
 0x117   : > { %v688_v3 = vadd.f32 %v687_v1, %v686_v63  ;;  %v716_v4 = vrot.slane %v715_v2, 2 }
 0x119   : > { %v689_v5 = vrot.slane %v688_v3, 1  ;;  %v717_v6 = vadd.f32 %v716_v4, %v715_v2 }
 0x11b   : > { %v718_v7 = vrot.slane %v717_v6, 1  ;;  %v690_v8 = vadd.f32 %v689_v5, %v688_v3 }
 0x11d   : > { %v719_v9 = vadd.f32 %v718_v7, %v717_v6 }
 0x11f   : > { %v722_v11 = vsel %vm721_vm4, %v690_v8, %v719_v9 }
 0x120   : > { %v723_v12 = vadd.f32 %v722_v11, %v720_v10 }
 0x122   : > { %725 = vst.msk [vmem:[%s1194_s19] sm:$0x3] %vm667_vm1, %v723_v12 }
 0x123 PF: > { %s15_s17 = sadd.s32 1, %s1066_s17   ;;  %s1266_s15 = smov %s1062_s16 }
 0x124   : > { %p12_p5 = scmp.ge.s32.totalorder %s15_s17, 4   ;;  %s1267_s16 = smov %s1269_s18 }
 0x126   :  { %14 = sbr.rel (!%p12_p5) target bundleno = 2 (0x2), region = 78 }

// kernel: deepstylex_forward.34
= control target key start
LH: loop header
LB: loop body
LE: loop exit
PB: predicated region body
PF: predicated region fallthrough
CT: control target
= control target key end

     0   :  { %s601_s15 = smov 0   ;;  %s603_s16 = smov 0   ;;  %s659_s0 = inlined_call_operand.vmem [shape: bf16[2,64,64], index: 0, kind: input, shape index: {}]   ;;  %s660_s1 = inlined_call_operand.vmem [shape: f32[2,2,64], index: 1, kind: input, shape index: {}]   ;;  %s661_s2 = inlined_call_operand.vmem [shape: f32[1,64], index: 2, kind: input, shape index: {}]   ;;  %s662_s3 = inlined_call_operand.vmem [shape: f32[1,64], index: 3, kind: input, shape index: {}]   ;;  %s663_s4 = inlined_call_operand.vmem [shape: bf16[2,64,64], index: 4, kind: output, shape index: {}]  }
   0x1   :  { %s605_s17 = smov 0  }
   0x2 LB: > { %s26_s18 = sadd.s32 1, %s570_s16  ;;  %p479_p0 = scmp.ge.s32.totalorder %s574_s17, 1  ;;  %s574_s17 = sphi %s605_s17, %s14_s17   ;;  %s570_s16 = sphi %s603_s16, %s665_s16   ;;  %s566_s15 = sphi %s601_s15, %s664_s15  }
   0x3   : > { %p28_p1 = scmp.ge.s32.totalorder %s26_s18, 2  ;;  %p192_p2 = scmp.lt.s32.totalorder %s574_s17, 3 }
   0x5   : > { %s667_s18 = smov (%p28_p1, %s26_s18), 0  ;;  %p193_p3 = pnand %p479_p0, %p192_p2 }
   0x6   : > { %p231_p4 = scmp.lt.s32.totalorder (!%p193_p3), %s566_s15, 1 }
   0x7   : > { %196 = sbr.rel (%p193_p3) target bundleno = 58 (0x3a), region = 36 }
   0xc   : > { %s669_s15 = smov (!%p231_p4, %s566_s15), 1  ;;  %v288_v6 = vlaneseq  ;;  %v485_v19 = vld [vmem:[%s661_s2] ss:$0 sm:$0xff]  ;;  %vm367_vm0 = vcmask 519168  }
   0xd   : > { %s482_s19 = sshll.u32 %s669_s15, 1  ;;  %s497_s23 = sshll.u32 %s669_s15, 5  ;;  %v486_v36 = vld [vmem:[%s662_s3] ss:$0 sm:$0xff] }
   0xe   : > { %s243_s22 = scalar_lea.vmem %s660_s1, %s482_s19  ;;  %v289_v8 = vshrl.u32 %v288_v6, 7  ;;  %s238_s26 = scalar_lea.vmem %s659_s0, %s497_s23 }
   0xf   : > { %v270_v0 = vld [vmem:[%s243_s22] sm:$0x3]  ;;  %v523_v11 = vld [vmem:[%s238_s26 + $0x8] sm:$0xff]   ;;  %v524_v12 = vld [vmem:[%s238_s26 + $0x10] sm:$0xff]   ;;  %s252_s7 = scalar_lea.vmem %s663_s4, %s497_s23 }
  0x10   : > { %v271_v1 = vmul.f32 0.015625, %v270_v0  ;;  %v290_v9 = vsub.s32 0, %v289_v8  ;;  %v508_v10 = vld [vmem:[%s238_s26] sm:$0xff]   ;;  %v525_v13 = vld [vmem:[%s238_s26 + $0x18] sm:$0xff]   ;;  %v513_v17 = vunpack.c.l.bf16 %v523_v11  ;;  %v514_v18 = vunpack.c.h.bf16 %v523_v11 }
  0x11   : > { %v509_v14 = vunpack.c.l.bf16 %v508_v10  ;;  %v510_v16 = vunpack.c.h.bf16 %v508_v10  ;;  %v517_v20 = vunpack.c.l.bf16 %v524_v12  ;;  %v518_v21 = vunpack.c.h.bf16 %v524_v12 }
  0x12   : > { %v272_v2 = vmul.f32 %v271_v1, %v271_v1  ;;  %v291_v15 = vrot.slane %v271_v1, %v290_v9  ;;  %v521_v22 = vunpack.c.l.bf16 %v525_v13  ;;  %v522_v23 = vunpack.c.h.bf16 %v525_v13 }
  0x13   : > { %v302_v24 = vsub.s32 1, %v289_v8 }
  0x14   : > { %v274_v3 = vrot.slane %v272_v2, 7  ;;  %v292_v26 = vsub.f32 %v509_v14, %v291_v15  ;;  %v293_v28 = vsub.f32 %v510_v16, %v291_v15  ;;  %v294_v29 = vsub.f32 %v513_v17, %v291_v15 }
  0x15   : > { %v295_v30 = vsub.f32 %v514_v18, %v291_v15  ;;  %v296_v31 = vsub.f32 %v517_v20, %v291_v15  ;;  %v297_v32 = vsub.f32 %v518_v21, %v291_v15  ;;  %v298_v33 = vsub.f32 %v521_v22, %v291_v15 }
  0x16   : > { %v276_v4 = vsub.f32 %v271_v1, %v274_v3  ;;  %v299_v34 = vsub.f32 %v522_v23, %v291_v15 }
  0x18   : > { %v277_v5 = vmax.f32 %v276_v4, 0.0 }
  0x1a   : > { %v278_v7 = vadd.f32 1e-05, %v277_v5 }
  0x1c   : > { %550 = vrsqrt.f32 %v278_v7 }
  0x29   : > { %v551_v25 = vpop.eup %550 }
  0x2a   : > { %v287_v27 = vmul.f32 %v551_v25, %v485_v19 }
  0x2c   : > { %v303_v35 = vrot.slane %v287_v27, %v302_v24 }
  0x2e   : > { %v304_v37 = vmul.f32 %v303_v35, %v292_v26  ;;  %v305_v38 = vmul.f32 %v303_v35, %v293_v28  ;;  %v306_v39 = vmul.f32 %v303_v35, %v294_v29  ;;  %v307_v40 = vmul.f32 %v303_v35, %v295_v30 }
  0x2f   : > { %v308_v41 = vmul.f32 %v303_v35, %v296_v31  ;;  %v309_v42 = vmul.f32 %v303_v35, %v297_v32  ;;  %v310_v43 = vmul.f32 %v303_v35, %v298_v33  ;;  %v311_v44 = vmul.f32 %v303_v35, %v299_v34 }
  0x30   : > { %v319_v45 = vadd.f32 %v486_v36, %v304_v37  ;;  %v320_v46 = vadd.f32 %v486_v36, %v305_v38  ;;  %v321_v47 = vadd.f32 %v486_v36, %v306_v39  ;;  %v322_v48 = vadd.f32 %v486_v36, %v307_v40 }
  0x31   : > { %v323_v49 = vadd.f32 %v486_v36, %v308_v41  ;;  %v324_v50 = vadd.f32 %v486_v36, %v309_v42  ;;  %v325_v51 = vadd.f32 %v486_v36, %v310_v43  ;;  %v326_v52 = vadd.f32 %v486_v36, %v311_v44 }
  0x32   : > { %v327_v53 = vmax.f32 %v319_v45, 0.0  ;;  %v328_v54 = vmax.f32 %v320_v46, 0.0  ;;  %v329_v55 = vmax.f32 %v321_v47, 0.0  ;;  %v330_v56 = vmax.f32 %v322_v48, 0.0 }
  0x33   : > { %v331_v57 = vmax.f32 %v323_v49, 0.0  ;;  %v332_v58 = vmax.f32 %v324_v50, 0.0  ;;  %v333_v59 = vmax.f32 %v325_v51, 0.0  ;;  %v334_v60 = vmax.f32 %v326_v52, 0.0 }
  0x34   : > { %v499_v61 = vpack.c.bf16 %v327_v53, %v327_v53  ;;  %v500_v62 = vpack.c.bf16 %v328_v54, %v328_v54  ;;  %v501_v63 = vpack.c.bf16 %v329_v55, %v329_v55  ;;  %v502_v0 = vpack.c.bf16 %v330_v56, %v330_v56 }
  0x35   : > { %v503_v1 = vpack.c.bf16 %v331_v57, %v331_v57  ;;  %v504_v2 = vpack.c.bf16 %v332_v58, %v332_v58  ;;  %v505_v3 = vpack.c.bf16 %v333_v59, %v333_v59  ;;  %v506_v4 = vpack.c.bf16 %v334_v60, %v334_v60 }
  0x36   : > { %368 = vst.msk [vmem:[%s252_s7] sm:$0xf] %vm367_vm0, %v499_v61  ;;  %369 = vst.msk [vmem:[%s252_s7 + $0x4] sm:$0xf] %vm367_vm0, %v500_v62 }
  0x37   : > { %370 = vst.msk [vmem:[%s252_s7 + $0x8] sm:$0xf] %vm367_vm0, %v501_v63  ;;  %371 = vst.msk [vmem:[%s252_s7 + $0xc] sm:$0xf] %vm367_vm0, %v502_v0 }
  0x38   : > { %372 = vst.msk [vmem:[%s252_s7 + $0x10] sm:$0xf] %vm367_vm0, %v503_v1  ;;  %373 = vst.msk [vmem:[%s252_s7 + $0x14] sm:$0xf] %vm367_vm0, %v504_v2 }
  0x39   : > { %374 = vst.msk [vmem:[%s252_s7 + $0x18] sm:$0xf] %vm367_vm0, %v505_v3  ;;  %375 = vst.msk [vmem:[%s252_s7 + $0x1c] sm:$0xf] %vm367_vm0, %v506_v4 }
  0x3a PF: > { %s14_s17 = sadd.s32 1, %s574_s17   ;;  %s664_s15 = smov %s570_s16 }
  0x3b   : > { %p11_p5 = scmp.ge.s32.totalorder %s14_s17, 4   ;;  %s665_s16 = smov %s667_s18 }
  0x3d   :  { %13 = sbr.rel (!%p11_p5) target bundleno = 2 (0x2), region = 69 }

// kernel: deepstylex_forward.36
= control target key start
LH: loop header
LB: loop body
LE: loop exit
PB: predicated region body
PF: predicated region fallthrough
CT: control target
= control target key end

     0   :  { %s512_s15 = smov 0   ;;  %s514_s16 = smov 0   ;;  %s558_s0 = inlined_call_operand.vmem [shape: bf16[2,16,128], index: 0, kind: input, shape index: {}]   ;;  %s559_s1 = inlined_call_operand.vmem [shape: f32[2,2,128], index: 1, kind: input, shape index: {}]   ;;  %s560_s2 = inlined_call_operand.vmem [shape: f32[1,128], index: 2, kind: input, shape index: {}]   ;;  %s561_s3 = inlined_call_operand.vmem [shape: f32[1,128], index: 3, kind: input, shape index: {}]   ;;  %s562_s4 = inlined_call_operand.vmem [shape: bf16[2,16,128], index: 4, kind: output, shape index: {}]  }
   0x1   :  { %s516_s17 = smov 0  }
   0x2 LB: > { %s26_s18 = sadd.s32 1, %s481_s16  ;;  %p412_p0 = scmp.ge.s32.totalorder %s485_s17, 1  ;;  %s485_s17 = sphi %s516_s17, %s14_s17   ;;  %s481_s16 = sphi %s514_s16, %s564_s16   ;;  %s477_s15 = sphi %s512_s15, %s563_s15  }
   0x3   : > { %p28_p1 = scmp.ge.s32.totalorder %s26_s18, 2  ;;  %p192_p2 = scmp.lt.s32.totalorder %s485_s17, 3 }
   0x5   : > { %s566_s18 = smov (%p28_p1, %s26_s18), 0  ;;  %p193_p3 = pnand %p412_p0, %p192_p2 }
   0x6   : > { %p231_p4 = scmp.lt.s32.totalorder (!%p193_p3), %s477_s15, 1 }
   0x7   : > { %196 = sbr.rel (%p193_p3) target bundleno = 55 (0x37), region = 36 }
   0xc   : > { %s568_s15 = smov (!%p231_p4, %s477_s15), 1  ;;  %v276_v7 = vlaneseq  ;;  %v418_v14 = vld [vmem:[%s560_s2] ss:$0 sm:$0xff] }
   0xd   : > { %s415_s19 = sshll.u32 %s568_s15, 1  ;;  %s424_s23 = sshll.u32 %s568_s15, 3  ;;  %v419_v21 = vld [vmem:[%s561_s3] ss:$0 sm:$0xff] }
   0xe   : > { %s243_s22 = scalar_lea.vmem %s559_s1, %s415_s19  ;;  %v277_v8 = vshrl.u32 %v276_v7, 7  ;;  %s238_s26 = scalar_lea.vmem %s558_s0, %s424_s23 }
   0xf   : > { %v258_v0 = vld [vmem:[%s243_s22] sm:$0x3]  ;;  %s252_s7 = scalar_lea.vmem %s562_s4, %s424_s23 }
  0x10   : > { %v259_v1 = vmul.f32 0.0625, %v258_v0  ;;  %v278_v9 = vsub.s32 0, %v277_v8  ;;  %v429_v10 = vld [vmem:[%s238_s26] sm:$0xff]   ;;  %v284_v15 = vsub.s32 1, %v277_v8 }
  0x11   : > { %v430_v11 = vunpack.c.l.bf16 %v429_v10  ;;  %v431_v12 = vunpack.c.h.bf16 %v429_v10 }
  0x12   : > { %v260_v2 = vmul.f32 %v259_v1, %v259_v1  ;;  %v279_v13 = vrot.slane %v259_v1, %v278_v9 }
  0x14   : > { %v262_v3 = vrot.slane %v260_v2, 7  ;;  %v280_v18 = vsub.f32 %v430_v11, %v279_v13  ;;  %v281_v19 = vsub.f32 %v431_v12, %v279_v13 }
  0x16   : > { %v264_v4 = vsub.f32 %v259_v1, %v262_v3 }
  0x18   : > { %v265_v5 = vmax.f32 %v264_v4, 0.0 }
  0x1a   : > { %v266_v6 = vadd.f32 1e-05, %v265_v5 }
  0x1c   : > { %461 = vrsqrt.f32 %v266_v6 }
  0x29   : > { %v462_v16 = vpop.eup %461 }
  0x2a   : > { %v275_v17 = vmul.f32 %v462_v16, %v418_v14 }
  0x2c   : > { %v285_v20 = vrot.slane %v275_v17, %v284_v15 }
  0x2e   : > { %v286_v22 = vmul.f32 %v285_v20, %v280_v18  ;;  %v287_v23 = vmul.f32 %v285_v20, %v281_v19 }
  0x30   : > { %v295_v24 = vadd.f32 %v419_v21, %v286_v22  ;;  %v296_v25 = vadd.f32 %v419_v21, %v287_v23 }
  0x32   : > { %v297_v26 = vmax.f32 %v295_v24, 0.0  ;;  %v298_v27 = vmax.f32 %v296_v25, 0.0 }
  0x34   : > { %v435_v28 = vpack.c.bf16 %v298_v27, %v297_v26 }
  0x36   : > { %436 = vst [vmem:[%s252_s7] sm:$0xff] %v435_v28  }
  0x37 PF: > { %s14_s17 = sadd.s32 1, %s485_s17   ;;  %s563_s15 = smov %s481_s16 }
  0x38   : > { %p11_p5 = scmp.ge.s32.totalorder %s14_s17, 4   ;;  %s564_s16 = smov %s566_s18 }
  0x3a   :  { %13 = sbr.rel (!%p11_p5) target bundleno = 2 (0x2), region = 69 }

// kernel: deepstylex_forward.35
= control target key start
LH: loop header
LB: loop body
LE: loop exit
PB: predicated region body
PF: predicated region fallthrough
CT: control target
= control target key end

     0   :  { %s1156_s15 = smov 0   ;;  %s1158_s16 = smov 0   ;;  %s1336_s0 = inlined_call_operand.vmem [shape: bf16[2,16,640], index: 0, kind: input, shape index: {}]   ;;  %s1337_s1 = inlined_call_operand.vmem [shape: bf16[640,128], index: 1, kind: input, shape index: {}]   ;;  %s1338_s2 = inlined_call_operand.vmem [shape: f32[1,128], index: 2, kind: input, shape index: {}]   ;;  %s1339_s3 = inlined_call_operand.vmem [shape: bf16[2,16,128], index: 3, kind: output, shape index: {0}]   ;;  %s1340_s4 = inlined_call_operand.vmem [shape: f32[2,2,128], index: 4, kind: output, shape index: {1}]  }
   0x1   :  { %s1160_s17 = smov 0  }
   0x2 LB: > { %s27_s18 = sadd.s32 1, %s1123_s16  ;;  %p895_p0 = scmp.ge.s32.totalorder %s1127_s17, 1  ;;  %s1127_s17 = sphi %s1160_s17, %s15_s17   ;;  %s1123_s16 = sphi %s1158_s16, %s1342_s16   ;;  %s1119_s15 = sphi %s1156_s15, %s1341_s15  }
   0x3   : > { %p29_p1 = scmp.ge.s32.totalorder %s27_s18, 2  ;;  %p187_p2 = scmp.lt.s32.totalorder %s1127_s17, 3 }
   0x5   : > { %s1344_s18 = smov (%p29_p1, %s27_s18), 0  ;;  %p188_p3 = pnand %p895_p0, %p187_p2 }
   0x6   : > { %p227_p4 = scmp.lt.s32.totalorder (!%p188_p3), %s1119_s15, 1 }
   0x7   : > { %191 = sbr.rel (%p188_p3) target bundleno = 296 (0x128), region = 32 }
   0xc   : > { %v1058_v0 = vld [vmem:[%s1337_s1 + $0x78] sm:$0xff]   ;;  %v1062_v4 = vld [vmem:[%s1337_s1 + $0x70] sm:$0xff]   ;;  %v1066_v8 = vld [vmem:[%s1337_s1 + $0x68] sm:$0xff]   ;;  %s1346_s15 = smov (!%p227_p4, %s1119_s15), 1  ;;  %v1129_v33 = vmov 0.0   ;;  %vm1130_vm0 = vmmov 0  }
   0xd   : > { %v1059_v1 = vld [vmem:[%s1337_s1 + $0x38] sm:$0xff]   ;;  %958 = vmatprep.subr.bf16.mxu0 %v1058_v0  ;;  %v1063_v5 = vld [vmem:[%s1337_s1 + $0x30] sm:$0xff]   ;;  %v1067_v9 = vld [vmem:[%s1337_s1 + $0x28] sm:$0xff]   ;;  %s1031_s25 = smul.u32 40, %s1346_s15  ;;  %s899_s12 = sshll.u32 %s1346_s15, 1  ;;  %vm766_vm1 = vcmask 1040384  }
   0xe   : > { %v1060_v2 = vld [vmem:[%s1337_s1 + $0xf8] sm:$0xff]   ;;  %959 = vmatpush3.bf16.msra.mxu0 %v1059_v1  ;;  %v1064_v6 = vld [vmem:[%s1337_s1 + $0xf0] sm:$0xff]   ;;  %v1068_v10 = vld [vmem:[%s1337_s1 + $0xe8] sm:$0xff]   ;;  %s1315_s19 = scalar_lea.vmem %s1340_s4, %s899_s12  ;;  %s950_s21 = sshll.u32 %s1346_s15, 3 }
   0xf   : > { %v1061_v3 = vld [vmem:[%s1337_s1 + $0xb8] sm:$0xff]   ;;  %980 = vmatprep.subr.bf16.mxu1 %v1060_v2  ;;  %960 = vmatprep.subr.bf16.mxu0 %v1062_v4  ;;  %v1065_v7 = vld [vmem:[%s1337_s1 + $0xb0] sm:$0xff]   ;;  %v1069_v11 = vld [vmem:[%s1337_s1 + $0xa8] sm:$0xff]   ;;  %s1271_s10 = scalar_lea.vmem %s1336_s0, %s1031_s25  ;;  %748 = vst [vmem:[%s1315_s19] sm:$0x3] %v1129_v33  ;;  %s245_s24 = scalar_lea.vmem %s1339_s3, %s950_s21 }
  0x10   : > { %981 = vmatpush3.bf16.msra.mxu1 %v1061_v3  ;;  %v1070_v12 = vld [vmem:[%s1337_s1 + $0x60] sm:$0xff]   ;;  %v1074_v16 = vld [vmem:[%s1337_s1 + $0x58] sm:$0xff]   ;;  %v1078_v20 = vld [vmem:[%s1337_s1 + $0x50] sm:$0xff]  }
  0x11   : > { %982 = vmatprep.subr.bf16.mxu1 %v1064_v6  ;;  %v1071_v13 = vld [vmem:[%s1337_s1 + $0x20] sm:$0xff]   ;;  %v1075_v17 = vld [vmem:[%s1337_s1 + $0x18] sm:$0xff]   ;;  %v1079_v21 = vld [vmem:[%s1337_s1 + $0x10] sm:$0xff]  }
  0x12   : > { %961 = vmatpush3.bf16.msra.mxu0 %v1063_v5  ;;  %v1072_v14 = vld [vmem:[%s1337_s1 + $0xe0] sm:$0xff]   ;;  %v1076_v18 = vld [vmem:[%s1337_s1 + $0xd8] sm:$0xff]   ;;  %v1080_v22 = vld [vmem:[%s1337_s1 + $0xd0] sm:$0xff]  }
  0x13   : > { %962 = vmatprep.subr.bf16.mxu0 %v1066_v8  ;;  %v1073_v15 = vld [vmem:[%s1337_s1 + $0xa0] sm:$0xff]   ;;  %v1077_v19 = vld [vmem:[%s1337_s1 + $0x98] sm:$0xff]   ;;  %v1081_v23 = vld [vmem:[%s1337_s1 + $0x90] sm:$0xff]  }
  0x14   : > { %983 = vmatpush3.bf16.msra.mxu1 %v1065_v7  ;;  %v1082_v24 = vld [vmem:[%s1337_s1 + $0x48] sm:$0xff]   ;;  %v1086_v28 = vld [vmem:[%s1337_s1 + $0x40] sm:$0xff]   ;;  %v1096_v37 = vld [vmem:[%s1337_s1 + $0x138] sm:$0xff]  }
  0x15   : > { %984 = vmatprep.subr.bf16.mxu1 %v1068_v10  ;;  %v1083_v25 = vld [vmem:[%s1337_s1 + $0x8] sm:$0xff]   ;;  %v1087_v29 = vld [vmem:[%s1337_s1] sm:$0xff]   ;;  %v1097_v38 = vld [vmem:[%s1337_s1 + $0x130] sm:$0xff]  }
  0x16   : > { %963 = vmatpush3.bf16.msra.mxu0 %v1067_v9  ;;  %v1084_v26 = vld [vmem:[%s1337_s1 + $0xc8] sm:$0xff]   ;;  %v1088_v30 = vld [vmem:[%s1337_s1 + $0xc0] sm:$0xff]   ;;  %v1100_v41 = vld [vmem:[%s1337_s1 + $0x118] sm:$0xff]  }
  0x17   : > { %964 = vmatprep.subr.bf16.mxu0 %v1070_v12  ;;  %v1085_v27 = vld [vmem:[%s1337_s1 + $0x88] sm:$0xff]   ;;  %v1089_v31 = vld [vmem:[%s1271_s10] ss:$20 sps:$4 sm:$0xff]   ;;  %v1091_v32 = vld [vmem:[%s1271_s10 + $0x4] ss:$20 sps:$4 sm:$0xff]  }
  0x18   : > { %985 = vmatpush3.bf16.msra.mxu1 %v1069_v11  ;;  %v1092_v34 = vld [vmem:[%s1337_s1 + $0x80] sm:$0xff]   ;;  %643 = vmatprep.mubr.bf16.mxu0 %v1091_v32  ;;  %v1093_v35 = vld [vmem:[%s1271_s10 + $0x8] ss:$20 sps:$4 sm:$0xff]   ;;  %v1101_v42 = vld [vmem:[%s1337_s1 + $0x110] sm:$0xff]  }
  0x19   : > { %986 = vmatprep.subr.bf16.mxu1 %v1072_v14  ;;  %v1095_v36 = vld [vmem:[%s1271_s10 + $0xc] ss:$20 sps:$4 sm:$0xff]   ;;  %v1104_v45 = vld [vmem:[%s1271_s10 + $0x10] ss:$20 sps:$4 sm:$0xff]  }
  0x1a   : > { %965 = vmatpush3.bf16.msra.mxu0 %v1071_v13  ;;  %684 = vmatprep.mubr.bf16.mxu1 %v1095_v36  ;;  %v1098_v39 = vld [vmem:[%s1337_s1 + $0x128] sm:$0xff]   ;;  %v1099_v40 = vld [vmem:[%s1337_s1 + $0x120] sm:$0xff]  }
  0x1b   : > { %966 = vmatprep.subr.bf16.mxu0 %v1074_v16  ;;  %v1102_v43 = vld [vmem:[%s1337_s1 + $0x108] sm:$0xff]   ;;  %v1103_v44 = vld [vmem:[%s1337_s1 + $0x100] sm:$0xff]  }
  0x1c   : > { %987 = vmatpush3.bf16.msra.mxu1 %v1073_v15  ;;  %v900_v54 = vld [vmem:[%s1338_s2] ss:$0 sm:$0xff] }
  0x1d   : > { %988 = vmatprep.subr.bf16.mxu1 %v1076_v18 }
  0x1e   : > { %967 = vmatpush3.bf16.msra.mxu0 %v1075_v17 }
  0x1f   : > { %968 = vmatprep.subr.bf16.mxu0 %v1078_v20 }
  0x20   : > { %989 = vmatpush3.bf16.msra.mxu1 %v1077_v19 }
  0x21   : > { %990 = vmatprep.subr.bf16.mxu1 %v1080_v22  ;;  %v765_v22 = vld [vmem:[%s1315_s19] sm:$0x3] }
  0x22   : > { %969 = vmatpush3.bf16.msra.mxu0 %v1079_v21 }
  0x23   : > { %970 = vmatprep.subr.bf16.mxu0 %v1082_v24 }
  0x24   : > { %991 = vmatpush3.bf16.msra.mxu1 %v1081_v23 }
  0x25   : > { %992 = vmatprep.subr.bf16.mxu1 %v1084_v26 }
  0x26   : > { %971 = vmatpush3.bf16.msra.mxu0 %v1083_v25 }
  0x27   : > { %972 = vmatprep.subr.bf16.mxu0 %v1086_v28 }
  0x28   : > { %993 = vmatpush3.bf16.msra.mxu1 %v1085_v27 }
  0x29   : > { %994 = vmatprep.subr.bf16.mxu1 %v1088_v30 }
  0x2a   : > { %973 = vmatpush3.bf16.msra.mxu0 %v1087_v29 }
  0x2b   : > { %1011 = vmatprep.subr.bf16.mxu0 %v1129_v33 }
  0x2c   : > { %995 = vmatpush3.bf16.msra.mxu1 %v1092_v34 }
  0x2d   : > { %644 = vmatmul.mubr.bf16.vlgmr.msra.gmra.mxu0 %v1089_v31 }
  0x2e   : > { %1027 = vmatprep.mubr.msk.bf16.mxu0 %vm1130_vm0, %v1129_v33  ;;  %1012 = vmatpush3.bf16.msra.mxu0 %v1096_v37 }
  0x2f   : > { %685 = vmatmul.mubr.bf16.vlgmr.msra.gmra.mxu1 %v1093_v35  ;;  %1013 = vmatprep.subr.bf16.mxu0 %v1129_v33 }
  0x32   : > { %1014 = vmatpush3.bf16.msra.mxu0 %v1097_v38 }
  0x33   : > { %1015 = vmatprep.subr.bf16.mxu0 %v1129_v33 }
  0x36   : > { %1016 = vmatpush3.bf16.msra.mxu0 %v1098_v39 }
  0x37   : > { %1017 = vmatprep.subr.bf16.mxu0 %v1129_v33 }
  0x3a   : > { %1018 = vmatpush3.bf16.msra.mxu0 %v1099_v40 }
  0x3b   : > { %1019 = vmatprep.subr.bf16.mxu0 %v1129_v33 }
  0x3e   : > { %1020 = vmatpush3.bf16.msra.mxu0 %v1100_v41 }
  0x3f   : > { %1021 = vmatprep.subr.bf16.mxu0 %v1129_v33 }
  0x42   : > { %1022 = vmatpush3.bf16.msra.mxu0 %v1101_v42 }
  0x43   : > { %1023 = vmatprep.subr.bf16.mxu0 %v1129_v33 }
  0x46   : > { %1024 = vmatpush3.bf16.msra.mxu0 %v1102_v43 }
  0x47   : > { %1025 = vmatprep.subr.bf16.mxu0 %v1129_v33 }
  0x4a   : > { %1026 = vmatpush3.bf16.msra.mxu0 %v1103_v44 }
  0x4d   : > { %1028 = vmatmul.mubr.bf16.vlgmr.msra.gmra.mxu0 %v1104_v45 }
  0xed   : > { %v974_v46 = vpop.f32.mrf.mxu0 }
  0xef   : > { %v975_v47 = vpop.f32.mrf.mxu0  ;;  %v996_v48 = vpop.f32.mrf.mxu1 }
  0xf0   : > { %v976_v53 = vadd.f32 %v975_v47, %v974_v46 }
  0xf1   : > { %v977_v49 = vpop.f32.mrf.mxu0  ;;  %v997_v50 = vpop.f32.mrf.mxu1 }
  0xf2   : > { %v646_v57 = vadd.f32 %v976_v53, %v900_v54  ;;  %v998_v58 = vadd.f32 %v997_v50, %v996_v48 }
  0xf3   : > { %v978_v51 = vpop.f32.mrf.mxu0  ;;  %v999_v52 = vpop.f32.mrf.mxu1 }
  0xf4   : > { %v979_v55 = vadd.f32 %v978_v51, %v977_v49  ;;  %v687_v62 = vadd.f32 %v998_v58, %v646_v57 }
  0xf5   : > { %v1000_v56 = vpop.f32.mrf.mxu1 }
  0xf6   : > { %v649_v59 = vadd.f32 %v979_v55, %v900_v54  ;;  %v1001_v60 = vadd.f32 %v1000_v56, %v999_v52 }
  0xf8   : > { %v690_v1 = vadd.f32 %v1001_v60, %v649_v59 }
 0x10d   : > { %v727_v61 = vpop.f32.mrf.mxu0 }
 0x10e   : > { %v728_v0 = vadd.f32 %v727_v61, %v687_v62 }
 0x10f   : > { %v1029_v63 = vpop.f32.mrf.mxu0 }
 0x110   : > { %v756_v5 = vmul.f32 %v728_v0, %v728_v0 }
 0x111   : > { %v730_v2 = vpop.f32.mrf.mxu0 }
 0x112   : > { %v731_v3 = vadd.f32 %v730_v2, %v690_v1 }
 0x113   : > { %v1030_v4 = vpop.f32.mrf.mxu0 }
 0x114   : > { %v956_v6 = vpack.c.bf16 %v731_v3, %v728_v0  ;;  %v749_v7 = vadd.f32 %v731_v3, %v728_v0  ;;  %v757_v8 = vmul.f32 %v731_v3, %v731_v3 }
 0x116   : > { %957 = vst [vmem:[%s245_s24] sm:$0xff] %v956_v6   ;;  %v750_v9 = vrot.slane %v749_v7, 4  ;;  %v758_v10 = vadd.f32 %v757_v8, %v756_v5 }
 0x118   : > { %v751_v11 = vadd.f32 %v750_v9, %v749_v7  ;;  %v759_v12 = vrot.slane %v758_v10, 4 }
 0x11a   : > { %v752_v13 = vrot.slane %v751_v11, 2  ;;  %v760_v14 = vadd.f32 %v759_v12, %v758_v10 }
 0x11c   : > { %v753_v15 = vadd.f32 %v752_v13, %v751_v11  ;;  %v761_v16 = vrot.slane %v760_v14, 2 }
 0x11e   : > { %v754_v17 = vrot.slane %v753_v15, 1  ;;  %v762_v18 = vadd.f32 %v761_v16, %v760_v14 }
 0x120   : > { %v763_v19 = vrot.slane %v762_v18, 1  ;;  %v755_v20 = vadd.f32 %v754_v17, %v753_v15 }
 0x122   : > { %v764_v21 = vadd.f32 %v763_v19, %v762_v18 }
 0x124   : > { %v767_v23 = vsel %vm766_vm1, %v755_v20, %v764_v21 }
 0x125   : > { %v768_v24 = vadd.f32 %v767_v23, %v765_v22 }
 0x127   : > { %769 = vst [vmem:[%s1315_s19] sm:$0x3] %v768_v24 }
 0x128 PF: > { %s15_s17 = sadd.s32 1, %s1127_s17   ;;  %s1341_s15 = smov %s1123_s16 }
 0x129   : > { %p12_p5 = scmp.ge.s32.totalorder %s15_s17, 4   ;;  %s1342_s16 = smov %s1344_s18 }
 0x12b   :  { %14 = sbr.rel (!%p12_p5) target bundleno = 2 (0x2), region = 78 }

// kernel: deepstylex_forward.40
= control target key start
LH: loop header
LB: loop body
LE: loop exit
PB: predicated region body
PF: predicated region fallthrough
CT: control target
= control target key end

     0   :  { %s609_s18 = smov 0   ;;  %s611_s19 = smov 0   ;;  %s654_s0 = inlined_call_operand.vmem [shape: bf16[2,16,128], index: 0, kind: input, shape index: {}]   ;;  %s655_s1 = inlined_call_operand.vmem [shape: f32[2,2,128], index: 1, kind: input, shape index: {}]   ;;  %s656_s2 = inlined_call_operand.vmem [shape: f32[1,128], index: 2, kind: input, shape index: {}]   ;;  %s657_s3 = inlined_call_operand.vmem [shape: f32[1,128], index: 3, kind: input, shape index: {}]   ;;  %s658_s4 = inlined_call_operand.vmem [shape: bf16[2,16,128], index: 4, kind: input, shape index: {}]   ;;  %s659_s5 = inlined_call_operand.vmem [shape: bf16[2,16,128], index: 5, kind: output, shape index: {}]  }
   0x1   :  { %s613_s20 = smov 0  }
   0x2 LB: > { %s27_s21 = sadd.s32 1, %s573_s19  ;;  %p497_p0 = scmp.ge.s32.totalorder %s577_s20, 1  ;;  %s577_s20 = sphi %s613_s20, %s15_s20   ;;  %s573_s19 = sphi %s611_s19, %s661_s19   ;;  %s569_s18 = sphi %s609_s18, %s660_s18  }
   0x3   : > { %p29_p1 = scmp.ge.s32.totalorder %s27_s21, 2  ;;  %p234_p2 = scmp.lt.s32.totalorder %s577_s20, 3 }
   0x5   : > { %s663_s21 = smov (%p29_p1, %s27_s21), 0  ;;  %p235_p3 = pnand %p497_p0, %p234_p2 }
   0x6   : > { %p284_p4 = scmp.lt.s32.totalorder (!%p235_p3), %s569_s18, 1 }
   0x7   : > { %238 = sbr.rel (%p235_p3) target bundleno = 55 (0x37), region = 40 }
   0xc   : > { %s665_s18 = smov (!%p284_p4, %s569_s18), 1  ;;  %v339_v7 = vlaneseq  ;;  %v505_v14 = vld [vmem:[%s656_s2] ss:$0 sm:$0xff] }
   0xd   : > { %s500_s22 = sshll.u32 %s665_s18, 1  ;;  %s511_s26 = sshll.u32 %s665_s18, 3  ;;  %v506_v22 = vld [vmem:[%s657_s3] ss:$0 sm:$0xff] }
   0xe   : > { %s296_s25 = scalar_lea.vmem %s655_s1, %s500_s22  ;;  %v340_v8 = vshrl.u32 %v339_v7, 7  ;;  %s291_s29 = scalar_lea.vmem %s654_s0, %s511_s26 }
   0xf   : > { %v321_v0 = vld [vmem:[%s296_s25] sm:$0x3]  ;;  %s305_s9 = scalar_lea.vmem %s658_s4, %s511_s26  ;;  %s315_s14 = scalar_lea.vmem %s659_s5, %s511_s26 }
  0x10   : > { %v322_v1 = vmul.f32 0.0625, %v321_v0  ;;  %v341_v9 = vsub.s32 0, %v340_v8  ;;  %v517_v10 = vld [vmem:[%s291_s29] sm:$0xff]   ;;  %v347_v15 = vsub.s32 1, %v340_v8 }
  0x11   : > { %v518_v11 = vunpack.c.l.bf16 %v517_v10  ;;  %v519_v12 = vunpack.c.h.bf16 %v517_v10  ;;  %v521_v20 = vld [vmem:[%s305_s9] sm:$0xff]  }
  0x12   : > { %v323_v2 = vmul.f32 %v322_v1, %v322_v1  ;;  %v342_v13 = vrot.slane %v322_v1, %v341_v9  ;;  %v522_v25 = vunpack.c.l.bf16 %v521_v20  ;;  %v523_v26 = vunpack.c.h.bf16 %v521_v20 }
  0x14   : > { %v325_v3 = vrot.slane %v323_v2, 7  ;;  %v343_v18 = vsub.f32 %v518_v11, %v342_v13  ;;  %v344_v19 = vsub.f32 %v519_v12, %v342_v13 }
  0x16   : > { %v327_v4 = vsub.f32 %v322_v1, %v325_v3 }
  0x18   : > { %v328_v5 = vmax.f32 %v327_v4, 0.0 }
  0x1a   : > { %v329_v6 = vadd.f32 1e-05, %v328_v5 }
  0x1c   : > { %553 = vrsqrt.f32 %v329_v6 }
  0x29   : > { %v554_v16 = vpop.eup %553 }
  0x2a   : > { %v338_v17 = vmul.f32 %v554_v16, %v505_v14 }
  0x2c   : > { %v348_v21 = vrot.slane %v338_v17, %v347_v15 }
  0x2e   : > { %v349_v23 = vmul.f32 %v348_v21, %v343_v18  ;;  %v350_v24 = vmul.f32 %v348_v21, %v344_v19 }
  0x30   : > { %v358_v27 = vadd.f32 %v506_v22, %v349_v23  ;;  %v359_v28 = vadd.f32 %v506_v22, %v350_v24 }
  0x32   : > { %v364_v29 = vadd.f32 %v522_v25, %v358_v27  ;;  %v365_v30 = vadd.f32 %v523_v26, %v359_v28 }
  0x34   : > { %v527_v31 = vpack.c.bf16 %v365_v30, %v364_v29 }
  0x36   : > { %528 = vst [vmem:[%s315_s14] sm:$0xff] %v527_v31  }
  0x37 PF: > { %s15_s20 = sadd.s32 1, %s577_s20   ;;  %s660_s18 = smov %s573_s19 }
  0x38   : > { %p12_p5 = scmp.ge.s32.totalorder %s15_s20, 4   ;;  %s661_s19 = smov %s663_s21 }
  0x3a   :  { %14 = sbr.rel (!%p12_p5) target bundleno = 2 (0x2), region = 76 }

// kernel: deepstylex_forward.37
= control target key start
LH: loop header
LB: loop body
LE: loop exit
PB: predicated region body
PF: predicated region fallthrough
CT: control target
= control target key end

     0   :  { %s1636_s15 = smov 0   ;;  %s1638_s16 = smov 0   ;;  %s1916_s0 = inlined_call_operand.vmem [shape: bf16[2,16,1152], index: 0, kind: input, shape index: {}]   ;;  %s1917_s1 = inlined_call_operand.vmem [shape: bf16[1152,128], index: 1, kind: input, shape index: {}]   ;;  %s1918_s2 = inlined_call_operand.vmem [shape: f32[1,128], index: 2, kind: input, shape index: {}]   ;;  %s1919_s3 = inlined_call_operand.vmem [shape: bf16[2,16,128], index: 3, kind: output, shape index: {0}]   ;;  %s1920_s4 = inlined_call_operand.vmem [shape: f32[2,2,128], index: 4, kind: output, shape index: {1}]  }
   0x1   :  { %s1640_s17 = smov 0  }
   0x2 LB: > { %s27_s18 = sadd.s32 1, %s1603_s16  ;;  %p1257_p0 = scmp.ge.s32.totalorder %s1607_s17, 1  ;;  %s1607_s17 = sphi %s1640_s17, %s15_s17   ;;  %s1603_s16 = sphi %s1638_s16, %s1922_s16   ;;  %s1599_s15 = sphi %s1636_s15, %s1921_s15  }
   0x3   : > { %p29_p1 = scmp.ge.s32.totalorder %s27_s18, 2  ;;  %p187_p2 = scmp.lt.s32.totalorder %s1607_s17, 3 }
   0x5   : > { %s1924_s18 = smov (%p29_p1, %s27_s18), 0  ;;  %p188_p3 = pnand %p1257_p0, %p187_p2 }
   0x6   : > { %p227_p4 = scmp.lt.s32.totalorder (!%p188_p3), %s1599_s15, 1 }
   0x7   : > { %191 = sbr.rel (%p188_p3) target bundleno = 328 (0x148), region = 32 }
   0xc   : > { %v1500_v0 = vld [vmem:[%s1917_s1 + $0x78] sm:$0xff]   ;;  %v1504_v4 = vld [vmem:[%s1917_s1 + $0x70] sm:$0xff]   ;;  %v1508_v8 = vld [vmem:[%s1917_s1 + $0x68] sm:$0xff]   ;;  %s1926_s15 = smov (!%p227_p4, %s1599_s15), 1  ;;  %vm1610_vm0 = vmmov 0   ;;  %vm1128_vm1 = vcmask 1040384  }
   0xd   : > { %v1501_v1 = vld [vmem:[%s1917_s1 + $0x38] sm:$0xff]   ;;  %1356 = vmatprep.subr.bf16.mxu0 %v1500_v0  ;;  %v1505_v5 = vld [vmem:[%s1917_s1 + $0x30] sm:$0xff]   ;;  %v1509_v9 = vld [vmem:[%s1917_s1 + $0x28] sm:$0xff]   ;;  %s1473_s25 = smul.u32 72, %s1926_s15  ;;  %s1261_s13 = sshll.u32 %s1926_s15, 1 }
   0xe   : > { %v1502_v2 = vld [vmem:[%s1917_s1 + $0xf8] sm:$0xff]   ;;  %1357 = vmatpush3.bf16.msra.mxu0 %v1501_v1  ;;  %v1506_v6 = vld [vmem:[%s1917_s1 + $0xf0] sm:$0xff]   ;;  %v1510_v10 = vld [vmem:[%s1917_s1 + $0xe8] sm:$0xff]   ;;  %s1895_s20 = scalar_lea.vmem %s1920_s4, %s1261_s13  ;;  %s1348_s22 = sshll.u32 %s1926_s15, 3 }
   0xf   : > { %v1503_v3 = vld [vmem:[%s1917_s1 + $0xb8] sm:$0xff]   ;;  %1378 = vmatprep.subr.bf16.mxu1 %v1502_v2  ;;  %1358 = vmatprep.subr.bf16.mxu0 %v1504_v4  ;;  %v1507_v7 = vld [vmem:[%s1917_s1 + $0xb0] sm:$0xff]   ;;  %v1511_v11 = vld [vmem:[%s1917_s1 + $0xa8] sm:$0xff]   ;;  %s1751_s10 = scalar_lea.vmem %s1916_s0, %s1473_s25  ;;  %s245_s25 = scalar_lea.vmem %s1919_s3, %s1348_s22 }
  0x10   : > { %1379 = vmatpush3.bf16.msra.mxu1 %v1503_v3  ;;  %v1512_v12 = vld [vmem:[%s1917_s1 + $0x60] sm:$0xff]   ;;  %v1516_v16 = vld [vmem:[%s1917_s1 + $0x58] sm:$0xff]   ;;  %v1520_v20 = vld [vmem:[%s1917_s1 + $0x50] sm:$0xff]  }
  0x11   : > { %1380 = vmatprep.subr.bf16.mxu1 %v1506_v6  ;;  %v1513_v13 = vld [vmem:[%s1917_s1 + $0x20] sm:$0xff]   ;;  %v1517_v17 = vld [vmem:[%s1917_s1 + $0x18] sm:$0xff]   ;;  %v1521_v21 = vld [vmem:[%s1917_s1 + $0x10] sm:$0xff]   ;;  %v1609_v6 = vmov 0.0  }
  0x12   : > { %1359 = vmatpush3.bf16.msra.mxu0 %v1505_v5  ;;  %v1514_v14 = vld [vmem:[%s1917_s1 + $0xe0] sm:$0xff]   ;;  %v1518_v18 = vld [vmem:[%s1917_s1 + $0xd8] sm:$0xff]   ;;  %v1522_v22 = vld [vmem:[%s1917_s1 + $0xd0] sm:$0xff]   ;;  %1110 = vst [vmem:[%s1895_s20] sm:$0x3] %v1609_v6 }
  0x13   : > { %1360 = vmatprep.subr.bf16.mxu0 %v1508_v8  ;;  %v1515_v15 = vld [vmem:[%s1917_s1 + $0xa0] sm:$0xff]   ;;  %v1519_v19 = vld [vmem:[%s1917_s1 + $0x98] sm:$0xff]   ;;  %v1523_v23 = vld [vmem:[%s1917_s1 + $0x90] sm:$0xff]  }
  0x14   : > { %1381 = vmatpush3.bf16.msra.mxu1 %v1507_v7  ;;  %v1524_v24 = vld [vmem:[%s1917_s1 + $0x48] sm:$0xff]   ;;  %v1528_v28 = vld [vmem:[%s1917_s1 + $0x40] sm:$0xff]   ;;  %v1535_v34 = vld [vmem:[%s1917_s1 + $0x178] sm:$0xff]  }
  0x15   : > { %1382 = vmatprep.subr.bf16.mxu1 %v1510_v10  ;;  %v1525_v25 = vld [vmem:[%s1917_s1 + $0x8] sm:$0xff]   ;;  %v1529_v29 = vld [vmem:[%s1917_s1] sm:$0xff]   ;;  %v1539_v37 = vld [vmem:[%s1917_s1 + $0x138] sm:$0xff]  }
  0x16   : > { %1361 = vmatpush3.bf16.msra.mxu0 %v1509_v9  ;;  %v1526_v26 = vld [vmem:[%s1917_s1 + $0xc8] sm:$0xff]   ;;  %v1530_v30 = vld [vmem:[%s1917_s1 + $0xc0] sm:$0xff]   ;;  %v1540_v38 = vld [vmem:[%s1917_s1 + $0x1f8] sm:$0xff]  }
  0x17   : > { %1362 = vmatprep.subr.bf16.mxu0 %v1512_v12  ;;  %v1527_v27 = vld [vmem:[%s1917_s1 + $0x88] sm:$0xff]   ;;  %v1531_v31 = vld [vmem:[%s1751_s10] ss:$36 sps:$4 sm:$0xff]   ;;  %v1541_v39 = vld [vmem:[%s1917_s1 + $0x1b8] sm:$0xff]  }
  0x18   : > { %1383 = vmatpush3.bf16.msra.mxu1 %v1511_v11  ;;  %v1533_v32 = vld [vmem:[%s1751_s10 + $0x4] ss:$36 sps:$4 sm:$0xff]   ;;  %v1538_v36 = vld [vmem:[%s1751_s10 + $0xc] ss:$36 sps:$4 sm:$0xff]   ;;  %v1554_v52 = vld [vmem:[%s1917_s1 + $0x158] sm:$0xff]  }
  0x19   : > { %1384 = vmatprep.subr.bf16.mxu1 %v1514_v14  ;;  %v1534_v33 = vld [vmem:[%s1917_s1 + $0x80] sm:$0xff]   ;;  %923 = vmatprep.mubr.bf16.mxu0 %v1533_v32  ;;  %v1536_v35 = vld [vmem:[%s1751_s10 + $0x8] ss:$36 sps:$4 sm:$0xff]   ;;  %v1542_v40 = vld [vmem:[%s1917_s1 + $0x170] sm:$0xff]  }
  0x1a   : > { %1363 = vmatpush3.bf16.msra.mxu0 %v1513_v13  ;;  %964 = vmatprep.mubr.bf16.mxu1 %v1538_v36  ;;  %v1543_v41 = vld [vmem:[%s1917_s1 + $0x130] sm:$0xff]   ;;  %v1546_v44 = vld [vmem:[%s1917_s1 + $0x168] sm:$0xff]   ;;  %v1550_v48 = vld [vmem:[%s1917_s1 + $0x160] sm:$0xff]  }
  0x1b   : > { %1364 = vmatprep.subr.bf16.mxu0 %v1516_v16  ;;  %v1544_v42 = vld [vmem:[%s1917_s1 + $0x1f0] sm:$0xff]   ;;  %v1547_v45 = vld [vmem:[%s1917_s1 + $0x128] sm:$0xff]   ;;  %v1551_v49 = vld [vmem:[%s1917_s1 + $0x120] sm:$0xff]  }
  0x1c   : > { %1385 = vmatpush3.bf16.msra.mxu1 %v1515_v15  ;;  %v1545_v43 = vld [vmem:[%s1917_s1 + $0x1b0] sm:$0xff]   ;;  %v1548_v46 = vld [vmem:[%s1917_s1 + $0x1e8] sm:$0xff]   ;;  %v1552_v50 = vld [vmem:[%s1917_s1 + $0x1e0] sm:$0xff]  }
  0x1d   : > { %1386 = vmatprep.subr.bf16.mxu1 %v1518_v18  ;;  %v1549_v47 = vld [vmem:[%s1917_s1 + $0x1a8] sm:$0xff]   ;;  %v1553_v51 = vld [vmem:[%s1917_s1 + $0x1a0] sm:$0xff]   ;;  %v1555_v53 = vld [vmem:[%s1917_s1 + $0x118] sm:$0xff]  }
  0x1e   : > { %1365 = vmatpush3.bf16.msra.mxu0 %v1517_v17  ;;  %v1556_v54 = vld [vmem:[%s1917_s1 + $0x1d8] sm:$0xff]   ;;  %v1558_v56 = vld [vmem:[%s1917_s1 + $0x150] sm:$0xff]   ;;  %v1562_v60 = vld [vmem:[%s1917_s1 + $0x148] sm:$0xff]  }
  0x1f   : > { %1366 = vmatprep.subr.bf16.mxu0 %v1520_v20  ;;  %v1557_v55 = vld [vmem:[%s1917_s1 + $0x198] sm:$0xff]   ;;  %v1559_v57 = vld [vmem:[%s1917_s1 + $0x110] sm:$0xff]   ;;  %v1563_v61 = vld [vmem:[%s1917_s1 + $0x108] sm:$0xff]  }
  0x20   : > { %1387 = vmatpush3.bf16.msra.mxu1 %v1519_v19  ;;  %v1560_v58 = vld [vmem:[%s1917_s1 + $0x1d0] sm:$0xff]   ;;  %v1564_v62 = vld [vmem:[%s1917_s1 + $0x1c8] sm:$0xff]   ;;  %v1566_v0 = vld [vmem:[%s1917_s1 + $0x140] sm:$0xff]  }
  0x21   : > { %1388 = vmatprep.subr.bf16.mxu1 %v1522_v22  ;;  %v1561_v59 = vld [vmem:[%s1917_s1 + $0x190] sm:$0xff]   ;;  %v1565_v63 = vld [vmem:[%s1917_s1 + $0x188] sm:$0xff]   ;;  %v1567_v1 = vld [vmem:[%s1917_s1 + $0x100] sm:$0xff]  }
  0x22   : > { %1367 = vmatpush3.bf16.msra.mxu0 %v1521_v21  ;;  %v1568_v2 = vld [vmem:[%s1917_s1 + $0x1c0] sm:$0xff]   ;;  %v1569_v3 = vld [vmem:[%s1751_s10 + $0x10] ss:$36 sps:$4 sm:$0xff]   ;;  %v1573_v7 = vld [vmem:[%s1751_s10 + $0x18] ss:$36 sps:$4 sm:$0xff]  }
  0x23   : > { %1368 = vmatprep.subr.bf16.mxu0 %v1524_v24  ;;  %v1571_v4 = vld [vmem:[%s1751_s10 + $0x14] ss:$36 sps:$4 sm:$0xff]   ;;  %v1572_v5 = vld [vmem:[%s1917_s1 + $0x180] sm:$0xff]   ;;  %v1578_v11 = vld [vmem:[%s1917_s1 + $0x228] sm:$0xff]  }
  0x24   : > { %1389 = vmatpush3.bf16.msra.mxu1 %v1523_v23  ;;  %v1575_v8 = vld [vmem:[%s1751_s10 + $0x1c] ss:$36 sps:$4 sm:$0xff]   ;;  %v1577_v10 = vld [vmem:[%s1917_s1 + $0x230] sm:$0xff]   ;;  %v1582_v15 = vld [vmem:[%s1917_s1 + $0x208] sm:$0xff]  }
  0x25   : > { %1390 = vmatprep.subr.bf16.mxu1 %v1526_v26  ;;  %v1576_v9 = vld [vmem:[%s1917_s1 + $0x238] sm:$0xff]   ;;  %v1579_v12 = vld [vmem:[%s1917_s1 + $0x220] sm:$0xff]   ;;  %v1581_v14 = vld [vmem:[%s1917_s1 + $0x210] sm:$0xff]  }
  0x26   : > { %1369 = vmatpush3.bf16.msra.mxu0 %v1525_v25  ;;  %v1580_v13 = vld [vmem:[%s1917_s1 + $0x218] sm:$0xff]   ;;  %v1583_v16 = vld [vmem:[%s1917_s1 + $0x200] sm:$0xff]  }
  0x27   : > { %1370 = vmatprep.subr.bf16.mxu0 %v1528_v28  ;;  %v1584_v17 = vld [vmem:[%s1751_s10 + $0x20] ss:$36 sps:$4 sm:$0xff]  }
  0x28   : > { %1391 = vmatpush3.bf16.msra.mxu1 %v1527_v27 }
  0x29   : > { %1392 = vmatprep.subr.bf16.mxu1 %v1530_v30  ;;  %v1262_v30 = vld [vmem:[%s1918_s2] ss:$0 sm:$0xff] }
  0x2a   : > { %1371 = vmatpush3.bf16.msra.mxu0 %v1529_v29 }
  0x2b   : > { %1400 = vmatprep.subr.bf16.mxu0 %v1535_v34 }
  0x2c   : > { %1393 = vmatpush3.bf16.msra.mxu1 %v1534_v33 }
  0x2d   : > { %924 = vmatmul.mubr.bf16.vlgmr.msra.gmra.mxu0 %v1531_v31  ;;  %1422 = vmatprep.subr.bf16.mxu1 %v1540_v38 }
  0x2e   : > { %1401 = vmatpush3.bf16.msra.mxu0 %v1539_v37  ;;  %1005 = vmatprep.mubr.bf16.mxu0 %v1571_v4 }
  0x2f   : > { %965 = vmatmul.mubr.bf16.vlgmr.msra.gmra.mxu1 %v1536_v35  ;;  %1402 = vmatprep.subr.bf16.mxu0 %v1542_v40 }
  0x30   : > { %1423 = vmatpush3.bf16.msra.mxu1 %v1541_v39  ;;  %1046 = vmatprep.mubr.bf16.mxu1 %v1575_v8 }
  0x31   : > { %1424 = vmatprep.subr.bf16.mxu1 %v1544_v42 }
  0x32   : > { %1403 = vmatpush3.bf16.msra.mxu0 %v1543_v41 }
  0x33   : > { %1404 = vmatprep.subr.bf16.mxu0 %v1546_v44 }
  0x34   : > { %1425 = vmatpush3.bf16.msra.mxu1 %v1545_v43 }
  0x35   : > { %1426 = vmatprep.subr.bf16.mxu1 %v1548_v46 }
  0x36   : > { %1405 = vmatpush3.bf16.msra.mxu0 %v1547_v45 }
  0x37   : > { %1406 = vmatprep.subr.bf16.mxu0 %v1550_v48 }
  0x38   : > { %1427 = vmatpush3.bf16.msra.mxu1 %v1549_v47 }
  0x39   : > { %1428 = vmatprep.subr.bf16.mxu1 %v1552_v50 }
  0x3a   : > { %1407 = vmatpush3.bf16.msra.mxu0 %v1551_v49 }
  0x3b   : > { %1408 = vmatprep.subr.bf16.mxu0 %v1554_v52 }
  0x3c   : > { %1429 = vmatpush3.bf16.msra.mxu1 %v1553_v51 }
  0x3d   : > { %1430 = vmatprep.subr.bf16.mxu1 %v1556_v54 }
  0x3e   : > { %1409 = vmatpush3.bf16.msra.mxu0 %v1555_v53 }
  0x3f   : > { %1410 = vmatprep.subr.bf16.mxu0 %v1558_v56 }
  0x40   : > { %1431 = vmatpush3.bf16.msra.mxu1 %v1557_v55 }
  0x41   : > { %1432 = vmatprep.subr.bf16.mxu1 %v1560_v58 }
  0x42   : > { %1411 = vmatpush3.bf16.msra.mxu0 %v1559_v57 }
  0x43   : > { %1412 = vmatprep.subr.bf16.mxu0 %v1562_v60 }
  0x44   : > { %1433 = vmatpush3.bf16.msra.mxu1 %v1561_v59 }
  0x45   : > { %1434 = vmatprep.subr.bf16.mxu1 %v1564_v62 }
  0x46   : > { %1413 = vmatpush3.bf16.msra.mxu0 %v1563_v61 }
  0x47   : > { %1414 = vmatprep.subr.bf16.mxu0 %v1566_v0 }
  0x48   : > { %1435 = vmatpush3.bf16.msra.mxu1 %v1565_v63 }
  0x49   : > { %1436 = vmatprep.subr.bf16.mxu1 %v1568_v2 }
  0x4a   : > { %1415 = vmatpush3.bf16.msra.mxu0 %v1567_v1 }
  0x4b   : > { %1453 = vmatprep.subr.bf16.mxu0 %v1609_v6 }
  0x4c   : > { %1437 = vmatpush3.bf16.msra.mxu1 %v1572_v5 }
  0x4d   : > { %1006 = vmatmul.mubr.bf16.vlgmr.msra.gmra.mxu0 %v1569_v3 }
  0x4e   : > { %1469 = vmatprep.mubr.msk.bf16.mxu0 %vm1610_vm0, %v1609_v6  ;;  %1454 = vmatpush3.bf16.msra.mxu0 %v1576_v9 }
  0x4f   : > { %1047 = vmatmul.mubr.bf16.vlgmr.msra.gmra.mxu1 %v1573_v7  ;;  %1455 = vmatprep.subr.bf16.mxu0 %v1609_v6 }
  0x52   : > { %1456 = vmatpush3.bf16.msra.mxu0 %v1577_v10  ;;  %v1127_v10 = vld [vmem:[%s1895_s20] sm:$0x3] }
  0x53   : > { %1457 = vmatprep.subr.bf16.mxu0 %v1609_v6 }
  0x56   : > { %1458 = vmatpush3.bf16.msra.mxu0 %v1578_v11 }
  0x57   : > { %1459 = vmatprep.subr.bf16.mxu0 %v1609_v6 }
  0x5a   : > { %1460 = vmatpush3.bf16.msra.mxu0 %v1579_v12 }
  0x5b   : > { %1461 = vmatprep.subr.bf16.mxu0 %v1609_v6 }
  0x5e   : > { %1462 = vmatpush3.bf16.msra.mxu0 %v1580_v13 }
  0x5f   : > { %1463 = vmatprep.subr.bf16.mxu0 %v1609_v6 }
  0x62   : > { %1464 = vmatpush3.bf16.msra.mxu0 %v1581_v14 }
  0x63   : > { %1465 = vmatprep.subr.bf16.mxu0 %v1609_v6 }
  0x66   : > { %1466 = vmatpush3.bf16.msra.mxu0 %v1582_v15 }
  0x67   : > { %1467 = vmatprep.subr.bf16.mxu0 %v1609_v6 }
  0x6a   : > { %1468 = vmatpush3.bf16.msra.mxu0 %v1583_v16 }
  0x6d   : > { %1470 = vmatmul.mubr.bf16.vlgmr.msra.gmra.mxu0 %v1584_v17 }
  0xed   : > { %v1372_v18 = vpop.f32.mrf.mxu0 }
  0xef   : > { %v1373_v19 = vpop.f32.mrf.mxu0  ;;  %v1394_v20 = vpop.f32.mrf.mxu1 }
  0xf0   : > { %v1374_v29 = vadd.f32 %v1373_v19, %v1372_v18 }
  0xf1   : > { %v1375_v21 = vpop.f32.mrf.mxu0  ;;  %v1395_v22 = vpop.f32.mrf.mxu1 }
  0xf2   : > { %v926_v34 = vadd.f32 %v1374_v29, %v1262_v30  ;;  %v1396_v35 = vadd.f32 %v1395_v22, %v1394_v20 }
  0xf3   : > { %v1376_v23 = vpop.f32.mrf.mxu0  ;;  %v1397_v24 = vpop.f32.mrf.mxu1 }
  0xf4   : > { %v1377_v33 = vadd.f32 %v1376_v23, %v1375_v21  ;;  %v967_v41 = vadd.f32 %v1396_v35, %v926_v34 }
  0xf5   : > { %v1398_v26 = vpop.f32.mrf.mxu1 }
  0xf6   : > { %v929_v38 = vadd.f32 %v1377_v33, %v1262_v30  ;;  %v1399_v39 = vadd.f32 %v1398_v26, %v1397_v24 }
  0xf8   : > { %v970_v44 = vadd.f32 %v1399_v39, %v929_v38 }
 0x10d   : > { %v1416_v25 = vpop.f32.mrf.mxu0 }
 0x10f   : > { %v1417_v27 = vpop.f32.mrf.mxu0  ;;  %v1438_v28 = vpop.f32.mrf.mxu1 }
 0x110   : > { %v1418_v40 = vadd.f32 %v1417_v27, %v1416_v25 }
 0x111   : > { %v1419_v31 = vpop.f32.mrf.mxu0  ;;  %v1439_v32 = vpop.f32.mrf.mxu1 }
 0x112   : > { %v1008_v45 = vadd.f32 %v1418_v40, %v967_v41  ;;  %v1440_v46 = vadd.f32 %v1439_v32, %v1438_v28 }
 0x113   : > { %v1420_v36 = vpop.f32.mrf.mxu0  ;;  %v1441_v37 = vpop.f32.mrf.mxu1 }
 0x114   : > { %v1421_v42 = vadd.f32 %v1420_v36, %v1419_v31  ;;  %v1049_v50 = vadd.f32 %v1440_v46, %v1008_v45 }
 0x115   : > { %v1442_v43 = vpop.f32.mrf.mxu1 }
 0x116   : > { %v1011_v47 = vadd.f32 %v1421_v42, %v970_v44  ;;  %v1443_v48 = vadd.f32 %v1442_v43, %v1441_v37 }
 0x118   : > { %v1052_v53 = vadd.f32 %v1443_v48, %v1011_v47 }
 0x12d   : > { %v1089_v49 = vpop.f32.mrf.mxu0 }
 0x12e   : > { %v1090_v52 = vadd.f32 %v1089_v49, %v1049_v50 }
 0x12f   : > { %v1471_v51 = vpop.f32.mrf.mxu0 }
 0x130   : > { %v1118_v57 = vmul.f32 %v1090_v52, %v1090_v52 }
 0x131   : > { %v1092_v54 = vpop.f32.mrf.mxu0 }
 0x132   : > { %v1093_v55 = vadd.f32 %v1092_v54, %v1052_v53 }
 0x133   : > { %v1472_v56 = vpop.f32.mrf.mxu0 }
 0x134   : > { %v1354_v58 = vpack.c.bf16 %v1093_v55, %v1090_v52  ;;  %v1111_v59 = vadd.f32 %v1093_v55, %v1090_v52  ;;  %v1119_v60 = vmul.f32 %v1093_v55, %v1093_v55 }
 0x136   : > { %1355 = vst [vmem:[%s245_s25] sm:$0xff] %v1354_v58   ;;  %v1112_v61 = vrot.slane %v1111_v59, 4  ;;  %v1120_v62 = vadd.f32 %v1119_v60, %v1118_v57 }
 0x138   : > { %v1113_v63 = vadd.f32 %v1112_v61, %v1111_v59  ;;  %v1121_v0 = vrot.slane %v1120_v62, 4 }
 0x13a   : > { %v1114_v1 = vrot.slane %v1113_v63, 2  ;;  %v1122_v2 = vadd.f32 %v1121_v0, %v1120_v62 }
 0x13c   : > { %v1115_v3 = vadd.f32 %v1114_v1, %v1113_v63  ;;  %v1123_v4 = vrot.slane %v1122_v2, 2 }
 0x13e   : > { %v1116_v5 = vrot.slane %v1115_v3, 1  ;;  %v1124_v6 = vadd.f32 %v1123_v4, %v1122_v2 }
 0x140   : > { %v1125_v7 = vrot.slane %v1124_v6, 1  ;;  %v1117_v8 = vadd.f32 %v1116_v5, %v1115_v3 }
 0x142   : > { %v1126_v9 = vadd.f32 %v1125_v7, %v1124_v6 }
 0x144   : > { %v1129_v11 = vsel %vm1128_vm1, %v1117_v8, %v1126_v9 }
 0x145   : > { %v1130_v12 = vadd.f32 %v1129_v11, %v1127_v10 }
 0x147   : > { %1131 = vst [vmem:[%s1895_s20] sm:$0x3] %v1130_v12 }
 0x148 PF: > { %s15_s17 = sadd.s32 1, %s1607_s17   ;;  %s1921_s15 = smov %s1603_s16 }
 0x149   : > { %p12_p5 = scmp.ge.s32.totalorder %s15_s17, 4   ;;  %s1922_s16 = smov %s1924_s18 }
 0x14b   :  { %14 = sbr.rel (!%p12_p5) target bundleno = 2 (0x2), region = 78 }

// kernel: deepstylex_forward.57
= control target key start
LH: loop header
LB: loop body
LE: loop exit
PB: predicated region body
PF: predicated region fallthrough
CT: control target
= control target key end

     0   :  { %s2158_s15 = smov 0   ;;  %s2160_s16 = smov 0   ;;  %s2543_s0 = inlined_call_operand.vmem [shape: bf16[2,64,1152], index: 0, kind: input, shape index: {}]   ;;  %s2544_s1 = inlined_call_operand.vmem [shape: bf16[1152,64], index: 1, kind: input, shape index: {}]   ;;  %s2545_s2 = inlined_call_operand.vmem [shape: f32[1,64], index: 2, kind: input, shape index: {}]   ;;  %s2546_s3 = inlined_call_operand.vmem [shape: bf16[2,64,64], index: 3, kind: output, shape index: {0}]   ;;  %s2547_s4 = inlined_call_operand.vmem [shape: f32[2,2,64], index: 4, kind: output, shape index: {1}]  }
   0x1   :  { %s2162_s17 = smov 0  }
   0x2 LB: > { %s27_s18 = sadd.s32 1, %s2126_s16  ;;  %p1613_p0 = scmp.ge.s32.totalorder %s2130_s17, 1  ;;  %s2130_s17 = sphi %s2162_s17, %s15_s17   ;;  %s2126_s16 = sphi %s2160_s16, %s2559_s16   ;;  %s2122_s15 = sphi %s2158_s15, %s2558_s15  }
   0x3   : > { %p29_p1 = scmp.ge.s32.totalorder %s27_s18, 2  ;;  %p187_p2 = scmp.lt.s32.totalorder %s2130_s17, 3 }
   0x5   : > { %s2561_s18 = smov (%p29_p1, %s27_s18), 0  ;;  %p188_p3 = pnand %p1613_p0, %p187_p2 }
   0x7   : > { %191 = sbr.rel (%p188_p3) target bundleno = 345 (0x159), region = 32 }
   0xc   : > { %v1984_v0 = vld [vmem:[%s2544_s1 + $0x78] sm:$0xff]   ;;  %v1988_v4 = vld [vmem:[%s2544_s1 + $0x70] sm:$0xff]   ;;  %v1992_v8 = vld [vmem:[%s2544_s1 + $0x68] sm:$0xff]   ;;  %p227_p4 = scmp.lt.s32.totalorder %s2122_s15, 1  ;;  %vm1429_vm0 = vcmask 517120   ;;  %vm1416_vm1 = vcmask 519168  }
   0xd   : > { %v1985_v1 = vld [vmem:[%s2544_s1 + $0xf8] sm:$0xff]   ;;  %1746 = vmatprep.subr.bf16.mxu0 %v1984_v0  ;;  %v1989_v5 = vld [vmem:[%s2544_s1 + $0xf0] sm:$0xff]   ;;  %v1993_v9 = vld [vmem:[%s2544_s1 + $0xe8] sm:$0xff]   ;;  %vm1431_vm2 = vcmask 523264   ;;  %vm1483_vm3 = vcmask 1040384  }
   0xe   : > { %v1986_v2 = vld [vmem:[%s2544_s1 + $0x38] sm:$0xff]   ;;  %1786 = vmatprep.subr.bf16.mxu1 %v1985_v1  ;;  %v1990_v6 = vld [vmem:[%s2544_s1 + $0x30] sm:$0xff]   ;;  %v1994_v10 = vld [vmem:[%s2544_s1 + $0x28] sm:$0xff]   ;;  %s2563_s15 = smov (!%p227_p4, %s2122_s15), 1 }
   0xf   : > { %v1987_v3 = vld [vmem:[%s2544_s1 + $0xb8] sm:$0xff]   ;;  %1747 = vmatpush3.bf16.msra.mxu0 %v1986_v2  ;;  %v1991_v7 = vld [vmem:[%s2544_s1 + $0xb0] sm:$0xff]   ;;  %v1995_v11 = vld [vmem:[%s2544_s1 + $0xa8] sm:$0xff]   ;;  %s1958_s27 = smul.u32 288, %s2563_s15  ;;  %s1617_s13 = sshll.u32 %s2563_s15, 1 }
  0x10   : > { %1787 = vmatpush3.bf16.msra.mxu1 %v1987_v3  ;;  %1748 = vmatprep.subr.bf16.mxu0 %v1988_v4  ;;  %v1996_v12 = vld [vmem:[%s2544_s1 + $0x60] sm:$0xff]   ;;  %v2000_v16 = vld [vmem:[%s2544_s1 + $0x58] sm:$0xff]   ;;  %v2004_v20 = vld [vmem:[%s2544_s1 + $0x50] sm:$0xff]   ;;  %s2444_s20 = scalar_lea.vmem %s2547_s4, %s1617_s13  ;;  %s1737_s22 = sshll.u32 %s2563_s15, 5 }
  0x11   : > { %1788 = vmatprep.subr.bf16.mxu1 %v1989_v5  ;;  %v1997_v13 = vld [vmem:[%s2544_s1 + $0xe0] sm:$0xff]   ;;  %v2001_v17 = vld [vmem:[%s2544_s1 + $0xd8] sm:$0xff]   ;;  %v2005_v21 = vld [vmem:[%s2544_s1 + $0xd0] sm:$0xff]   ;;  %s2276_s12 = scalar_lea.vmem %s2543_s0, %s1958_s27  ;;  %s2497_s24 = scalar_lea.vmem %s2546_s3, %s1737_s22 }
  0x12   : > { %v1998_v14 = vld [vmem:[%s2544_s1 + $0x20] sm:$0xff]   ;;  %v2002_v18 = vld [vmem:[%s2544_s1 + $0x18] sm:$0xff]   ;;  %v2006_v22 = vld [vmem:[%s2544_s1 + $0x10] sm:$0xff]  }
  0x13   : > { %1749 = vmatpush3.bf16.msra.mxu0 %v1990_v6  ;;  %v1999_v15 = vld [vmem:[%s2544_s1 + $0xa0] sm:$0xff]   ;;  %v2003_v19 = vld [vmem:[%s2544_s1 + $0x98] sm:$0xff]   ;;  %v2007_v23 = vld [vmem:[%s2544_s1 + $0x90] sm:$0xff]  }
  0x14   : > { %1789 = vmatpush3.bf16.msra.mxu1 %v1991_v7  ;;  %1750 = vmatprep.subr.bf16.mxu0 %v1992_v8  ;;  %v2008_v24 = vld [vmem:[%s2544_s1 + $0x48] sm:$0xff]   ;;  %v2012_v28 = vld [vmem:[%s2544_s1 + $0x40] sm:$0xff]   ;;  %v2022_v36 = vld [vmem:[%s2544_s1 + $0x178] sm:$0xff]  }
  0x15   : > { %1790 = vmatprep.subr.bf16.mxu1 %v1993_v9  ;;  %v2009_v25 = vld [vmem:[%s2544_s1 + $0xc8] sm:$0xff]   ;;  %v2013_v29 = vld [vmem:[%s2544_s1 + $0xc0] sm:$0xff]   ;;  %v2023_v37 = vld [vmem:[%s2544_s1 + $0x1f8] sm:$0xff]  }
  0x16   : > { %v2010_v26 = vld [vmem:[%s2544_s1 + $0x8] sm:$0xff]   ;;  %v2014_v30 = vld [vmem:[%s2544_s1] sm:$0xff]   ;;  %v2024_v38 = vld [vmem:[%s2544_s1 + $0x138] sm:$0xff]  }
  0x17   : > { %1751 = vmatpush3.bf16.msra.mxu0 %v1994_v10  ;;  %v2011_v27 = vld [vmem:[%s2544_s1 + $0x88] sm:$0xff]   ;;  %v2015_v31 = vld [vmem:[%s2544_s1 + $0x80] sm:$0xff]   ;;  %v2025_v39 = vld [vmem:[%s2544_s1 + $0x1b8] sm:$0xff]  }
  0x18   : > { %1791 = vmatpush3.bf16.msra.mxu1 %v1995_v11  ;;  %1752 = vmatprep.subr.bf16.mxu0 %v1996_v12  ;;  %v2016_v32 = vld [vmem:[%s2276_s12] ss:$36 sps:$4 sm:$0xff]   ;;  %v2019_v34 = vld [vmem:[%s2276_s12 + $0x8] ss:$36 sps:$4 sm:$0xff]   ;;  %v2026_v40 = vld [vmem:[%s2544_s1 + $0x170] sm:$0xff]  }
  0x19   : > { %1792 = vmatprep.subr.bf16.mxu1 %v1997_v13  ;;  %v2018_v33 = vld [vmem:[%s2276_s12 + $0x4] ss:$36 sps:$4 sm:$0xff]   ;;  %v2021_v35 = vld [vmem:[%s2276_s12 + $0xc] ss:$36 sps:$4 sm:$0xff]   ;;  %v2032_v45 = vld [vmem:[%s2276_s12 + $0x54] ss:$36 sps:$4 sm:$0xff]  }
  0x1a   : > { %1091 = vmatprep.mubr.bf16.mxu0 %v2018_v33  ;;  %1156 = vmatprep.mubr.bf16.mxu1 %v2021_v35  ;;  %v2027_v41 = vld [vmem:[%s2544_s1 + $0x1f0] sm:$0xff]   ;;  %v2034_v46 = vld [vmem:[%s2276_s12 + $0x48] ss:$36 sps:$4 sm:$0xff]   ;;  %v2040_v52 = vld [vmem:[%s2544_s1 + $0x160] sm:$0xff]  }
  0x1b   : > { %1753 = vmatpush3.bf16.msra.mxu0 %v1998_v14  ;;  %v2028_v42 = vld [vmem:[%s2544_s1 + $0x130] sm:$0xff]   ;;  %v2036_v48 = vld [vmem:[%s2544_s1 + $0x168] sm:$0xff]   ;;  %v2041_v53 = vld [vmem:[%s2544_s1 + $0x1e0] sm:$0xff]  }
  0x1c   : > { %1793 = vmatpush3.bf16.msra.mxu1 %v1999_v15  ;;  %1754 = vmatprep.subr.bf16.mxu0 %v2000_v16  ;;  %v2029_v43 = vld [vmem:[%s2544_s1 + $0x1b0] sm:$0xff]   ;;  %v2037_v49 = vld [vmem:[%s2544_s1 + $0x1e8] sm:$0xff]   ;;  %v2042_v54 = vld [vmem:[%s2544_s1 + $0x120] sm:$0xff]  }
  0x1d   : > { %1794 = vmatprep.subr.bf16.mxu1 %v2001_v17  ;;  %v2030_v44 = vld [vmem:[%s2276_s12 + $0x4c] ss:$36 sps:$4 sm:$0xff]   ;;  %v2043_v55 = vld [vmem:[%s2544_s1 + $0x1a0] sm:$0xff]   ;;  %v2044_v56 = vld [vmem:[%s2276_s12 + $0x94] ss:$36 sps:$4 sm:$0xff]  }
  0x1e   : > { %v2035_v47 = vld [vmem:[%s2276_s12 + $0x50] ss:$36 sps:$4 sm:$0xff]   ;;  %v2038_v50 = vld [vmem:[%s2544_s1 + $0x128] sm:$0xff]   ;;  %v2046_v57 = vld [vmem:[%s2276_s12 + $0x9c] ss:$36 sps:$4 sm:$0xff]  }
  0x1f   : > { %1755 = vmatpush3.bf16.msra.mxu0 %v2002_v18  ;;  %v2039_v51 = vld [vmem:[%s2544_s1 + $0x1a8] sm:$0xff]   ;;  %v2048_v58 = vld [vmem:[%s2276_s12 + $0x90] ss:$36 sps:$4 sm:$0xff]   ;;  %v2049_v59 = vld [vmem:[%s2276_s12 + $0x98] ss:$36 sps:$4 sm:$0xff]  }
  0x20   : > { %1795 = vmatpush3.bf16.msra.mxu1 %v2003_v19  ;;  %1756 = vmatprep.subr.bf16.mxu0 %v2004_v20  ;;  %v2050_v60 = vld [vmem:[%s2544_s1 + $0x158] sm:$0xff]   ;;  %v2054_v0 = vld [vmem:[%s2544_s1 + $0x150] sm:$0xff]   ;;  %v2060_v5 = vld [vmem:[%s2276_s12 + $0xe4] ss:$36 sps:$4 sm:$0xff]  }
  0x21   : > { %1796 = vmatprep.subr.bf16.mxu1 %v2005_v21  ;;  %v2051_v61 = vld [vmem:[%s2544_s1 + $0x1d8] sm:$0xff]   ;;  %v2055_v1 = vld [vmem:[%s2544_s1 + $0x1d0] sm:$0xff]   ;;  %v2063_v7 = vld [vmem:[%s2276_s12 + $0xe0] ss:$36 sps:$4 sm:$0xff]  }
  0x22   : > { %v2052_v62 = vld [vmem:[%s2544_s1 + $0x118] sm:$0xff]   ;;  %v2056_v2 = vld [vmem:[%s2544_s1 + $0x110] sm:$0xff]   ;;  %v2064_v8 = vld [vmem:[%s2544_s1 + $0x148] sm:$0xff]  }
  0x23   : > { %1757 = vmatpush3.bf16.msra.mxu0 %v2006_v22  ;;  %v2053_v63 = vld [vmem:[%s2544_s1 + $0x198] sm:$0xff]   ;;  %v2057_v3 = vld [vmem:[%s2544_s1 + $0x190] sm:$0xff]   ;;  %v2065_v9 = vld [vmem:[%s2544_s1 + $0x1c8] sm:$0xff]  }
  0x24   : > { %1797 = vmatpush3.bf16.msra.mxu1 %v2007_v23  ;;  %1758 = vmatprep.subr.bf16.mxu0 %v2008_v24  ;;  %v2058_v4 = vld [vmem:[%s2276_s12 + $0xdc] ss:$36 sps:$4 sm:$0xff]   ;;  %v2066_v10 = vld [vmem:[%s2544_s1 + $0x108] sm:$0xff]   ;;  %v2072_v16 = vld [vmem:[%s2276_s12 + $0x10] ss:$36 sps:$4 sm:$0xff]  }
  0x25   : > { %1798 = vmatprep.subr.bf16.mxu1 %v2009_v25  ;;  %v2062_v6 = vld [vmem:[%s2276_s12 + $0xd8] ss:$36 sps:$4 sm:$0xff]   ;;  %v2067_v11 = vld [vmem:[%s2544_s1 + $0x188] sm:$0xff]   ;;  %v2068_v12 = vld [vmem:[%s2544_s1 + $0x140] sm:$0xff]  }
  0x26   : > { %v2069_v13 = vld [vmem:[%s2544_s1 + $0x1c0] sm:$0xff]   ;;  %v2074_v17 = vld [vmem:[%s2276_s12 + $0x14] ss:$36 sps:$4 sm:$0xff]   ;;  %v2096_v33 = vld [vmem:[%s2276_s12 + $0xec] ss:$36 sps:$4 sm:$0xff]  }
  0x27   : > { %1759 = vmatpush3.bf16.msra.mxu0 %v2010_v26  ;;  %v2070_v14 = vld [vmem:[%s2544_s1 + $0x100] sm:$0xff]   ;;  %v2075_v18 = vld [vmem:[%s2276_s12 + $0x18] ss:$36 sps:$4 sm:$0xff]   ;;  %v2079_v21 = vld [vmem:[%s2544_s1 + $0x230] sm:$0xff]  }
  0x28   : > { %1799 = vmatpush3.bf16.msra.mxu1 %v2011_v27  ;;  %1760 = vmatprep.subr.bf16.mxu0 %v2012_v28  ;;  %v2071_v15 = vld [vmem:[%s2544_s1 + $0x180] sm:$0xff]   ;;  %v2078_v20 = vld [vmem:[%s2544_s1 + $0x238] sm:$0xff]   ;;  %v2086_v26 = vld [vmem:[%s2544_s1 + $0x228] sm:$0xff]  }
  0x29   : > { %1800 = vmatprep.subr.bf16.mxu1 %v2013_v29  ;;  %v2077_v19 = vld [vmem:[%s2276_s12 + $0x1c] ss:$36 sps:$4 sm:$0xff]   ;;  %v2082_v23 = vld [vmem:[%s2276_s12 + $0x64] ss:$36 sps:$4 sm:$0xff]   ;;  %v2090_v28 = vld [vmem:[%s2276_s12 + $0xac] ss:$36 sps:$4 sm:$0xff]  }
  0x2a   : > { %v2080_v22 = vld [vmem:[%s2276_s12 + $0x5c] ss:$36 sps:$4 sm:$0xff]   ;;  %v2088_v27 = vld [vmem:[%s2276_s12 + $0xa4] ss:$36 sps:$4 sm:$0xff]   ;;  %v2095_v35 = vld [vmem:[%s2544_s1 + $0x210] sm:$0xff]  }
  0x2b   : > { %1761 = vmatpush3.bf16.msra.mxu0 %v2014_v30  ;;  %v2084_v24 = vld [vmem:[%s2276_s12 + $0x58] ss:$36 sps:$4 sm:$0xff]   ;;  %v2085_v25 = vld [vmem:[%s2276_s12 + $0x60] ss:$36 sps:$4 sm:$0xff]  }
  0x2c   : > { %1801 = vmatpush3.bf16.msra.mxu1 %v2015_v31  ;;  %1826 = vmatprep.subr.bf16.mxu0 %v2022_v36  ;;  %v2087_v29 = vld [vmem:[%s2544_s1 + $0x220] sm:$0xff]   ;;  %v2093_v31 = vld [vmem:[%s2276_s12 + $0xa8] ss:$36 sps:$4 sm:$0xff]  }
  0x2d   : > { %1866 = vmatprep.subr.bf16.mxu1 %v2023_v37  ;;  %v2092_v30 = vld [vmem:[%s2276_s12 + $0xa0] ss:$36 sps:$4 sm:$0xff]   ;;  %v2100_v36 = vld [vmem:[%s2276_s12 + $0xe8] ss:$36 sps:$4 sm:$0xff]  }
  0x2e   : > { %1092 = vmatmul.mubr.bf16.vlgmr.msra.gmra.mxu0 %v2016_v32  ;;  %v2094_v32 = vld [vmem:[%s2544_s1 + $0x218] sm:$0xff]   ;;  %v2102_v37 = vld [vmem:[%s2544_s1 + $0x208] sm:$0xff]  }
  0x2f   : > { %1157 = vmatmul.mubr.bf16.vlgmr.msra.gmra.mxu1 %v2019_v34  ;;  %1827 = vmatpush3.bf16.msra.mxu0 %v2024_v38  ;;  %v2098_v34 = vld [vmem:[%s2276_s12 + $0xf4] ss:$36 sps:$4 sm:$0xff]  }
  0x30   : > { %1867 = vmatpush3.bf16.msra.mxu1 %v2025_v39  ;;  %1828 = vmatprep.subr.bf16.mxu0 %v2026_v40  ;;  %v2101_v38 = vld [vmem:[%s2276_s12 + $0xf0] ss:$36 sps:$4 sm:$0xff]   ;;  %v2104_v39 = vld [vmem:[%s2276_s12 + $0x20] ss:$36 sps:$4 sm:$0xff]  }
  0x31   : > { %1868 = vmatprep.subr.bf16.mxu1 %v2027_v41  ;;  %1099 = vmatprep.mubr.bf16.mxu0 %v2030_v44  ;;  %v2105_v40 = vld [vmem:[%s2276_s12 + $0xb0] ss:$36 sps:$4 sm:$0xff]   ;;  %v2103_v41 = vld [vmem:[%s2544_s1 + $0x200] sm:$0xff]   ;;  %v2132_v44 = vmov 0.0  }
  0x32   : > { %1164 = vmatprep.mubr.bf16.mxu1 %v2032_v45  ;;  %1430 = vst.msk [vmem:[%s2444_s20] sm:$0x3] %vm1429_vm0, %v2132_v44 }
  0x33   : > { %1829 = vmatpush3.bf16.msra.mxu0 %v2028_v42  ;;  %v2106_v42 = vld [vmem:[%s2276_s12 + $0x68] ss:$36 sps:$4 sm:$0xff]  }
  0x34   : > { %1869 = vmatpush3.bf16.msra.mxu1 %v2029_v43  ;;  %1830 = vmatprep.subr.bf16.mxu0 %v2036_v48  ;;  %v2107_v43 = vld [vmem:[%s2276_s12 + $0xf8] ss:$36 sps:$4 sm:$0xff]  }
  0x35   : > { %1870 = vmatprep.subr.bf16.mxu1 %v2037_v49 }
  0x36   : > { %1100 = vmatmul.mubr.bf16.gmra.mxu0 %v2034_v46 }
  0x37   : > { %1165 = vmatmul.mubr.bf16.gmra.mxu1 %v2035_v47  ;;  %1831 = vmatpush3.bf16.msra.mxu0 %v2038_v50 }
  0x38   : > { %1871 = vmatpush3.bf16.msra.mxu1 %v2039_v51  ;;  %1832 = vmatprep.subr.bf16.mxu0 %v2040_v52 }
  0x39   : > { %1872 = vmatprep.subr.bf16.mxu1 %v2041_v53  ;;  %1107 = vmatprep.mubr.bf16.mxu0 %v2044_v56 }
  0x3a   : > { %1172 = vmatprep.mubr.bf16.mxu1 %v2046_v57 }
  0x3b   : > { %1833 = vmatpush3.bf16.msra.mxu0 %v2042_v54 }
  0x3c   : > { %1873 = vmatpush3.bf16.msra.mxu1 %v2043_v55  ;;  %1834 = vmatprep.subr.bf16.mxu0 %v2050_v60 }
  0x3d   : > { %1874 = vmatprep.subr.bf16.mxu1 %v2051_v61 }
  0x3e   : > { %1108 = vmatmul.mubr.bf16.gmra.mxu0 %v2048_v58 }
  0x3f   : > { %1173 = vmatmul.mubr.bf16.gmra.mxu1 %v2049_v59  ;;  %1835 = vmatpush3.bf16.msra.mxu0 %v2052_v62 }
  0x40   : > { %1875 = vmatpush3.bf16.msra.mxu1 %v2053_v63  ;;  %1836 = vmatprep.subr.bf16.mxu0 %v2054_v0 }
  0x41   : > { %1876 = vmatprep.subr.bf16.mxu1 %v2055_v1  ;;  %1115 = vmatprep.mubr.bf16.mxu0 %v2058_v4 }
  0x42   : > { %1180 = vmatprep.mubr.bf16.mxu1 %v2060_v5 }
  0x43   : > { %1837 = vmatpush3.bf16.msra.mxu0 %v2056_v2 }
  0x44   : > { %1877 = vmatpush3.bf16.msra.mxu1 %v2057_v3  ;;  %1838 = vmatprep.subr.bf16.mxu0 %v2064_v8 }
  0x45   : > { %1878 = vmatprep.subr.bf16.mxu1 %v2065_v9 }
  0x46   : > { %1116 = vmatmul.mubr.bf16.gmra.mxu0 %v2062_v6 }
  0x47   : > { %1181 = vmatmul.mubr.bf16.gmra.mxu1 %v2063_v7  ;;  %1839 = vmatpush3.bf16.msra.mxu0 %v2066_v10 }
  0x48   : > { %1879 = vmatpush3.bf16.msra.mxu1 %v2067_v11  ;;  %1840 = vmatprep.subr.bf16.mxu0 %v2068_v12 }
  0x49   : > { %1880 = vmatprep.subr.bf16.mxu1 %v2069_v13  ;;  %1221 = vmatprep.mubr.bf16.mxu0 %v2074_v17 }
  0x4a   : > { %1286 = vmatprep.mubr.bf16.mxu1 %v2077_v19 }
  0x4b   : > { %1841 = vmatpush3.bf16.msra.mxu0 %v2070_v14 }
  0x4c   : > { %1881 = vmatpush3.bf16.msra.mxu1 %v2071_v15  ;;  %1918 = vmatprep.subr.bf16.mxu0 %v2078_v20 }
  0x4d   : > { %1942 = vmatprep.subr.bf16.mxu1 %v2078_v20 }
  0x4e   : > { %1222 = vmatmul.mubr.bf16.vlgmr.msra.gmra.mxu0 %v2072_v16 }
  0x4f   : > { %1287 = vmatmul.mubr.bf16.vlgmr.msra.gmra.mxu1 %v2075_v18  ;;  %1919 = vmatpush3.bf16.msra.mxu0 %v2078_v20 }
  0x50   : > { %1950 = vmatpush3.bf16.msra.mxu1 %v2078_v20  ;;  %1920 = vmatprep.subr.bf16.mxu0 %v2079_v21 }
  0x51   : > { %1943 = vmatprep.subr.bf16.mxu1 %v2079_v21  ;;  %1229 = vmatprep.mubr.bf16.mxu0 %v2080_v22 }
  0x52   : > { %1294 = vmatprep.mubr.bf16.mxu1 %v2082_v23 }
  0x53   : > { %1921 = vmatpush3.bf16.msra.mxu0 %v2079_v21 }
  0x54   : > { %1951 = vmatpush3.bf16.msra.mxu1 %v2079_v21  ;;  %1922 = vmatprep.subr.bf16.mxu0 %v2086_v26 }
  0x55   : > { %1944 = vmatprep.subr.bf16.mxu1 %v2086_v26 }
  0x56   : > { %1230 = vmatmul.mubr.bf16.gmra.mxu0 %v2084_v24 }
  0x57   : > { %1295 = vmatmul.mubr.bf16.gmra.mxu1 %v2085_v25  ;;  %1237 = vmatprep.mubr.bf16.mxu0 %v2088_v27 }
  0x58   : > { %1923 = vmatpush3.bf16.msra.mxu0 %v2086_v26  ;;  %1302 = vmatprep.mubr.bf16.mxu1 %v2090_v28 }
  0x59   : > { %1952 = vmatpush3.bf16.msra.mxu1 %v2086_v26  ;;  %1924 = vmatprep.subr.bf16.mxu0 %v2087_v29 }
  0x5a   : > { %1945 = vmatprep.subr.bf16.mxu1 %v2087_v29 }
  0x5c   : > { %1925 = vmatpush3.bf16.msra.mxu0 %v2087_v29 }
  0x5d   : > { %1953 = vmatpush3.bf16.msra.mxu1 %v2087_v29  ;;  %1926 = vmatprep.subr.bf16.mxu0 %v2094_v32 }
  0x5e   : > { %1238 = vmatmul.mubr.bf16.gmra.mxu0 %v2092_v30  ;;  %1946 = vmatprep.subr.bf16.mxu1 %v2094_v32 }
  0x5f   : > { %1303 = vmatmul.mubr.bf16.gmra.mxu1 %v2093_v31  ;;  %1245 = vmatprep.mubr.bf16.mxu0 %v2096_v33  ;;  %v1618_v31 = vld [vmem:[%s2545_s2] ss:$0 sm:$0xff] }
  0x60   : > { %1927 = vmatpush3.bf16.msra.mxu0 %v2094_v32  ;;  %1310 = vmatprep.mubr.bf16.mxu1 %v2098_v34 }
  0x61   : > { %1954 = vmatpush3.bf16.msra.mxu1 %v2094_v32  ;;  %1928 = vmatprep.subr.bf16.mxu0 %v2095_v35 }
  0x62   : > { %1947 = vmatprep.subr.bf16.mxu1 %v2095_v35 }
  0x64   : > { %1929 = vmatpush3.bf16.msra.mxu0 %v2095_v35 }
  0x65   : > { %1955 = vmatpush3.bf16.msra.mxu1 %v2095_v35  ;;  %1930 = vmatprep.subr.bf16.mxu0 %v2102_v37 }
  0x66   : > { %1246 = vmatmul.mubr.bf16.gmra.mxu0 %v2100_v36  ;;  %1948 = vmatprep.subr.bf16.mxu1 %v2102_v37 }
  0x67   : > { %1311 = vmatmul.mubr.bf16.gmra.mxu1 %v2101_v38  ;;  %1934 = vmatprep.mubr.bf16.mxu0 %v2104_v39 }
  0x68   : > { %1931 = vmatpush3.bf16.msra.mxu0 %v2102_v37  ;;  %1938 = vmatprep.mubr.bf16.mxu1 %v2105_v40 }
  0x69   : > { %1956 = vmatpush3.bf16.msra.mxu1 %v2102_v37  ;;  %1932 = vmatprep.subr.bf16.mxu0 %v2103_v41 }
  0x6a   : > { %1949 = vmatprep.subr.bf16.mxu1 %v2103_v41 }
  0x6c   : > { %1933 = vmatpush3.bf16.msra.mxu0 %v2103_v41 }
  0x6d   : > { %1957 = vmatpush3.bf16.msra.mxu1 %v2103_v41 }
  0x6f   : > { %1935 = vmatmul.mubr.bf16.vlgmr.msra.gmra.mxu0 %v2106_v42 }
  0x70   : > { %1939 = vmatmul.mubr.bf16.vlgmr.msra.gmra.mxu1 %v2107_v43 }
  0xee   : > { %v1762_v45 = vpop.f32.mrf.mxu0 }
  0xef   : > { %v1802_v46 = vpop.f32.mrf.mxu1 }
  0xf0   : > { %v1763_v47 = vpop.f32.mrf.mxu0 }
  0xf1   : > { %v1803_v48 = vpop.f32.mrf.mxu1  ;;  %v1764_v30 = vadd.f32 %v1763_v47, %v1762_v45 }
  0xf2   : > { %v1765_v49 = vpop.f32.mrf.mxu0  ;;  %v1804_v40 = vadd.f32 %v1803_v48, %v1802_v46 }
  0xf3   : > { %v2448_v50 = vpop.f32.mrf.mxu1  ;;  %v1094_v39 = vadd.f32 %v1764_v30, %v1618_v31 }
  0xf4   : > { %v1766_v51 = vpop.f32.mrf.mxu0 }
  0xf5   : > { %v2450_v52 = vpop.f32.mrf.mxu1  ;;  %v1767_v41 = vadd.f32 %v1766_v51, %v1765_v49 }
  0xf6   : > { %v1768_v53 = vpop.f32.mrf.mxu0 }
  0xf7   : > { %v1808_v54 = vpop.f32.mrf.mxu1 }
  0xf8   : > { %v1769_v55 = vpop.f32.mrf.mxu0 }
  0xf9   : > { %v1809_v56 = vpop.f32.mrf.mxu1  ;;  %v1770_v32 = vadd.f32 %v1769_v55, %v1768_v53 }
  0xfa   : > { %v1771_v57 = vpop.f32.mrf.mxu0  ;;  %v1810_v43 = vadd.f32 %v1809_v56, %v1808_v54 }
  0xfb   : > { %v2452_v58 = vpop.f32.mrf.mxu1  ;;  %v1102_v42 = vadd.f32 %v1770_v32, %v1618_v31 }
  0xfc   : > { %v1772_v59 = vpop.f32.mrf.mxu0 }
  0xfd   : > { %v2454_v60 = vpop.f32.mrf.mxu1  ;;  %v1167_v48 = vadd.f32 %v1810_v43, %v1102_v42 }
  0xfe   : > { %v1774_v61 = vpop.f32.mrf.mxu0  ;;  %v1813_v49 = vadd.f32 %v2454_v60, %v2452_v58 }
  0xff   : > { %v1814_v62 = vpop.f32.mrf.mxu1 }
 0x100   : > { %v1775_v63 = vpop.f32.mrf.mxu0 }
 0x101   : > { %v1815_v0 = vpop.f32.mrf.mxu1  ;;  %v1776_v36 = vadd.f32 %v1775_v63, %v1774_v61  ;;  %v1097_v61 = vadd.f32 %v1767_v41, %v1618_v31  ;;  %v1807_v63 = vadd.f32 %v2450_v52, %v2448_v50 }
 0x102   : > { %v1777_v1 = vpop.f32.mrf.mxu0  ;;  %v1816_v53 = vadd.f32 %v1815_v0, %v1814_v62 }
 0x103   : > { %v2456_v2 = vpop.f32.mrf.mxu1 }
 0x104   : > { %v1778_v3 = vpop.f32.mrf.mxu0 }
 0x105   : > { %v2458_v4 = vpop.f32.mrf.mxu1  ;;  %v1779_v51 = vadd.f32 %v1778_v3, %v1777_v1 }
 0x106   : > { %v1780_v5 = vpop.f32.mrf.mxu0 }
 0x107   : > { %v1820_v6 = vpop.f32.mrf.mxu1  ;;  %v1113_v60 = vadd.f32 %v1779_v51, %v1618_v31 }
 0x108   : > { %v1781_v7 = vpop.f32.mrf.mxu0 }
 0x109   : > { %v1821_v8 = vpop.f32.mrf.mxu1  ;;  %v1782_v35 = vadd.f32 %v1781_v7, %v1780_v5  ;;  %v1159_v5 = vadd.f32 %v1804_v40, %v1094_v39 }
 0x10a   : > { %v1783_v9 = vpop.f32.mrf.mxu0  ;;  %v1822_v47 = vadd.f32 %v1821_v8, %v1820_v6 }
 0x10b   : > { %v1823_v10 = vpop.f32.mrf.mxu1  ;;  %v1118_v45 = vadd.f32 %v1782_v35, %v1618_v31 }
 0x10c   : > { %v1784_v11 = vpop.f32.mrf.mxu0 }
 0x10d   : > { %v1824_v12 = vpop.f32.mrf.mxu1  ;;  %v1183_v7 = vadd.f32 %v1822_v47, %v1118_v45 }
 0x10e   : > { %v1842_v13 = vpop.f32.mrf.mxu0 }
 0x10f   : > { %v2460_v14 = vpop.f32.mrf.mxu1 }
 0x110   : > { %v1843_v15 = vpop.f32.mrf.mxu0 }
 0x111   : > { %v2462_v16 = vpop.f32.mrf.mxu1  ;;  %v1844_v54 = vadd.f32 %v1843_v15, %v1842_v13 }
 0x112   : > { %v2464_v17 = vpop.f32.mrf.mxu0  ;;  %v1884_v3 = vadd.f32 %v2462_v16, %v2460_v14 }
 0x113   : > { %2548 = vst [vmem:[#allocation2_spill] sm:$0xff] %v2464_v17  ;;  %v2466_v18 = vpop.f32.mrf.mxu1  ;;  %v1224_v1 = vadd.f32 %v1844_v54, %v1159_v5 }
 0x114   : > { %2549 = vst [vmem:[#allocation3_spill] sm:$0xff] %v2466_v18  ;;  %v1846_v19 = vpop.f32.mrf.mxu0  ;;  %v1110_v18 = vadd.f32 %v1776_v36, %v1618_v31 }
 0x115   : > { %v2468_v20 = vpop.f32.mrf.mxu1 }
 0x116   : > { %2550 = vst [vmem:[#allocation4_spill] sm:$0xff] %v2468_v20  ;;  %v1848_v21 = vpop.f32.mrf.mxu0  ;;  %v1773_v20 = vadd.f32 %v1772_v59, %v1771_v57  ;;  %v1825_v59 = vadd.f32 %v1824_v12, %v1823_v10  ;;  %v1175_v8 = vadd.f32 %v1816_v53, %v1110_v18 }
 0x117   : > { %v1888_v22 = vpop.f32.mrf.mxu1 }
 0x118   : > { %v1849_v23 = vpop.f32.mrf.mxu0  ;;  %v1105_v0 = vadd.f32 %v1773_v20, %v1618_v31 }
 0x119   : > { %v1889_v24 = vpop.f32.mrf.mxu1  ;;  %v1850_v46 = vadd.f32 %v1849_v23, %v1848_v21 }
 0x11a   : > { %v1851_v25 = vpop.f32.mrf.mxu0  ;;  %v1890_v23 = vadd.f32 %v1889_v24, %v1888_v22  ;;  %v2553_v13 = vld [vmem:[#allocation2_spill] sm:$0xff]  ;;  %v1170_v32 = vadd.f32 %v1813_v49, %v1105_v0 }
 0x11b   : > { %v2470_v26 = vpop.f32.mrf.mxu1  ;;  %v1232_v21 = vadd.f32 %v1850_v46, %v1167_v48  ;;  %v1847_v10 = vadd.f32 %v1846_v19, %v2553_v13  ;;  %v1289_v19 = vadd.f32 %v1884_v3, %v1224_v1  ;;  %v2554_v39 = vld [vmem:[#allocation3_spill] sm:$0xff] }
 0x11c   : > { %2551 = vst [vmem:[#allocation5_spill] sm:$0xff] %v2470_v26  ;;  %v1852_v27 = vpop.f32.mrf.mxu0  ;;  %v1785_v26 = vadd.f32 %v1784_v11, %v1783_v9  ;;  %v1819_v9 = vadd.f32 %v2458_v4, %v2456_v2 }
 0x11d   : > { %v2472_v28 = vpop.f32.mrf.mxu1  ;;  %v1853_v2 = vadd.f32 %v1852_v27, %v1851_v25  ;;  %v1297_v35 = vadd.f32 %v1890_v23, %v1232_v21  ;;  %v2555_v40 = vld [vmem:[#allocation4_spill] sm:$0xff] }
 0x11e   : > { %2552 = vst [vmem:[#allocation6_spill] sm:$0xff] %v2472_v28  ;;  %v1854_v29 = vpop.f32.mrf.mxu0  ;;  %v1121_v57 = vadd.f32 %v1785_v26, %v1618_v31  ;;  %v1178_v14 = vadd.f32 %v1819_v9, %v1113_v60  ;;  %v1887_v41 = vadd.f32 %v2555_v40, %v2554_v39 }
 0x11f   : > { %v1894_v33 = vpop.f32.mrf.mxu1  ;;  %v1235_v25 = vadd.f32 %v1853_v2, %v1170_v32 }
 0x120   : > { %v1855_v34 = vpop.f32.mrf.mxu0  ;;  %v1186_v18 = vadd.f32 %v1825_v59, %v1121_v57 }
 0x121   : > { %v1895_v37 = vpop.f32.mrf.mxu1  ;;  %v1856_v11 = vadd.f32 %v1855_v34, %v1854_v29 }
 0x122   : > { %v1857_v38 = vpop.f32.mrf.mxu0  ;;  %v1896_v26 = vadd.f32 %v1895_v37, %v1894_v33 }
 0x123   : > { %v2477_v44 = vpop.f32.mrf.mxu1  ;;  %v1240_v20 = vadd.f32 %v1856_v11, %v1175_v8  ;;  %v2556_v27 = vld [vmem:[#allocation5_spill] sm:$0xff] }
 0x124   : > { %v1858_v28 = vpop.f32.mrf.mxu0 }
 0x125   : > { %v1898_v55 = vpop.f32.mrf.mxu1  ;;  %v1859_v29 = vadd.f32 %v1858_v28, %v1857_v38  ;;  %v2557_v42 = vld [vmem:[#allocation6_spill] sm:$0xff]  ;;  %v1305_v53 = vadd.f32 %v1896_v26, %v1240_v20 }
 0x126   : > { %v1860_v17 = vpop.f32.mrf.mxu0  ;;  %v1893_v33 = vadd.f32 %v2557_v42, %v2556_v27  ;;  %v1899_v43 = vadd.f32 %v1898_v55, %v2477_v44 }
 0x127   : > { %v1900_v56 = vpop.f32.mrf.mxu1  ;;  %v1243_v38 = vadd.f32 %v1859_v29, %v1178_v14 }
 0x128   : > { %v1861_v6 = vpop.f32.mrf.mxu0  ;;  %v1300_v55 = vadd.f32 %v1893_v33, %v1235_v25 }
 0x129   : > { %v1862_v62 = vadd.f32 %v1861_v6, %v1860_v17  ;;  %v1901_v50 = vpop.f32.mrf.mxu1  ;;  %v1162_v17 = vadd.f32 %v1807_v63, %v1097_v61  ;;  %v1308_v57 = vadd.f32 %v1899_v43, %v1243_v38 }
 0x12a   : > { %v1863_v52 = vpop.f32.mrf.mxu0  ;;  %v1902_v58 = vadd.f32 %v1901_v50, %v1900_v56 }
 0x12b   : > { %v1248_v30 = vadd.f32 %v1862_v62, %v1183_v7  ;;  %v1903_v12 = vpop.f32.mrf.mxu1  ;;  %v1227_v16 = vadd.f32 %v1847_v10, %v1162_v17 }
 0x12c   : > { %v1864_v15 = vpop.f32.mrf.mxu0 }
 0x12d   : > { %v1865_v4 = vadd.f32 %v1864_v15, %v1863_v52  ;;  %v1904_v22 = vpop.f32.mrf.mxu1  ;;  %v1313_v24 = vadd.f32 %v1902_v58, %v1248_v30  ;;  %v1292_v56 = vadd.f32 %v1887_v41, %v1227_v16 }
 0x12e   : > { %v1905_v34 = vadd.f32 %v1904_v22, %v1903_v12 }
 0x12f   : > { %v1251_v31 = vadd.f32 %v1865_v4, %v1186_v18  ;;  %v1936_v36 = vpop.f32.mrf.mxu0 }
 0x130   : > { %v1362_v28 = vadd.f32 %v1936_v36, %v1297_v35  ;;  %v1940_v37 = vpop.f32.mrf.mxu1 }
 0x131   : > { %v1378_v45 = vadd.f32 %v1940_v37, %v1313_v24  ;;  %v1353_v47 = vpop.f32.mrf.mxu0  ;;  %v1316_v46 = vadd.f32 %v1905_v34, %v1251_v31 }
 0x132   : > { %v1740_v5 = vpack.c.bf16 %v1362_v28, %v1362_v28  ;;  %v1354_v61 = vadd.f32 %v1353_v47, %v1289_v19  ;;  %v1369_v63 = vpop.f32.mrf.mxu1  ;;  %v1455_v58 = vmul.f32 %v1362_v28, %v1362_v28  ;;  %v1435_v13 = vsel %vm1431_vm2, %v1362_v28, 0.0 }
 0x133   : > { %v1744_v48 = vpack.c.bf16 %v1378_v45, %v1378_v45  ;;  %v1370_v49 = vadd.f32 %v1369_v63, %v1305_v53  ;;  %v1937_v51 = vpop.f32.mrf.mxu0  ;;  %v1459_v14 = vmul.f32 %v1378_v45, %v1378_v45  ;;  %v1443_v19 = vsel %vm1431_vm2, %v1378_v45, 0.0 }
 0x134   : > { %1419 = vst.msk [vmem:[%s2497_s24 + $0x8] sm:$0xf] %vm1416_vm1, %v1740_v5  ;;  %v1738_v44 = vpack.c.bf16 %v1354_v61, %v1354_v61  ;;  %v1941_v54 = vpop.f32.mrf.mxu1  ;;  %v1365_v59 = vadd.f32 %v1937_v51, %v1300_v55  ;;  %v1453_v11 = vmul.f32 %v1354_v61, %v1354_v61  ;;  %v1432_v21 = vsel %vm1431_vm2, %v1354_v61, 0.0 }
 0x135   : > { %1423 = vst.msk [vmem:[%s2497_s24 + $0x18] sm:$0xf] %vm1416_vm1, %v1744_v48  ;;  %v1742_v6 = vpack.c.bf16 %v1370_v49, %v1370_v49  ;;  %v1356_v7 = vpop.f32.mrf.mxu0  ;;  %v1381_v62 = vadd.f32 %v1941_v54, %v1316_v46  ;;  %v1464_v4 = vsel %vm1431_vm2, %v1455_v58, 0.0  ;;  %v1457_v20 = vmul.f32 %v1370_v49, %v1370_v49  ;;  %v1482_v54 = vld [vmem:[%s2444_s20] sm:$0x3] }
 0x136   : > { %1417 = vst.msk [vmem:[%s2497_s24] sm:$0xf] %vm1416_vm1, %v1738_v44  ;;  %v1357_v0 = vadd.f32 %v1356_v7, %v1292_v56  ;;  %v1372_v8 = vpop.f32.mrf.mxu1  ;;  %v1741_v50 = vpack.c.bf16 %v1365_v59, %v1365_v59  ;;  %v1461_v10 = vsel %vm1431_vm2, %v1453_v11, 0.0  ;;  %v1456_v12 = vmul.f32 %v1365_v59, %v1365_v59 }
 0x137   : > { %1421 = vst.msk [vmem:[%s2497_s24 + $0x10] sm:$0xf] %vm1416_vm1, %v1742_v6  ;;  %v1373_v9 = vadd.f32 %v1372_v8, %v1308_v57  ;;  %v1745_v52 = vpack.c.bf16 %v1381_v62, %v1381_v62  ;;  %v1437_v18 = vsel %vm1431_vm2, %v1365_v59, 0.0  ;;  %v1439_v29 = vsel %vm1431_vm2, %v1370_v49, 0.0 }
 0x138   : > { %v1739_v23 = vpack.c.bf16 %v1357_v0, %v1357_v0  ;;  %v1433_v30 = vsel %vm1431_vm2, %v1357_v0, 0.0  ;;  %1420 = vst.msk [vmem:[%s2497_s24 + $0xc] sm:$0xf] %vm1416_vm1, %v1741_v50  ;;  %v1454_v1 = vmul.f32 %v1357_v0, %v1357_v0  ;;  %v1466_v24 = vsel %vm1431_vm2, %v1456_v12, 0.0 }
 0x139   : > { %1424 = vst.msk [vmem:[%s2497_s24 + $0x1c] sm:$0xf] %vm1416_vm1, %v1745_v52  ;;  %v1434_v60 = vadd.f32 %v1433_v30, %v1432_v21  ;;  %v1743_v3 = vpack.c.bf16 %v1373_v9, %v1373_v9  ;;  %v1458_v31 = vmul.f32 %v1373_v9, %v1373_v9  ;;  %v1441_v34 = vsel %vm1431_vm2, %v1373_v9, 0.0 }
 0x13a   : > { %1418 = vst.msk [vmem:[%s2497_s24 + $0x4] sm:$0xf] %vm1416_vm1, %v1739_v23  ;;  %v1462_v17 = vsel %vm1431_vm2, %v1454_v1, 0.0  ;;  %v1468_v16 = vsel %vm1431_vm2, %v1457_v20, 0.0  ;;  %v1460_v40 = vmul.f32 %v1381_v62, %v1381_v62  ;;  %v1445_v27 = vsel %vm1431_vm2, %v1381_v62, 0.0 }
 0x13b   : > { %v1436_v15 = vadd.f32 %v1435_v13, %v1434_v60  ;;  %1422 = vst.msk [vmem:[%s2497_s24 + $0x14] sm:$0xf] %vm1416_vm1, %v1743_v3  ;;  %v1463_v2 = vadd.f32 %v1462_v17, %v1461_v10  ;;  %v1470_v25 = vsel %vm1431_vm2, %v1458_v31, 0.0  ;;  %v1472_v33 = vsel %vm1431_vm2, %v1459_v14, 0.0 }
 0x13c   : > { %v1474_v38 = vsel %vm1431_vm2, %v1460_v40, 0.0 }
 0x13d   : > { %v1438_v26 = vadd.f32 %v1437_v18, %v1436_v15  ;;  %v1465_v22 = vadd.f32 %v1464_v4, %v1463_v2 }
 0x13f   : > { %v1440_v32 = vadd.f32 %v1439_v29, %v1438_v26  ;;  %v1467_v35 = vadd.f32 %v1466_v24, %v1465_v22 }
 0x141   : > { %v1442_v36 = vadd.f32 %v1441_v34, %v1440_v32  ;;  %v1469_v39 = vadd.f32 %v1468_v16, %v1467_v35 }
 0x143   : > { %v1444_v41 = vadd.f32 %v1443_v19, %v1442_v36  ;;  %v1471_v42 = vadd.f32 %v1470_v25, %v1469_v39 }
 0x145   : > { %v1446_v28 = vadd.f32 %v1445_v27, %v1444_v41  ;;  %v1473_v37 = vadd.f32 %v1472_v33, %v1471_v42 }
 0x147   : > { %v1447_v43 = vrot.slane %v1446_v28, 4  ;;  %v1475_v47 = vadd.f32 %v1474_v38, %v1473_v37 }
 0x149   : > { %v1448_v53 = vadd.f32 %v1447_v43, %v1446_v28  ;;  %v1476_v45 = vrot.slane %v1475_v47, 4 }
 0x14b   : > { %v1449_v5 = vrot.slane %v1448_v53, 2  ;;  %v1477_v61 = vadd.f32 %v1476_v45, %v1475_v47 }
 0x14d   : > { %v1450_v63 = vadd.f32 %v1449_v5, %v1448_v53  ;;  %v1478_v46 = vrot.slane %v1477_v61, 2 }
 0x14f   : > { %v1451_v48 = vrot.slane %v1450_v63, 1  ;;  %v1479_v49 = vadd.f32 %v1478_v46, %v1477_v61 }
 0x151   : > { %v1480_v51 = vrot.slane %v1479_v49, 1  ;;  %v1452_v44 = vadd.f32 %v1451_v48, %v1450_v63 }
 0x153   : > { %v1481_v55 = vadd.f32 %v1480_v51, %v1479_v49 }
 0x155   : > { %v1484_v56 = vsel %vm1483_vm3, %v1452_v44, %v1481_v55 }
 0x156   : > { %v1485_v6 = vadd.f32 %v1484_v56, %v1482_v54 }
 0x158   : > { %1487 = vst.msk [vmem:[%s2444_s20] sm:$0x3] %vm1429_vm0, %v1485_v6 }
 0x159 PF: > { %s15_s17 = sadd.s32 1, %s2130_s17   ;;  %s2558_s15 = smov %s2126_s16 }
 0x15a   : > { %p12_p5 = scmp.ge.s32.totalorder %s15_s17, 4   ;;  %s2559_s16 = smov %s2561_s18 }
 0x15c   :  { %14 = sbr.rel (!%p12_p5) target bundleno = 2 (0x2), region = 78 }

// kernel: deepstylex_forward.59
= control target key start
LH: loop header
LB: loop body
LE: loop exit
PB: predicated region body
PF: predicated region fallthrough
CT: control target
= control target key end

     0   :  { %s2776_s15 = smov 0   ;;  %s2778_s16 = smov 0   ;;  %s3430_s0 = inlined_call_operand.vmem [shape: bf16[2,256,640], index: 0, kind: input, shape index: {}]   ;;  %s3431_s1 = inlined_call_operand.vmem [shape: bf16[640,32], index: 1, kind: input, shape index: {}]   ;;  %s3432_s2 = inlined_call_operand.vmem [shape: f32[1,32], index: 2, kind: input, shape index: {}]   ;;  %s3433_s3 = inlined_call_operand.vmem [shape: bf16[2,256,32], index: 3, kind: output, shape index: {0}]   ;;  %s3434_s4 = inlined_call_operand.vmem [shape: f32[2,2,32], index: 4, kind: output, shape index: {1}]  }
   0x1   :  { %s2780_s17 = smov 0  }
   0x2 LB: > { %s27_s18 = sadd.s32 1, %s2744_s16  ;;  %p2043_p0 = scmp.ge.s32.totalorder %s2748_s17, 1  ;;  %s2748_s17 = sphi %s2780_s17, %s15_s17   ;;  %s2744_s16 = sphi %s2778_s16, %s3466_s16   ;;  %s2740_s15 = sphi %s2776_s15, %s3465_s15  }
   0x3   : > { %p29_p1 = scmp.ge.s32.totalorder %s27_s18, 2  ;;  %p187_p2 = scmp.lt.s32.totalorder %s2748_s17, 3 }
   0x5   : > { %s3468_s18 = smov (%p29_p1, %s27_s18), 0  ;;  %p188_p3 = pnand %p2043_p0, %p187_p2 }
   0x7   : > { %191 = sbr.rel (%p188_p3) target bundleno = 424 (0x1a8), region = 32 }
   0xc   : > { %v2574_v0 = vld [vmem:[%s3431_s1 + $0x78] sm:$0xff]   ;;  %v2576_v2 = vld [vmem:[%s3431_s1 + $0x70] sm:$0xff]   ;;  %p227_p4 = scmp.lt.s32.totalorder %s2740_s15, 1  ;;  %v2578_v4 = vld [vmem:[%s3431_s1 + $0x68] sm:$0xff]   ;;  %vm1739_vm0 = vcmask 254976   ;;  %vm1702_vm1 = vcmask 257024  }
   0xd   : > { %v2575_v1 = vld [vmem:[%s3431_s1 + $0x38] sm:$0xff]   ;;  %2236 = vmatprep.subr.bf16.mxu0 %v2574_v0  ;;  %2532 = vmatprep.subr.bf16.mxu1 %v2574_v0  ;;  %v2577_v3 = vld [vmem:[%s3431_s1 + $0x30] sm:$0xff]   ;;  %v2579_v5 = vld [vmem:[%s3431_s1 + $0x28] sm:$0xff]   ;;  %vm1741_vm2 = vcmask 261120   ;;  %vm1913_vm3 = vcmask 1040384  }
   0xe   : > { %2237 = vmatpush3.bf16.msra.mxu0 %v2575_v1  ;;  %2540 = vmatpush3.bf16.msra.mxu1 %v2575_v1  ;;  %s3470_s15 = smov (!%p227_p4, %s2740_s15), 1  ;;  %v2580_v6 = vld [vmem:[%s3431_s1 + $0x60] sm:$0xff]   ;;  %v2582_v8 = vld [vmem:[%s3431_s1 + $0x58] sm:$0xff]   ;;  %v2584_v10 = vld [vmem:[%s3431_s1 + $0x50] sm:$0xff]  }
   0xf   : > { %2238 = vmatprep.subr.bf16.mxu0 %v2576_v2  ;;  %2533 = vmatprep.subr.bf16.mxu1 %v2576_v2  ;;  %s2548_s7 = smul.u32 640, %s3470_s15  ;;  %v2581_v7 = vld [vmem:[%s3431_s1 + $0x20] sm:$0xff]   ;;  %v2583_v9 = vld [vmem:[%s3431_s1 + $0x18] sm:$0xff]   ;;  %v2585_v13 = vld [vmem:[%s3431_s1 + $0x10] sm:$0xff]   ;;  %s2203_s23 = sshll.u32 %s3470_s15, 7 }
  0x10   : > { %v2586_v14 = vld [vmem:[%s3431_s1 + $0x48] sm:$0xff]   ;;  %v2588_v16 = vld [vmem:[%s3431_s1 + $0x40] sm:$0xff]   ;;  %v2596_v18 = vld [vmem:[%s3431_s1 + $0xf8] sm:$0xff]   ;;  %s3209_s25 = scalar_lea.vmem %s3433_s3, %s2203_s23 }
  0x11   : > { %s2827_s14 = scalar_lea.vmem %s3430_s0, %s2548_s7  ;;  %v2587_v15 = vld [vmem:[%s3431_s1 + $0x8] sm:$0xff]   ;;  %v2589_v17 = vld [vmem:[%s3431_s1] sm:$0xff]   ;;  %v2597_v20 = vld [vmem:[%s3431_s1 + $0x138] sm:$0xff]  }
  0x12   : > { %2239 = vmatpush3.bf16.msra.mxu0 %v2577_v3  ;;  %2541 = vmatpush3.bf16.msra.mxu1 %v2577_v3  ;;  %v2592_v11 = vld [vmem:[%s2827_s14 + $0x4] ss:$20 sps:$4 sm:$0xff]   ;;  %v2590_v19 = vld [vmem:[%s2827_s14] ss:$20 sps:$4 sm:$0xff]   ;;  %v2605_v28 = vld [vmem:[%s2827_s14 + $0x28] ss:$20 sps:$4 sm:$0xff]  }
  0x13   : > { %2240 = vmatprep.subr.bf16.mxu0 %v2578_v4  ;;  %2534 = vmatprep.subr.bf16.mxu1 %v2578_v4  ;;  %v2595_v12 = vld [vmem:[%s2827_s14 + $0x1e4] ss:$20 sps:$4 sm:$0xff]   ;;  %v2593_v21 = vld [vmem:[%s2827_s14 + $0x1e0] ss:$20 sps:$4 sm:$0xff]   ;;  %v2607_v29 = vld [vmem:[%s3431_s1 + $0xe8] sm:$0xff]  }
  0x14   : > { %1123 = vmatprep.mubr.bf16.mxu0 %v2592_v11  ;;  %1219 = vmatprep.mubr.bf16.mxu1 %v2595_v12  ;;  %v2598_v22 = vld [vmem:[%s3431_s1 + $0xb8] sm:$0xff]   ;;  %v2599_v23 = vld [vmem:[%s3431_s1 + $0xf0] sm:$0xff]   ;;  %v2601_v24 = vld [vmem:[%s2827_s14 + $0x2c] ss:$20 sps:$4 sm:$0xff]  }
  0x15   : > { %v2603_v25 = vld [vmem:[%s2827_s14 + $0x20c] ss:$20 sps:$4 sm:$0xff]   ;;  %v2610_v26 = vld [vmem:[%s3431_s1 + $0x130] sm:$0xff]   ;;  %v2606_v30 = vld [vmem:[%s2827_s14 + $0x208] ss:$20 sps:$4 sm:$0xff]  }
  0x16   : > { %2241 = vmatpush3.bf16.msra.mxu0 %v2579_v5  ;;  %2542 = vmatpush3.bf16.msra.mxu1 %v2579_v5  ;;  %v2600_v27 = vld [vmem:[%s3431_s1 + $0xb0] sm:$0xff]   ;;  %v2608_v31 = vld [vmem:[%s3431_s1 + $0xa8] sm:$0xff]   ;;  %v2609_v33 = vld [vmem:[%s3431_s1 + $0xe0] sm:$0xff]  }
  0x17   : > { %2242 = vmatprep.subr.bf16.mxu0 %v2580_v6  ;;  %2535 = vmatprep.subr.bf16.mxu1 %v2580_v6  ;;  %v2612_v32 = vld [vmem:[%s2827_s14 + $0x54] ss:$20 sps:$4 sm:$0xff]   ;;  %v2611_v36 = vld [vmem:[%s3431_s1 + $0xa0] sm:$0xff]   ;;  %v2618_v38 = vld [vmem:[%s3431_s1 + $0xd8] sm:$0xff]  }
  0x18   : > { %v2614_v34 = vld [vmem:[%s2827_s14 + $0x234] ss:$20 sps:$4 sm:$0xff]   ;;  %v2616_v37 = vld [vmem:[%s2827_s14 + $0x50] ss:$20 sps:$4 sm:$0xff]   ;;  %v2619_v40 = vld [vmem:[%s3431_s1 + $0x98] sm:$0xff]  }
  0x19   : > { %v2629_v35 = vld [vmem:[%s3431_s1 + $0x128] sm:$0xff]   ;;  %v2617_v39 = vld [vmem:[%s2827_s14 + $0x230] ss:$20 sps:$4 sm:$0xff]   ;;  %v2652_v52 = vld [vmem:[%s3431_s1 + $0x118] sm:$0xff]  }
  0x1a   : > { %2243 = vmatpush3.bf16.msra.mxu0 %v2581_v7  ;;  %2543 = vmatpush3.bf16.msra.mxu1 %v2581_v7  ;;  %v2620_v41 = vld [vmem:[%s3431_s1 + $0xd0] sm:$0xff]   ;;  %v2639_v44 = vld [vmem:[%s3431_s1 + $0x120] sm:$0xff]   ;;  %v2626_v46 = vld [vmem:[%s2827_s14 + $0x78] ss:$20 sps:$4 sm:$0xff]  }
  0x1b   : > { %2244 = vmatprep.subr.bf16.mxu0 %v2582_v8  ;;  %2536 = vmatprep.subr.bf16.mxu1 %v2582_v8  ;;  %v2622_v42 = vld [vmem:[%s2827_s14 + $0x7c] ss:$20 sps:$4 sm:$0xff]   ;;  %v2627_v47 = vld [vmem:[%s2827_s14 + $0x258] ss:$20 sps:$4 sm:$0xff]   ;;  %v2631_v50 = vld [vmem:[%s3431_s1 + $0xc0] sm:$0xff]  }
  0x1c   : > { %v2624_v43 = vld [vmem:[%s2827_s14 + $0x25c] ss:$20 sps:$4 sm:$0xff]   ;;  %v2628_v48 = vld [vmem:[%s3431_s1 + $0xc8] sm:$0xff]   ;;  %v2633_v51 = vld [vmem:[%s2827_s14 + $0xa4] ss:$20 sps:$4 sm:$0xff]  }
  0x1d   : > { %v2621_v45 = vld [vmem:[%s3431_s1 + $0x90] sm:$0xff]   ;;  %v2630_v49 = vld [vmem:[%s3431_s1 + $0x88] sm:$0xff]   ;;  %v2632_v54 = vld [vmem:[%s3431_s1 + $0x80] sm:$0xff]  }
  0x1e   : > { %2245 = vmatpush3.bf16.msra.mxu0 %v2583_v9  ;;  %2544 = vmatpush3.bf16.msra.mxu1 %v2583_v9  ;;  %v2637_v53 = vld [vmem:[%s2827_s14 + $0xc] ss:$20 sps:$4 sm:$0xff]   ;;  %v2659_v55 = vld [vmem:[%s3431_s1 + $0x110] sm:$0xff]   ;;  %v2635_v56 = vld [vmem:[%s2827_s14 + $0x8] ss:$20 sps:$4 sm:$0xff]  }
  0x1f   : > { %2246 = vmatprep.subr.bf16.mxu0 %v2584_v10  ;;  %2537 = vmatprep.subr.bf16.mxu1 %v2584_v10  ;;  %v2638_v57 = vld [vmem:[%s2827_s14 + $0xa0] ss:$20 sps:$4 sm:$0xff]   ;;  %v2672_v60 = vld [vmem:[%s3431_s1 + $0x108] sm:$0xff]   ;;  %v2645_v63 = vld [vmem:[%s2827_s14 + $0x30] ss:$20 sps:$4 sm:$0xff]  }
  0x20   : > { %v2640_v58 = vld [vmem:[%s2827_s14 + $0xcc] ss:$20 sps:$4 sm:$0xff]   ;;  %v2642_v59 = vld [vmem:[%s2827_s14 + $0x34] ss:$20 sps:$4 sm:$0xff]   ;;  %v2648_v1 = vld [vmem:[%s2827_s14 + $0x5c] ss:$20 sps:$4 sm:$0xff]  }
  0x21   : > { %v2644_v61 = vld [vmem:[%s2827_s14 + $0xc8] ss:$20 sps:$4 sm:$0xff]   ;;  %v2679_v62 = vld [vmem:[%s3431_s1 + $0x100] sm:$0xff]   ;;  %v2651_v3 = vld [vmem:[%s2827_s14 + $0x58] ss:$20 sps:$4 sm:$0xff]  }
  0x22   : > { %2247 = vmatpush3.bf16.msra.mxu0 %v2585_v13  ;;  %2545 = vmatpush3.bf16.msra.mxu1 %v2585_v13  ;;  %v2646_v0 = vld [vmem:[%s2827_s14 + $0xf4] ss:$20 sps:$4 sm:$0xff]   ;;  %v2650_v2 = vld [vmem:[%s2827_s14 + $0xf0] ss:$20 sps:$4 sm:$0xff]   ;;  %v2657_v6 = vld [vmem:[%s2827_s14 + $0x118] ss:$20 sps:$4 sm:$0xff]  }
  0x23   : > { %2248 = vmatprep.subr.bf16.mxu0 %v2586_v14  ;;  %2538 = vmatprep.subr.bf16.mxu1 %v2586_v14  ;;  %v2653_v4 = vld [vmem:[%s2827_s14 + $0x11c] ss:$20 sps:$4 sm:$0xff]   ;;  %v2655_v5 = vld [vmem:[%s2827_s14 + $0x84] ss:$20 sps:$4 sm:$0xff]   ;;  %v2658_v7 = vld [vmem:[%s2827_s14 + $0x80] ss:$20 sps:$4 sm:$0xff]  }
  0x24   : > { %v2660_v8 = vld [vmem:[%s2827_s14 + $0x144] ss:$20 sps:$4 sm:$0xff]   ;;  %v2662_v9 = vld [vmem:[%s2827_s14 + $0xac] ss:$20 sps:$4 sm:$0xff]   ;;  %v2665_v11 = vld [vmem:[%s2827_s14 + $0xa8] ss:$20 sps:$4 sm:$0xff]  }
  0x25   : > { %v2664_v10 = vld [vmem:[%s2827_s14 + $0x140] ss:$20 sps:$4 sm:$0xff]   ;;  %v2670_v14 = vld [vmem:[%s2827_s14 + $0x168] ss:$20 sps:$4 sm:$0xff]  }
  0x26   : > { %2249 = vmatpush3.bf16.msra.mxu0 %v2587_v15  ;;  %2546 = vmatpush3.bf16.msra.mxu1 %v2587_v15  ;;  %v2666_v12 = vld [vmem:[%s2827_s14 + $0x16c] ss:$20 sps:$4 sm:$0xff]   ;;  %v2668_v13 = vld [vmem:[%s2827_s14 + $0xd4] ss:$20 sps:$4 sm:$0xff]   ;;  %v2671_v15 = vld [vmem:[%s2827_s14 + $0xd0] ss:$20 sps:$4 sm:$0xff]  }
  0x27   : > { %2250 = vmatprep.subr.bf16.mxu0 %v2588_v16  ;;  %2539 = vmatprep.subr.bf16.mxu1 %v2588_v16  ;;  %v2673_v16 = vld [vmem:[%s2827_s14 + $0x194] ss:$20 sps:$4 sm:$0xff]  }
  0x2a   : > { %2251 = vmatpush3.bf16.msra.mxu0 %v2589_v17  ;;  %2547 = vmatpush3.bf16.msra.mxu1 %v2589_v17  ;;  %v2675_v17 = vld [vmem:[%s2827_s14 + $0xfc] ss:$20 sps:$4 sm:$0xff]  }
  0x2b   : > { %2348 = vmatprep.subr.bf16.mxu1 %v2596_v18  ;;  %2484 = vmatprep.subr.bf16.mxu0 %v2597_v20  ;;  %v2677_v18 = vld [vmem:[%s2827_s14 + $0x190] ss:$20 sps:$4 sm:$0xff]  }
  0x2d   : > { %1124 = vmatmul.mubr.bf16.vlgmr.msra.gmra.mxu0 %v2590_v19  ;;  %1220 = vmatmul.mubr.bf16.vlgmr.msra.gmra.mxu1 %v2593_v21  ;;  %v2678_v19 = vld [vmem:[%s2827_s14 + $0xf8] ss:$20 sps:$4 sm:$0xff]  }
  0x2e   : > { %2349 = vmatpush3.bf16.msra.mxu1 %v2598_v22  ;;  %2485 = vmatpush3.bf16.msra.mxu0 %v2597_v20  ;;  %v2680_v20 = vld [vmem:[%s2827_s14 + $0x1bc] ss:$20 sps:$4 sm:$0xff]   ;;  %v2682_v21 = vld [vmem:[%s2827_s14 + $0x124] ss:$20 sps:$4 sm:$0xff]  }
  0x2f   : > { %2350 = vmatprep.subr.bf16.mxu1 %v2599_v23  ;;  %1131 = vmatprep.mubr.bf16.mxu0 %v2601_v24  ;;  %v2684_v22 = vld [vmem:[%s2827_s14 + $0x1b8] ss:$20 sps:$4 sm:$0xff]   ;;  %v2685_v23 = vld [vmem:[%s2827_s14 + $0x120] ss:$20 sps:$4 sm:$0xff]  }
  0x30   : > { %1227 = vmatprep.mubr.bf16.mxu1 %v2603_v25  ;;  %2486 = vmatprep.subr.bf16.mxu0 %v2610_v26  ;;  %v2686_v24 = vld [vmem:[%s2827_s14 + $0x14c] ss:$20 sps:$4 sm:$0xff]   ;;  %v2688_v25 = vld [vmem:[%s2827_s14 + $0x10] ss:$20 sps:$4 sm:$0xff]  }
  0x32   : > { %2351 = vmatpush3.bf16.msra.mxu1 %v2600_v27  ;;  %2487 = vmatpush3.bf16.msra.mxu0 %v2610_v26  ;;  %v2689_v26 = vld [vmem:[%s2827_s14 + $0x148] ss:$20 sps:$4 sm:$0xff]   ;;  %v2690_v27 = vld [vmem:[%s2827_s14 + $0x38] ss:$20 sps:$4 sm:$0xff]  }
  0x33   : > { %2352 = vmatprep.subr.bf16.mxu1 %v2607_v29  ;;  %2488 = vmatprep.subr.bf16.mxu0 %v2629_v35  ;;  %v2693_v29 = vld [vmem:[%s2827_s14 + $0x60] ss:$20 sps:$4 sm:$0xff]  }
  0x35   : > { %1132 = vmatmul.mubr.bf16.gmra.mxu0 %v2605_v28  ;;  %1228 = vmatmul.mubr.bf16.gmra.mxu1 %v2606_v30  ;;  %v2691_v28 = vld [vmem:[%s2827_s14 + $0x174] ss:$20 sps:$4 sm:$0xff]   ;;  %v2694_v30 = vld [vmem:[%s2827_s14 + $0x170] ss:$20 sps:$4 sm:$0xff]  }
  0x36   : > { %2353 = vmatpush3.bf16.msra.mxu1 %v2608_v31  ;;  %1139 = vmatprep.mubr.bf16.mxu0 %v2612_v32  ;;  %v2695_v31 = vld [vmem:[%s2827_s14 + $0x88] ss:$20 sps:$4 sm:$0xff]  }
  0x37   : > { %2354 = vmatprep.subr.bf16.mxu1 %v2609_v33  ;;  %1235 = vmatprep.mubr.bf16.mxu1 %v2614_v34  ;;  %v2696_v32 = vld [vmem:[%s2827_s14 + $0x19c] ss:$20 sps:$4 sm:$0xff]   ;;  %v2699_v34 = vld [vmem:[%s2827_s14 + $0x198] ss:$20 sps:$4 sm:$0xff]  }
  0x38   : > { %2489 = vmatpush3.bf16.msra.mxu0 %v2629_v35  ;;  %v2698_v33 = vld [vmem:[%s2827_s14 + $0xb0] ss:$20 sps:$4 sm:$0xff]   ;;  %v2700_v35 = vld [vmem:[%s2827_s14 + $0xd8] ss:$20 sps:$4 sm:$0xff]  }
  0x39   : > { %2490 = vmatprep.subr.bf16.mxu0 %v2639_v44 }
  0x3a   : > { %2355 = vmatpush3.bf16.msra.mxu1 %v2611_v36  ;;  %v2701_v36 = vld [vmem:[%s2827_s14 + $0x1c4] ss:$20 sps:$4 sm:$0xff]  }
  0x3b   : > { %2356 = vmatprep.subr.bf16.mxu1 %v2618_v38  ;;  %v2704_v38 = vld [vmem:[%s2827_s14 + $0x1c0] ss:$20 sps:$4 sm:$0xff]  }
  0x3c   : > { %2491 = vmatpush3.bf16.msra.mxu0 %v2639_v44  ;;  %v2711_v44 = vld [vmem:[%s2827_s14 + $0x214] ss:$20 sps:$4 sm:$0xff]  }
  0x3d   : > { %1140 = vmatmul.mubr.bf16.gmra.mxu0 %v2616_v37  ;;  %1236 = vmatmul.mubr.bf16.gmra.mxu1 %v2617_v39  ;;  %v2703_v37 = vld [vmem:[%s2827_s14 + $0x100] ss:$20 sps:$4 sm:$0xff]   ;;  %v2705_v39 = vld [vmem:[%s2827_s14 + $0x128] ss:$20 sps:$4 sm:$0xff]  }
  0x3e   : > { %2357 = vmatpush3.bf16.msra.mxu1 %v2619_v40  ;;  %1147 = vmatprep.mubr.bf16.mxu0 %v2622_v42  ;;  %v2706_v40 = vld [vmem:[%s2827_s14 + $0x1ec] ss:$20 sps:$4 sm:$0xff]   ;;  %v2709_v42 = vld [vmem:[%s2827_s14 + $0x1e8] ss:$20 sps:$4 sm:$0xff]  }
  0x3f   : > { %2358 = vmatprep.subr.bf16.mxu1 %v2620_v41  ;;  %1243 = vmatprep.mubr.bf16.mxu1 %v2624_v43  ;;  %v2708_v41 = vld [vmem:[%s2827_s14 + $0x150] ss:$20 sps:$4 sm:$0xff]   ;;  %v2710_v43 = vld [vmem:[%s2827_s14 + $0x178] ss:$20 sps:$4 sm:$0xff]  }
  0x40   : > { %2492 = vmatprep.subr.bf16.mxu0 %v2652_v52 }
  0x41   : > { %2493 = vmatpush3.bf16.msra.mxu0 %v2652_v52  ;;  %v2721_v52 = vld [vmem:[%s2827_s14 + $0x264] ss:$20 sps:$4 sm:$0xff]  }
  0x42   : > { %2359 = vmatpush3.bf16.msra.mxu1 %v2621_v45  ;;  %2494 = vmatprep.subr.bf16.mxu0 %v2659_v55  ;;  %v2713_v45 = vld [vmem:[%s2827_s14 + $0x1a0] ss:$20 sps:$4 sm:$0xff]  }
  0x43   : > { %2360 = vmatprep.subr.bf16.mxu1 %v2628_v48  ;;  %v2716_v48 = vld [vmem:[%s2827_s14 + $0x23c] ss:$20 sps:$4 sm:$0xff]  }
  0x45   : > { %1148 = vmatmul.mubr.bf16.gmra.mxu0 %v2626_v46  ;;  %1244 = vmatmul.mubr.bf16.gmra.mxu1 %v2627_v47  ;;  %v2714_v46 = vld [vmem:[%s2827_s14 + $0x210] ss:$20 sps:$4 sm:$0xff]   ;;  %v2715_v47 = vld [vmem:[%s2827_s14 + $0x1c8] ss:$20 sps:$4 sm:$0xff]  }
  0x46   : > { %2361 = vmatpush3.bf16.msra.mxu1 %v2630_v49  ;;  %1155 = vmatprep.mubr.bf16.mxu0 %v2633_v51  ;;  %v2718_v49 = vld [vmem:[%s2827_s14 + $0x1f0] ss:$20 sps:$4 sm:$0xff]   ;;  %v2720_v51 = vld [vmem:[%s2827_s14 + $0x218] ss:$20 sps:$4 sm:$0xff]  }
  0x47   : > { %2362 = vmatprep.subr.bf16.mxu1 %v2631_v50  ;;  %1284 = vmatprep.mubr.bf16.mxu1 %v2637_v53  ;;  %v2719_v50 = vld [vmem:[%s2827_s14 + $0x238] ss:$20 sps:$4 sm:$0xff]   ;;  %v2723_v53 = vld [vmem:[%s2827_s14 + $0x240] ss:$20 sps:$4 sm:$0xff]  }
  0x48   : > { %2495 = vmatpush3.bf16.msra.mxu0 %v2659_v55  ;;  %v2725_v55 = vld [vmem:[%s2827_s14 + $0x268] ss:$20 sps:$4 sm:$0xff]  }
  0x49   : > { %2496 = vmatprep.subr.bf16.mxu0 %v2672_v60 }
  0x4a   : > { %2363 = vmatpush3.bf16.msra.mxu1 %v2632_v54  ;;  %v2724_v54 = vld [vmem:[%s2827_s14 + $0x260] ss:$20 sps:$4 sm:$0xff]   ;;  %s2047_s14 = sshll.u32 %s3470_s15, 1 }
  0x4b   : > { %s3052_s20 = scalar_lea.vmem %s3434_s4, %s2047_s14 }
  0x4c   : > { %2497 = vmatpush3.bf16.msra.mxu0 %v2672_v60 }
  0x4d   : > { %1156 = vmatmul.mubr.bf16.gmra.mxu0 %v2638_v57  ;;  %1285 = vmatmul.mubr.bf16.vlgmr.msra.gmra.mxu1 %v2635_v56 }
  0x4e   : > { %1163 = vmatprep.mubr.bf16.mxu0 %v2640_v58  ;;  %1292 = vmatprep.mubr.bf16.mxu1 %v2642_v59 }
  0x4f   : > { %2498 = vmatprep.subr.bf16.mxu0 %v2679_v62 }
  0x50   : > { %2499 = vmatpush3.bf16.msra.mxu0 %v2679_v62 }
  0x55   : > { %1164 = vmatmul.mubr.bf16.gmra.mxu0 %v2644_v61  ;;  %1293 = vmatmul.mubr.bf16.gmra.mxu1 %v2645_v63 }
  0x56   : > { %1171 = vmatprep.mubr.bf16.mxu0 %v2646_v0  ;;  %1300 = vmatprep.mubr.bf16.mxu1 %v2648_v1 }
  0x5d   : > { %1172 = vmatmul.mubr.bf16.gmra.mxu0 %v2650_v2  ;;  %1301 = vmatmul.mubr.bf16.gmra.mxu1 %v2651_v3 }
  0x5e   : > { %1179 = vmatprep.mubr.bf16.mxu0 %v2653_v4  ;;  %1308 = vmatprep.mubr.bf16.mxu1 %v2655_v5 }
  0x65   : > { %1180 = vmatmul.mubr.bf16.gmra.mxu0 %v2657_v6  ;;  %1309 = vmatmul.mubr.bf16.gmra.mxu1 %v2658_v7 }
  0x66   : > { %1187 = vmatprep.mubr.bf16.mxu0 %v2660_v8  ;;  %1316 = vmatprep.mubr.bf16.mxu1 %v2662_v9 }
  0x6d   : > { %1188 = vmatmul.mubr.bf16.gmra.mxu0 %v2664_v10  ;;  %1317 = vmatmul.mubr.bf16.gmra.mxu1 %v2665_v11 }
  0x6e   : > { %1195 = vmatprep.mubr.bf16.mxu0 %v2666_v12  ;;  %1324 = vmatprep.mubr.bf16.mxu1 %v2668_v13 }
  0x75   : > { %1196 = vmatmul.mubr.bf16.gmra.mxu0 %v2670_v14  ;;  %1325 = vmatmul.mubr.bf16.gmra.mxu1 %v2671_v15 }
  0x76   : > { %1203 = vmatprep.mubr.bf16.mxu0 %v2673_v16  ;;  %1332 = vmatprep.mubr.bf16.mxu1 %v2675_v17 }
  0x7d   : > { %1204 = vmatmul.mubr.bf16.gmra.mxu0 %v2677_v18  ;;  %1333 = vmatmul.mubr.bf16.gmra.mxu1 %v2678_v19 }
  0x7e   : > { %1211 = vmatprep.mubr.bf16.mxu0 %v2680_v20  ;;  %1340 = vmatprep.mubr.bf16.mxu1 %v2682_v21 }
  0x85   : > { %1212 = vmatmul.mubr.bf16.gmra.mxu0 %v2684_v22  ;;  %1341 = vmatmul.mubr.bf16.gmra.mxu1 %v2685_v23 }
  0x86   : > { %1348 = vmatprep.mubr.bf16.mxu1 %v2686_v24  ;;  %2500 = vmatprep.mubr.bf16.mxu0 %v2688_v25 }
  0x8d   : > { %1349 = vmatmul.mubr.bf16.gmra.mxu1 %v2689_v26  ;;  %2501 = vmatmul.mubr.bf16.vlgmr.msra.gmra.mxu0 %v2690_v27 }
  0x8e   : > { %1356 = vmatprep.mubr.bf16.mxu1 %v2691_v28  ;;  %2504 = vmatprep.mubr.bf16.mxu0 %v2693_v29 }
  0x95   : > { %1357 = vmatmul.mubr.bf16.gmra.mxu1 %v2694_v30  ;;  %2505 = vmatmul.mubr.bf16.gmra.mxu0 %v2695_v31 }
  0x96   : > { %1364 = vmatprep.mubr.bf16.mxu1 %v2696_v32  ;;  %2508 = vmatprep.mubr.bf16.mxu0 %v2698_v33 }
  0x9d   : > { %1365 = vmatmul.mubr.bf16.gmra.mxu1 %v2699_v34  ;;  %2509 = vmatmul.mubr.bf16.gmra.mxu0 %v2700_v35 }
  0x9e   : > { %1372 = vmatprep.mubr.bf16.mxu1 %v2701_v36  ;;  %2512 = vmatprep.mubr.bf16.mxu0 %v2703_v37 }
  0xa5   : > { %1373 = vmatmul.mubr.bf16.gmra.mxu1 %v2704_v38  ;;  %2513 = vmatmul.mubr.bf16.gmra.mxu0 %v2705_v39 }
  0xa6   : > { %1380 = vmatprep.mubr.bf16.mxu1 %v2706_v40  ;;  %2516 = vmatprep.mubr.bf16.mxu0 %v2708_v41 }
  0xad   : > { %1381 = vmatmul.mubr.bf16.gmra.mxu1 %v2709_v42  ;;  %2517 = vmatmul.mubr.bf16.gmra.mxu0 %v2710_v43 }
  0xae   : > { %1388 = vmatprep.mubr.bf16.mxu1 %v2711_v44  ;;  %2520 = vmatprep.mubr.bf16.mxu0 %v2713_v45 }
  0xb5   : > { %1389 = vmatmul.mubr.bf16.gmra.mxu1 %v2714_v46  ;;  %2521 = vmatmul.mubr.bf16.gmra.mxu0 %v2715_v47 }
  0xb6   : > { %1396 = vmatprep.mubr.bf16.mxu1 %v2716_v48  ;;  %2524 = vmatprep.mubr.bf16.mxu0 %v2718_v49 }
  0xbd   : > { %1397 = vmatmul.mubr.bf16.gmra.mxu1 %v2719_v50  ;;  %2525 = vmatmul.mubr.bf16.gmra.mxu0 %v2720_v51 }
  0xbe   : > { %1404 = vmatprep.mubr.bf16.mxu1 %v2721_v52  ;;  %2528 = vmatprep.mubr.bf16.mxu0 %v2723_v53 }
  0xc5   : > { %1405 = vmatmul.mubr.bf16.gmra.mxu1 %v2724_v54  ;;  %2529 = vmatmul.mubr.bf16.gmra.mxu0 %v2725_v55  ;;  %v2750_v54 = vmov 0.0  }
  0xc6   : > { %1740 = vst.msk [vmem:[%s3052_s20] sm:$0x3] %vm1739_vm0, %v2750_v54 }
  0xed   : > { %v2252_v56 = vpop.f32.mrf.mxu0  ;;  %v2324_v57 = vpop.f32.mrf.mxu1 }
  0xef   : > { %v2253_v58 = vpop.f32.mrf.mxu0  ;;  %v2325_v59 = vpop.f32.mrf.mxu1 }
  0xf0   : > { %v3002_v60 = vadd.f32 %v2253_v58, %v2252_v56  ;;  %v3004_v61 = vadd.f32 %v2325_v59, %v2324_v57 }
  0xf1   : > { %v2255_v62 = vpop.f32.mrf.mxu0  ;;  %v2327_v63 = vpop.f32.mrf.mxu1 }
  0xf3   : > { %v2256_v0 = vpop.f32.mrf.mxu0  ;;  %v2328_v1 = vpop.f32.mrf.mxu1 }
  0xf4   : > { %v3006_v2 = vadd.f32 %v2256_v0, %v2255_v62  ;;  %v3008_v3 = vadd.f32 %v2328_v1, %v2327_v63 }
  0xf5   : > { %v2258_v4 = vpop.f32.mrf.mxu0  ;;  %v2330_v5 = vpop.f32.mrf.mxu1 }
  0xf7   : > { %v2259_v6 = vpop.f32.mrf.mxu0  ;;  %v2331_v7 = vpop.f32.mrf.mxu1 }
  0xf8   : > { %v3010_v8 = vadd.f32 %v2259_v6, %v2258_v4  ;;  %v3012_v9 = vadd.f32 %v2331_v7, %v2330_v5 }
  0xf9   : > { %v2261_v10 = vpop.f32.mrf.mxu0  ;;  %v2333_v11 = vpop.f32.mrf.mxu1 }
  0xfb   : > { %v2262_v12 = vpop.f32.mrf.mxu0  ;;  %v2334_v13 = vpop.f32.mrf.mxu1 }
  0xfc   : > { %v3014_v14 = vadd.f32 %v2262_v12, %v2261_v10  ;;  %v3016_v15 = vadd.f32 %v2334_v13, %v2333_v11 }
  0xfd   : > { %v2264_v16 = vpop.f32.mrf.mxu0  ;;  %v2336_v17 = vpop.f32.mrf.mxu1 }
  0xff   : > { %v2265_v18 = vpop.f32.mrf.mxu0  ;;  %v2337_v19 = vpop.f32.mrf.mxu1 }
 0x100   : > { %v3018_v20 = vadd.f32 %v2265_v18, %v2264_v16  ;;  %v3020_v21 = vadd.f32 %v2337_v19, %v2336_v17 }
 0x101   : > { %v2267_v22 = vpop.f32.mrf.mxu0  ;;  %v2339_v23 = vpop.f32.mrf.mxu1 }
 0x103   : > { %v2268_v24 = vpop.f32.mrf.mxu0  ;;  %v2340_v25 = vpop.f32.mrf.mxu1 }
 0x104   : > { %v3022_v26 = vadd.f32 %v2268_v24, %v2267_v22  ;;  %v3024_v27 = vadd.f32 %v2340_v25, %v2339_v23 }
 0x105   : > { %v2270_v28 = vpop.f32.mrf.mxu0  ;;  %v2342_v29 = vpop.f32.mrf.mxu1 }
 0x106   : > { %3435 = vst [vmem:[#allocation2_spill] sm:$0xff] %v3024_v27 }
 0x107   : > { %v2271_v30 = vpop.f32.mrf.mxu0  ;;  %v2343_v31 = vpop.f32.mrf.mxu1 }
 0x108   : > { %v3026_v32 = vadd.f32 %v2271_v30, %v2270_v28  ;;  %v3028_v33 = vadd.f32 %v2343_v31, %v2342_v29 }
 0x109   : > { %v2273_v34 = vpop.f32.mrf.mxu0  ;;  %v2345_v35 = vpop.f32.mrf.mxu1 }
 0x10b   : > { %v2274_v36 = vpop.f32.mrf.mxu0  ;;  %v2346_v37 = vpop.f32.mrf.mxu1 }
 0x10c   : > { %v3030_v38 = vadd.f32 %v2274_v36, %v2273_v34  ;;  %v3032_v39 = vadd.f32 %v2346_v37, %v2345_v35 }
 0x10d   : > { %v2276_v40 = vpop.f32.mrf.mxu0  ;;  %v3034_v41 = vpop.f32.mrf.mxu1 }
 0x10e   : > { %3436 = vst [vmem:[#allocation3_spill] sm:$0xff] %v3032_v39 }
 0x10f   : > { %v2277_v42 = vpop.f32.mrf.mxu0  ;;  %v3036_v43 = vpop.f32.mrf.mxu1 }
 0x110   : > { %v3038_v44 = vadd.f32 %v2277_v42, %v2276_v40 }
 0x111   : > { %v2279_v45 = vpop.f32.mrf.mxu0  ;;  %v3040_v46 = vpop.f32.mrf.mxu1 }
 0x113   : > { %v2280_v47 = vpop.f32.mrf.mxu0  ;;  %v3042_v48 = vpop.f32.mrf.mxu1 }
 0x114   : > { %v3044_v49 = vadd.f32 %v2280_v47, %v2279_v45 }
 0x115   : > { %v2282_v50 = vpop.f32.mrf.mxu0  ;;  %v3046_v51 = vpop.f32.mrf.mxu1 }
 0x117   : > { %v2283_v52 = vpop.f32.mrf.mxu0  ;;  %v3054_v53 = vpop.f32.mrf.mxu1 }
 0x118   : > { %v3058_v55 = vadd.f32 %v2283_v52, %v2282_v50 }
 0x119   : > { %v2285_v56 = vpop.f32.mrf.mxu0  ;;  %v3060_v57 = vpop.f32.mrf.mxu1 }
 0x11b   : > { %v2286_v58 = vpop.f32.mrf.mxu0  ;;  %v3062_v59 = vpop.f32.mrf.mxu1 }
 0x11c   : > { %v3064_v62 = vadd.f32 %v2286_v58, %v2285_v56 }
 0x11d   : > { %v2288_v63 = vpop.f32.mrf.mxu0  ;;  %v3066_v0 = vpop.f32.mrf.mxu1 }
 0x11f   : > { %v2289_v1 = vpop.f32.mrf.mxu0  ;;  %v3068_v4 = vpop.f32.mrf.mxu1 }
 0x120   : > { %v3070_v5 = vadd.f32 %v2289_v1, %v2288_v63  ;;  %v3099_v63 = vld [vmem:[%s3432_s2] ss:$0 sm:$0xff] }
 0x121   : > { %v2291_v6 = vpop.f32.mrf.mxu0  ;;  %v2379_v7 = vpop.f32.mrf.mxu1  ;;  %v1126_v27 = vadd.f32 %v3002_v60, %v3099_v63  ;;  %v3127_v60 = vadd.f32 %v3012_v9, %v3099_v63  ;;  %v3143_v9 = vadd.f32 %v3020_v21, %v3099_v63  ;;  %v1158_v21 = vadd.f32 %v3038_v44, %v3099_v63 }
 0x123   : > { %v2292_v10 = vpop.f32.mrf.mxu0  ;;  %v2380_v11 = vpop.f32.mrf.mxu1  ;;  %3445 = vst [vmem:[#allocation12_spill] sm:$0xff] %v3127_v60  ;;  %3448 = vst [vmem:[#allocation15_spill] sm:$0xff] %v3143_v9 }
 0x124   : > { %v3072_v12 = vadd.f32 %v2292_v10, %v2291_v6 }
 0x125   : > { %v2294_v13 = vpop.f32.mrf.mxu0  ;;  %v2382_v16 = vpop.f32.mrf.mxu1 }
 0x127   : > { %v2295_v17 = vpop.f32.mrf.mxu0  ;;  %v2383_v18 = vpop.f32.mrf.mxu1 }
 0x129   : > { %v2297_v19 = vpop.f32.mrf.mxu0  ;;  %v2385_v22 = vpop.f32.mrf.mxu1 }
 0x12b   : > { %v2298_v23 = vpop.f32.mrf.mxu0  ;;  %v2386_v24 = vpop.f32.mrf.mxu1 }
 0x12c   : > { %v2299_v60 = vadd.f32 %v2298_v23, %v2297_v19  ;;  %v2387_v44 = vadd.f32 %v2386_v24, %v2385_v22 }
 0x12d   : > { %v2300_v25 = vpop.f32.mrf.mxu0  ;;  %v2388_v28 = vpop.f32.mrf.mxu1 }
 0x12f   : > { %v2301_v29 = vpop.f32.mrf.mxu0  ;;  %v2389_v30 = vpop.f32.mrf.mxu1 }
 0x131   : > { %v2303_v31 = vpop.f32.mrf.mxu0  ;;  %v3074_v34 = vpop.f32.mrf.mxu1 }
 0x133   : > { %v2304_v35 = vpop.f32.mrf.mxu0  ;;  %v2392_v36 = vpop.f32.mrf.mxu1 }
 0x135   : > { %v3076_v37 = vpop.f32.mrf.mxu0  ;;  %v3078_v40 = vpop.f32.mrf.mxu1 }
 0x137   : > { %v3080_v42 = vpop.f32.mrf.mxu0  ;;  %v3082_v45 = vpop.f32.mrf.mxu1 }
 0x138   : > { %v2396_v24 = vadd.f32 %v3082_v45, %v3078_v40 }
 0x139   : > { %v3084_v47 = vpop.f32.mrf.mxu0  ;;  %v3086_v50 = vpop.f32.mrf.mxu1 }
 0x13b   : > { %v3088_v52 = vpop.f32.mrf.mxu0  ;;  %v3090_v54 = vpop.f32.mrf.mxu1 }
 0x13c   : > { %3437 = vst [vmem:[#allocation4_spill] sm:$0xff] %v3090_v54  ;;  %v2366_v54 = vadd.f32 %v3036_v43, %v3034_v41  ;;  %v1145_v41 = vadd.f32 %v3022_v26, %v3099_v63  ;;  %v1150_v43 = vadd.f32 %v3026_v32, %v3099_v63  ;;  %v2375_v26 = vadd.f32 %v3062_v59, %v3060_v57 }
 0x13d   : > { %v3092_v56 = vpop.f32.mrf.mxu0  ;;  %v3094_v58 = vpop.f32.mrf.mxu1  ;;  %v1161_v32 = vadd.f32 %v3044_v49, %v3099_v63  ;;  %v1166_v57 = vadd.f32 %v3058_v55, %v3099_v63  ;;  %v2390_v59 = vadd.f32 %v2389_v30, %v2388_v28 }
 0x13e   : > { %3438 = vst [vmem:[#allocation5_spill] sm:$0xff] %v3092_v56  ;;  %3439 = vst [vmem:[#allocation6_spill] sm:$0xff] %v3094_v58  ;;  %v3113_v56 = vadd.f32 %v3004_v61, %v3099_v63  ;;  %v1129_v58 = vadd.f32 %v3006_v2, %v3099_v63  ;;  %v2369_v61 = vadd.f32 %v3042_v48, %v3040_v46 }
 0x13f   : > { %v3101_v1 = vpop.f32.mrf.mxu0  ;;  %v3103_v6 = vpop.f32.mrf.mxu1  ;;  %v1137_v2 = vadd.f32 %v3014_v14, %v3099_v63  ;;  %v3151_v14 = vadd.f32 %v3028_v33, %v3099_v63  ;;  %v1287_v9 = vadd.f32 %v2366_v54, %v1126_v27  ;;  %v2378_v33 = vadd.f32 %v3068_v4, %v3066_v0 }
 0x140   : > { %3440 = vst [vmem:[#allocation7_spill] sm:$0xff] %v3103_v6  ;;  %3443 = vst [vmem:[#allocation10_spill] sm:$0xff] %v3113_v56  ;;  %v3121_v6 = vadd.f32 %v3008_v3, %v3099_v63  ;;  %v3137_v3 = vadd.f32 %v3016_v15, %v3099_v63  ;;  %v2372_v15 = vadd.f32 %v3054_v53, %v3046_v51 }
 0x141   : > { %v3105_v10 = vpop.f32.mrf.mxu0  ;;  %v3107_v39 = vpop.f32.mrf.mxu1  ;;  %3449 = vst [vmem:[#allocation16_spill] sm:$0xff] %v3151_v14  ;;  %v2381_v14 = vadd.f32 %v2380_v11, %v2379_v7  ;;  %v2302_v27 = vadd.f32 %v2301_v29, %v2300_v25  ;;  %v1169_v0 = vadd.f32 %v3064_v62, %v3099_v63  ;;  %v1174_v4 = vadd.f32 %v3070_v5, %v3099_v63 }
 0x142   : > { %3441 = vst [vmem:[#allocation8_spill] sm:$0xff] %v3105_v10  ;;  %3442 = vst [vmem:[#allocation9_spill] sm:$0xff] %v3107_v39  ;;  %v1134_v39 = vadd.f32 %v3010_v8, %v3099_v63  ;;  %v1142_v8 = vadd.f32 %v3018_v20, %v3099_v63  ;;  %v1153_v20 = vadd.f32 %v3030_v38, %v3099_v63 }
 0x143   : > { %3444 = vst [vmem:[#allocation11_spill] sm:$0xff] %v3121_v6  ;;  %v2316_v56 = vpop.f32.mrf.mxu0  ;;  %v3131_v10 = vpop.f32.mrf.mxu1  ;;  %3447 = vst [vmem:[#allocation14_spill] sm:$0xff] %v3137_v3  ;;  %v3165_v3 = vadd.f32 %v2369_v61, %v1129_v58  ;;  %v2296_v38 = vadd.f32 %v2295_v17, %v2294_v13  ;;  %v2384_v6 = vadd.f32 %v2383_v18, %v2382_v16 }
 0x144   : > { %3446 = vst [vmem:[#allocation13_spill] sm:$0xff] %v3131_v10  ;;  %v1295_v10 = vadd.f32 %v2372_v15, %v1134_v39  ;;  %v2305_v7 = vadd.f32 %v2304_v35, %v2303_v31  ;;  %v1298_v11 = vadd.f32 %v2375_v26, %v1137_v2  ;;  %v1177_v13 = vadd.f32 %v3072_v12, %v3099_v63 }
 0x145   : > { %v2318_v46 = vpop.f32.mrf.mxu0  ;;  %v2406_v48 = vpop.f32.mrf.mxu1  ;;  %v2393_v16 = vadd.f32 %v2392_v36, %v3074_v34  ;;  %v3176_v18 = vadd.f32 %v2378_v33, %v1142_v8  ;;  %v3178_v19 = vadd.f32 %v2381_v14, %v1145_v41  ;;  %v1182_v39 = vadd.f32 %v2296_v38, %v3099_v63  ;;  %v3450_v34 = vld [vmem:[#allocation4_spill] sm:$0xff]  ;;  %v3451_v58 = vld [vmem:[#allocation5_spill] sm:$0xff] }
 0x146   : > { %v1185_v62 = vadd.f32 %v2299_v60, %v3099_v63  ;;  %v1311_v22 = vadd.f32 %v2384_v6, %v1150_v43  ;;  %v3183_v5 = vadd.f32 %v2387_v44, %v1153_v20  ;;  %v3186_v23 = vadd.f32 %v2302_v27, %v3099_v63 }
 0x147   : > { %v2319_v51 = vpop.f32.mrf.mxu0  ;;  %v2407_v53 = vpop.f32.mrf.mxu1  ;;  %v2308_v12 = vadd.f32 %v3080_v42, %v3076_v37  ;;  %v3192_v29 = vadd.f32 %v2390_v59, %v1158_v21  ;;  %v3195_v30 = vadd.f32 %v2305_v7, %v3099_v63  ;;  %v2311_v31 = vadd.f32 %v3088_v52, %v3084_v47  ;;  %v3452_v42 = vld [vmem:[#allocation6_spill] sm:$0xff]  ;;  %v3453_v40 = vld [vmem:[#allocation7_spill] sm:$0xff] }
 0x148   : > { %v2399_v35 = vadd.f32 %v3450_v34, %v3086_v50  ;;  %v2314_v37 = vadd.f32 %v3101_v1, %v3451_v58  ;;  %v2402_v45 = vadd.f32 %v3453_v40, %v3452_v42  ;;  %v3211_v52 = vadd.f32 %v2393_v16, %v1161_v32 }
 0x149   : > { %v2321_v49 = vpop.f32.mrf.mxu0  ;;  %v2409_v54 = vpop.f32.mrf.mxu1  ;;  %v3454_v6 = vld [vmem:[#allocation8_spill] sm:$0xff]  ;;  %v3455_v50 = vld [vmem:[#allocation9_spill] sm:$0xff]  ;;  %v2320_v8 = vadd.f32 %v2319_v51, %v2318_v46  ;;  %v2408_v1 = vadd.f32 %v2407_v53, %v2406_v48  ;;  %v3216_v43 = vadd.f32 %v2308_v12, %v3099_v63  ;;  %v3218_v21 = vadd.f32 %v2396_v24, %v1166_v57 }
 0x14a   : > { %v2317_v60 = vadd.f32 %v2316_v56, %v3454_v6  ;;  %v3221_v26 = vadd.f32 %v2311_v31, %v3099_v63  ;;  %v3225_v46 = vadd.f32 %v2399_v35, %v1169_v0  ;;  %v3228_v48 = vadd.f32 %v2314_v37, %v3099_v63 }
 0x14b   : > { %v2322_v55 = vpop.f32.mrf.mxu0  ;;  %v2410_v17 = vpop.f32.mrf.mxu1  ;;  %v3233_v44 = vadd.f32 %v2402_v45, %v1174_v4  ;;  %v3236_v57 = vadd.f32 %v2320_v8, %v3099_v63  ;;  %v3238_v59 = vadd.f32 %v2408_v1, %v1182_v39 }
 0x14c   : > { %v2323_v56 = vadd.f32 %v2322_v55, %v2321_v49  ;;  %v2411_v32 = vadd.f32 %v2410_v17, %v2409_v54  ;;  %v3231_v51 = vadd.f32 %v2317_v60, %v3099_v63 }
 0x14d   : > { %v2412_v25 = vpop.f32.mrf.mxu1  ;;  %v2502_v28 = vpop.f32.mrf.mxu0 }
 0x14e   : > { %v1456_v36 = vadd.f32 %v2502_v28, %v1295_v10  ;;  %v3456_v10 = vld [vmem:[#allocation13_spill] sm:$0xff]  ;;  %v3243_v54 = vadd.f32 %v2323_v56, %v3099_v63 }
 0x14f   : > { %v2413_v61 = vpop.f32.mrf.mxu1  ;;  %v1447_v47 = vpop.f32.mrf.mxu0  ;;  %v2405_v2 = vadd.f32 %v3456_v10, %v3455_v50 }
 0x150   : > { %v2206_v41 = vpack.c.bf16 %v1456_v36, %v1456_v36  ;;  %v1448_v14 = vadd.f32 %v1447_v47, %v1287_v9  ;;  %v1813_v0 = vmul.f32 %v1456_v36, %v1456_v36  ;;  %v2414_v55 = vadd.f32 %v2413_v61, %v2412_v25 }
 0x151   : > { %v2415_v15 = vpop.f32.mrf.mxu1  ;;  %v2503_v20 = vpop.f32.mrf.mxu0  ;;  %v3240_v49 = vadd.f32 %v2405_v2, %v1177_v13  ;;  %v3251_v13 = vadd.f32 %v2411_v32, %v1185_v62 }
 0x152   : > { %1705 = vst.msk [vmem:[%s3209_s25 + $0x8] sm:$0xf] %vm1702_vm1, %v2206_v41  ;;  %v1459_v33 = vadd.f32 %v2503_v20, %v1298_v11  ;;  %v2204_v9 = vpack.c.bf16 %v1448_v14, %v1448_v14  ;;  %v1811_v7 = vmul.f32 %v1448_v14, %v1448_v14  ;;  %v1742_v17 = vsel %vm1741_vm2, %v1448_v14, 0.0 }
 0x153   : > { %v2416_v53 = vpop.f32.mrf.mxu1  ;;  %v1450_v38 = vpop.f32.mrf.mxu0  ;;  %v1846_v42 = vsel %vm1741_vm2, %v1813_v0, 0.0  ;;  %v3265_v47 = vadd.f32 %v2414_v55, %v3186_v23 }
 0x154   : > { %v2207_v27 = vpack.c.bf16 %v1459_v33, %v1459_v33  ;;  %1703 = vst.msk [vmem:[%s3209_s25] sm:$0xf] %vm1702_vm1, %v2204_v9  ;;  %v1451_v11 = vadd.f32 %v1450_v38, %v3165_v3  ;;  %v1814_v12 = vmul.f32 %v1459_v33, %v1459_v33  ;;  %v1745_v3 = vsel %vm1741_vm2, %v1456_v36, 0.0 }
 0x155   : > { %v2418_v16 = vpop.f32.mrf.mxu1  ;;  %v2506_v4 = vpop.f32.mrf.mxu0  ;;  %v2417_v58 = vadd.f32 %v2416_v53, %v2415_v15  ;;  %v1843_v40 = vsel %vm1741_vm2, %v1811_v7, 0.0  ;;  %v1747_v50 = vsel %vm1741_vm2, %v1459_v33, 0.0 }
 0x156   : > { %1706 = vst.msk [vmem:[%s3209_s25 + $0xc] sm:$0xf] %vm1702_vm1, %v2207_v27  ;;  %v1472_v39 = vadd.f32 %v2506_v4, %v1311_v22  ;;  %v2205_v24 = vpack.c.bf16 %v1451_v11, %v1451_v11  ;;  %v1743_v28 = vsel %vm1741_vm2, %v1451_v11, 0.0  ;;  %v1812_v31 = vmul.f32 %v1451_v11, %v1451_v11 }
 0x157   : > { %v2419_v34 = vpop.f32.mrf.mxu1  ;;  %v1463_v35 = vpop.f32.mrf.mxu0  ;;  %v1744_v25 = vadd.f32 %v1743_v28, %v1742_v17  ;;  %v1848_v10 = vsel %vm1741_vm2, %v1814_v12, 0.0  ;;  %v3270_v15 = vadd.f32 %v2417_v58, %v3195_v30 }
 0x158   : > { %v2210_v37 = vpack.c.bf16 %v1472_v39, %v1472_v39  ;;  %1704 = vst.msk [vmem:[%s3209_s25 + $0x4] sm:$0xf] %vm1702_vm1, %v2205_v24  ;;  %v1844_v62 = vsel %vm1741_vm2, %v1812_v31, 0.0  ;;  %v1464_v22 = vadd.f32 %v1463_v35, %v3176_v18  ;;  %v1817_v20 = vmul.f32 %v1472_v39, %v1472_v39 }
 0x159   : > { %v2421_v45 = vpop.f32.mrf.mxu1  ;;  %v2507_v6 = vpop.f32.mrf.mxu0  ;;  %v1746_v60 = vadd.f32 %v1745_v3, %v1744_v25  ;;  %v1845_v61 = vadd.f32 %v1844_v62, %v1843_v40 }
 0x15a   : > { %1709 = vst.msk [vmem:[%s3209_s25 + $0x18] sm:$0xf] %vm1702_vm1, %v2210_v37  ;;  %v1475_v36 = vadd.f32 %v2507_v6, %v3183_v5  ;;  %v2208_v2 = vpack.c.bf16 %v1464_v22, %v1464_v22  ;;  %v1815_v8 = vmul.f32 %v1464_v22, %v1464_v22  ;;  %v2420_v5 = vadd.f32 %v2419_v34, %v2418_v16 }
 0x15b   : > { %v2422_v1 = vpop.f32.mrf.mxu1  ;;  %v1466_v18 = vpop.f32.mrf.mxu0  ;;  %v1847_v41 = vadd.f32 %v1846_v42, %v1845_v61  ;;  %v1748_v56 = vadd.f32 %v1747_v50, %v1746_v60  ;;  %v1749_v23 = vsel %vm1741_vm2, %v1464_v22, 0.0  ;;  %v1854_v28 = vsel %vm1741_vm2, %v1817_v20, 0.0 }
 0x15c   : > { %v2211_v14 = vpack.c.bf16 %v1475_v36, %v1475_v36  ;;  %1707 = vst.msk [vmem:[%s3209_s25 + $0x10] sm:$0xf] %vm1702_vm1, %v2208_v2  ;;  %v1467_v32 = vadd.f32 %v1466_v18, %v3178_v19  ;;  %v1850_v27 = vsel %vm1741_vm2, %v1815_v8, 0.0  ;;  %v1818_v0 = vmul.f32 %v1475_v36, %v1475_v36 }
 0x15d   : > { %v2424_v33 = vpop.f32.mrf.mxu1  ;;  %v2510_v9 = vpop.f32.mrf.mxu0  ;;  %v1750_v53 = vadd.f32 %v1749_v23, %v1748_v56  ;;  %v1849_v38 = vadd.f32 %v1848_v10, %v1847_v41  ;;  %v1753_v19 = vsel %vm1741_vm2, %v1472_v39, 0.0  ;;  %v3288_v3 = vadd.f32 %v2420_v5, %v3216_v43 }
 0x15e   : > { %1710 = vst.msk [vmem:[%s3209_s25 + $0x1c] sm:$0xf] %vm1702_vm1, %v2211_v14  ;;  %v1488_v30 = vadd.f32 %v2510_v9, %v3218_v21  ;;  %v2209_v7 = vpack.c.bf16 %v1467_v32, %v1467_v32  ;;  %v1751_v11 = vsel %vm1741_vm2, %v1467_v32, 0.0  ;;  %v1816_v16 = vmul.f32 %v1467_v32, %v1467_v32 }
 0x15f   : > { %v2425_v4 = vpop.f32.mrf.mxu1  ;;  %v1479_v55 = vpop.f32.mrf.mxu0  ;;  %v1851_v17 = vadd.f32 %v1850_v27, %v1849_v38  ;;  %v1752_v12 = vadd.f32 %v1751_v11, %v1750_v53  ;;  %v1755_v58 = vsel %vm1741_vm2, %v1475_v36, 0.0  ;;  %v1856_v42 = vsel %vm1741_vm2, %v1818_v0, 0.0 }
 0x160   : > { %v2214_v24 = vpack.c.bf16 %v1488_v30, %v1488_v30  ;;  %1708 = vst.msk [vmem:[%s3209_s25 + $0x14] sm:$0xf] %vm1702_vm1, %v2209_v7  ;;  %v1852_v31 = vsel %vm1741_vm2, %v1816_v16, 0.0  ;;  %v1480_v21 = vadd.f32 %v1479_v55, %v3192_v29  ;;  %v2423_v40 = vadd.f32 %v2422_v1, %v2421_v45 }
 0x161   : > { %v2427_v34 = vpop.f32.mrf.mxu1  ;;  %v2511_v35 = vpop.f32.mrf.mxu0  ;;  %v1754_v25 = vadd.f32 %v1753_v19, %v1752_v12  ;;  %v1853_v39 = vadd.f32 %v1852_v31, %v1851_v17  ;;  %v1761_v43 = vsel %vm1741_vm2, %v1488_v30, 0.0  ;;  %v1821_v50 = vmul.f32 %v1488_v30, %v1488_v30 }
 0x162   : > { %1713 = vst.msk [vmem:[%s3209_s25 + $0x28] sm:$0xf] %vm1702_vm1, %v2214_v24  ;;  %v1491_v37 = vadd.f32 %v2511_v35, %v3225_v46  ;;  %v2212_v62 = vpack.c.bf16 %v1480_v21, %v1480_v21  ;;  %v1819_v22 = vmul.f32 %v1480_v21, %v1480_v21  ;;  %v2426_v10 = vadd.f32 %v2425_v4, %v2424_v33 }
 0x163   : > { %v2428_v29 = vpop.f32.mrf.mxu1  ;;  %v1482_v6 = vpop.f32.mrf.mxu0  ;;  %v1855_v60 = vadd.f32 %v1854_v28, %v1853_v39  ;;  %v1756_v61 = vadd.f32 %v1755_v58, %v1754_v25  ;;  %v1757_v2 = vsel %vm1741_vm2, %v1480_v21, 0.0  ;;  %v1362_v38 = vadd.f32 %v2423_v40, %v3221_v26 }
 0x164   : > { %v2215_v36 = vpack.c.bf16 %v1491_v37, %v1491_v37  ;;  %1711 = vst.msk [vmem:[%s3209_s25 + $0x20] sm:$0xf] %vm1702_vm1, %v2212_v62  ;;  %v1483_v46 = vadd.f32 %v1482_v6, %v3211_v52  ;;  %v1858_v41 = vsel %vm1741_vm2, %v1819_v22, 0.0  ;;  %v1822_v14 = vmul.f32 %v1491_v37, %v1491_v37 }
 0x165   : > { %v2430_v8 = vpop.f32.mrf.mxu1  ;;  %v2514_v45 = vpop.f32.mrf.mxu0  ;;  %v1758_v1 = vadd.f32 %v1757_v2, %v1756_v61  ;;  %v1857_v18 = vadd.f32 %v1856_v42, %v1855_v60  ;;  %v1862_v27 = vsel %vm1741_vm2, %v1821_v50, 0.0  ;;  %v1763_v30 = vsel %vm1741_vm2, %v1491_v37, 0.0 }
 0x166   : > { %1714 = vst.msk [vmem:[%s3209_s25 + $0x2c] sm:$0xf] %vm1702_vm1, %v2215_v36  ;;  %v1504_v56 = vadd.f32 %v2514_v45, %v3238_v59  ;;  %v2213_v20 = vpack.c.bf16 %v1483_v46, %v1483_v46  ;;  %v1759_v5 = vsel %vm1741_vm2, %v1483_v46, 0.0  ;;  %v1820_v23 = vmul.f32 %v1483_v46, %v1483_v46 }
 0x167   : > { %v2431_v32 = vpop.f32.mrf.mxu1  ;;  %v1495_v33 = vpop.f32.mrf.mxu0  ;;  %v1859_v52 = vadd.f32 %v1858_v41, %v1857_v18  ;;  %v1760_v9 = vadd.f32 %v1759_v5, %v1758_v1  ;;  %v2429_v16 = vadd.f32 %v2428_v29, %v2427_v34  ;;  %v1864_v19 = vsel %vm1741_vm2, %v1822_v14, 0.0 }
 0x168   : > { %v2218_v53 = vpack.c.bf16 %v1504_v56, %v1504_v56  ;;  %1712 = vst.msk [vmem:[%s3209_s25 + $0x24] sm:$0xf] %vm1702_vm1, %v2213_v20  ;;  %v1860_v59 = vsel %vm1741_vm2, %v1820_v23, 0.0  ;;  %v1496_v0 = vadd.f32 %v1495_v33, %v3233_v44  ;;  %v3317_v31 = vadd.f32 %v2426_v10, %v3228_v48 }
 0x169   : > { %v2433_v7 = vpop.f32.mrf.mxu1  ;;  %v2515_v11 = vpop.f32.mrf.mxu0  ;;  %v1762_v4 = vadd.f32 %v1761_v43, %v1760_v9  ;;  %v1861_v55 = vadd.f32 %v1860_v59, %v1859_v52  ;;  %v1769_v21 = vsel %vm1741_vm2, %v1504_v56, 0.0  ;;  %v1825_v58 = vmul.f32 %v1504_v56, %v1504_v56 }
 0x16a   : > { %1717 = vst.msk [vmem:[%s3209_s25 + $0x38] sm:$0xf] %vm1702_vm1, %v2218_v53  ;;  %v1507_v26 = vadd.f32 %v2515_v11, %v3251_v13  ;;  %v2216_v17 = vpack.c.bf16 %v1496_v0, %v1496_v0  ;;  %v1823_v12 = vmul.f32 %v1496_v0, %v1496_v0  ;;  %v2432_v25 = vadd.f32 %v2431_v32, %v2430_v8 }
 0x16b   : > { %v2434_v24 = vpop.f32.mrf.mxu1  ;;  %v1498_v28 = vpop.f32.mrf.mxu0  ;;  %v1863_v44 = vadd.f32 %v1862_v27, %v1861_v55  ;;  %v1764_v34 = vadd.f32 %v1763_v30, %v1762_v4  ;;  %v1765_v13 = vsel %vm1741_vm2, %v1496_v0, 0.0  ;;  %v3330_v2 = vadd.f32 %v2429_v16, %v3231_v51 }
 0x16c   : > { %v2219_v35 = vpack.c.bf16 %v1507_v26, %v1507_v26  ;;  %1715 = vst.msk [vmem:[%s3209_s25 + $0x30] sm:$0xf] %vm1702_vm1, %v2216_v17  ;;  %v1499_v39 = vadd.f32 %v1498_v28, %v3240_v49  ;;  %v1866_v48 = vsel %vm1741_vm2, %v1823_v12, 0.0  ;;  %v1826_v29 = vmul.f32 %v1507_v26, %v1507_v26 }
 0x16d   : > { %v2436_v37 = vpop.f32.mrf.mxu1  ;;  %v2518_v42 = vpop.f32.mrf.mxu0  ;;  %v1766_v40 = vadd.f32 %v1765_v13, %v1764_v34  ;;  %v1865_v62 = vadd.f32 %v1864_v19, %v1863_v44  ;;  %v1870_v46 = vsel %vm1741_vm2, %v1825_v58, 0.0  ;;  %v1771_v8 = vsel %vm1741_vm2, %v1507_v26, 0.0 }
 0x16e   : > { %1718 = vst.msk [vmem:[%s3209_s25 + $0x3c] sm:$0xf] %vm1702_vm1, %v2219_v35  ;;  %v1520_v22 = vadd.f32 %v2518_v42, %v3288_v3  ;;  %v2217_v6 = vpack.c.bf16 %v1499_v39, %v1499_v39  ;;  %v1767_v60 = vsel %vm1741_vm2, %v1499_v39, 0.0  ;;  %v1824_v43 = vmul.f32 %v1499_v39, %v1499_v39 }
 0x16f   : > { %v2437_v61 = vpop.f32.mrf.mxu1  ;;  %v1511_v36 = vpop.f32.mrf.mxu0  ;;  %v1867_v49 = vadd.f32 %v1866_v48, %v1865_v62  ;;  %v1768_v50 = vadd.f32 %v1767_v60, %v1766_v40  ;;  %v2435_v41 = vadd.f32 %v2434_v24, %v2433_v7  ;;  %v1872_v20 = vsel %vm1741_vm2, %v1826_v29, 0.0 }
 0x170   : > { %v2222_v10 = vpack.c.bf16 %v1520_v22, %v1520_v22  ;;  %1716 = vst.msk [vmem:[%s3209_s25 + $0x34] sm:$0xf] %vm1702_vm1, %v2217_v6  ;;  %v1868_v3 = vsel %vm1741_vm2, %v1824_v43, 0.0  ;;  %v1512_v45 = vadd.f32 %v1511_v36, %v3265_v47  ;;  %v1375_v52 = vadd.f32 %v2432_v25, %v3236_v57  ;;  %v3457_v43 = vld [vmem:[#allocation10_spill] sm:$0xff] }
 0x171   : > { %v2439_v1 = vpop.f32.mrf.mxu1  ;;  %v2519_v18 = vpop.f32.mrf.mxu0  ;;  %v1770_v56 = vadd.f32 %v1769_v21, %v1768_v50  ;;  %v1869_v14 = vadd.f32 %v1868_v3, %v1867_v49  ;;  %v1777_v47 = vsel %vm1741_vm2, %v1520_v22, 0.0  ;;  %v1829_v30 = vmul.f32 %v1520_v22, %v1520_v22 }
 0x172   : > { %1721 = vst.msk [vmem:[%s3209_s25 + $0x48] sm:$0xf] %vm1702_vm1, %v2222_v10  ;;  %v1523_v51 = vadd.f32 %v2519_v18, %v1362_v38  ;;  %v2220_v5 = vpack.c.bf16 %v1512_v45, %v1512_v45  ;;  %v1827_v23 = vmul.f32 %v1512_v45, %v1512_v45  ;;  %v2438_v59 = vadd.f32 %v2437_v61, %v2436_v37 }
 0x173   : > { %v2440_v32 = vpop.f32.mrf.mxu1  ;;  %v1514_v33 = vpop.f32.mrf.mxu0  ;;  %v1871_v9 = vadd.f32 %v1870_v46, %v1869_v14  ;;  %v1772_v53 = vadd.f32 %v1771_v8, %v1770_v56  ;;  %v1773_v38 = vsel %vm1741_vm2, %v1512_v45, 0.0  ;;  %v1378_v55 = vadd.f32 %v2435_v41, %v3243_v54  ;;  %v3458_v14 = vld [vmem:[#allocation12_spill] sm:$0xff] }
 0x174   : > { %v2223_v27 = vpack.c.bf16 %v1523_v51, %v1523_v51  ;;  %1719 = vst.msk [vmem:[%s3209_s25 + $0x40] sm:$0xf] %vm1702_vm1, %v2220_v5  ;;  %v1515_v0 = vadd.f32 %v1514_v33, %v3270_v15  ;;  %v1874_v26 = vsel %vm1741_vm2, %v1827_v23, 0.0  ;;  %v1830_v44 = vmul.f32 %v1523_v51, %v1523_v51 }
 0x175   : > { %v2442_v7 = vpop.f32.mrf.mxu1  ;;  %v2522_v11 = vpop.f32.mrf.mxu0  ;;  %v1774_v16 = vadd.f32 %v1773_v38, %v1772_v53  ;;  %v1873_v4 = vadd.f32 %v1872_v20, %v1871_v9  ;;  %v1878_v35 = vsel %vm1741_vm2, %v1829_v30, 0.0  ;;  %v1779_v58 = vsel %vm1741_vm2, %v1523_v51, 0.0 }
 0x176   : > { %1722 = vst.msk [vmem:[%s3209_s25 + $0x4c] sm:$0xf] %vm1702_vm1, %v2223_v27  ;;  %v1536_v57 = vadd.f32 %v2522_v11, %v1375_v52  ;;  %v2221_v19 = vpack.c.bf16 %v1515_v0, %v1515_v0  ;;  %v1775_v17 = vsel %vm1741_vm2, %v1515_v0, 0.0  ;;  %v1828_v12 = vmul.f32 %v1515_v0, %v1515_v0 }
 0x177   : > { %v2443_v24 = vpop.f32.mrf.mxu1  ;;  %v1527_v28 = vpop.f32.mrf.mxu0  ;;  %v1875_v15 = vadd.f32 %v1874_v26, %v1873_v4  ;;  %v1776_v21 = vadd.f32 %v1775_v17, %v1774_v16  ;;  %v2441_v48 = vadd.f32 %v2440_v32, %v2439_v1  ;;  %v1383_v61 = vadd.f32 %v2438_v59, %v3457_v43 }
 0x178   : > { %v2226_v34 = vpack.c.bf16 %v1536_v57, %v1536_v57  ;;  %1720 = vst.msk [vmem:[%s3209_s25 + $0x44] sm:$0xf] %vm1702_vm1, %v2221_v19  ;;  %v1876_v54 = vsel %vm1741_vm2, %v1828_v12, 0.0  ;;  %v1528_v25 = vadd.f32 %v1527_v28, %v3317_v31  ;;  %v2444_v40 = vadd.f32 %v2443_v24, %v2442_v7  ;;  %v3459_v7 = vld [vmem:[#allocation11_spill] sm:$0xff] }
 0x179   : > { %v2445_v13 = vpop.f32.mrf.mxu1  ;;  %v2523_v39 = vpop.f32.mrf.mxu0  ;;  %v1778_v37 = vadd.f32 %v1777_v47, %v1776_v21  ;;  %v1877_v42 = vadd.f32 %v1876_v54, %v1875_v15  ;;  %v1880_v36 = vsel %vm1741_vm2, %v1830_v44, 0.0  ;;  %v1785_v10 = vsel %vm1741_vm2, %v1536_v57, 0.0 }
 0x17a   : > { %1725 = vst.msk [vmem:[%s3209_s25 + $0x58] sm:$0xf] %vm1702_vm1, %v2226_v34  ;;  %v1539_v62 = vadd.f32 %v2523_v39, %v1378_v55  ;;  %v2224_v22 = vpack.c.bf16 %v1528_v25, %v1528_v25  ;;  %v1831_v29 = vmul.f32 %v1528_v25, %v1528_v25  ;;  %v1833_v46 = vmul.f32 %v1536_v57, %v1536_v57  ;;  %v3460_v55 = vld [vmem:[#allocation14_spill] sm:$0xff] }
 0x17b   : > { %v2446_v6 = vpop.f32.mrf.mxu1  ;;  %v1530_v60 = vpop.f32.mrf.mxu0  ;;  %v1879_v31 = vadd.f32 %v1878_v35, %v1877_v42  ;;  %v1780_v49 = vadd.f32 %v1779_v58, %v1778_v37  ;;  %v1781_v8 = vsel %vm1741_vm2, %v1528_v25, 0.0  ;;  %v1391_v51 = vadd.f32 %v2444_v40, %v3458_v14 }
 0x17c   : > { %v2227_v50 = vpack.c.bf16 %v1539_v62, %v1539_v62  ;;  %1723 = vst.msk [vmem:[%s3209_s25 + $0x50] sm:$0xf] %vm1702_vm1, %v2224_v22  ;;  %v1531_v3 = vadd.f32 %v1530_v60, %v3330_v2  ;;  %v2447_v56 = vadd.f32 %v2446_v6, %v2445_v13  ;;  %v1882_v20 = vsel %vm1741_vm2, %v1831_v29, 0.0 }
 0x17d   : > { %v2448_v45 = vpop.f32.mrf.mxu1  ;;  %v2526_v1 = vpop.f32.mrf.mxu0  ;;  %v1782_v18 = vadd.f32 %v1781_v8, %v1780_v49  ;;  %v1881_v41 = vadd.f32 %v1880_v36, %v1879_v31  ;;  %v1834_v2 = vmul.f32 %v1539_v62, %v1539_v62  ;;  %v1386_v11 = vadd.f32 %v2441_v48, %v3459_v7  ;;  %v3461_v48 = vld [vmem:[#allocation15_spill] sm:$0xff] }
 0x17e   : > { %1726 = vst.msk [vmem:[%s3209_s25 + $0x5c] sm:$0xf] %vm1702_vm1, %v2227_v50  ;;  %v2225_v5 = vpack.c.bf16 %v1531_v3, %v1531_v3  ;;  %v1783_v23 = vsel %vm1741_vm2, %v1531_v3, 0.0  ;;  %v1832_v32 = vmul.f32 %v1531_v3, %v1531_v3  ;;  %v1552_v53 = vadd.f32 %v2526_v1, %v1391_v51  ;;  %v3463_v51 = vld [vmem:[#allocation16_spill] sm:$0xff] }
 0x17f   : > { %v2449_v33 = vpop.f32.mrf.mxu1  ;;  %v1543_v52 = vpop.f32.mrf.mxu0  ;;  %v1883_v9 = vadd.f32 %v1882_v20, %v1881_v41  ;;  %v1784_v47 = vadd.f32 %v1783_v23, %v1782_v18  ;;  %v1394_v26 = vadd.f32 %v2447_v56, %v3460_v55  ;;  %v1886_v19 = vsel %vm1741_vm2, %v1833_v46, 0.0  ;;  %v3462_v46 = vld [vmem:[#allocation2_spill] sm:$0xff] }
 0x180   : > { %1724 = vst.msk [vmem:[%s3209_s25 + $0x54] sm:$0xf] %vm1702_vm1, %v2225_v5  ;;  %v1884_v27 = vsel %vm1741_vm2, %v1832_v32, 0.0  ;;  %v2450_v30 = vadd.f32 %v2449_v33, %v2448_v45  ;;  %v1544_v59 = vadd.f32 %v1543_v52, %v1383_v61  ;;  %v2230_v57 = vpack.c.bf16 %v1552_v53, %v1552_v53 }
 0x181   : > { %v2451_v38 = vpop.f32.mrf.mxu1  ;;  %v2527_v0 = vpop.f32.mrf.mxu0  ;;  %v1786_v16 = vadd.f32 %v1785_v10, %v1784_v47  ;;  %v1885_v4 = vadd.f32 %v1884_v27, %v1883_v9  ;;  %v1787_v17 = vsel %vm1741_vm2, %v1539_v62, 0.0  ;;  %v1888_v44 = vsel %vm1741_vm2, %v1834_v2, 0.0 }
 0x182   : > { %v2228_v12 = vpack.c.bf16 %v1544_v59, %v1544_v59  ;;  %v1835_v24 = vmul.f32 %v1544_v59, %v1544_v59  ;;  %1729 = vst.msk [vmem:[%s3209_s25 + $0x68] sm:$0xf] %vm1702_vm1, %v2230_v57  ;;  %v1555_v35 = vadd.f32 %v2527_v0, %v1394_v26  ;;  %v1837_v58 = vmul.f32 %v1552_v53, %v1552_v53 }
 0x183   : > { %v2452_v28 = vpop.f32.mrf.mxu1  ;;  %v1546_v15 = vpop.f32.mrf.mxu0  ;;  %v1887_v21 = vadd.f32 %v1886_v19, %v1885_v4  ;;  %v1788_v34 = vadd.f32 %v1787_v17, %v1786_v16  ;;  %v1789_v54 = vsel %vm1741_vm2, %v1544_v59, 0.0  ;;  %v1399_v22 = vadd.f32 %v2450_v30, %v3461_v48  ;;  %v3464_v59 = vld [vmem:[#allocation3_spill] sm:$0xff] }
 0x184   : > { %1727 = vst.msk [vmem:[%s3209_s25 + $0x60] sm:$0xf] %vm1702_vm1, %v2228_v12  ;;  %v2453_v25 = vadd.f32 %v2452_v28, %v2451_v38  ;;  %v1547_v13 = vadd.f32 %v1546_v15, %v1386_v11  ;;  %v2231_v62 = vpack.c.bf16 %v1555_v35, %v1555_v35  ;;  %v1890_v29 = vsel %vm1741_vm2, %v1835_v24, 0.0 }
 0x185   : > { %v2454_v39 = vpop.f32.mrf.mxu1  ;;  %v2530_v37 = vpop.f32.mrf.mxu0  ;;  %v1790_v42 = vadd.f32 %v1789_v54, %v1788_v34  ;;  %v1889_v40 = vadd.f32 %v1888_v44, %v1887_v21  ;;  %v1241_v8 = vadd.f32 %v3462_v46, %v3099_v63  ;;  %v1793_v3 = vsel %vm1741_vm2, %v1552_v53, 0.0 }
 0x186   : > { %v2229_v6 = vpack.c.bf16 %v1547_v13, %v1547_v13  ;;  %v1791_v60 = vsel %vm1741_vm2, %v1547_v13, 0.0  ;;  %v1836_v43 = vmul.f32 %v1547_v13, %v1547_v13  ;;  %1730 = vst.msk [vmem:[%s3209_s25 + $0x6c] sm:$0xf] %vm1702_vm1, %v2231_v62  ;;  %v1838_v45 = vmul.f32 %v1555_v35, %v1555_v35 }
 0x187   : > { %v2455_v61 = vpop.f32.mrf.mxu1  ;;  %v1559_v36 = vpop.f32.mrf.mxu0  ;;  %v1891_v31 = vadd.f32 %v1890_v29, %v1889_v40  ;;  %v1792_v49 = vadd.f32 %v1791_v60, %v1790_v42  ;;  %v1894_v23 = vsel %vm1741_vm2, %v1837_v58, 0.0  ;;  %v1795_v32 = vsel %vm1741_vm2, %v1555_v35, 0.0 }
 0x188   : > { %v2456_v50 = vadd.f32 %v2455_v61, %v2454_v39  ;;  %v1560_v10 = vadd.f32 %v1559_v36, %v1399_v22  ;;  %1728 = vst.msk [vmem:[%s3209_s25 + $0x64] sm:$0xf] %vm1702_vm1, %v2229_v6  ;;  %v1892_v1 = vsel %vm1741_vm2, %v1836_v43, 0.0  ;;  %v1402_v9 = vadd.f32 %v2453_v25, %v1241_v8 }
 0x189   : > { %v2457_v18 = vpop.f32.mrf.mxu1  ;;  %v2531_v41 = vpop.f32.mrf.mxu0  ;;  %v1794_v56 = vadd.f32 %v1793_v3, %v1792_v49  ;;  %v1893_v14 = vadd.f32 %v1892_v1, %v1891_v31  ;;  %v1249_v38 = vadd.f32 %v3464_v59, %v3099_v63  ;;  %v1896_v0 = vsel %vm1741_vm2, %v1838_v45, 0.0 }
 0x18a   : > { %v1407_v20 = vadd.f32 %v2456_v50, %v3463_v51  ;;  %v2232_v5 = vpack.c.bf16 %v1560_v10, %v1560_v10  ;;  %v1839_v33 = vmul.f32 %v1560_v10, %v1560_v10  ;;  %v1797_v7 = vsel %vm1741_vm2, %v1560_v10, 0.0  ;;  %v1912_v10 = vld [vmem:[%s3052_s20] sm:$0x3] }
 0x18b   : > { %v2458_v52 = vpop.f32.mrf.mxu1  ;;  %v1562_v2 = vpop.f32.mrf.mxu0  ;;  %v1895_v47 = vadd.f32 %v1894_v23, %v1893_v14  ;;  %v1796_v27 = vadd.f32 %v1795_v32, %v1794_v56 }
 0x18c   : > { %v1568_v53 = vadd.f32 %v2530_v37, %v1407_v20  ;;  %1731 = vst.msk [vmem:[%s3209_s25 + $0x70] sm:$0xf] %vm1702_vm1, %v2232_v5  ;;  %v2459_v30 = vadd.f32 %v2458_v52, %v2457_v18  ;;  %v1563_v11 = vadd.f32 %v1562_v2, %v1402_v9  ;;  %v1898_v55 = vsel %vm1741_vm2, %v1839_v33, 0.0 }
 0x18d   : > { %v1798_v4 = vadd.f32 %v1797_v7, %v1796_v27  ;;  %v1897_v57 = vadd.f32 %v1896_v0, %v1895_v47 }
 0x18e   : > { %v2234_v16 = vpack.c.bf16 %v1568_v53, %v1568_v53  ;;  %v1410_v26 = vadd.f32 %v2459_v30, %v1249_v38  ;;  %v2233_v19 = vpack.c.bf16 %v1563_v11, %v1563_v11  ;;  %v1799_v17 = vsel %vm1741_vm2, %v1563_v11, 0.0 }
 0x18f   : > { %v1841_v12 = vmul.f32 %v1568_v53, %v1568_v53  ;;  %v1899_v63 = vadd.f32 %v1898_v55, %v1897_v57  ;;  %v1800_v24 = vadd.f32 %v1799_v17, %v1798_v4  ;;  %v1840_v28 = vmul.f32 %v1563_v11, %v1563_v11 }
 0x190   : > { %1733 = vst.msk [vmem:[%s3209_s25 + $0x78] sm:$0xf] %vm1702_vm1, %v2234_v16  ;;  %v1571_v15 = vadd.f32 %v2531_v41, %v1410_v26  ;;  %1732 = vst.msk [vmem:[%s3209_s25 + $0x74] sm:$0xf] %vm1702_vm1, %v2233_v19  ;;  %v1801_v44 = vsel %vm1741_vm2, %v1568_v53, 0.0 }
 0x191   : > { %v1802_v21 = vadd.f32 %v1801_v44, %v1800_v24  ;;  %v1900_v34 = vsel %vm1741_vm2, %v1840_v28, 0.0  ;;  %v1902_v39 = vsel %vm1741_vm2, %v1841_v12, 0.0 }
 0x192   : > { %v2235_v35 = vpack.c.bf16 %v1571_v15, %v1571_v15  ;;  %v1803_v58 = vsel %vm1741_vm2, %v1571_v15, 0.0  ;;  %v1842_v54 = vmul.f32 %v1571_v15, %v1571_v15  ;;  %v1901_v25 = vadd.f32 %v1900_v34, %v1899_v63 }
 0x193   : > { %v1804_v13 = vadd.f32 %v1803_v58, %v1802_v21 }
 0x194   : > { %1734 = vst.msk [vmem:[%s3209_s25 + $0x7c] sm:$0xf] %vm1702_vm1, %v2235_v35  ;;  %v1904_v37 = vsel %vm1741_vm2, %v1842_v54, 0.0  ;;  %v1903_v42 = vadd.f32 %v1902_v39, %v1901_v25 }
 0x195   : > { %v1805_v40 = vrot.slane %v1804_v13, 4 }
 0x196   : > { %v1905_v62 = vadd.f32 %v1904_v37, %v1903_v42 }
 0x197   : > { %v1806_v48 = vadd.f32 %v1805_v40, %v1804_v13 }
 0x198   : > { %v1906_v22 = vrot.slane %v1905_v62, 4 }
 0x199   : > { %v1807_v29 = vrot.slane %v1806_v48, 2 }
 0x19a   : > { %v1907_v6 = vadd.f32 %v1906_v22, %v1905_v62 }
 0x19b   : > { %v1808_v60 = vadd.f32 %v1807_v29, %v1806_v48 }
 0x19c   : > { %v1908_v43 = vrot.slane %v1907_v6, 2 }
 0x19d   : > { %v1809_v61 = vrot.slane %v1808_v60, 1 }
 0x19e   : > { %v1909_v36 = vadd.f32 %v1908_v43, %v1907_v6 }
 0x19f   : > { %v1810_v49 = vadd.f32 %v1809_v61, %v1808_v60 }
 0x1a0   : > { %v1910_v31 = vrot.slane %v1909_v36, 1 }
 0x1a2   : > { %v1911_v50 = vadd.f32 %v1910_v31, %v1909_v36 }
 0x1a4   : > { %v1914_v46 = vsel %vm1913_vm3, %v1810_v49, %v1911_v50 }
 0x1a5   : > { %v1915_v8 = vadd.f32 %v1914_v46, %v1912_v10 }
 0x1a7   : > { %1917 = vst.msk [vmem:[%s3052_s20] sm:$0x3] %vm1739_vm0, %v1915_v8 }
 0x1a8 PF: > { %s15_s17 = sadd.s32 1, %s2748_s17   ;;  %s3465_s15 = smov %s2744_s16 }
 0x1a9   : > { %p12_p5 = scmp.ge.s32.totalorder %s15_s17, 4   ;;  %s3466_s16 = smov %s3468_s18 }
 0x1ab   :  { %14 = sbr.rel (!%p12_p5) target bundleno = 2 (0x2), region = 78 }

// kernel: deepstylex_forward.61
= control target key start
LH: loop header
LB: loop body
LE: loop exit
PB: predicated region body
PF: predicated region fallthrough
CT: control target
= control target key end

     0   :  { %s7964_s12 = smov 0   ;;  %s7966_s13 = smov 0   ;;  %s9895_s0 = inlined_call_operand.vmem [shape: bf16[2,256,2688], index: 0, kind: input, shape index: {}]   ;;  %s9896_s1 = inlined_call_operand.vmem [shape: bf16[2688,128], index: 1, kind: input, shape index: {}]   ;;  %s9897_s2 = inlined_call_operand.vmem [shape: f32[1,128], index: 2, kind: input, shape index: {}]   ;;  %s9898_s3 = inlined_call_operand.vmem [shape: f32[2,256,128], index: 3, kind: output, shape index: {}]  }
   0x1   :  { %s7968_s14 = smov 0  }
   0x2 LB: > { %s25_s15 = sadd.s32 1, %s7938_s13  ;;  %p5510_p0 = scmp.ge.s32.totalorder %s7942_s14, 1  ;;  %s7942_s14 = sphi %s7968_s14, %s13_s14   ;;  %s7938_s13 = sphi %s7966_s13, %s9920_s13   ;;  %s7934_s12 = sphi %s7964_s12, %s9919_s12  }
   0x3   : > { %p27_p1 = scmp.ge.s32.totalorder %s25_s15, 2  ;;  %p159_p2 = scmp.lt.s32.totalorder %s7942_s14, 3 }
   0x5   : > { %s9922_s15 = smov (%p27_p1, %s25_s15), 0  ;;  %p160_p3 = pnand %p5510_p0, %p159_p2 }
   0x7   : > { %163 = sbr.rel (%p160_p3) target bundleno = 915 (0x393), region = 32 }
   0xc   : > { %v7255_v0 = vld [vmem:[%s9896_s1 + $0x78] sm:$0xff]   ;;  %v7257_v2 = vld [vmem:[%s9896_s1 + $0x70] sm:$0xff]   ;;  %p193_p4 = scmp.lt.s32.totalorder %s7934_s12, 1  ;;  %v7259_v4 = vld [vmem:[%s9896_s1 + $0x68] sm:$0xff]  }
   0xd   : > { %v7256_v1 = vld [vmem:[%s9896_s1 + $0x38] sm:$0xff]   ;;  %6022 = vmatprep.subr.bf16.mxu0 %v7255_v0  ;;  %7214 = vmatprep.subr.bf16.mxu1 %v7255_v0  ;;  %v7258_v3 = vld [vmem:[%s9896_s1 + $0x30] sm:$0xff]   ;;  %v7260_v5 = vld [vmem:[%s9896_s1 + $0x28] sm:$0xff]  }
   0xe   : > { %6023 = vmatpush3.bf16.msra.mxu0 %v7256_v1  ;;  %7222 = vmatpush3.bf16.msra.mxu1 %v7256_v1  ;;  %s9924_s12 = smov (!%p193_p4, %s7934_s12), 1  ;;  %v7261_v6 = vld [vmem:[%s9896_s1 + $0x60] sm:$0xff]   ;;  %v7263_v8 = vld [vmem:[%s9896_s1 + $0x58] sm:$0xff]   ;;  %v7265_v10 = vld [vmem:[%s9896_s1 + $0x50] sm:$0xff]  }
   0xf   : > { %6024 = vmatprep.subr.bf16.mxu0 %v7257_v2  ;;  %7215 = vmatprep.subr.bf16.mxu1 %v7257_v2  ;;  %s7230_s30 = smul.u32 2688, %s9924_s12  ;;  %v7262_v7 = vld [vmem:[%s9896_s1 + $0x20] sm:$0xff]   ;;  %v7264_v9 = vld [vmem:[%s9896_s1 + $0x18] sm:$0xff]   ;;  %v7266_v13 = vld [vmem:[%s9896_s1 + $0x10] sm:$0xff]  }
  0x10   : > { %v7267_v14 = vld [vmem:[%s9896_s1 + $0x48] sm:$0xff]   ;;  %v7269_v16 = vld [vmem:[%s9896_s1 + $0x40] sm:$0xff]   ;;  %v7277_v18 = vld [vmem:[%s9896_s1 + $0xf8] sm:$0xff]  }
  0x11   : > { %s8015_s10 = scalar_lea.vmem %s9895_s0, %s7230_s30  ;;  %v7268_v15 = vld [vmem:[%s9896_s1 + $0x8] sm:$0xff]   ;;  %v7270_v17 = vld [vmem:[%s9896_s1] sm:$0xff]   ;;  %v7280_v21 = vld [vmem:[%s9896_s1 + $0x178] sm:$0xff]  }
  0x12   : > { %6025 = vmatpush3.bf16.msra.mxu0 %v7258_v3  ;;  %7223 = vmatpush3.bf16.msra.mxu1 %v7258_v3  ;;  %v7273_v11 = vld [vmem:[%s8015_s10 + $0x4] ss:$84 sps:$4 sm:$0xff]   ;;  %v7271_v19 = vld [vmem:[%s8015_s10] ss:$84 sps:$4 sm:$0xff]   ;;  %v7287_v29 = vld [vmem:[%s8015_s10 + $0xa8] ss:$84 sps:$4 sm:$0xff]  }
  0x13   : > { %6026 = vmatprep.subr.bf16.mxu0 %v7259_v4  ;;  %7216 = vmatprep.subr.bf16.mxu1 %v7259_v4  ;;  %v7276_v12 = vld [vmem:[%s8015_s10 + $0x7e4] ss:$84 sps:$4 sm:$0xff]   ;;  %v7274_v20 = vld [vmem:[%s8015_s10 + $0x7e0] ss:$84 sps:$4 sm:$0xff]   ;;  %v7288_v30 = vld [vmem:[%s8015_s10 + $0x888] ss:$84 sps:$4 sm:$0xff]  }
  0x14   : > { %3645 = vmatprep.mubr.bf16.mxu0 %v7273_v11  ;;  %3741 = vmatprep.mubr.bf16.mxu1 %v7276_v12  ;;  %v7278_v22 = vld [vmem:[%s9896_s1 + $0xb8] sm:$0xff]   ;;  %v7279_v23 = vld [vmem:[%s9896_s1 + $0xf0] sm:$0xff]   ;;  %v7283_v25 = vld [vmem:[%s8015_s10 + $0xac] ss:$84 sps:$4 sm:$0xff]  }
  0x15   : > { %v7282_v24 = vld [vmem:[%s9896_s1 + $0x138] sm:$0xff]   ;;  %v7285_v26 = vld [vmem:[%s8015_s10 + $0x88c] ss:$84 sps:$4 sm:$0xff]   ;;  %v7281_v27 = vld [vmem:[%s9896_s1 + $0xb0] sm:$0xff]  }
  0x16   : > { %6027 = vmatpush3.bf16.msra.mxu0 %v7260_v5  ;;  %7224 = vmatpush3.bf16.msra.mxu1 %v7260_v5  ;;  %v7300_v28 = vld [vmem:[%s9896_s1 + $0x170] sm:$0xff]   ;;  %v7289_v31 = vld [vmem:[%s9896_s1 + $0xe8] sm:$0xff]   ;;  %v7291_v34 = vld [vmem:[%s9896_s1 + $0xe0] sm:$0xff]  }
  0x17   : > { %6028 = vmatprep.subr.bf16.mxu0 %v7261_v6  ;;  %7217 = vmatprep.subr.bf16.mxu1 %v7261_v6  ;;  %v7290_v32 = vld [vmem:[%s9896_s1 + $0xa8] sm:$0xff]   ;;  %v7302_v33 = vld [vmem:[%s9896_s1 + $0x130] sm:$0xff]   ;;  %v7292_v37 = vld [vmem:[%s9896_s1 + $0xa0] sm:$0xff]  }
  0x18   : > { %v7293_v35 = vld [vmem:[%s8015_s10 + $0x154] ss:$84 sps:$4 sm:$0xff]   ;;  %v7297_v38 = vld [vmem:[%s8015_s10 + $0x150] ss:$84 sps:$4 sm:$0xff]   ;;  %v7299_v40 = vld [vmem:[%s9896_s1 + $0xd8] sm:$0xff]  }
  0x19   : > { %v7295_v36 = vld [vmem:[%s8015_s10 + $0x934] ss:$84 sps:$4 sm:$0xff]   ;;  %v7298_v39 = vld [vmem:[%s8015_s10 + $0x930] ss:$84 sps:$4 sm:$0xff]   ;;  %v7301_v41 = vld [vmem:[%s9896_s1 + $0x98] sm:$0xff]  }
  0x1a   : > { %6029 = vmatpush3.bf16.msra.mxu0 %v7262_v7  ;;  %7225 = vmatpush3.bf16.msra.mxu1 %v7262_v7  ;;  %v7303_v42 = vld [vmem:[%s9896_s1 + $0xd0] sm:$0xff]   ;;  %v7314_v43 = vld [vmem:[%s9896_s1 + $0x168] sm:$0xff]   ;;  %v7313_v52 = vld [vmem:[%s9896_s1 + $0xc0] sm:$0xff]  }
  0x1b   : > { %6030 = vmatprep.subr.bf16.mxu0 %v7263_v8  ;;  %7218 = vmatprep.subr.bf16.mxu1 %v7263_v8  ;;  %v7305_v44 = vld [vmem:[%s8015_s10 + $0x1fc] ss:$84 sps:$4 sm:$0xff]   ;;  %v7316_v46 = vld [vmem:[%s9896_s1 + $0x128] sm:$0xff]   ;;  %v7317_v53 = vld [vmem:[%s8015_s10 + $0x2a4] ss:$84 sps:$4 sm:$0xff]  }
  0x1c   : > { %v7307_v45 = vld [vmem:[%s8015_s10 + $0x9dc] ss:$84 sps:$4 sm:$0xff]   ;;  %v7311_v48 = vld [vmem:[%s9896_s1 + $0xc8] sm:$0xff]   ;;  %v7331_v55 = vld [vmem:[%s9896_s1 + $0x160] sm:$0xff]  }
  0x1d   : > { %v7304_v47 = vld [vmem:[%s9896_s1 + $0x90] sm:$0xff]   ;;  %v7309_v49 = vld [vmem:[%s8015_s10 + $0x1f8] ss:$84 sps:$4 sm:$0xff]   ;;  %v7332_v56 = vld [vmem:[%s9896_s1 + $0x120] sm:$0xff]  }
  0x1e   : > { %6031 = vmatpush3.bf16.msra.mxu0 %v7264_v9  ;;  %7226 = vmatpush3.bf16.msra.mxu1 %v7264_v9  ;;  %v7310_v50 = vld [vmem:[%s8015_s10 + $0x9d8] ss:$84 sps:$4 sm:$0xff]   ;;  %v7315_v57 = vld [vmem:[%s9896_s1 + $0x80] sm:$0xff]   ;;  %v7319_v58 = vld [vmem:[%s8015_s10 + $0x8] ss:$84 sps:$4 sm:$0xff]  }
  0x1f   : > { %6032 = vmatprep.subr.bf16.mxu0 %v7265_v10  ;;  %7219 = vmatprep.subr.bf16.mxu1 %v7265_v10  ;;  %v7312_v51 = vld [vmem:[%s9896_s1 + $0x88] sm:$0xff]   ;;  %v7322_v59 = vld [vmem:[%s8015_s10 + $0x2a0] ss:$84 sps:$4 sm:$0xff]   ;;  %v7323_v60 = vld [vmem:[%s9896_s1 + $0x1f8] sm:$0xff]  }
  0x20   : > { %v7321_v54 = vld [vmem:[%s8015_s10 + $0xc] ss:$84 sps:$4 sm:$0xff]   ;;  %v7324_v61 = vld [vmem:[%s9896_s1 + $0x1b8] sm:$0xff]   ;;  %v7327_v63 = vld [vmem:[%s8015_s10 + $0xb4] ss:$84 sps:$4 sm:$0xff]  }
  0x21   : > { %v7325_v62 = vld [vmem:[%s8015_s10 + $0x34c] ss:$84 sps:$4 sm:$0xff]   ;;  %v7341_v0 = vld [vmem:[%s9896_s1 + $0x158] sm:$0xff]   ;;  %v7339_v1 = vld [vmem:[%s9896_s1 + $0x1f0] sm:$0xff]  }
  0x22   : > { %6033 = vmatpush3.bf16.msra.mxu0 %v7266_v13  ;;  %7227 = vmatpush3.bf16.msra.mxu1 %v7266_v13  ;;  %v7342_v2 = vld [vmem:[%s9896_s1 + $0x118] sm:$0xff]   ;;  %v7340_v3 = vld [vmem:[%s9896_s1 + $0x1b0] sm:$0xff]   ;;  %v7356_v9 = vld [vmem:[%s9896_s1 + $0x1e8] sm:$0xff]  }
  0x23   : > { %6034 = vmatprep.subr.bf16.mxu0 %v7267_v14  ;;  %7220 = vmatprep.subr.bf16.mxu1 %v7267_v14  ;;  %v7329_v4 = vld [vmem:[%s8015_s10 + $0x348] ss:$84 sps:$4 sm:$0xff]   ;;  %v7330_v5 = vld [vmem:[%s8015_s10 + $0xb0] ss:$84 sps:$4 sm:$0xff]   ;;  %v7338_v13 = vld [vmem:[%s8015_s10 + $0x158] ss:$84 sps:$4 sm:$0xff]  }
  0x24   : > { %v7333_v6 = vld [vmem:[%s8015_s10 + $0x3f4] ss:$84 sps:$4 sm:$0xff]   ;;  %v7335_v7 = vld [vmem:[%s8015_s10 + $0x15c] ss:$84 sps:$4 sm:$0xff]  }
  0x25   : > { %v7355_v8 = vld [vmem:[%s9896_s1 + $0x150] sm:$0xff]   ;;  %v7358_v11 = vld [vmem:[%s9896_s1 + $0x1a8] sm:$0xff]  }
  0x26   : > { %6035 = vmatpush3.bf16.msra.mxu0 %v7268_v15  ;;  %7228 = vmatpush3.bf16.msra.mxu1 %v7268_v15  ;;  %v7357_v10 = vld [vmem:[%s9896_s1 + $0x110] sm:$0xff]   ;;  %v7365_v15 = vld [vmem:[%s9896_s1 + $0x148] sm:$0xff]  }
  0x27   : > { %6036 = vmatprep.subr.bf16.mxu0 %v7269_v16  ;;  %7221 = vmatprep.subr.bf16.mxu1 %v7269_v16  ;;  %v7337_v12 = vld [vmem:[%s8015_s10 + $0x3f0] ss:$84 sps:$4 sm:$0xff]   ;;  %v7366_v16 = vld [vmem:[%s9896_s1 + $0x108] sm:$0xff]  }
  0x28   : > { %v7343_v14 = vld [vmem:[%s8015_s10 + $0x49c] ss:$84 sps:$4 sm:$0xff]  }
  0x2a   : > { %6037 = vmatpush3.bf16.msra.mxu0 %v7270_v17  ;;  %7229 = vmatpush3.bf16.msra.mxu1 %v7270_v17  ;;  %v7345_v17 = vld [vmem:[%s8015_s10 + $0x204] ss:$84 sps:$4 sm:$0xff]  }
  0x2b   : > { %6134 = vmatprep.subr.bf16.mxu1 %v7277_v18  ;;  %6246 = vmatprep.subr.bf16.mxu0 %v7280_v21  ;;  %v7373_v18 = vld [vmem:[%s9896_s1 + $0x1e0] sm:$0xff]  }
  0x2c   : > { %v7348_v21 = vld [vmem:[%s8015_s10 + $0x200] ss:$84 sps:$4 sm:$0xff]  }
  0x2d   : > { %3646 = vmatmul.mubr.bf16.vlgmr.msra.gmra.mxu0 %v7271_v19  ;;  %3742 = vmatmul.mubr.bf16.vlgmr.msra.gmra.mxu1 %v7274_v20  ;;  %v7374_v19 = vld [vmem:[%s9896_s1 + $0x1a0] sm:$0xff]   ;;  %v7347_v20 = vld [vmem:[%s8015_s10 + $0x498] ss:$84 sps:$4 sm:$0xff]  }
  0x2e   : > { %6135 = vmatpush3.bf16.msra.mxu1 %v7278_v22  ;;  %6247 = vmatpush3.bf16.msra.mxu0 %v7282_v24  ;;  %v7349_v22 = vld [vmem:[%s8015_s10 + $0x544] ss:$84 sps:$4 sm:$0xff]  }
  0x2f   : > { %6136 = vmatprep.subr.bf16.mxu1 %v7279_v23  ;;  %3653 = vmatprep.mubr.bf16.mxu0 %v7283_v25  ;;  %v7351_v23 = vld [vmem:[%s8015_s10 + $0x2ac] ss:$84 sps:$4 sm:$0xff]  }
  0x30   : > { %3749 = vmatprep.mubr.bf16.mxu1 %v7285_v26  ;;  %6248 = vmatprep.subr.bf16.mxu0 %v7300_v28  ;;  %v7381_v24 = vld [vmem:[%s9896_s1 + $0x140] sm:$0xff]   ;;  %v7389_v26 = vld [vmem:[%s9896_s1 + $0x1d8] sm:$0xff]  }
  0x31   : > { %v7382_v25 = vld [vmem:[%s9896_s1 + $0x100] sm:$0xff]   ;;  %v7354_v28 = vld [vmem:[%s8015_s10 + $0x2a8] ss:$84 sps:$4 sm:$0xff]  }
  0x32   : > { %6137 = vmatpush3.bf16.msra.mxu1 %v7281_v27  ;;  %6249 = vmatpush3.bf16.msra.mxu0 %v7302_v33  ;;  %v7353_v27 = vld [vmem:[%s8015_s10 + $0x540] ss:$84 sps:$4 sm:$0xff]   ;;  %v7363_v33 = vld [vmem:[%s8015_s10 + $0x5e8] ss:$84 sps:$4 sm:$0xff]  }
  0x33   : > { %6138 = vmatprep.subr.bf16.mxu1 %v7289_v31  ;;  %6250 = vmatprep.subr.bf16.mxu0 %v7314_v43  ;;  %v7359_v31 = vld [vmem:[%s8015_s10 + $0x5ec] ss:$84 sps:$4 sm:$0xff]  }
  0x34   : > { %v7421_v43 = vld [vmem:[%s9896_s1 + $0x1c8] sm:$0xff]  }
  0x35   : > { %3654 = vmatmul.mubr.bf16.gmra.mxu0 %v7287_v29  ;;  %3750 = vmatmul.mubr.bf16.gmra.mxu1 %v7288_v30  ;;  %v7390_v29 = vld [vmem:[%s9896_s1 + $0x198] sm:$0xff]  }
  0x36   : > { %6139 = vmatpush3.bf16.msra.mxu1 %v7290_v32  ;;  %3661 = vmatprep.mubr.bf16.mxu0 %v7293_v35  ;;  %v7391_v30 = vld [vmem:[%s9896_s1 + $0x278] sm:$0xff]   ;;  %v7361_v32 = vld [vmem:[%s8015_s10 + $0x354] ss:$84 sps:$4 sm:$0xff]  }
  0x37   : > { %6140 = vmatprep.subr.bf16.mxu1 %v7291_v34  ;;  %3757 = vmatprep.mubr.bf16.mxu1 %v7295_v36  ;;  %v7364_v34 = vld [vmem:[%s8015_s10 + $0x350] ss:$84 sps:$4 sm:$0xff]  }
  0x38   : > { %6251 = vmatpush3.bf16.msra.mxu0 %v7316_v46  ;;  %v7405_v35 = vld [vmem:[%s9896_s1 + $0x1d0] sm:$0xff]  }
  0x39   : > { %6252 = vmatprep.subr.bf16.mxu0 %v7331_v55  ;;  %v7406_v36 = vld [vmem:[%s9896_s1 + $0x190] sm:$0xff]  }
  0x3a   : > { %6141 = vmatpush3.bf16.msra.mxu1 %v7292_v37  ;;  %v7367_v37 = vld [vmem:[%s8015_s10 + $0x694] ss:$84 sps:$4 sm:$0xff]   ;;  %v7395_v55 = vld [vmem:[%s8015_s10 + $0xbc] ss:$84 sps:$4 sm:$0xff]  }
  0x3b   : > { %6142 = vmatprep.subr.bf16.mxu1 %v7299_v40  ;;  %v7372_v40 = vld [vmem:[%s8015_s10 + $0x3f8] ss:$84 sps:$4 sm:$0xff]   ;;  %v7380_v46 = vld [vmem:[%s8015_s10 + $0x4a0] ss:$84 sps:$4 sm:$0xff]  }
  0x3c   : > { %6253 = vmatpush3.bf16.msra.mxu0 %v7332_v56  ;;  %v7407_v56 = vld [vmem:[%s9896_s1 + $0x270] sm:$0xff]  }
  0x3d   : > { %3662 = vmatmul.mubr.bf16.gmra.mxu0 %v7297_v38  ;;  %3758 = vmatmul.mubr.bf16.gmra.mxu1 %v7298_v39  ;;  %v7369_v38 = vld [vmem:[%s8015_s10 + $0x3fc] ss:$84 sps:$4 sm:$0xff]  }
  0x3e   : > { %6143 = vmatpush3.bf16.msra.mxu1 %v7301_v41  ;;  %3669 = vmatprep.mubr.bf16.mxu0 %v7305_v44  ;;  %v7371_v39 = vld [vmem:[%s8015_s10 + $0x690] ss:$84 sps:$4 sm:$0xff]   ;;  %v7422_v44 = vld [vmem:[%s9896_s1 + $0x188] sm:$0xff]  }
  0x3f   : > { %6144 = vmatprep.subr.bf16.mxu1 %v7303_v42  ;;  %3765 = vmatprep.mubr.bf16.mxu1 %v7307_v45  ;;  %v7375_v41 = vld [vmem:[%s8015_s10 + $0x73c] ss:$84 sps:$4 sm:$0xff]   ;;  %v7377_v42 = vld [vmem:[%s8015_s10 + $0x4a4] ss:$84 sps:$4 sm:$0xff]  }
  0x40   : > { %6254 = vmatprep.subr.bf16.mxu0 %v7341_v0  ;;  %v7379_v45 = vld [vmem:[%s8015_s10 + $0x738] ss:$84 sps:$4 sm:$0xff]  }
  0x41   : > { %6255 = vmatpush3.bf16.msra.mxu0 %v7342_v2  ;;  %v7424_v0 = vld [vmem:[%s9896_s1 + $0x228] sm:$0xff]  }
  0x42   : > { %6145 = vmatpush3.bf16.msra.mxu1 %v7304_v47  ;;  %6256 = vmatprep.subr.bf16.mxu0 %v7355_v8  ;;  %v7383_v47 = vld [vmem:[%s8015_s10 + $0x54c] ss:$84 sps:$4 sm:$0xff]   ;;  %v7456_v8 = vld [vmem:[%s9896_s1 + $0x218] sm:$0xff]  }
  0x43   : > { %6146 = vmatprep.subr.bf16.mxu1 %v7311_v48  ;;  %v7387_v48 = vld [vmem:[%s8015_s10 + $0x14] ss:$84 sps:$4 sm:$0xff]   ;;  %v7403_v2 = vld [vmem:[%s8015_s10 + $0x698] ss:$84 sps:$4 sm:$0xff]  }
  0x45   : > { %3670 = vmatmul.mubr.bf16.gmra.mxu0 %v7309_v49  ;;  %3766 = vmatmul.mubr.bf16.gmra.mxu1 %v7310_v50  ;;  %v7437_v49 = vld [vmem:[%s9896_s1 + $0x1c0] sm:$0xff]  }
  0x46   : > { %6147 = vmatpush3.bf16.msra.mxu1 %v7312_v51  ;;  %3677 = vmatprep.mubr.bf16.mxu0 %v7317_v53  ;;  %v7438_v50 = vld [vmem:[%s9896_s1 + $0x180] sm:$0xff]   ;;  %v7392_v53 = vld [vmem:[%s9896_s1 + $0x238] sm:$0xff]  }
  0x47   : > { %6148 = vmatprep.subr.bf16.mxu1 %v7313_v52  ;;  %3806 = vmatprep.mubr.bf16.mxu1 %v7321_v54  ;;  %v7385_v51 = vld [vmem:[%s8015_s10 + $0x10] ss:$84 sps:$4 sm:$0xff]   ;;  %v7388_v52 = vld [vmem:[%s8015_s10 + $0x548] ss:$84 sps:$4 sm:$0xff]  }
  0x48   : > { %6257 = vmatpush3.bf16.msra.mxu0 %v7357_v10  ;;  %v7393_v54 = vld [vmem:[%s8015_s10 + $0x5f4] ss:$84 sps:$4 sm:$0xff]  }
  0x49   : > { %6258 = vmatprep.subr.bf16.mxu0 %v7365_v15  ;;  %v7413_v10 = vld [vmem:[%s8015_s10 + $0x740] ss:$84 sps:$4 sm:$0xff]  }
  0x4a   : > { %6149 = vmatpush3.bf16.msra.mxu1 %v7315_v57  ;;  %v7453_v57 = vld [vmem:[%s9896_s1 + $0x2f8] sm:$0xff]   ;;  %v7417_v15 = vld [vmem:[%s8015_s10 + $0x2b4] ss:$84 sps:$4 sm:$0xff]  }
  0x4b   : > { %6358 = vmatprep.subr.bf16.mxu1 %v7323_v60  ;;  %v7397_v60 = vld [vmem:[%s8015_s10 + $0x5f0] ss:$84 sps:$4 sm:$0xff]  }
  0x4c   : > { %6259 = vmatpush3.bf16.msra.mxu0 %v7366_v16  ;;  %v7488_v16 = vld [vmem:[%s9896_s1 + $0x208] sm:$0xff]  }
  0x4d   : > { %3678 = vmatmul.mubr.bf16.gmra.mxu0 %v7322_v59  ;;  %3807 = vmatmul.mubr.bf16.vlgmr.msra.gmra.mxu1 %v7319_v58  ;;  %v7408_v58 = vld [vmem:[%s9896_s1 + $0x230] sm:$0xff]   ;;  %v7423_v59 = vld [vmem:[%s9896_s1 + $0x268] sm:$0xff]  }
  0x4e   : > { %6359 = vmatpush3.bf16.msra.mxu1 %v7324_v61  ;;  %3685 = vmatprep.mubr.bf16.mxu0 %v7325_v62  ;;  %v7398_v61 = vld [vmem:[%s8015_s10 + $0xb8] ss:$84 sps:$4 sm:$0xff]   ;;  %v7399_v62 = vld [vmem:[%s8015_s10 + $0x69c] ss:$84 sps:$4 sm:$0xff]  }
  0x4f   : > { %3814 = vmatprep.mubr.bf16.mxu1 %v7327_v63  ;;  %6360 = vmatprep.subr.bf16.mxu1 %v7339_v1  ;;  %v7401_v63 = vld [vmem:[%s8015_s10 + $0x164] ss:$84 sps:$4 sm:$0xff]  }
  0x50   : > { %6260 = vmatprep.subr.bf16.mxu0 %v7381_v24  ;;  %v7439_v1 = vld [vmem:[%s9896_s1 + $0x260] sm:$0xff]   ;;  %v7430_v24 = vld [vmem:[%s8015_s10 + $0x358] ss:$84 sps:$4 sm:$0xff]  }
  0x51   : > { %6261 = vmatpush3.bf16.msra.mxu0 %v7382_v25  ;;  %v7431_v25 = vld [vmem:[%s8015_s10 + $0x93c] ss:$84 sps:$4 sm:$0xff]  }
  0x52   : > { %6361 = vmatpush3.bf16.msra.mxu1 %v7340_v3  ;;  %6470 = vmatprep.subr.bf16.mxu0 %v7391_v30  ;;  %v7440_v3 = vld [vmem:[%s9896_s1 + $0x220] sm:$0xff]  }
  0x53   : > { %6362 = vmatprep.subr.bf16.mxu1 %v7356_v9  ;;  %v7471_v9 = vld [vmem:[%s9896_s1 + $0x250] sm:$0xff]   ;;  %v7441_v30 = vld [vmem:[%s8015_s10 + $0x9e4] ss:$84 sps:$4 sm:$0xff]  }
  0x55   : > { %3686 = vmatmul.mubr.bf16.gmra.mxu0 %v7329_v4  ;;  %3815 = vmatmul.mubr.bf16.gmra.mxu1 %v7330_v5  ;;  %v7455_v4 = vld [vmem:[%s9896_s1 + $0x258] sm:$0xff]   ;;  %v7404_v5 = vld [vmem:[%s8015_s10 + $0x160] ss:$84 sps:$4 sm:$0xff]  }
  0x56   : > { %3693 = vmatprep.mubr.bf16.mxu0 %v7333_v6  ;;  %3822 = vmatprep.mubr.bf16.mxu1 %v7335_v7  ;;  %v7409_v6 = vld [vmem:[%s8015_s10 + $0x744] ss:$84 sps:$4 sm:$0xff]   ;;  %v7411_v7 = vld [vmem:[%s8015_s10 + $0x20c] ss:$84 sps:$4 sm:$0xff]  }
  0x57   : > { %6363 = vmatpush3.bf16.msra.mxu1 %v7358_v11  ;;  %v7414_v11 = vld [vmem:[%s8015_s10 + $0x208] ss:$84 sps:$4 sm:$0xff]  }
  0x58   : > { %6364 = vmatprep.subr.bf16.mxu1 %v7373_v18  ;;  %v7420_v18 = vld [vmem:[%s8015_s10 + $0x2b0] ss:$84 sps:$4 sm:$0xff]  }
  0x5b   : > { %6365 = vmatpush3.bf16.msra.mxu1 %v7374_v19  ;;  %v7425_v19 = vld [vmem:[%s8015_s10 + $0x894] ss:$84 sps:$4 sm:$0xff]  }
  0x5c   : > { %6366 = vmatprep.subr.bf16.mxu1 %v7389_v26  ;;  %v7433_v26 = vld [vmem:[%s8015_s10 + $0x404] ss:$84 sps:$4 sm:$0xff]  }
  0x5d   : > { %3694 = vmatmul.mubr.bf16.gmra.mxu0 %v7337_v12  ;;  %3823 = vmatmul.mubr.bf16.gmra.mxu1 %v7338_v13  ;;  %v7472_v12 = vld [vmem:[%s9896_s1 + $0x210] sm:$0xff]   ;;  %v7487_v13 = vld [vmem:[%s9896_s1 + $0x248] sm:$0xff]  }
  0x5e   : > { %3701 = vmatprep.mubr.bf16.mxu0 %v7343_v14  ;;  %3830 = vmatprep.mubr.bf16.mxu1 %v7345_v17  ;;  %v7415_v14 = vld [vmem:[%s8015_s10 + $0x7ec] ss:$84 sps:$4 sm:$0xff]   ;;  %v7419_v17 = vld [vmem:[%s8015_s10 + $0x7e8] ss:$84 sps:$4 sm:$0xff]  }
  0x5f   : > { %6367 = vmatpush3.bf16.msra.mxu1 %v7390_v29  ;;  %v7436_v29 = vld [vmem:[%s8015_s10 + $0x400] ss:$84 sps:$4 sm:$0xff]  }
  0x60   : > { %6368 = vmatprep.subr.bf16.mxu1 %v7405_v35  ;;  %v7451_v35 = vld [vmem:[%s8015_s10 + $0x1c] ss:$84 sps:$4 sm:$0xff]  }
  0x63   : > { %6369 = vmatpush3.bf16.msra.mxu1 %v7406_v36  ;;  %v7449_v36 = vld [vmem:[%s8015_s10 + $0x18] ss:$84 sps:$4 sm:$0xff]  }
  0x64   : > { %6370 = vmatprep.subr.bf16.mxu1 %v7421_v43  ;;  %v7485_v43 = vld [vmem:[%s9896_s1 + $0x2e8] sm:$0xff]  }
  0x65   : > { %3702 = vmatmul.mubr.bf16.gmra.mxu0 %v7347_v20  ;;  %3831 = vmatmul.mubr.bf16.gmra.mxu1 %v7348_v21  ;;  %v7427_v20 = vld [vmem:[%s8015_s10 + $0x35c] ss:$84 sps:$4 sm:$0xff]   ;;  %v7503_v21 = vld [vmem:[%s9896_s1 + $0x240] sm:$0xff]  }
  0x66   : > { %3709 = vmatprep.mubr.bf16.mxu0 %v7349_v22  ;;  %3838 = vmatprep.mubr.bf16.mxu1 %v7351_v23  ;;  %v7504_v22 = vld [vmem:[%s9896_s1 + $0x200] sm:$0xff]  }
  0x67   : > { %6371 = vmatpush3.bf16.msra.mxu1 %v7422_v44  ;;  %v7429_v23 = vld [vmem:[%s8015_s10 + $0x890] ss:$84 sps:$4 sm:$0xff]   ;;  %v7461_v44 = vld [vmem:[%s8015_s10 + $0x5f8] ss:$84 sps:$4 sm:$0xff]  }
  0x68   : > { %6372 = vmatprep.subr.bf16.mxu1 %v7437_v49  ;;  %v7501_v49 = vld [vmem:[%s9896_s1 + $0x2e0] sm:$0xff]  }
  0x6b   : > { %6373 = vmatpush3.bf16.msra.mxu1 %v7438_v50  ;;  %v7467_v50 = vld [vmem:[%s8015_s10 + $0x6a0] ss:$84 sps:$4 sm:$0xff]  }
  0x6c   : > { %6582 = vmatprep.subr.bf16.mxu1 %v7453_v57  ;;  %v7533_v57 = vld [vmem:[%s9896_s1 + $0x2d0] sm:$0xff]  }
  0x6d   : > { %3710 = vmatmul.mubr.bf16.gmra.mxu0 %v7353_v27  ;;  %3839 = vmatmul.mubr.bf16.gmra.mxu1 %v7354_v28  ;;  %v7519_v27 = vld [vmem:[%s9896_s1 + $0x378] sm:$0xff]  }
  0x6e   : > { %3717 = vmatprep.mubr.bf16.mxu0 %v7359_v31  ;;  %3846 = vmatprep.mubr.bf16.mxu1 %v7361_v32  ;;  %v7435_v28 = vld [vmem:[%s8015_s10 + $0x938] ss:$84 sps:$4 sm:$0xff]   ;;  %v7445_v32 = vld [vmem:[%s8015_s10 + $0x9e0] ss:$84 sps:$4 sm:$0xff]  }
  0x6f   : > { %v7443_v31 = vld [vmem:[%s8015_s10 + $0x4ac] ss:$84 sps:$4 sm:$0xff]  }
  0x75   : > { %3718 = vmatmul.mubr.bf16.gmra.mxu0 %v7363_v33  ;;  %3847 = vmatmul.mubr.bf16.gmra.mxu1 %v7364_v34  ;;  %v7446_v33 = vld [vmem:[%s8015_s10 + $0x4a8] ss:$84 sps:$4 sm:$0xff]  }
  0x76   : > { %3725 = vmatprep.mubr.bf16.mxu0 %v7367_v37  ;;  %3854 = vmatprep.mubr.bf16.mxu1 %v7369_v38  ;;  %v7447_v34 = vld [vmem:[%s8015_s10 + $0x554] ss:$84 sps:$4 sm:$0xff]   ;;  %v7452_v37 = vld [vmem:[%s8015_s10 + $0x550] ss:$84 sps:$4 sm:$0xff]   ;;  %v7454_v38 = vld [vmem:[%s9896_s1 + $0x2b8] sm:$0xff]  }
  0x7d   : > { %3726 = vmatmul.mubr.bf16.gmra.mxu0 %v7371_v39  ;;  %3855 = vmatmul.mubr.bf16.gmra.mxu1 %v7372_v40  ;;  %v7457_v39 = vld [vmem:[%s8015_s10 + $0x5fc] ss:$84 sps:$4 sm:$0xff]   ;;  %v7459_v40 = vld [vmem:[%s8015_s10 + $0xc4] ss:$84 sps:$4 sm:$0xff]  }
  0x7e   : > { %3733 = vmatprep.mubr.bf16.mxu0 %v7375_v41  ;;  %3862 = vmatprep.mubr.bf16.mxu1 %v7377_v42  ;;  %v7469_v41 = vld [vmem:[%s9896_s1 + $0x2f0] sm:$0xff]  }
  0x7f   : > { %v7470_v42 = vld [vmem:[%s9896_s1 + $0x2b0] sm:$0xff]  }
  0x85   : > { %3734 = vmatmul.mubr.bf16.gmra.mxu0 %v7379_v45  ;;  %3863 = vmatmul.mubr.bf16.gmra.mxu1 %v7380_v46  ;;  %v7462_v45 = vld [vmem:[%s8015_s10 + $0xc0] ss:$84 sps:$4 sm:$0xff]   ;;  %v7463_v46 = vld [vmem:[%s8015_s10 + $0x6a4] ss:$84 sps:$4 sm:$0xff]  }
  0x86   : > { %3870 = vmatprep.mubr.bf16.mxu1 %v7383_v47  ;;  %3967 = vmatprep.mubr.bf16.mxu0 %v7387_v48  ;;  %v7465_v47 = vld [vmem:[%s8015_s10 + $0x16c] ss:$84 sps:$4 sm:$0xff]  }
  0x87   : > { %v7486_v48 = vld [vmem:[%s9896_s1 + $0x2a8] sm:$0xff]  }
  0x8d   : > { %3871 = vmatmul.mubr.bf16.gmra.mxu1 %v7388_v52  ;;  %3968 = vmatmul.mubr.bf16.vlgmr.msra.gmra.mxu0 %v7385_v51  ;;  %v7468_v51 = vld [vmem:[%s8015_s10 + $0x168] ss:$84 sps:$4 sm:$0xff]   ;;  %v7502_v52 = vld [vmem:[%s9896_s1 + $0x2a0] sm:$0xff]  }
  0x8e   : > { %6471 = vmatpush3.bf16.msra.mxu0 %v7392_v53  ;;  %3878 = vmatprep.mubr.bf16.mxu1 %v7393_v54  ;;  %v7517_v53 = vld [vmem:[%s9896_s1 + $0x2d8] sm:$0xff]   ;;  %v7473_v54 = vld [vmem:[%s8015_s10 + $0x74c] ss:$84 sps:$4 sm:$0xff]  }
  0x8f   : > { %3975 = vmatprep.mubr.bf16.mxu0 %v7395_v55  ;;  %6472 = vmatprep.subr.bf16.mxu0 %v7407_v56  ;;  %v7475_v55 = vld [vmem:[%s8015_s10 + $0x214] ss:$84 sps:$4 sm:$0xff]   ;;  %v7518_v56 = vld [vmem:[%s9896_s1 + $0x298] sm:$0xff]  }
  0x92   : > { %6473 = vmatpush3.bf16.msra.mxu0 %v7408_v58  ;;  %v7477_v58 = vld [vmem:[%s8015_s10 + $0x748] ss:$84 sps:$4 sm:$0xff]  }
  0x93   : > { %6474 = vmatprep.subr.bf16.mxu0 %v7423_v59  ;;  %v7478_v59 = vld [vmem:[%s8015_s10 + $0x210] ss:$84 sps:$4 sm:$0xff]  }
  0x95   : > { %3879 = vmatmul.mubr.bf16.gmra.mxu1 %v7397_v60  ;;  %3976 = vmatmul.mubr.bf16.gmra.mxu0 %v7398_v61  ;;  %v7534_v60 = vld [vmem:[%s9896_s1 + $0x290] sm:$0xff]   ;;  %v7549_v61 = vld [vmem:[%s9896_s1 + $0x2c8] sm:$0xff]  }
  0x96   : > { %3886 = vmatprep.mubr.bf16.mxu1 %v7399_v62  ;;  %3983 = vmatprep.mubr.bf16.mxu0 %v7401_v63  ;;  %v7479_v62 = vld [vmem:[%s8015_s10 + $0x7f4] ss:$84 sps:$4 sm:$0xff]   ;;  %v7481_v63 = vld [vmem:[%s8015_s10 + $0x2bc] ss:$84 sps:$4 sm:$0xff]  }
  0x97   : > { %6475 = vmatpush3.bf16.msra.mxu0 %v7424_v0  ;;  %v7550_v0 = vld [vmem:[%s9896_s1 + $0x288] sm:$0xff]  }
  0x98   : > { %6476 = vmatprep.subr.bf16.mxu0 %v7439_v1  ;;  %v7565_v1 = vld [vmem:[%s9896_s1 + $0x2c0] sm:$0xff]  }
  0x9b   : > { %6477 = vmatpush3.bf16.msra.mxu0 %v7440_v3  ;;  %v7581_v3 = vld [vmem:[%s9896_s1 + $0x3f8] sm:$0xff]  }
  0x9c   : > { %6478 = vmatprep.subr.bf16.mxu0 %v7455_v4  ;;  %v7483_v4 = vld [vmem:[%s8015_s10 + $0x7f0] ss:$84 sps:$4 sm:$0xff]  }
  0x9d   : > { %3887 = vmatmul.mubr.bf16.gmra.mxu1 %v7403_v2  ;;  %3984 = vmatmul.mubr.bf16.gmra.mxu0 %v7404_v5  ;;  %v7566_v2 = vld [vmem:[%s9896_s1 + $0x280] sm:$0xff]   ;;  %v7484_v5 = vld [vmem:[%s8015_s10 + $0x2b8] ss:$84 sps:$4 sm:$0xff]  }
  0x9e   : > { %3894 = vmatprep.mubr.bf16.mxu1 %v7409_v6  ;;  %3991 = vmatprep.mubr.bf16.mxu0 %v7411_v7  ;;  %v7489_v6 = vld [vmem:[%s8015_s10 + $0x89c] ss:$84 sps:$4 sm:$0xff]   ;;  %v7491_v7 = vld [vmem:[%s8015_s10 + $0x364] ss:$84 sps:$4 sm:$0xff]  }
  0x9f   : > { %6479 = vmatpush3.bf16.msra.mxu0 %v7456_v8 }
  0xa0   : > { %6480 = vmatprep.subr.bf16.mxu0 %v7471_v9 }
  0xa3   : > { %6481 = vmatpush3.bf16.msra.mxu0 %v7472_v12  ;;  %v7493_v12 = vld [vmem:[%s8015_s10 + $0x898] ss:$84 sps:$4 sm:$0xff]  }
  0xa4   : > { %6482 = vmatprep.subr.bf16.mxu0 %v7487_v13  ;;  %v7494_v13 = vld [vmem:[%s8015_s10 + $0x360] ss:$84 sps:$4 sm:$0xff]  }
  0xa5   : > { %3895 = vmatmul.mubr.bf16.gmra.mxu1 %v7413_v10  ;;  %3992 = vmatmul.mubr.bf16.gmra.mxu0 %v7414_v11 }
  0xa6   : > { %3902 = vmatprep.mubr.bf16.mxu1 %v7415_v14  ;;  %3999 = vmatprep.mubr.bf16.mxu0 %v7417_v15 }
  0xa7   : > { %6483 = vmatpush3.bf16.msra.mxu0 %v7488_v16 }
  0xa8   : > { %6484 = vmatprep.subr.bf16.mxu0 %v7503_v21 }
  0xab   : > { %6485 = vmatpush3.bf16.msra.mxu0 %v7504_v22 }
  0xac   : > { %6694 = vmatprep.subr.bf16.mxu0 %v7519_v27 }
  0xad   : > { %3903 = vmatmul.mubr.bf16.gmra.mxu1 %v7419_v17  ;;  %4000 = vmatmul.mubr.bf16.gmra.mxu0 %v7420_v18  ;;  %v7495_v18 = vld [vmem:[%s8015_s10 + $0x944] ss:$84 sps:$4 sm:$0xff]  }
  0xae   : > { %3910 = vmatprep.mubr.bf16.mxu1 %v7425_v19  ;;  %4007 = vmatprep.mubr.bf16.mxu0 %v7427_v20  ;;  %v7497_v19 = vld [vmem:[%s8015_s10 + $0x40c] ss:$84 sps:$4 sm:$0xff]  }
  0xb5   : > { %3911 = vmatmul.mubr.bf16.gmra.mxu1 %v7429_v23  ;;  %4008 = vmatmul.mubr.bf16.gmra.mxu0 %v7430_v24 }
  0xb6   : > { %3918 = vmatprep.mubr.bf16.mxu1 %v7431_v25  ;;  %4015 = vmatprep.mubr.bf16.mxu0 %v7433_v26 }
  0xbd   : > { %3919 = vmatmul.mubr.bf16.gmra.mxu1 %v7435_v28  ;;  %4016 = vmatmul.mubr.bf16.gmra.mxu0 %v7436_v29  ;;  %v7499_v28 = vld [vmem:[%s8015_s10 + $0x940] ss:$84 sps:$4 sm:$0xff]   ;;  %v7500_v29 = vld [vmem:[%s8015_s10 + $0x408] ss:$84 sps:$4 sm:$0xff]  }
  0xbe   : > { %3926 = vmatprep.mubr.bf16.mxu1 %v7441_v30  ;;  %4023 = vmatprep.mubr.bf16.mxu0 %v7443_v31 }
  0xc5   : > { %3927 = vmatmul.mubr.bf16.gmra.mxu1 %v7445_v32  ;;  %4024 = vmatmul.mubr.bf16.gmra.mxu0 %v7446_v33 }
  0xc6   : > { %4031 = vmatprep.mubr.bf16.mxu0 %v7447_v34  ;;  %4128 = vmatprep.mubr.bf16.mxu1 %v7451_v35  ;;  %v7505_v34 = vld [vmem:[%s8015_s10 + $0x9ec] ss:$84 sps:$4 sm:$0xff]   ;;  %v7507_v35 = vld [vmem:[%s8015_s10 + $0x4b4] ss:$84 sps:$4 sm:$0xff]  }
  0xcd   : > { %4032 = vmatmul.mubr.bf16.gmra.mxu0 %v7452_v37  ;;  %4129 = vmatmul.mubr.bf16.vlgmr.msra.gmra.mxu1 %v7449_v36 }
  0xce   : > { %6583 = vmatpush3.bf16.msra.mxu1 %v7454_v38  ;;  %4039 = vmatprep.mubr.bf16.mxu0 %v7457_v39 }
  0xcf   : > { %4136 = vmatprep.mubr.bf16.mxu1 %v7459_v40  ;;  %6584 = vmatprep.subr.bf16.mxu1 %v7469_v41 }
  0xd2   : > { %6585 = vmatpush3.bf16.msra.mxu1 %v7470_v42 }
  0xd3   : > { %6586 = vmatprep.subr.bf16.mxu1 %v7485_v43 }
  0xd5   : > { %4040 = vmatmul.mubr.bf16.gmra.mxu0 %v7461_v44  ;;  %4137 = vmatmul.mubr.bf16.gmra.mxu1 %v7462_v45  ;;  %v7509_v44 = vld [vmem:[%s8015_s10 + $0x9e8] ss:$84 sps:$4 sm:$0xff]   ;;  %v7510_v45 = vld [vmem:[%s8015_s10 + $0x4b0] ss:$84 sps:$4 sm:$0xff]  }
  0xd6   : > { %4047 = vmatprep.mubr.bf16.mxu0 %v7463_v46  ;;  %4144 = vmatprep.mubr.bf16.mxu1 %v7465_v47 }
  0xd7   : > { %6587 = vmatpush3.bf16.msra.mxu1 %v7486_v48 }
  0xd8   : > { %6588 = vmatprep.subr.bf16.mxu1 %v7501_v49 }
  0xdb   : > { %6589 = vmatpush3.bf16.msra.mxu1 %v7502_v52 }
  0xdc   : > { %6590 = vmatprep.subr.bf16.mxu1 %v7517_v53 }
  0xdd   : > { %4048 = vmatmul.mubr.bf16.gmra.mxu0 %v7467_v50  ;;  %4145 = vmatmul.mubr.bf16.gmra.mxu1 %v7468_v51  ;;  %v7513_v50 = vld [vmem:[%s8015_s10 + $0x55c] ss:$84 sps:$4 sm:$0xff]   ;;  %v7516_v51 = vld [vmem:[%s8015_s10 + $0x24] ss:$84 sps:$4 sm:$0xff]  }
  0xde   : > { %4055 = vmatprep.mubr.bf16.mxu0 %v7473_v54  ;;  %4152 = vmatprep.mubr.bf16.mxu1 %v7475_v55 }
  0xdf   : > { %6591 = vmatpush3.bf16.msra.mxu1 %v7518_v56 }
  0xe0   : > { %6592 = vmatprep.subr.bf16.mxu1 %v7533_v57 }
  0xe3   : > { %6593 = vmatpush3.bf16.msra.mxu1 %v7534_v60  ;;  %v7511_v60 = vld [vmem:[%s8015_s10 + $0x558] ss:$84 sps:$4 sm:$0xff]  }
  0xe4   : > { %6594 = vmatprep.subr.bf16.mxu1 %v7549_v61  ;;  %v7514_v61 = vld [vmem:[%s8015_s10 + $0x20] ss:$84 sps:$4 sm:$0xff]  }
  0xe5   : > { %4056 = vmatmul.mubr.bf16.gmra.mxu0 %v7477_v58  ;;  %4153 = vmatmul.mubr.bf16.gmra.mxu1 %v7478_v59 }
  0xe6   : > { %4063 = vmatprep.mubr.bf16.mxu0 %v7479_v62  ;;  %4160 = vmatprep.mubr.bf16.mxu1 %v7481_v63 }
  0xe7   : > { %6595 = vmatpush3.bf16.msra.mxu1 %v7550_v0 }
  0xe8   : > { %6596 = vmatprep.subr.bf16.mxu1 %v7565_v1 }
  0xeb   : > { %6597 = vmatpush3.bf16.msra.mxu1 %v7566_v2  ;;  %v7520_v2 = vld [vmem:[%s9896_s1 + $0x338] sm:$0xff]  }
  0xec   : > { %6806 = vmatprep.subr.bf16.mxu1 %v7581_v3  ;;  %v7523_v3 = vld [vmem:[%s8015_s10 + $0x604] ss:$84 sps:$4 sm:$0xff]  }
  0xed   : > { %v6038_v8 = vpop.f32.mrf.mxu0  ;;  %v6110_v9 = vpop.f32.mrf.mxu1  ;;  %4064 = vmatmul.mubr.bf16.gmra.mxu0 %v7483_v4  ;;  %4161 = vmatmul.mubr.bf16.gmra.mxu1 %v7484_v5 }
  0xee   : > { %4071 = vmatprep.mubr.bf16.mxu0 %v7489_v6  ;;  %4168 = vmatprep.mubr.bf16.mxu1 %v7491_v7  ;;  %v7526_v6 = vld [vmem:[%s8015_s10 + $0xcc] ss:$84 sps:$4 sm:$0xff]   ;;  %v7535_v7 = vld [vmem:[%s9896_s1 + $0x370] sm:$0xff]  }
  0xef   : > { %v6039_v10 = vpop.f32.mrf.mxu0  ;;  %v6111_v11 = vpop.f32.mrf.mxu1 }
  0xf0   : > { %v8388_v14 = vadd.f32 %v6039_v10, %v6038_v8  ;;  %v8390_v15 = vadd.f32 %v6111_v11, %v6110_v9  ;;  %v8443_v10 = vld [vmem:[%s9897_s2] ss:$0 sm:$0xff] }
  0xf1   : > { %v6041_v16 = vpop.f32.mrf.mxu0  ;;  %v6113_v17 = vpop.f32.mrf.mxu1 }
  0xf3   : > { %v6042_v20 = vpop.f32.mrf.mxu0  ;;  %v6114_v21 = vpop.f32.mrf.mxu1 }
  0xf4   : > { %v8394_v22 = vadd.f32 %v6042_v20, %v6041_v16  ;;  %v8396_v23 = vadd.f32 %v6114_v21, %v6113_v17  ;;  %v7551_v16 = vld [vmem:[%s9896_s1 + $0x368] sm:$0xff]   ;;  %v3648_v21 = vadd.f32 %v8388_v14, %v8443_v10  ;;  %v7567_v14 = vld [vmem:[%s9896_s1 + $0x360] sm:$0xff]  }
  0xf5   : > { %v6044_v24 = vpop.f32.mrf.mxu0  ;;  %v6116_v25 = vpop.f32.mrf.mxu1  ;;  %4072 = vmatmul.mubr.bf16.gmra.mxu0 %v7493_v12  ;;  %4169 = vmatmul.mubr.bf16.gmra.mxu1 %v7494_v13  ;;  %v7536_v13 = vld [vmem:[%s9896_s1 + $0x330] sm:$0xff]   ;;  %v7524_v20 = vld [vmem:[%s8015_s10 + $0xc8] ss:$84 sps:$4 sm:$0xff]  }
  0xf6   : > { %4079 = vmatprep.mubr.bf16.mxu0 %v7495_v18  ;;  %4176 = vmatprep.mubr.bf16.mxu1 %v7497_v19  ;;  %v7521_v19 = vld [vmem:[%s8015_s10 + $0x600] ss:$84 sps:$4 sm:$0xff]  }
  0xf7   : > { %v6045_v26 = vpop.f32.mrf.mxu0  ;;  %v6117_v27 = vpop.f32.mrf.mxu1 }
  0xf8   : > { %v8400_v30 = vadd.f32 %v6045_v26, %v6044_v24  ;;  %v8402_v31 = vadd.f32 %v6117_v27, %v6116_v25 }
  0xf9   : > { %v6047_v32 = vpop.f32.mrf.mxu0  ;;  %v6119_v33 = vpop.f32.mrf.mxu1 }
  0xfb   : > { %v6048_v36 = vpop.f32.mrf.mxu0  ;;  %v6120_v37 = vpop.f32.mrf.mxu1 }
  0xfc   : > { %v8406_v38 = vadd.f32 %v6048_v36, %v6047_v32  ;;  %v8408_v39 = vadd.f32 %v6120_v37, %v6119_v33  ;;  %v7532_v32 = vld [vmem:[%s8015_s10 + $0x174] ss:$84 sps:$4 sm:$0xff]   ;;  %v3651_v36 = vadd.f32 %v8394_v22, %v8443_v10  ;;  %v7583_v22 = vld [vmem:[%s9896_s1 + $0x358] sm:$0xff]  }
  0xfd   : > { %v6050_v40 = vpop.f32.mrf.mxu0  ;;  %v6122_v41 = vpop.f32.mrf.mxu1  ;;  %4080 = vmatmul.mubr.bf16.gmra.mxu0 %v7499_v28  ;;  %4177 = vmatmul.mubr.bf16.gmra.mxu1 %v7500_v29  ;;  %v7529_v29 = vld [vmem:[%s8015_s10 + $0x6ac] ss:$84 sps:$4 sm:$0xff]  }
  0xfe   : > { %4087 = vmatprep.mubr.bf16.mxu0 %v7505_v34  ;;  %4184 = vmatprep.mubr.bf16.mxu1 %v7507_v35  ;;  %v7552_v35 = vld [vmem:[%s9896_s1 + $0x328] sm:$0xff]  }
  0xff   : > { %v6051_v42 = vpop.f32.mrf.mxu0  ;;  %v6123_v43 = vpop.f32.mrf.mxu1 }
 0x100   : > { %v8412_v46 = vadd.f32 %v6051_v42, %v6050_v40  ;;  %v8414_v47 = vadd.f32 %v6123_v43, %v6122_v41  ;;  %v7568_v43 = vld [vmem:[%s9896_s1 + $0x320] sm:$0xff]  }
 0x101   : > { %v6053_v48 = vpop.f32.mrf.mxu0  ;;  %v6125_v49 = vpop.f32.mrf.mxu1 }
 0x103   : > { %v6054_v52 = vpop.f32.mrf.mxu0  ;;  %v6126_v53 = vpop.f32.mrf.mxu1 }
 0x104   : > { %v8418_v54 = vadd.f32 %v6054_v52, %v6053_v48  ;;  %v8420_v55 = vadd.f32 %v6126_v53, %v6125_v49  ;;  %v7527_v49 = vld [vmem:[%s8015_s10 + $0x6a8] ss:$84 sps:$4 sm:$0xff]  }
 0x105   : > { %v6056_v56 = vpop.f32.mrf.mxu0  ;;  %v6128_v57 = vpop.f32.mrf.mxu1  ;;  %4088 = vmatmul.mubr.bf16.gmra.mxu0 %v7509_v44  ;;  %4185 = vmatmul.mubr.bf16.gmra.mxu1 %v7510_v45 }
 0x106   : > { %4192 = vmatprep.mubr.bf16.mxu1 %v7513_v50  ;;  %4289 = vmatprep.mubr.bf16.mxu0 %v7516_v51  ;;  %v7530_v50 = vld [vmem:[%s8015_s10 + $0x170] ss:$84 sps:$4 sm:$0xff]   ;;  %v3656_v51 = vadd.f32 %v8400_v30, %v8443_v10 }
 0x107   : > { %v6057_v58 = vpop.f32.mrf.mxu0  ;;  %v6129_v59 = vpop.f32.mrf.mxu1  ;;  %v7599_v30 = vld [vmem:[%s9896_s1 + $0x350] sm:$0xff]  }
 0x108   : > { %v8424_v62 = vadd.f32 %v6057_v58, %v6056_v56  ;;  %v8426_v63 = vadd.f32 %v6129_v59, %v6128_v57  ;;  %v7539_v59 = vld [vmem:[%s8015_s10 + $0x754] ss:$84 sps:$4 sm:$0xff]  }
 0x109   : > { %v6059_v0 = vpop.f32.mrf.mxu0  ;;  %v6131_v1 = vpop.f32.mrf.mxu1 }
 0x10b   : > { %v6060_v4 = vpop.f32.mrf.mxu0  ;;  %v6132_v5 = vpop.f32.mrf.mxu1 }
 0x10c   : > { %v8436_v8 = vadd.f32 %v6060_v4, %v6059_v0  ;;  %v8438_v9 = vadd.f32 %v6132_v5, %v6131_v1  ;;  %v7584_v1 = vld [vmem:[%s9896_s1 + $0x318] sm:$0xff]  }
 0x10d   : > { %v6062_v11 = vpop.f32.mrf.mxu0  ;;  %v6150_v12 = vpop.f32.mrf.mxu1  ;;  %4193 = vmatmul.mubr.bf16.gmra.mxu1 %v7511_v60  ;;  %4290 = vmatmul.mubr.bf16.vlgmr.msra.gmra.mxu0 %v7514_v61  ;;  %v7542_v60 = vld [vmem:[%s8015_s10 + $0x21c] ss:$84 sps:$4 sm:$0xff]  }
 0x10e   : > { %6695 = vmatpush3.bf16.msra.mxu0 %v7520_v2  ;;  %4200 = vmatprep.mubr.bf16.mxu1 %v7523_v3  ;;  %v3659_v2 = vadd.f32 %v8406_v38, %v8443_v10  ;;  %v7615_v38 = vld [vmem:[%s9896_s1 + $0x348] sm:$0xff]  }
 0x10f   : > { %v6063_v17 = vpop.f32.mrf.mxu0  ;;  %v6151_v18 = vpop.f32.mrf.mxu1  ;;  %4297 = vmatprep.mubr.bf16.mxu0 %v7526_v6  ;;  %6696 = vmatprep.subr.bf16.mxu0 %v7535_v7 }
 0x110   : > { %v8455_v24 = vadd.f32 %v6063_v17, %v6062_v11  ;;  %v6152_v25 = vadd.f32 %v6151_v18, %v6150_v12  ;;  %v7600_v11 = vld [vmem:[%s9896_s1 + $0x310] sm:$0xff]   ;;  %v7540_v17 = vld [vmem:[%s8015_s10 + $0x218] ss:$84 sps:$4 sm:$0xff]   ;;  %v3664_v18 = vadd.f32 %v8412_v46, %v8443_v10  ;;  %v7631_v46 = vld [vmem:[%s9896_s1 + $0x340] sm:$0xff]  }
 0x111   : > { %v6065_v26 = vpop.f32.mrf.mxu0  ;;  %v6153_v27 = vpop.f32.mrf.mxu1 }
 0x112   : > { %v8457_v28 = vadd.f32 %v6152_v25, %v3648_v21  ;;  %6697 = vmatpush3.bf16.msra.mxu0 %v7536_v13 }
 0x113   : > { %v6066_v33 = vpop.f32.mrf.mxu0  ;;  %v6154_v34 = vpop.f32.mrf.mxu1  ;;  %6698 = vmatprep.subr.bf16.mxu0 %v7551_v16  ;;  %v7537_v16 = vld [vmem:[%s8015_s10 + $0x750] ss:$84 sps:$4 sm:$0xff]  }
 0x114   : > { %v8469_v37 = vadd.f32 %v6066_v33, %v6065_v26  ;;  %v6155_v40 = vadd.f32 %v6154_v34, %v6153_v27  ;;  %v7545_v27 = vld [vmem:[%s8015_s10 + $0x7fc] ss:$84 sps:$4 sm:$0xff]   ;;  %v7616_v34 = vld [vmem:[%s9896_s1 + $0x308] sm:$0xff]  }
 0x115   : > { %v6068_v41 = vpop.f32.mrf.mxu0  ;;  %v6156_v42 = vpop.f32.mrf.mxu1  ;;  %4201 = vmatmul.mubr.bf16.gmra.mxu1 %v7521_v19  ;;  %4298 = vmatmul.mubr.bf16.gmra.mxu0 %v7524_v20 }
 0x116   : > { %v8474_v44 = vadd.f32 %v6155_v40, %v3651_v36  ;;  %4208 = vmatprep.mubr.bf16.mxu1 %v7529_v29  ;;  %4305 = vmatprep.mubr.bf16.mxu0 %v7532_v32  ;;  %v7548_v29 = vld [vmem:[%s8015_s10 + $0x2c4] ss:$84 sps:$4 sm:$0xff]  }
 0x117   : > { %v6069_v45 = vpop.f32.mrf.mxu0  ;;  %v6157_v48 = vpop.f32.mrf.mxu1  ;;  %6699 = vmatpush3.bf16.msra.mxu0 %v7552_v35  ;;  %v3667_v35 = vadd.f32 %v8418_v54, %v8443_v10  ;;  %v7647_v54 = vld [vmem:[%s9896_s1 + $0x478] sm:$0xff]  }
 0x118   : > { %v8483_v52 = vadd.f32 %v6069_v45, %v6068_v41  ;;  %v6158_v53 = vadd.f32 %v6157_v48, %v6156_v42  ;;  %6700 = vmatprep.subr.bf16.mxu0 %v7567_v14  ;;  %v7632_v42 = vld [vmem:[%s9896_s1 + $0x300] sm:$0xff]   ;;  %v7543_v48 = vld [vmem:[%s8015_s10 + $0x7f8] ss:$84 sps:$4 sm:$0xff]  }
 0x119   : > { %v6071_v56 = vpop.f32.mrf.mxu0  ;;  %v6159_v57 = vpop.f32.mrf.mxu1 }
 0x11a   : > { %v8485_v58 = vadd.f32 %v6158_v53, %v3656_v51 }
 0x11b   : > { %v6072_v61 = vpop.f32.mrf.mxu0  ;;  %v6160_v0 = vpop.f32.mrf.mxu1  ;;  %6701 = vmatpush3.bf16.msra.mxu0 %v7568_v43 }
 0x11c   : > { %v8497_v3 = vadd.f32 %v6072_v61, %v6071_v56  ;;  %v6161_v4 = vadd.f32 %v6160_v0, %v6159_v57  ;;  %6702 = vmatprep.subr.bf16.mxu0 %v7583_v22  ;;  %v7558_v61 = vld [vmem:[%s8015_s10 + $0x36c] ss:$84 sps:$4 sm:$0xff]  }
 0x11d   : > { %v6074_v5 = vpop.f32.mrf.mxu0  ;;  %v6162_v6 = vpop.f32.mrf.mxu1  ;;  %4209 = vmatmul.mubr.bf16.gmra.mxu1 %v7527_v49  ;;  %4306 = vmatmul.mubr.bf16.gmra.mxu0 %v7530_v50  ;;  %v7546_v49 = vld [vmem:[%s8015_s10 + $0x2c0] ss:$84 sps:$4 sm:$0xff]   ;;  %v3672_v50 = vadd.f32 %v8424_v62, %v8443_v10 }
 0x11e   : > { %v8499_v7 = vadd.f32 %v6161_v4, %v3659_v2  ;;  %4216 = vmatprep.mubr.bf16.mxu1 %v7539_v59  ;;  %4313 = vmatprep.mubr.bf16.mxu0 %v7542_v60  ;;  %v7555_v60 = vld [vmem:[%s8015_s10 + $0x8a4] ss:$84 sps:$4 sm:$0xff]  }
 0x11f   : > { %v6075_v12 = vpop.f32.mrf.mxu0  ;;  %v6163_v13 = vpop.f32.mrf.mxu1  ;;  %6703 = vmatpush3.bf16.msra.mxu0 %v7584_v1 }
 0x120   : > { %v8511_v19 = vadd.f32 %v6075_v12, %v6074_v5  ;;  %v6164_v20 = vadd.f32 %v6163_v13, %v6162_v6  ;;  %6704 = vmatprep.subr.bf16.mxu0 %v7599_v30  ;;  %v3675_v30 = vadd.f32 %v8436_v8, %v8443_v10  ;;  %v7553_v12 = vld [vmem:[%s8015_s10 + $0x8a0] ss:$84 sps:$4 sm:$0xff]   ;;  %v7556_v13 = vld [vmem:[%s8015_s10 + $0x368] ss:$84 sps:$4 sm:$0xff]   ;;  %v3680_v8 = vadd.f32 %v8455_v24, %v8443_v10 }
 0x121   : > { %v6077_v21 = vpop.f32.mrf.mxu0  ;;  %v6165_v25 = vpop.f32.mrf.mxu1 }
 0x122   : > { %v8513_v26 = vadd.f32 %v6164_v20, %v3664_v18 }
 0x123   : > { %v6078_v32 = vpop.f32.mrf.mxu0  ;;  %v6166_v33 = vpop.f32.mrf.mxu1  ;;  %6705 = vmatpush3.bf16.msra.mxu0 %v7600_v11 }
 0x124   : > { %v8525_v14 = vadd.f32 %v6078_v32, %v6077_v21  ;;  %v6167_v36 = vadd.f32 %v6166_v33, %v6165_v25  ;;  %6706 = vmatprep.subr.bf16.mxu0 %v7615_v38  ;;  %v7561_v25 = vld [vmem:[%s8015_s10 + $0x94c] ss:$84 sps:$4 sm:$0xff]   ;;  %v3683_v33 = vadd.f32 %v8469_v37, %v8443_v10  ;;  %v3688_v37 = vadd.f32 %v8483_v52, %v8443_v10 }
 0x125   : > { %v6080_v40 = vpop.f32.mrf.mxu0  ;;  %v6168_v41 = vpop.f32.mrf.mxu1  ;;  %4217 = vmatmul.mubr.bf16.gmra.mxu1 %v7537_v16  ;;  %4314 = vmatmul.mubr.bf16.gmra.mxu0 %v7540_v17 }
 0x126   : > { %v8530_v43 = vadd.f32 %v6167_v36, %v3667_v35  ;;  %4224 = vmatprep.mubr.bf16.mxu1 %v7545_v27  ;;  %4321 = vmatprep.mubr.bf16.mxu0 %v7548_v29  ;;  %v7564_v27 = vld [vmem:[%s8015_s10 + $0x414] ss:$84 sps:$4 sm:$0xff]  }
 0x127   : > { %v6081_v22 = vpop.f32.mrf.mxu0  ;;  %v6169_v45 = vpop.f32.mrf.mxu1  ;;  %6707 = vmatpush3.bf16.msra.mxu0 %v7616_v34 }
 0x128   : > { %v8539_v51 = vadd.f32 %v6081_v22, %v6080_v40  ;;  %v6170_v53 = vadd.f32 %v6169_v45, %v6168_v41  ;;  %6708 = vmatprep.subr.bf16.mxu0 %v7631_v46 }
 0x129   : > { %v6083_v56 = vpop.f32.mrf.mxu0  ;;  %v6171_v57 = vpop.f32.mrf.mxu1 }
 0x12a   : > { %v8541_v59 = vadd.f32 %v6170_v53, %v3672_v50  ;;  %v7571_v53 = vld [vmem:[%s8015_s10 + $0x9f4] ss:$84 sps:$4 sm:$0xff]  }
 0x12b   : > { %v6084_v0 = vpop.f32.mrf.mxu0  ;;  %v6172_v1 = vpop.f32.mrf.mxu1  ;;  %6709 = vmatpush3.bf16.msra.mxu0 %v7632_v42  ;;  %v7559_v42 = vld [vmem:[%s8015_s10 + $0x948] ss:$84 sps:$4 sm:$0xff]  }
 0x12c   : > { %v8547_v2 = vadd.f32 %v6084_v0, %v6083_v56  ;;  %v6173_v62 = vadd.f32 %v6172_v1, %v6171_v57  ;;  %6918 = vmatprep.subr.bf16.mxu0 %v7647_v54  ;;  %v7562_v54 = vld [vmem:[%s8015_s10 + $0x410] ss:$84 sps:$4 sm:$0xff]  }
 0x12d   : > { %v6086_v4 = vpop.f32.mrf.mxu0  ;;  %v6174_v5 = vpop.f32.mrf.mxu1  ;;  %4225 = vmatmul.mubr.bf16.gmra.mxu1 %v7543_v48  ;;  %4322 = vmatmul.mubr.bf16.gmra.mxu0 %v7546_v49  ;;  %v7574_v56 = vld [vmem:[%s8015_s10 + $0x4bc] ss:$84 sps:$4 sm:$0xff]  }
 0x12e   : > { %v8549_v6 = vadd.f32 %v6173_v62, %v3675_v30  ;;  %4232 = vmatprep.mubr.bf16.mxu1 %v7555_v60  ;;  %4329 = vmatprep.mubr.bf16.mxu0 %v7558_v61  ;;  %v3691_v61 = vadd.f32 %v8497_v3, %v8443_v10  ;;  %v3696_v3 = vadd.f32 %v8511_v19, %v8443_v10 }
 0x12f   : > { %v6087_v11 = vpop.f32.mrf.mxu0  ;;  %v6175_v38 = vpop.f32.mrf.mxu1 }
 0x130   : > { %v8555_v16 = vadd.f32 %v6087_v11, %v6086_v4  ;;  %v6176_v17 = vadd.f32 %v6175_v38, %v6174_v5  ;;  %v7569_v11 = vld [vmem:[%s8015_s10 + $0x9f0] ss:$84 sps:$4 sm:$0xff]   ;;  %v7572_v38 = vld [vmem:[%s8015_s10 + $0x4b8] ss:$84 sps:$4 sm:$0xff]  }
 0x131   : > { %v6089_v18 = vpop.f32.mrf.mxu0  ;;  %v6177_v20 = vpop.f32.mrf.mxu1 }
 0x132   : > { %v8557_v21 = vadd.f32 %v6176_v17, %v3680_v8 }
 0x133   : > { %v6090_v29 = vpop.f32.mrf.mxu0  ;;  %v6178_v32 = vpop.f32.mrf.mxu1 }
 0x134   : > { %v8563_v34 = vadd.f32 %v6090_v29, %v6089_v18  ;;  %v6179_v46 = vadd.f32 %v6178_v32, %v6177_v20  ;;  %v7577_v20 = vld [vmem:[%s8015_s10 + $0x564] ss:$84 sps:$4 sm:$0xff]   ;;  %v3699_v32 = vadd.f32 %v8525_v14, %v8443_v10  ;;  %v3704_v14 = vadd.f32 %v8539_v51, %v8443_v10  ;;  %v7597_v51 = vld [vmem:[%s9896_s1 + $0x3f0] sm:$0xff]  }
 0x135   : > { %v6092_v24 = vpop.f32.mrf.mxu0  ;;  %v6180_v35 = vpop.f32.mrf.mxu1  ;;  %4233 = vmatmul.mubr.bf16.gmra.mxu1 %v7553_v12  ;;  %4330 = vmatmul.mubr.bf16.gmra.mxu0 %v7556_v13 }
 0x136   : > { %v8565_v36 = vadd.f32 %v6179_v46, %v3683_v33  ;;  %4240 = vmatprep.mubr.bf16.mxu1 %v7561_v25  ;;  %4337 = vmatprep.mubr.bf16.mxu0 %v7564_v27  ;;  %v7580_v25 = vld [vmem:[%s8015_s10 + $0x2c] ss:$84 sps:$4 sm:$0xff]  }
 0x137   : > { %v6093_v40 = vpop.f32.mrf.mxu0  ;;  %v6181_v41 = vpop.f32.mrf.mxu1 }
 0x138   : > { %v8571_v22 = vadd.f32 %v6093_v40, %v6092_v24  ;;  %v6182_v45 = vadd.f32 %v6181_v41, %v6180_v35 }
 0x139   : > { %v6095_v48 = vpop.f32.mrf.mxu0  ;;  %v6183_v49 = vpop.f32.mrf.mxu1 }
 0x13a   : > { %v8573_v50 = vadd.f32 %v6182_v45, %v3688_v37 }
 0x13b   : > { %v6096_v57 = vpop.f32.mrf.mxu0  ;;  %v6184_v60 = vpop.f32.mrf.mxu1 }
 0x13c   : > { %v8579_v0 = vadd.f32 %v6096_v57, %v6095_v48  ;;  %v6185_v1 = vadd.f32 %v6184_v60, %v6183_v49  ;;  %v7587_v57 = vld [vmem:[%s8015_s10 + $0x60c] ss:$84 sps:$4 sm:$0xff]  }
 0x13d   : > { %v6098_v52 = vpop.f32.mrf.mxu0  ;;  %v6186_v30 = vpop.f32.mrf.mxu1  ;;  %4241 = vmatmul.mubr.bf16.gmra.mxu1 %v7559_v42  ;;  %4338 = vmatmul.mubr.bf16.gmra.mxu0 %v7562_v54  ;;  %v7575_v42 = vld [vmem:[%s8015_s10 + $0x560] ss:$84 sps:$4 sm:$0xff]   ;;  %v7578_v54 = vld [vmem:[%s8015_s10 + $0x28] ss:$84 sps:$4 sm:$0xff]  }
 0x13e   : > { %v8581_v62 = vadd.f32 %v6185_v1, %v3691_v61  ;;  %4248 = vmatprep.mubr.bf16.mxu1 %v7571_v53  ;;  %4345 = vmatprep.mubr.bf16.mxu0 %v7574_v56  ;;  %v7582_v56 = vld [vmem:[%s9896_s1 + $0x3b8] sm:$0xff]   ;;  %v7590_v1 = vld [vmem:[%s8015_s10 + $0xd4] ss:$84 sps:$4 sm:$0xff]  }
 0x13f   : > { %v6099_v4 = vpop.f32.mrf.mxu0  ;;  %v6187_v5 = vpop.f32.mrf.mxu1 }
 0x140   : > { %v8587_v12 = vadd.f32 %v6099_v4, %v6098_v52  ;;  %v6188_v13 = vadd.f32 %v6187_v5, %v6186_v30  ;;  %v3707_v52 = vadd.f32 %v8547_v2, %v8443_v10  ;;  %v7613_v2 = vld [vmem:[%s9896_s1 + $0x3e8] sm:$0xff]  }
 0x141   : > { %v6101_v8 = vpop.f32.mrf.mxu0  ;;  %v6189_v17 = vpop.f32.mrf.mxu1 }
 0x142   : > { %v8589_v18 = vadd.f32 %v6188_v13, %v3696_v3  ;;  %v7598_v3 = vld [vmem:[%s9896_s1 + $0x3b0] sm:$0xff]  }
 0x143   : > { %v6102_v27 = vpop.f32.mrf.mxu0  ;;  %v6190_v29 = vpop.f32.mrf.mxu1 }
 0x144   : > { %v8595_v33 = vadd.f32 %v6102_v27, %v6101_v8  ;;  %v6191_v46 = vadd.f32 %v6190_v29, %v6189_v17  ;;  %v7585_v17 = vld [vmem:[%s8015_s10 + $0x608] ss:$84 sps:$4 sm:$0xff]  }
 0x145   : > { %v6104_v19 = vpop.f32.mrf.mxu0  ;;  %v6192_v24 = vpop.f32.mrf.mxu1  ;;  %4249 = vmatmul.mubr.bf16.gmra.mxu1 %v7569_v11  ;;  %4346 = vmatmul.mubr.bf16.gmra.mxu0 %v7572_v38 }
 0x146   : > { %v8597_v35 = vadd.f32 %v6191_v46, %v3699_v32  ;;  %4353 = vmatprep.mubr.bf16.mxu0 %v7577_v20  ;;  %4450 = vmatprep.mubr.bf16.mxu1 %v7580_v25  ;;  %v7588_v20 = vld [vmem:[%s8015_s10 + $0xd0] ss:$84 sps:$4 sm:$0xff]   ;;  %v3712_v25 = vadd.f32 %v8555_v16, %v8443_v10 }
 0x147   : > { %v6105_v40 = vpop.f32.mrf.mxu0  ;;  %v6193_v41 = vpop.f32.mrf.mxu1  ;;  %v7629_v16 = vld [vmem:[%s9896_s1 + $0x3e0] sm:$0xff]  }
 0x148   : > { %v8603_v37 = vadd.f32 %v6105_v40, %v6104_v19  ;;  %v6194_v45 = vadd.f32 %v6193_v41, %v6192_v24  ;;  %v7593_v40 = vld [vmem:[%s8015_s10 + $0x6b4] ss:$84 sps:$4 sm:$0xff]   ;;  %v7596_v41 = vld [vmem:[%s8015_s10 + $0x17c] ss:$84 sps:$4 sm:$0xff]  }
 0x149   : > { %v6107_v48 = vpop.f32.mrf.mxu0  ;;  %v6195_v49 = vpop.f32.mrf.mxu1 }
 0x14a   : > { %v8605_v53 = vadd.f32 %v6194_v45, %v3704_v14  ;;  %v7614_v14 = vld [vmem:[%s9896_s1 + $0x3a8] sm:$0xff]   ;;  %v3715_v45 = vadd.f32 %v8563_v34, %v8443_v10  ;;  %v7645_v34 = vld [vmem:[%s9896_s1 + $0x3d8] sm:$0xff]  }
 0x14b   : > { %v6108_v60 = vpop.f32.mrf.mxu0  ;;  %v6196_v61 = vpop.f32.mrf.mxu1 }
 0x14c   : > { %v8617_v30 = vadd.f32 %v6108_v60, %v6107_v48  ;;  %v6197_v4 = vadd.f32 %v6196_v61, %v6195_v49 }
 0x14d   : > { %v6198_v5 = vpop.f32.mrf.mxu1  ;;  %v6262_v11 = vpop.f32.mrf.mxu0  ;;  %4354 = vmatmul.mubr.bf16.gmra.mxu0 %v7575_v42  ;;  %4451 = vmatmul.mubr.bf16.vlgmr.msra.gmra.mxu1 %v7578_v54 }
 0x14e   : > { %v8619_v38 = vadd.f32 %v6197_v4, %v3707_v52  ;;  %6807 = vmatpush3.bf16.msra.mxu1 %v7582_v56  ;;  %4361 = vmatprep.mubr.bf16.mxu0 %v7587_v57  ;;  %v7630_v57 = vld [vmem:[%s9896_s1 + $0x3a0] sm:$0xff]   ;;  %v7594_v4 = vld [vmem:[%s8015_s10 + $0x178] ss:$84 sps:$4 sm:$0xff]  }
 0x14f   : > { %v6199_v13 = vpop.f32.mrf.mxu1  ;;  %v6263_v8 = vpop.f32.mrf.mxu0  ;;  %4458 = vmatprep.mubr.bf16.mxu1 %v7590_v1  ;;  %6808 = vmatprep.subr.bf16.mxu1 %v7597_v51  ;;  %v7591_v52 = vld [vmem:[%s8015_s10 + $0x6b0] ss:$84 sps:$4 sm:$0xff]  }
 0x150   : > { %v6200_v27 = vadd.f32 %v6199_v13, %v6198_v5  ;;  %v6264_v29 = vadd.f32 %v6263_v8, %v6262_v11  ;;  %v3720_v5 = vadd.f32 %v8571_v22, %v8443_v10  ;;  %v7661_v22 = vld [vmem:[%s9896_s1 + $0x3d0] sm:$0xff]  }
 0x151   : > { %v6201_v32 = vpop.f32.mrf.mxu1  ;;  %v6265_v46 = vpop.f32.mrf.mxu0 }
 0x152   : > { %v8631_v19 = vadd.f32 %v6200_v27, %v3712_v25  ;;  %v8634_v24 = vadd.f32 %v6264_v29, %v8457_v28  ;;  %6809 = vmatpush3.bf16.msra.mxu1 %v7598_v3  ;;  %v7646_v29 = vld [vmem:[%s9896_s1 + $0x398] sm:$0xff]  }
 0x153   : > { %v6202_v42 = vpop.f32.mrf.mxu1  ;;  %v6266_v54 = vpop.f32.mrf.mxu0  ;;  %6810 = vmatprep.subr.bf16.mxu1 %v7613_v2 }
 0x154   : > { %v6203_v28 = vadd.f32 %v6202_v42, %v6201_v32  ;;  %v6267_v48 = vadd.f32 %v6266_v54, %v6265_v46  ;;  %v3723_v32 = vadd.f32 %v8579_v0, %v8443_v10  ;;  %v7662_v0 = vld [vmem:[%s9896_s1 + $0x390] sm:$0xff]  }
 0x155   : > { %v6204_v49 = vpop.f32.mrf.mxu1  ;;  %v6268_v56 = vpop.f32.mrf.mxu0  ;;  %4362 = vmatmul.mubr.bf16.gmra.mxu0 %v7585_v17  ;;  %4459 = vmatmul.mubr.bf16.gmra.mxu1 %v7588_v20  ;;  %v7603_v17 = vld [vmem:[%s8015_s10 + $0x75c] ss:$84 sps:$4 sm:$0xff]   ;;  %v7606_v20 = vld [vmem:[%s8015_s10 + $0x224] ss:$84 sps:$4 sm:$0xff]  }
 0x156   : > { %v8649_v60 = vadd.f32 %v6203_v28, %v3715_v45  ;;  %v8652_v61 = vadd.f32 %v6267_v48, %v8474_v44  ;;  %4369 = vmatprep.mubr.bf16.mxu0 %v7593_v40  ;;  %4466 = vmatprep.mubr.bf16.mxu1 %v7596_v41  ;;  %v7601_v28 = vld [vmem:[%s8015_s10 + $0x758] ss:$84 sps:$4 sm:$0xff]   ;;  %v7604_v48 = vld [vmem:[%s8015_s10 + $0x220] ss:$84 sps:$4 sm:$0xff]  }
 0x157   : > { %v6205_v1 = vpop.f32.mrf.mxu1  ;;  %v6269_v51 = vpop.f32.mrf.mxu0  ;;  %6811 = vmatpush3.bf16.msra.mxu1 %v7614_v14  ;;  %v7677_v14 = vld [vmem:[%s9896_s1 + $0x3c8] sm:$0xff]  }
 0x158   : > { %v6206_v11 = vadd.f32 %v6205_v1, %v6204_v49  ;;  %v6270_v3 = vadd.f32 %v6269_v51, %v6268_v56  ;;  %6812 = vmatprep.subr.bf16.mxu1 %v7629_v16 }
 0x159   : > { %v6207_v44 = vpop.f32.mrf.mxu1  ;;  %v6271_v2 = vpop.f32.mrf.mxu0 }
 0x15a   : > { %v8661_v13 = vadd.f32 %v6206_v11, %v3720_v5  ;;  %v8664_v8 = vadd.f32 %v6270_v3, %v8485_v58  ;;  %v7678_v3 = vld [vmem:[%s9896_s1 + $0x388] sm:$0xff]  }
 0x15b   : > { %v6208_v25 = vpop.f32.mrf.mxu1  ;;  %v6272_v27 = vpop.f32.mrf.mxu0  ;;  %6813 = vmatpush3.bf16.msra.mxu1 %v7630_v57 }
 0x15c   : > { %v6209_v46 = vadd.f32 %v6208_v25, %v6207_v44  ;;  %v6273_v58 = vadd.f32 %v6272_v27, %v6271_v2  ;;  %6814 = vmatprep.subr.bf16.mxu1 %v7645_v34  ;;  %v7694_v25 = vld [vmem:[%s9896_s1 + $0x380] sm:$0xff]  }
 0x15d   : > { %v6210_v40 = vpop.f32.mrf.mxu1  ;;  %v6274_v41 = vpop.f32.mrf.mxu0  ;;  %4370 = vmatmul.mubr.bf16.gmra.mxu0 %v7591_v52  ;;  %4467 = vmatmul.mubr.bf16.gmra.mxu1 %v7594_v4  ;;  %v7609_v52 = vld [vmem:[%s8015_s10 + $0x804] ss:$84 sps:$4 sm:$0xff]   ;;  %v7612_v4 = vld [vmem:[%s8015_s10 + $0x2cc] ss:$84 sps:$4 sm:$0xff]  }
 0x15e   : > { %v8676_v42 = vadd.f32 %v6209_v46, %v3723_v32  ;;  %v8679_v54 = vadd.f32 %v6273_v58, %v8499_v7  ;;  %4377 = vmatprep.mubr.bf16.mxu0 %v7603_v17  ;;  %4474 = vmatprep.mubr.bf16.mxu1 %v7606_v20  ;;  %v3728_v7 = vadd.f32 %v8587_v12, %v8443_v10  ;;  %v7693_v10 = vld [vmem:[%s9896_s1 + $0x3c0] sm:$0xff]   ;;  %v7610_v58 = vld [vmem:[%s8015_s10 + $0x2c8] ss:$84 sps:$4 sm:$0xff]  }
 0x15f   : > { %v6211_v16 = vpop.f32.mrf.mxu1  ;;  %v6275_v45 = vpop.f32.mrf.mxu0  ;;  %6815 = vmatpush3.bf16.msra.mxu1 %v7646_v29  ;;  %v8707_v12 = vld [vmem:[%s9897_s2] ss:$0 sm:$0xff] }
 0x160   : > { %v6212_v49 = vadd.f32 %v6211_v16, %v6210_v40  ;;  %v6276_v56 = vadd.f32 %v6275_v45, %v6274_v41  ;;  %6816 = vmatprep.subr.bf16.mxu1 %v7661_v22  ;;  %v7607_v46 = vld [vmem:[%s8015_s10 + $0x800] ss:$84 sps:$4 sm:$0xff]   ;;  %v3736_v40 = vadd.f32 %v8707_v12, %v8603_v37 }
 0x161   : > { %v6213_v57 = vpop.f32.mrf.mxu1  ;;  %v6277_v34 = vpop.f32.mrf.mxu0 }
 0x162   : > { %v8691_v1 = vadd.f32 %v6212_v49, %v3728_v7  ;;  %v8694_v51 = vadd.f32 %v6276_v56, %v8513_v26  ;;  %v3731_v26 = vadd.f32 %v8707_v12, %v8595_v33  ;;  %v7709_v33 = vld [vmem:[%s9896_s1 + $0x4f8] sm:$0xff]   ;;  %v3739_v56 = vadd.f32 %v8707_v12, %v8617_v30 }
 0x163   : > { %v6214_v5 = vpop.f32.mrf.mxu1  ;;  %v6278_v11 = vpop.f32.mrf.mxu0  ;;  %6817 = vmatpush3.bf16.msra.mxu1 %v7662_v0 }
 0x164   : > { %v6215_v44 = vadd.f32 %v6214_v5, %v6213_v57  ;;  %v6279_v2 = vadd.f32 %v6278_v11, %v6277_v34  ;;  %6818 = vmatprep.subr.bf16.mxu1 %v7677_v14  ;;  %v3744_v11 = vadd.f32 %v8707_v12, %v8390_v15 }
 0x165   : > { %v6216_v17 = vpop.f32.mrf.mxu1  ;;  %v6280_v20 = vpop.f32.mrf.mxu0  ;;  %4378 = vmatmul.mubr.bf16.gmra.mxu0 %v7601_v28  ;;  %4475 = vmatmul.mubr.bf16.gmra.mxu1 %v7604_v48  ;;  %v7619_v28 = vld [vmem:[%s8015_s10 + $0x8ac] ss:$84 sps:$4 sm:$0xff]   ;;  %v7622_v48 = vld [vmem:[%s8015_s10 + $0x374] ss:$84 sps:$4 sm:$0xff]  }
 0x166   : > { %v8714_v27 = vadd.f32 %v6215_v44, %v3731_v26  ;;  %v8717_v29 = vadd.f32 %v6279_v2, %v8530_v43  ;;  %4385 = vmatprep.mubr.bf16.mxu0 %v7609_v52  ;;  %4482 = vmatprep.mubr.bf16.mxu1 %v7612_v4  ;;  %v7617_v2 = vld [vmem:[%s8015_s10 + $0x8a8] ss:$84 sps:$4 sm:$0xff]  }
 0x167   : > { %v6217_v22 = vpop.f32.mrf.mxu1  ;;  %v6281_v32 = vpop.f32.mrf.mxu0  ;;  %6819 = vmatpush3.bf16.msra.mxu1 %v7678_v3 }
 0x168   : > { %v6218_v41 = vadd.f32 %v6217_v22, %v6216_v17  ;;  %v6282_v0 = vadd.f32 %v6281_v32, %v6280_v20  ;;  %6820 = vmatprep.subr.bf16.mxu1 %v7693_v10  ;;  %v7620_v17 = vld [vmem:[%s8015_s10 + $0x370] ss:$84 sps:$4 sm:$0xff]  }
 0x169   : > { %v6219_v43 = vpop.f32.mrf.mxu1  ;;  %v6283_v14 = vpop.f32.mrf.mxu0 }
 0x16a   : > { %v8726_v16 = vadd.f32 %v6218_v41, %v3736_v40  ;;  %v8729_v45 = vadd.f32 %v6282_v0, %v8541_v59 }
 0x16b   : > { %v6220_v7 = vpop.f32.mrf.mxu1  ;;  %v6284_v49 = vpop.f32.mrf.mxu0  ;;  %6821 = vmatpush3.bf16.msra.mxu1 %v7694_v25 }
 0x16c   : > { %v6221_v57 = vadd.f32 %v6220_v7, %v6219_v43  ;;  %v6285_v37 = vadd.f32 %v6284_v49, %v6283_v14  ;;  %7030 = vmatprep.subr.bf16.mxu1 %v7709_v33  ;;  %v7628_v33 = vld [vmem:[%s8015_s10 + $0x41c] ss:$84 sps:$4 sm:$0xff]  }
 0x16d   : > { %v6222_v34 = vpop.f32.mrf.mxu1  ;;  %v6286_v52 = vpop.f32.mrf.mxu0  ;;  %4386 = vmatmul.mubr.bf16.gmra.mxu0 %v7607_v46  ;;  %4483 = vmatmul.mubr.bf16.gmra.mxu1 %v7610_v58  ;;  %v3747_v46 = vadd.f32 %v8707_v12, %v8396_v23  ;;  %v3752_v23 = vadd.f32 %v8707_v12, %v8402_v31 }
 0x16e   : > { %v8735_v59 = vadd.f32 %v6221_v57, %v3739_v56  ;;  %v8738_v4 = vadd.f32 %v6285_v37, %v8549_v6  ;;  %4393 = vmatprep.mubr.bf16.mxu0 %v7619_v28  ;;  %4490 = vmatprep.mubr.bf16.mxu1 %v7622_v48  ;;  %v7625_v6 = vld [vmem:[%s8015_s10 + $0x954] ss:$84 sps:$4 sm:$0xff]   ;;  %v7623_v56 = vld [vmem:[%s8015_s10 + $0x950] ss:$84 sps:$4 sm:$0xff]   ;;  %v7626_v57 = vld [vmem:[%s8015_s10 + $0x418] ss:$84 sps:$4 sm:$0xff]  }
 0x16f   : > { %v6223_v5 = vpop.f32.mrf.mxu1  ;;  %v6287_v30 = vpop.f32.mrf.mxu0 }
 0x170   : > { %v6224_v3 = vadd.f32 %v6223_v5, %v6222_v34  ;;  %v6288_v10 = vadd.f32 %v6287_v30, %v6286_v52  ;;  %v7638_v52 = vld [vmem:[%s8015_s10 + $0x4c4] ss:$84 sps:$4 sm:$0xff]  }
 0x171   : > { %v6225_v26 = vpop.f32.mrf.mxu1  ;;  %v6289_v44 = vpop.f32.mrf.mxu0 }
 0x172   : > { %v8744_v20 = vadd.f32 %v6224_v3, %v3744_v11  ;;  %v8747_v25 = vadd.f32 %v6288_v10, %v8557_v21  ;;  %v3755_v11 = vadd.f32 %v8707_v12, %v8408_v39  ;;  %v3760_v39 = vadd.f32 %v8707_v12, %v8414_v47 }
 0x173   : > { %v6226_v22 = vpop.f32.mrf.mxu1  ;;  %v6290_v32 = vpop.f32.mrf.mxu0 }
 0x174   : > { %v6227_v58 = vadd.f32 %v6226_v22, %v6225_v26  ;;  %v6291_v15 = vadd.f32 %v6290_v32, %v6289_v44 }
 0x175   : > { %v6228_v40 = vpop.f32.mrf.mxu1  ;;  %v6292_v41 = vpop.f32.mrf.mxu0  ;;  %4394 = vmatmul.mubr.bf16.gmra.mxu0 %v7617_v2  ;;  %4491 = vmatmul.mubr.bf16.gmra.mxu1 %v7620_v17 }
 0x176   : > { %v8753_v0 = vadd.f32 %v6227_v58, %v3747_v46  ;;  %v8756_v21 = vadd.f32 %v6291_v15, %v8565_v36  ;;  %4401 = vmatprep.mubr.bf16.mxu0 %v7625_v6  ;;  %4498 = vmatprep.mubr.bf16.mxu1 %v7628_v33  ;;  %v7635_v36 = vld [vmem:[%s8015_s10 + $0x9fc] ss:$84 sps:$4 sm:$0xff]   ;;  %v7633_v46 = vld [vmem:[%s8015_s10 + $0x9f8] ss:$84 sps:$4 sm:$0xff]   ;;  %v7636_v58 = vld [vmem:[%s8015_s10 + $0x4c0] ss:$84 sps:$4 sm:$0xff]  }
 0x177   : > { %v6229_v43 = vpop.f32.mrf.mxu1  ;;  %v6293_v14 = vpop.f32.mrf.mxu0 }
 0x178   : > { %v6230_v28 = vadd.f32 %v6229_v43, %v6228_v40  ;;  %v6294_v48 = vadd.f32 %v6293_v14, %v6292_v41  ;;  %v7644_v41 = vld [vmem:[%s8015_s10 + $0x34] ss:$84 sps:$4 sm:$0xff]  }
 0x179   : > { %v6231_v7 = vpop.f32.mrf.mxu1  ;;  %v6295_v49 = vpop.f32.mrf.mxu0 }
 0x17a   : > { %v8762_v37 = vadd.f32 %v6230_v28, %v3752_v23  ;;  %v8765_v34 = vadd.f32 %v6294_v48, %v8573_v50  ;;  %v3763_v23 = vadd.f32 %v8707_v12, %v8420_v55  ;;  %v3768_v55 = vadd.f32 %v8707_v12, %v8426_v63  ;;  %v7663_v63 = vld [vmem:[%s9896_s1 + $0x470] sm:$0xff]  }
 0x17b   : > { %v6232_v5 = vpop.f32.mrf.mxu1  ;;  %v6296_v30 = vpop.f32.mrf.mxu0 }
 0x17c   : > { %v6233_v3 = vadd.f32 %v6232_v5, %v6231_v7  ;;  %v6297_v31 = vadd.f32 %v6296_v30, %v6295_v49 }
 0x17d   : > { %v6234_v10 = vpop.f32.mrf.mxu1  ;;  %v6298_v26 = vpop.f32.mrf.mxu0  ;;  %4402 = vmatmul.mubr.bf16.gmra.mxu0 %v7623_v56  ;;  %4499 = vmatmul.mubr.bf16.gmra.mxu1 %v7626_v57 }
 0x17e   : > { %v8771_v44 = vadd.f32 %v6233_v3, %v3755_v11  ;;  %v8774_v50 = vadd.f32 %v6297_v31, %v8581_v62  ;;  %4409 = vmatprep.mubr.bf16.mxu0 %v7635_v36  ;;  %4506 = vmatprep.mubr.bf16.mxu1 %v7638_v52  ;;  %v7641_v62 = vld [vmem:[%s8015_s10 + $0x56c] ss:$84 sps:$4 sm:$0xff]   ;;  %v7639_v11 = vld [vmem:[%s8015_s10 + $0x568] ss:$84 sps:$4 sm:$0xff]   ;;  %v7642_v3 = vld [vmem:[%s8015_s10 + $0x30] ss:$84 sps:$4 sm:$0xff]  }
 0x17f   : > { %v6235_v2 = vpop.f32.mrf.mxu1  ;;  %v6299_v17 = vpop.f32.mrf.mxu0 }
 0x180   : > { %v6236_v6 = vadd.f32 %v6235_v2, %v6234_v10  ;;  %v6300_v33 = vadd.f32 %v6299_v17, %v6298_v26  ;;  %v7651_v26 = vld [vmem:[%s8015_s10 + $0x614] ss:$84 sps:$4 sm:$0xff]  }
 0x181   : > { %v6237_v22 = vpop.f32.mrf.mxu1  ;;  %v6301_v32 = vpop.f32.mrf.mxu0 }
 0x182   : > { %v8780_v15 = vadd.f32 %v6236_v6, %v3760_v39  ;;  %v8783_v40 = vadd.f32 %v6300_v33, %v8589_v18  ;;  %v7654_v39 = vld [vmem:[%s8015_s10 + $0xdc] ss:$84 sps:$4 sm:$0xff]   ;;  %v3771_v6 = vadd.f32 %v8707_v12, %v8438_v9 }
 0x183   : > { %v6238_v43 = vpop.f32.mrf.mxu1  ;;  %v6302_v14 = vpop.f32.mrf.mxu0  ;;  %v7664_v9 = vld [vmem:[%s9896_s1 + $0x430] sm:$0xff]  }
 0x184   : > { %v6239_v28 = vadd.f32 %v6238_v43, %v6237_v22  ;;  %v6303_v47 = vadd.f32 %v6302_v14, %v6301_v32 }
 0x185   : > { %v6240_v48 = vpop.f32.mrf.mxu1  ;;  %v6304_v7 = vpop.f32.mrf.mxu0  ;;  %4410 = vmatmul.mubr.bf16.gmra.mxu0 %v7633_v46  ;;  %4507 = vmatmul.mubr.bf16.gmra.mxu1 %v7636_v58 }
 0x186   : > { %v8789_v49 = vadd.f32 %v6239_v28, %v3763_v23  ;;  %v8792_v18 = vadd.f32 %v6303_v47, %v8597_v35  ;;  %4514 = vmatprep.mubr.bf16.mxu1 %v7641_v62  ;;  %4611 = vmatprep.mubr.bf16.mxu0 %v7644_v41  ;;  %v7648_v35 = vld [vmem:[%s9896_s1 + $0x438] sm:$0xff]   ;;  %v7679_v41 = vld [vmem:[%s9896_s1 + $0x468] sm:$0xff]   ;;  %v7649_v28 = vld [vmem:[%s8015_s10 + $0x610] ss:$84 sps:$4 sm:$0xff]  }
 0x187   : > { %v6241_v56 = vpop.f32.mrf.mxu1  ;;  %v6305_v57 = vpop.f32.mrf.mxu0  ;;  %v7652_v47 = vld [vmem:[%s8015_s10 + $0xd8] ss:$84 sps:$4 sm:$0xff]  }
 0x188   : > { %v6242_v36 = vadd.f32 %v6241_v56, %v6240_v48  ;;  %v6306_v52 = vadd.f32 %v6305_v57, %v6304_v7  ;;  %v7657_v56 = vld [vmem:[%s8015_s10 + $0x6bc] ss:$84 sps:$4 sm:$0xff]   ;;  %v7660_v57 = vld [vmem:[%s8015_s10 + $0x184] ss:$84 sps:$4 sm:$0xff]  }
 0x189   : > { %v6243_v5 = vpop.f32.mrf.mxu1  ;;  %v6307_v30 = vpop.f32.mrf.mxu0 }
 0x18a   : > { %v8798_v31 = vadd.f32 %v6242_v36, %v3768_v55  ;;  %v8801_v10 = vadd.f32 %v6306_v52, %v8605_v53  ;;  %v7680_v52 = vld [vmem:[%s9896_s1 + $0x428] sm:$0xff]  }
 0x18b   : > { %v6244_v2 = vpop.f32.mrf.mxu1  ;;  %v6308_v17 = vpop.f32.mrf.mxu0 }
 0x18c   : > { %v6245_v33 = vadd.f32 %v6244_v2, %v6243_v5  ;;  %v6309_v22 = vadd.f32 %v6308_v17, %v6307_v30  ;;  %v7696_v17 = vld [vmem:[%s9896_s1 + $0x420] sm:$0xff]  }
 0x18d   : > { %v6310_v32 = vpop.f32.mrf.mxu0  ;;  %v6374_v53 = vpop.f32.mrf.mxu1  ;;  %4515 = vmatmul.mubr.bf16.gmra.mxu1 %v7639_v11  ;;  %4612 = vmatmul.mubr.bf16.vlgmr.msra.gmra.mxu0 %v7642_v3 }
 0x18e   : > { %v8813_v46 = vadd.f32 %v6245_v33, %v3771_v6  ;;  %v8816_v58 = vadd.f32 %v6309_v22, %v8619_v38  ;;  %6919 = vmatpush3.bf16.msra.mxu0 %v7648_v35  ;;  %4522 = vmatprep.mubr.bf16.mxu1 %v7651_v26  ;;  %v7655_v33 = vld [vmem:[%s8015_s10 + $0x6b8] ss:$84 sps:$4 sm:$0xff]   ;;  %v7658_v22 = vld [vmem:[%s8015_s10 + $0x180] ss:$84 sps:$4 sm:$0xff]  }
 0x18f   : > { %v6311_v12 = vpop.f32.mrf.mxu0  ;;  %v6375_v62 = vpop.f32.mrf.mxu1  ;;  %4619 = vmatprep.mubr.bf16.mxu0 %v7654_v39  ;;  %6920 = vmatprep.subr.bf16.mxu0 %v7663_v63 }
 0x190   : > { %v6312_v43 = vadd.f32 %v6311_v12, %v6310_v32  ;;  %v6376_v14 = vadd.f32 %v6375_v62, %v6374_v53  ;;  %v7670_v12 = vld [vmem:[%s8015_s10 + $0x22c] ss:$84 sps:$4 sm:$0xff]  }
 0x191   : > { %v6313_v38 = vpop.f32.mrf.mxu0  ;;  %v6377_v23 = vpop.f32.mrf.mxu1 }
 0x192   : > { %v8827_v48 = vadd.f32 %v6312_v43, %v8631_v19  ;;  %v8830_v7 = vadd.f32 %v6376_v14, %v8634_v24  ;;  %6921 = vmatpush3.bf16.msra.mxu0 %v7664_v9  ;;  %v7695_v19 = vld [vmem:[%s9896_s1 + $0x460] sm:$0xff]   ;;  %v7712_v43 = vld [vmem:[%s9896_s1 + $0x418] sm:$0xff]  }
 0x193   : > { %v6314_v55 = vpop.f32.mrf.mxu0  ;;  %v6378_v36 = vpop.f32.mrf.mxu1  ;;  %6922 = vmatprep.subr.bf16.mxu0 %v7679_v41  ;;  %v7667_v9 = vld [vmem:[%s8015_s10 + $0x764] ss:$84 sps:$4 sm:$0xff]  }
 0x194   : > { %v6315_v5 = vadd.f32 %v6314_v55, %v6313_v38  ;;  %v6379_v30 = vadd.f32 %v6378_v36, %v6377_v23  ;;  %v7728_v55 = vld [vmem:[%s9896_s1 + $0x410] sm:$0xff]  }
 0x195   : > { %v6316_v11 = vpop.f32.mrf.mxu0  ;;  %v6380_v3 = vpop.f32.mrf.mxu1  ;;  %4523 = vmatmul.mubr.bf16.gmra.mxu1 %v7649_v28  ;;  %4620 = vmatmul.mubr.bf16.gmra.mxu0 %v7652_v47 }
 0x196   : > { %v8841_v24 = vadd.f32 %v6315_v5, %v8649_v60  ;;  %v8844_v35 = vadd.f32 %v6379_v30, %v8652_v61  ;;  %4530 = vmatprep.mubr.bf16.mxu1 %v7657_v56  ;;  %4627 = vmatprep.mubr.bf16.mxu0 %v7660_v57  ;;  %v7711_v60 = vld [vmem:[%s9896_s1 + $0x458] sm:$0xff]   ;;  %v7665_v30 = vld [vmem:[%s8015_s10 + $0x760] ss:$84 sps:$4 sm:$0xff]  }
 0x197   : > { %v6317_v26 = vpop.f32.mrf.mxu0  ;;  %v6381_v2 = vpop.f32.mrf.mxu1  ;;  %6923 = vmatpush3.bf16.msra.mxu0 %v7680_v52 }
 0x198   : > { %v6318_v39 = vadd.f32 %v6317_v26, %v6316_v11  ;;  %v6382_v63 = vadd.f32 %v6381_v2, %v6380_v3  ;;  %6924 = vmatprep.subr.bf16.mxu0 %v7695_v19  ;;  %v7668_v19 = vld [vmem:[%s8015_s10 + $0x228] ss:$84 sps:$4 sm:$0xff]   ;;  %v7673_v26 = vld [vmem:[%s8015_s10 + $0x80c] ss:$84 sps:$4 sm:$0xff]  }
 0x199   : > { %v6319_v61 = vpop.f32.mrf.mxu0  ;;  %v6383_v6 = vpop.f32.mrf.mxu1  ;;  %v7676_v2 = vld [vmem:[%s8015_s10 + $0x2d4] ss:$84 sps:$4 sm:$0xff]  }
 0x19a   : > { %v8855_v32 = vadd.f32 %v6318_v39, %v8661_v13  ;;  %v8858_v53 = vadd.f32 %v6382_v63, %v8664_v8  ;;  %v7727_v13 = vld [vmem:[%s9896_s1 + $0x450] sm:$0xff]   ;;  %v7744_v63 = vld [vmem:[%s9896_s1 + $0x408] sm:$0xff]  }
 0x19b   : > { %v6320_v62 = vpop.f32.mrf.mxu0  ;;  %v6384_v41 = vpop.f32.mrf.mxu1  ;;  %6925 = vmatpush3.bf16.msra.mxu0 %v7696_v17 }
 0x19c   : > { %v6321_v14 = vadd.f32 %v6320_v62, %v6319_v61  ;;  %v6385_v38 = vadd.f32 %v6384_v41, %v6383_v6  ;;  %6926 = vmatprep.subr.bf16.mxu0 %v7711_v60  ;;  %v7760_v62 = vld [vmem:[%s9896_s1 + $0x400] sm:$0xff]  }
 0x19d   : > { %v6322_v23 = vpop.f32.mrf.mxu0  ;;  %v6386_v28 = vpop.f32.mrf.mxu1  ;;  %4531 = vmatmul.mubr.bf16.gmra.mxu1 %v7655_v33  ;;  %4628 = vmatmul.mubr.bf16.gmra.mxu0 %v7658_v22 }
 0x19e   : > { %v8869_v8 = vadd.f32 %v6321_v14, %v8676_v42  ;;  %v8872_v47 = vadd.f32 %v6385_v38, %v8679_v54  ;;  %4538 = vmatprep.mubr.bf16.mxu1 %v7667_v9  ;;  %4635 = vmatprep.mubr.bf16.mxu0 %v7670_v12  ;;  %v7743_v42 = vld [vmem:[%s9896_s1 + $0x448] sm:$0xff]  }
 0x19f   : > { %v6323_v56 = vpop.f32.mrf.mxu0  ;;  %v6387_v57 = vpop.f32.mrf.mxu1  ;;  %6927 = vmatpush3.bf16.msra.mxu0 %v7712_v43  ;;  %v7671_v38 = vld [vmem:[%s8015_s10 + $0x808] ss:$84 sps:$4 sm:$0xff]  }
 0x1a0   : > { %v6324_v36 = vadd.f32 %v6323_v56, %v6322_v23  ;;  %v6388_v52 = vadd.f32 %v6387_v57, %v6386_v28  ;;  %6928 = vmatprep.subr.bf16.mxu0 %v7727_v13  ;;  %v7674_v13 = vld [vmem:[%s8015_s10 + $0x2d0] ss:$84 sps:$4 sm:$0xff]   ;;  %v7683_v56 = vld [vmem:[%s8015_s10 + $0x8b4] ss:$84 sps:$4 sm:$0xff]  }
 0x1a1   : > { %v6325_v54 = vpop.f32.mrf.mxu0  ;;  %v6389_v5 = vpop.f32.mrf.mxu1  ;;  %v7686_v57 = vld [vmem:[%s8015_s10 + $0x37c] ss:$84 sps:$4 sm:$0xff]  }
 0x1a2   : > { %v8883_v11 = vadd.f32 %v6324_v36, %v8691_v1  ;;  %v8886_v3 = vadd.f32 %v6388_v52, %v8694_v51  ;;  %v7759_v1 = vld [vmem:[%s9896_s1 + $0x440] sm:$0xff]  }
 0x1a3   : > { %v6326_v17 = vpop.f32.mrf.mxu0  ;;  %v6390_v39 = vpop.f32.mrf.mxu1  ;;  %6929 = vmatpush3.bf16.msra.mxu0 %v7728_v55 }
 0x1a4   : > { %v6327_v60 = vadd.f32 %v6326_v17, %v6325_v54  ;;  %v6391_v61 = vadd.f32 %v6390_v39, %v6389_v5  ;;  %6930 = vmatprep.subr.bf16.mxu0 %v7743_v42 }
 0x1a5   : > { %v6328_v6 = vpop.f32.mrf.mxu0  ;;  %v6392_v33 = vpop.f32.mrf.mxu1  ;;  %4539 = vmatmul.mubr.bf16.gmra.mxu1 %v7665_v30  ;;  %4636 = vmatmul.mubr.bf16.gmra.mxu0 %v7668_v19 }
 0x1a6   : > { %v8897_v51 = vadd.f32 %v6327_v60, %v8714_v27  ;;  %v8900_v22 = vadd.f32 %v6391_v61, %v8717_v29  ;;  %4546 = vmatprep.mubr.bf16.mxu1 %v7673_v26  ;;  %4643 = vmatprep.mubr.bf16.mxu0 %v7676_v2  ;;  %v8908_v27 = vld [vmem:[%s9896_s1 + $0x538] sm:$0xff]  }
 0x1a7   : > { %v6329_v9 = vpop.f32.mrf.mxu0  ;;  %v6393_v12 = vpop.f32.mrf.mxu1  ;;  %6931 = vmatpush3.bf16.msra.mxu0 %v7744_v63  ;;  %v7681_v63 = vld [vmem:[%s8015_s10 + $0x8b0] ss:$84 sps:$4 sm:$0xff]   ;;  %v7684_v60 = vld [vmem:[%s8015_s10 + $0x378] ss:$84 sps:$4 sm:$0xff]  }
 0x1a8   : > { %v6330_v41 = vadd.f32 %v6329_v9, %v6328_v6  ;;  %v6394_v43 = vadd.f32 %v6393_v12, %v6392_v33  ;;  %6932 = vmatprep.subr.bf16.mxu0 %v7759_v1  ;;  %v7692_v6 = vld [vmem:[%s8015_s10 + $0x424] ss:$84 sps:$4 sm:$0xff]  }
 0x1a9   : > { %v6331_v29 = vpop.f32.mrf.mxu0  ;;  %v6395_v14 = vpop.f32.mrf.mxu1 }
 0x1aa   : > { %v8913_v23 = vadd.f32 %v6330_v41, %v8726_v16  ;;  %v8916_v28 = vadd.f32 %v6394_v43, %v8729_v45 }
 0x1ab   : > { %v6332_v55 = vpop.f32.mrf.mxu0  ;;  %v6396_v36 = vpop.f32.mrf.mxu1  ;;  %6933 = vmatpush3.bf16.msra.mxu0 %v7760_v62 }
 0x1ac   : > { %v6333_v52 = vadd.f32 %v6332_v55, %v6331_v29  ;;  %v6397_v42 = vadd.f32 %v6396_v36, %v6395_v14  ;;  %7166 = vmatprep.subr.bf16.mxu0 %v8908_v27  ;;  %v7690_v55 = vld [vmem:[%s8015_s10 + $0x420] ss:$84 sps:$4 sm:$0xff]  }
 0x1ad   : > { %v6334_v54 = vpop.f32.mrf.mxu0  ;;  %v6398_v5 = vpop.f32.mrf.mxu1  ;;  %4547 = vmatmul.mubr.bf16.gmra.mxu1 %v7671_v38  ;;  %4644 = vmatmul.mubr.bf16.gmra.mxu0 %v7674_v13 }
 0x1ae   : > { %v8922_v16 = vadd.f32 %v6333_v52, %v8735_v59  ;;  %v8925_v45 = vadd.f32 %v6397_v42, %v8738_v4  ;;  %4554 = vmatprep.mubr.bf16.mxu1 %v7683_v56  ;;  %4651 = vmatprep.mubr.bf16.mxu0 %v7686_v57  ;;  %v7689_v59 = vld [vmem:[%s8015_s10 + $0x95c] ss:$84 sps:$4 sm:$0xff]   ;;  %v7687_v57 = vld [vmem:[%s8015_s10 + $0x958] ss:$84 sps:$4 sm:$0xff]  }
 0x1af   : > { %v6335_v30 = vpop.f32.mrf.mxu0  ;;  %v6399_v19 = vpop.f32.mrf.mxu1  ;;  %v7702_v42 = vld [vmem:[%s8015_s10 + $0x4cc] ss:$84 sps:$4 sm:$0xff]  }
 0x1b0   : > { %v6336_v26 = vadd.f32 %v6335_v30, %v6334_v54  ;;  %v6400_v2 = vadd.f32 %v6399_v19, %v6398_v5 }
 0x1b1   : > { %v6337_v17 = vpop.f32.mrf.mxu0  ;;  %v6401_v39 = vpop.f32.mrf.mxu1 }
 0x1b2   : > { %v8930_v61 = vadd.f32 %v6336_v26, %v8744_v20  ;;  %v8933_v1 = vadd.f32 %v6400_v2, %v8747_v25 }
 0x1b3   : > { %v6338_v4 = vpop.f32.mrf.mxu0  ;;  %v6402_v33 = vpop.f32.mrf.mxu1 }
 0x1b4   : > { %v6339_v9 = vadd.f32 %v6338_v4, %v6337_v17  ;;  %v6403_v12 = vadd.f32 %v6402_v33, %v6401_v39  ;;  %v7700_v4 = vld [vmem:[%s8015_s10 + $0x4c8] ss:$84 sps:$4 sm:$0xff]  }
 0x1b5   : > { %v6340_v62 = vpop.f32.mrf.mxu0  ;;  %v6404_v41 = vpop.f32.mrf.mxu1  ;;  %4555 = vmatmul.mubr.bf16.gmra.mxu1 %v7681_v63  ;;  %4652 = vmatmul.mubr.bf16.gmra.mxu0 %v7684_v60 }
 0x1b6   : > { %v8938_v20 = vadd.f32 %v6339_v9, %v8753_v0  ;;  %v8941_v25 = vadd.f32 %v6403_v12, %v8756_v21  ;;  %4562 = vmatprep.mubr.bf16.mxu1 %v7689_v59  ;;  %4659 = vmatprep.mubr.bf16.mxu0 %v7692_v6  ;;  %v7699_v0 = vld [vmem:[%s8015_s10 + $0xa04] ss:$84 sps:$4 sm:$0xff]   ;;  %v7697_v6 = vld [vmem:[%s8015_s10 + $0xa00] ss:$84 sps:$4 sm:$0xff]   ;;  %v7708_v12 = vld [vmem:[%s8015_s10 + $0x3c] ss:$84 sps:$4 sm:$0xff]  }
 0x1b7   : > { %v6341_v43 = vpop.f32.mrf.mxu0  ;;  %v6405_v29 = vpop.f32.mrf.mxu1 }
 0x1b8   : > { %v6342_v14 = vadd.f32 %v6341_v43, %v6340_v62  ;;  %v6406_v38 = vadd.f32 %v6405_v29, %v6404_v41 }
 0x1b9   : > { %v6343_v13 = vpop.f32.mrf.mxu0  ;;  %v6407_v56 = vpop.f32.mrf.mxu1 }
 0x1ba   : > { %v8946_v36 = vadd.f32 %v6342_v14, %v8762_v37  ;;  %v8949_v52 = vadd.f32 %v6406_v38, %v8765_v34 }
 0x1bb   : > { %v6344_v21 = vpop.f32.mrf.mxu0  ;;  %v6408_v54 = vpop.f32.mrf.mxu1 }
 0x1bc   : > { %v6345_v5 = vadd.f32 %v6344_v21, %v6343_v13  ;;  %v6409_v30 = vadd.f32 %v6408_v54, %v6407_v56  ;;  %v7706_v21 = vld [vmem:[%s8015_s10 + $0x38] ss:$84 sps:$4 sm:$0xff]  }
 0x1bd   : > { %v6346_v19 = vpop.f32.mrf.mxu0  ;;  %v6410_v26 = vpop.f32.mrf.mxu1  ;;  %4563 = vmatmul.mubr.bf16.gmra.mxu1 %v7687_v57  ;;  %4660 = vmatmul.mubr.bf16.gmra.mxu0 %v7690_v55 }
 0x1be   : > { %v8954_v37 = vadd.f32 %v6345_v5, %v8771_v44  ;;  %v8957_v34 = vadd.f32 %v6409_v30, %v8774_v50  ;;  %4570 = vmatprep.mubr.bf16.mxu1 %v7699_v0  ;;  %4667 = vmatprep.mubr.bf16.mxu0 %v7702_v42  ;;  %v7705_v44 = vld [vmem:[%s8015_s10 + $0x574] ss:$84 sps:$4 sm:$0xff]   ;;  %v7703_v42 = vld [vmem:[%s8015_s10 + $0x570] ss:$84 sps:$4 sm:$0xff]  }
 0x1bf   : > { %v6347_v2 = vpop.f32.mrf.mxu0  ;;  %v6411_v17 = vpop.f32.mrf.mxu1  ;;  %v7715_v5 = vld [vmem:[%s8015_s10 + $0x61c] ss:$84 sps:$4 sm:$0xff]  }
 0x1c0   : > { %v6348_v39 = vadd.f32 %v6347_v2, %v6346_v19  ;;  %v6412_v63 = vadd.f32 %v6411_v17, %v6410_v26  ;;  %v7718_v26 = vld [vmem:[%s8015_s10 + $0xe4] ss:$84 sps:$4 sm:$0xff]   ;;  %v7725_v2 = vld [vmem:[%s9896_s1 + $0x4f0] sm:$0xff]  }
 0x1c1   : > { %v6349_v60 = vpop.f32.mrf.mxu0  ;;  %v6413_v59 = vpop.f32.mrf.mxu1 }
 0x1c2   : > { %v8962_v33 = vadd.f32 %v6348_v39, %v8780_v15  ;;  %v8965_v9 = vadd.f32 %v6412_v63, %v8783_v40 }
 0x1c3   : > { %v6350_v50 = vpop.f32.mrf.mxu0  ;;  %v6414_v62 = vpop.f32.mrf.mxu1 }
 0x1c4   : > { %v6351_v41 = vadd.f32 %v6350_v50, %v6349_v60  ;;  %v6415_v43 = vadd.f32 %v6414_v62, %v6413_v59  ;;  %v7726_v59 = vld [vmem:[%s9896_s1 + $0x4b0] sm:$0xff]   ;;  %v7713_v62 = vld [vmem:[%s8015_s10 + $0x618] ss:$84 sps:$4 sm:$0xff]  }
 0x1c5   : > { %v6352_v29 = vpop.f32.mrf.mxu0  ;;  %v6416_v14 = vpop.f32.mrf.mxu1  ;;  %4571 = vmatmul.mubr.bf16.gmra.mxu1 %v7697_v6  ;;  %4668 = vmatmul.mubr.bf16.gmra.mxu0 %v7700_v4 }
 0x1c6   : > { %v8970_v38 = vadd.f32 %v6351_v41, %v8789_v49  ;;  %v8973_v15 = vadd.f32 %v6415_v43, %v8792_v18  ;;  %4675 = vmatprep.mubr.bf16.mxu0 %v7705_v44  ;;  %4772 = vmatprep.mubr.bf16.mxu1 %v7708_v12  ;;  %v7710_v18 = vld [vmem:[%s9896_s1 + $0x4b8] sm:$0xff]   ;;  %v7716_v41 = vld [vmem:[%s8015_s10 + $0xe0] ss:$84 sps:$4 sm:$0xff]  }
 0x1c7   : > { %v6353_v40 = vpop.f32.mrf.mxu0  ;;  %v6417_v13 = vpop.f32.mrf.mxu1 }
 0x1c8   : > { %v6354_v56 = vadd.f32 %v6353_v40, %v6352_v29  ;;  %v6418_v57 = vadd.f32 %v6417_v13, %v6416_v14  ;;  %v7721_v14 = vld [vmem:[%s8015_s10 + $0x6c4] ss:$84 sps:$4 sm:$0xff]   ;;  %v7724_v40 = vld [vmem:[%s8015_s10 + $0x18c] ss:$84 sps:$4 sm:$0xff]  }
 0x1c9   : > { %v6355_v55 = vpop.f32.mrf.mxu0  ;;  %v6419_v0 = vpop.f32.mrf.mxu1 }
 0x1ca   : > { %v8978_v54 = vadd.f32 %v6354_v56, %v8798_v31  ;;  %v8981_v49 = vadd.f32 %v6418_v57, %v8801_v10  ;;  %v7742_v57 = vld [vmem:[%s9896_s1 + $0x4a8] sm:$0xff]  }
 0x1cb   : > { %v6356_v30 = vpop.f32.mrf.mxu0  ;;  %v6420_v19 = vpop.f32.mrf.mxu1 }
 0x1cc   : > { %v6357_v17 = vadd.f32 %v6356_v30, %v6355_v55  ;;  %v6421_v39 = vadd.f32 %v6420_v19, %v6419_v0  ;;  %v7758_v19 = vld [vmem:[%s9896_s1 + $0x4a0] sm:$0xff]  }
 0x1cd   : > { %v6422_v63 = vpop.f32.mrf.mxu1  ;;  %v6486_v31 = vpop.f32.mrf.mxu0  ;;  %4676 = vmatmul.mubr.bf16.gmra.mxu0 %v7703_v42  ;;  %4773 = vmatmul.mubr.bf16.vlgmr.msra.gmra.mxu1 %v7706_v21 }
 0x1ce   : > { %v8992_v10 = vadd.f32 %v6357_v17, %v8813_v46  ;;  %v8995_v60 = vadd.f32 %v6421_v39, %v8816_v58  ;;  %7031 = vmatpush3.bf16.msra.mxu1 %v7710_v18  ;;  %4683 = vmatprep.mubr.bf16.mxu0 %v7715_v5  ;;  %v7741_v46 = vld [vmem:[%s9896_s1 + $0x4e8] sm:$0xff]   ;;  %v7719_v39 = vld [vmem:[%s8015_s10 + $0x6c0] ss:$84 sps:$4 sm:$0xff]  }
 0x1cf   : > { %v6423_v6 = vpop.f32.mrf.mxu1  ;;  %v6487_v4 = vpop.f32.mrf.mxu0  ;;  %4780 = vmatprep.mubr.bf16.mxu1 %v7718_v26  ;;  %7032 = vmatprep.subr.bf16.mxu1 %v7725_v2 }
 0x1d0   : > { %v6424_v44 = vadd.f32 %v6423_v6, %v6422_v63  ;;  %v6488_v12 = vadd.f32 %v6487_v4, %v6486_v31  ;;  %v7722_v63 = vld [vmem:[%s8015_s10 + $0x188] ss:$84 sps:$4 sm:$0xff]   ;;  %v7731_v6 = vld [vmem:[%s8015_s10 + $0x76c] ss:$84 sps:$4 sm:$0xff]  }
 0x1d1   : > { %v6425_v58 = vpop.f32.mrf.mxu1  ;;  %v6489_v50 = vpop.f32.mrf.mxu0  ;;  %v7734_v4 = vld [vmem:[%s8015_s10 + $0x234] ss:$84 sps:$4 sm:$0xff]  }
 0x1d2   : > { %v9006_v43 = vadd.f32 %v6424_v44, %v8827_v48  ;;  %v9009_v29 = vadd.f32 %v6488_v12, %v8830_v7  ;;  %7033 = vmatpush3.bf16.msra.mxu1 %v7726_v59  ;;  %v7757_v48 = vld [vmem:[%s9896_s1 + $0x4e0] sm:$0xff]   ;;  %v7774_v12 = vld [vmem:[%s9896_s1 + $0x498] sm:$0xff]  }
 0x1d3   : > { %v6426_v13 = vpop.f32.mrf.mxu1  ;;  %v6490_v56 = vpop.f32.mrf.mxu0  ;;  %7034 = vmatprep.subr.bf16.mxu1 %v7741_v46 }
 0x1d4   : > { %v6427_v55 = vadd.f32 %v6426_v13, %v6425_v58  ;;  %v6491_v0 = vadd.f32 %v6490_v56, %v6489_v50  ;;  %v7789_v56 = vld [vmem:[%s9896_s1 + $0x490] sm:$0xff]  }
 0x1d5   : > { %v6428_v42 = vpop.f32.mrf.mxu1  ;;  %v6492_v21 = vpop.f32.mrf.mxu0  ;;  %4684 = vmatmul.mubr.bf16.gmra.mxu0 %v7713_v62  ;;  %4781 = vmatmul.mubr.bf16.gmra.mxu1 %v7716_v41 }
 0x1d6   : > { %v9020_v7 = vadd.f32 %v6427_v55, %v8841_v24  ;;  %v9023_v18 = vadd.f32 %v6491_v0, %v8844_v35  ;;  %4691 = vmatprep.mubr.bf16.mxu0 %v7721_v14  ;;  %4788 = vmatprep.mubr.bf16.mxu1 %v7724_v40  ;;  %v7773_v24 = vld [vmem:[%s9896_s1 + $0x4d8] sm:$0xff]  }
 0x1d7   : > { %v6429_v5 = vpop.f32.mrf.mxu1  ;;  %v6493_v30 = vpop.f32.mrf.mxu0  ;;  %7035 = vmatpush3.bf16.msra.mxu1 %v7742_v57 }
 0x1d8   : > { %v6430_v26 = vadd.f32 %v6429_v5, %v6428_v42  ;;  %v6494_v2 = vadd.f32 %v6493_v30, %v6492_v21  ;;  %7036 = vmatprep.subr.bf16.mxu1 %v7757_v48  ;;  %v7729_v48 = vld [vmem:[%s8015_s10 + $0x768] ss:$84 sps:$4 sm:$0xff]   ;;  %v7732_v42 = vld [vmem:[%s8015_s10 + $0x230] ss:$84 sps:$4 sm:$0xff]  }
 0x1d9   : > { %v6431_v35 = vpop.f32.mrf.mxu1  ;;  %v6495_v17 = vpop.f32.mrf.mxu0  ;;  %v7737_v30 = vld [vmem:[%s8015_s10 + $0x814] ss:$84 sps:$4 sm:$0xff]  }
 0x1da   : > { %v9034_v31 = vadd.f32 %v6430_v26, %v8855_v32  ;;  %v9037_v59 = vadd.f32 %v6494_v2, %v8858_v53  ;;  %v7788_v32 = vld [vmem:[%s9896_s1 + $0x4d0] sm:$0xff]  }
 0x1db   : > { %v6432_v46 = vpop.f32.mrf.mxu1  ;;  %v6496_v44 = vpop.f32.mrf.mxu0  ;;  %7037 = vmatpush3.bf16.msra.mxu1 %v7758_v19  ;;  %v7740_v19 = vld [vmem:[%s8015_s10 + $0x2dc] ss:$84 sps:$4 sm:$0xff]  }
 0x1dc   : > { %v6433_v58 = vadd.f32 %v6432_v46, %v6431_v35  ;;  %v6497_v50 = vadd.f32 %v6496_v44, %v6495_v17  ;;  %7038 = vmatprep.subr.bf16.mxu1 %v7773_v24  ;;  %v7804_v24 = vld [vmem:[%s9896_s1 + $0x488] sm:$0xff]   ;;  %v7819_v44 = vld [vmem:[%s9896_s1 + $0x480] sm:$0xff]  }
 0x1dd   : > { %v6434_v62 = vpop.f32.mrf.mxu1  ;;  %v6498_v41 = vpop.f32.mrf.mxu0  ;;  %4692 = vmatmul.mubr.bf16.gmra.mxu0 %v7719_v39  ;;  %4789 = vmatmul.mubr.bf16.gmra.mxu1 %v7722_v63 }
 0x1de   : > { %v9048_v53 = vadd.f32 %v6433_v58, %v8869_v8  ;;  %v9051_v14 = vadd.f32 %v6497_v50, %v8872_v47  ;;  %4699 = vmatprep.mubr.bf16.mxu0 %v7731_v6  ;;  %4796 = vmatprep.mubr.bf16.mxu1 %v7734_v4  ;;  %v7803_v8 = vld [vmem:[%s9896_s1 + $0x4c8] sm:$0xff]  }
 0x1df   : > { %v6435_v40 = vpop.f32.mrf.mxu1  ;;  %v6499_v13 = vpop.f32.mrf.mxu0  ;;  %7039 = vmatpush3.bf16.msra.mxu1 %v7774_v12 }
 0x1e0   : > { %v6436_v57 = vadd.f32 %v6435_v40, %v6434_v62  ;;  %v6500_v55 = vadd.f32 %v6499_v13, %v6498_v41  ;;  %7040 = vmatprep.subr.bf16.mxu1 %v7788_v32  ;;  %v7735_v32 = vld [vmem:[%s8015_s10 + $0x810] ss:$84 sps:$4 sm:$0xff]   ;;  %v7738_v62 = vld [vmem:[%s8015_s10 + $0x2d8] ss:$84 sps:$4 sm:$0xff]  }
 0x1e1   : > { %v6437_v47 = vpop.f32.mrf.mxu1  ;;  %v6501_v0 = vpop.f32.mrf.mxu0  ;;  %v7747_v40 = vld [vmem:[%s8015_s10 + $0x8bc] ss:$84 sps:$4 sm:$0xff]   ;;  %v7750_v13 = vld [vmem:[%s8015_s10 + $0x384] ss:$84 sps:$4 sm:$0xff]  }
 0x1e2   : > { %v9062_v21 = vadd.f32 %v6436_v57, %v8883_v11  ;;  %v9065_v5 = vadd.f32 %v6500_v55, %v8886_v3  ;;  %v7818_v11 = vld [vmem:[%s9896_s1 + $0x4c0] sm:$0xff]  }
 0x1e3   : > { %v6438_v26 = vpop.f32.mrf.mxu1  ;;  %v6502_v2 = vpop.f32.mrf.mxu0  ;;  %7041 = vmatpush3.bf16.msra.mxu1 %v7789_v56 }
 0x1e4   : > { %v6439_v35 = vadd.f32 %v6438_v26, %v6437_v47  ;;  %v6503_v17 = vadd.f32 %v6502_v2, %v6501_v0  ;;  %7042 = vmatprep.subr.bf16.mxu1 %v7803_v8 }
 0x1e5   : > { %v6440_v39 = vpop.f32.mrf.mxu1  ;;  %v6504_v63 = vpop.f32.mrf.mxu0  ;;  %4700 = vmatmul.mubr.bf16.gmra.mxu0 %v7729_v48  ;;  %4797 = vmatmul.mubr.bf16.gmra.mxu1 %v7732_v42 }
 0x1e6   : > { %v9076_v3 = vadd.f32 %v6439_v35, %v8897_v51  ;;  %v9079_v6 = vadd.f32 %v6503_v17, %v8900_v22  ;;  %4707 = vmatprep.mubr.bf16.mxu0 %v7737_v30  ;;  %4804 = vmatprep.mubr.bf16.mxu1 %v7740_v19  ;;  %v7748_v35 = vld [vmem:[%s8015_s10 + $0x380] ss:$84 sps:$4 sm:$0xff]  }
 0x1e7   : > { %v6441_v4 = vpop.f32.mrf.mxu1  ;;  %v6505_v46 = vpop.f32.mrf.mxu0  ;;  %7043 = vmatpush3.bf16.msra.mxu1 %v7804_v24  ;;  %v7745_v24 = vld [vmem:[%s8015_s10 + $0x8b8] ss:$84 sps:$4 sm:$0xff]  }
 0x1e8   : > { %v6442_v12 = vadd.f32 %v6441_v4, %v6440_v39  ;;  %v6506_v58 = vadd.f32 %v6505_v46, %v6504_v63  ;;  %7044 = vmatprep.subr.bf16.mxu1 %v7818_v11  ;;  %v7756_v39 = vld [vmem:[%s8015_s10 + $0x42c] ss:$84 sps:$4 sm:$0xff]  }
 0x1e9   : > { %v6443_v50 = vpop.f32.mrf.mxu1  ;;  %v6507_v51 = vpop.f32.mrf.mxu0 }
 0x1ea   : > { %v9087_v22 = vadd.f32 %v6442_v12, %v8913_v23  ;;  %v9090_v41 = vadd.f32 %v6506_v58, %v8916_v28 }
 0x1eb   : > { %v6444_v56 = vpop.f32.mrf.mxu1  ;;  %v6508_v57 = vpop.f32.mrf.mxu0  ;;  %7045 = vmatpush3.bf16.msra.mxu1 %v7819_v44 }
 0x1ec   : > { %v6445_v55 = vadd.f32 %v6444_v56, %v6443_v50  ;;  %v6509_v8 = vadd.f32 %v6508_v57, %v6507_v51  ;;  %v7754_v56 = vld [vmem:[%s8015_s10 + $0x428] ss:$84 sps:$4 sm:$0xff]  }
 0x1ed   : > { %v6446_v47 = vpop.f32.mrf.mxu1  ;;  %v6510_v0 = vpop.f32.mrf.mxu0  ;;  %4708 = vmatmul.mubr.bf16.gmra.mxu0 %v7735_v32  ;;  %4805 = vmatmul.mubr.bf16.gmra.mxu1 %v7738_v62 }
 0x1ee   : > { %v9095_v23 = vadd.f32 %v6445_v55, %v8922_v16  ;;  %v9098_v28 = vadd.f32 %v6509_v8, %v8925_v45  ;;  %4715 = vmatprep.mubr.bf16.mxu0 %v7747_v40  ;;  %4812 = vmatprep.mubr.bf16.mxu1 %v7750_v13  ;;  %v7753_v16 = vld [vmem:[%s8015_s10 + $0x964] ss:$84 sps:$4 sm:$0xff]   ;;  %v7751_v13 = vld [vmem:[%s8015_s10 + $0x960] ss:$84 sps:$4 sm:$0xff]  }
 0x1ef   : > { %v6447_v48 = vpop.f32.mrf.mxu1  ;;  %v6511_v42 = vpop.f32.mrf.mxu0  ;;  %v7766_v8 = vld [vmem:[%s8015_s10 + $0x4d4] ss:$84 sps:$4 sm:$0xff]  }
 0x1f0   : > { %v6448_v30 = vadd.f32 %v6447_v48, %v6446_v47  ;;  %v6512_v19 = vadd.f32 %v6511_v42, %v6510_v0 }
 0x1f1   : > { %v6449_v26 = vpop.f32.mrf.mxu1  ;;  %v6513_v2 = vpop.f32.mrf.mxu0 }
 0x1f2   : > { %v9103_v17 = vadd.f32 %v6448_v30, %v8930_v61  ;;  %v9106_v11 = vadd.f32 %v6512_v19, %v8933_v1 }
 0x1f3   : > { %v6450_v45 = vpop.f32.mrf.mxu1  ;;  %v6514_v63 = vpop.f32.mrf.mxu0 }
 0x1f4   : > { %v6451_v4 = vadd.f32 %v6450_v45, %v6449_v26  ;;  %v6515_v46 = vadd.f32 %v6514_v63, %v6513_v2  ;;  %v7764_v45 = vld [vmem:[%s8015_s10 + $0x4d0] ss:$84 sps:$4 sm:$0xff]  }
 0x1f5   : > { %v6452_v44 = vpop.f32.mrf.mxu1  ;;  %v6516_v12 = vpop.f32.mrf.mxu0  ;;  %4716 = vmatmul.mubr.bf16.gmra.mxu0 %v7745_v24  ;;  %4813 = vmatmul.mubr.bf16.gmra.mxu1 %v7748_v35 }
 0x1f6   : > { %v9111_v61 = vadd.f32 %v6451_v4, %v8938_v20  ;;  %v9114_v1 = vadd.f32 %v6515_v46, %v8941_v25  ;;  %4723 = vmatprep.mubr.bf16.mxu0 %v7753_v16  ;;  %4820 = vmatprep.mubr.bf16.mxu1 %v7756_v39  ;;  %v7763_v20 = vld [vmem:[%s8015_s10 + $0xa0c] ss:$84 sps:$4 sm:$0xff]   ;;  %v7761_v39 = vld [vmem:[%s8015_s10 + $0xa08] ss:$84 sps:$4 sm:$0xff]   ;;  %v7772_v46 = vld [vmem:[%s8015_s10 + $0x44] ss:$84 sps:$4 sm:$0xff]  }
 0x1f7   : > { %v6453_v58 = vpop.f32.mrf.mxu1  ;;  %v6517_v50 = vpop.f32.mrf.mxu0 }
 0x1f8   : > { %v6454_v51 = vadd.f32 %v6453_v58, %v6452_v44  ;;  %v6518_v32 = vadd.f32 %v6517_v50, %v6516_v12 }
 0x1f9   : > { %v6455_v62 = vpop.f32.mrf.mxu1  ;;  %v6519_v40 = vpop.f32.mrf.mxu0 }
 0x1fa   : > { %v9119_v57 = vadd.f32 %v6454_v51, %v8946_v36  ;;  %v9122_v55 = vadd.f32 %v6518_v32, %v8949_v52 }
 0x1fb   : > { %v6456_v25 = vpop.f32.mrf.mxu1  ;;  %v6520_v47 = vpop.f32.mrf.mxu0 }
 0x1fc   : > { %v6457_v0 = vadd.f32 %v6456_v25, %v6455_v62  ;;  %v6521_v48 = vadd.f32 %v6520_v47, %v6519_v40  ;;  %v7770_v25 = vld [vmem:[%s8015_s10 + $0x40] ss:$84 sps:$4 sm:$0xff]  }
 0x1fd   : > { %v6458_v42 = vpop.f32.mrf.mxu1  ;;  %v6522_v30 = vpop.f32.mrf.mxu0  ;;  %4724 = vmatmul.mubr.bf16.gmra.mxu0 %v7751_v13  ;;  %4821 = vmatmul.mubr.bf16.gmra.mxu1 %v7754_v56 }
 0x1fe   : > { %v9127_v36 = vadd.f32 %v6457_v0, %v8954_v37  ;;  %v9130_v52 = vadd.f32 %v6521_v48, %v8957_v34  ;;  %4731 = vmatprep.mubr.bf16.mxu0 %v7763_v20  ;;  %4828 = vmatprep.mubr.bf16.mxu1 %v7766_v8  ;;  %v7769_v37 = vld [vmem:[%s8015_s10 + $0x57c] ss:$84 sps:$4 sm:$0xff]   ;;  %v7767_v8 = vld [vmem:[%s8015_s10 + $0x578] ss:$84 sps:$4 sm:$0xff]  }
 0x1ff   : > { %v6459_v19 = vpop.f32.mrf.mxu1  ;;  %v6523_v26 = vpop.f32.mrf.mxu0  ;;  %v7778_v0 = vld [vmem:[%s8015_s10 + $0x624] ss:$84 sps:$4 sm:$0xff]  }
 0x200   : > { %v6460_v2 = vadd.f32 %v6459_v19, %v6458_v42  ;;  %v6524_v24 = vadd.f32 %v6523_v26, %v6522_v30  ;;  %v7781_v42 = vld [vmem:[%s8015_s10 + $0xec] ss:$84 sps:$4 sm:$0xff]   ;;  %v7790_v30 = vld [vmem:[%s9896_s1 + $0x530] sm:$0xff]  }
 0x201   : > { %v6461_v35 = vpop.f32.mrf.mxu1  ;;  %v6525_v16 = vpop.f32.mrf.mxu0 }
 0x202   : > { %v9135_v63 = vadd.f32 %v6460_v2, %v8962_v33  ;;  %v9138_v4 = vadd.f32 %v6524_v24, %v8965_v9 }
 0x203   : > { %v6462_v34 = vpop.f32.mrf.mxu1  ;;  %v6526_v44 = vpop.f32.mrf.mxu0 }
 0x204   : > { %v6463_v12 = vadd.f32 %v6462_v34, %v6461_v35  ;;  %v6527_v58 = vadd.f32 %v6526_v44, %v6525_v16  ;;  %v7776_v34 = vld [vmem:[%s8015_s10 + $0x620] ss:$84 sps:$4 sm:$0xff]  }
 0x205   : > { %v6464_v50 = vpop.f32.mrf.mxu1  ;;  %v6528_v51 = vpop.f32.mrf.mxu0  ;;  %4732 = vmatmul.mubr.bf16.gmra.mxu0 %v7761_v39  ;;  %4829 = vmatmul.mubr.bf16.gmra.mxu1 %v7764_v45  ;;  %v7805_v39 = vld [vmem:[%s9896_s1 + $0x528] sm:$0xff]  }
 0x206   : > { %v9143_v32 = vadd.f32 %v6463_v12, %v8970_v38  ;;  %v9146_v33 = vadd.f32 %v6527_v58, %v8973_v15  ;;  %4836 = vmatprep.mubr.bf16.mxu1 %v7769_v37  ;;  %4933 = vmatprep.mubr.bf16.mxu0 %v7772_v46  ;;  %v7784_v12 = vld [vmem:[%s8015_s10 + $0x6cc] ss:$84 sps:$4 sm:$0xff]   ;;  %v7787_v58 = vld [vmem:[%s8015_s10 + $0x194] ss:$84 sps:$4 sm:$0xff]  }
 0x207   : > { %v6465_v9 = vpop.f32.mrf.mxu1  ;;  %v6529_v62 = vpop.f32.mrf.mxu0 }
 0x208   : > { %v6466_v40 = vadd.f32 %v6465_v9, %v6464_v50  ;;  %v6530_v13 = vadd.f32 %v6529_v62, %v6528_v51 }
 0x209   : > { %v6467_v56 = vpop.f32.mrf.mxu1  ;;  %v6531_v20 = vpop.f32.mrf.mxu0 }
 0x20a   : > { %v9151_v47 = vadd.f32 %v6466_v40, %v8978_v54  ;;  %v9154_v38 = vadd.f32 %v6530_v13, %v8981_v49  ;;  %v7820_v40 = vld [vmem:[%s9896_s1 + $0x520] sm:$0xff]  }
 0x20b   : > { %v6468_v15 = vpop.f32.mrf.mxu1  ;;  %v6532_v48 = vpop.f32.mrf.mxu0 }
 0x20c   : > { %v6469_v19 = vadd.f32 %v6468_v15, %v6467_v56  ;;  %v6533_v26 = vadd.f32 %v6532_v48, %v6531_v20  ;;  %v7833_v15 = vld [vmem:[%s9896_s1 + $0x518] sm:$0xff]  }
 0x20d   : > { %v6534_v2 = vpop.f32.mrf.mxu0  ;;  %v6598_v24 = vpop.f32.mrf.mxu1  ;;  %4837 = vmatmul.mubr.bf16.gmra.mxu1 %v7767_v8  ;;  %4934 = vmatmul.mubr.bf16.vlgmr.msra.gmra.mxu0 %v7770_v25 }
 0x20e   : > { %v9162_v54 = vadd.f32 %v6469_v19, %v8992_v10  ;;  %v9165_v49 = vadd.f32 %v6533_v26, %v8995_v60  ;;  %7167 = vmatpush3.bf16.msra.mxu0 %v8908_v27  ;;  %4844 = vmatprep.mubr.bf16.mxu1 %v7778_v0  ;;  %v7779_v60 = vld [vmem:[%s8015_s10 + $0xe8] ss:$84 sps:$4 sm:$0xff]  }
 0x20f   : > { %v6535_v35 = vpop.f32.mrf.mxu0  ;;  %v6599_v16 = vpop.f32.mrf.mxu1  ;;  %4941 = vmatprep.mubr.bf16.mxu0 %v7781_v42  ;;  %7168 = vmatprep.subr.bf16.mxu0 %v7790_v30  ;;  %v7782_v42 = vld [vmem:[%s8015_s10 + $0x6c8] ss:$84 sps:$4 sm:$0xff]  }
 0x210   : > { %v6536_v45 = vadd.f32 %v6535_v35, %v6534_v2  ;;  %v6600_v37 = vadd.f32 %v6599_v16, %v6598_v24  ;;  %v7793_v26 = vld [vmem:[%s8015_s10 + $0x774] ss:$84 sps:$4 sm:$0xff]   ;;  %v7796_v2 = vld [vmem:[%s8015_s10 + $0x23c] ss:$84 sps:$4 sm:$0xff]  }
 0x211   : > { %v6537_v10 = vpop.f32.mrf.mxu0  ;;  %v6601_v46 = vpop.f32.mrf.mxu1 }
 0x212   : > { %v9174_v44 = vadd.f32 %v6536_v45, %v9006_v43  ;;  %v9177_v27 = vadd.f32 %v6600_v37, %v9009_v29  ;;  %7169 = vmatpush3.bf16.msra.mxu0 %v7790_v30  ;;  %v7785_v30 = vld [vmem:[%s8015_s10 + $0x190] ss:$84 sps:$4 sm:$0xff]  }
 0x213   : > { %v6538_v50 = vpop.f32.mrf.mxu0  ;;  %v6602_v51 = vpop.f32.mrf.mxu1  ;;  %7170 = vmatprep.subr.bf16.mxu0 %v7805_v39  ;;  %v7846_v45 = vld [vmem:[%s9896_s1 + $0x510] sm:$0xff]  }
 0x214   : > { %v6539_v9 = vadd.f32 %v6538_v50, %v6537_v10  ;;  %v6603_v62 = vadd.f32 %v6602_v51, %v6601_v46  ;;  %v7791_v51 = vld [vmem:[%s8015_s10 + $0x770] ss:$84 sps:$4 sm:$0xff]  }
 0x215   : > { %v6540_v13 = vpop.f32.mrf.mxu0  ;;  %v6604_v56 = vpop.f32.mrf.mxu1  ;;  %4845 = vmatmul.mubr.bf16.gmra.mxu1 %v7776_v34  ;;  %4942 = vmatmul.mubr.bf16.gmra.mxu0 %v7779_v60 }
 0x216   : > { %v9185_v43 = vadd.f32 %v6539_v9, %v9020_v7  ;;  %v9188_v29 = vadd.f32 %v6603_v62, %v9023_v18  ;;  %4852 = vmatprep.mubr.bf16.mxu1 %v7784_v12  ;;  %4949 = vmatprep.mubr.bf16.mxu0 %v7787_v58  ;;  %v7859_v58 = vld [vmem:[%s9896_s1 + $0x508] sm:$0xff]  }
 0x217   : > { %v6541_v20 = vpop.f32.mrf.mxu0  ;;  %v6605_v8 = vpop.f32.mrf.mxu1  ;;  %7171 = vmatpush3.bf16.msra.mxu0 %v7805_v39  ;;  %v7794_v9 = vld [vmem:[%s8015_s10 + $0x238] ss:$84 sps:$4 sm:$0xff]  }
 0x218   : > { %v6542_v25 = vadd.f32 %v6541_v20, %v6540_v13  ;;  %v6606_v0 = vadd.f32 %v6605_v8, %v6604_v56  ;;  %7172 = vmatprep.subr.bf16.mxu0 %v7820_v40  ;;  %v7802_v13 = vld [vmem:[%s8015_s10 + $0x2e4] ss:$84 sps:$4 sm:$0xff]  }
 0x219   : > { %v6543_v48 = vpop.f32.mrf.mxu0  ;;  %v6607_v7 = vpop.f32.mrf.mxu1 }
 0x21a   : > { %v9196_v18 = vadd.f32 %v6542_v25, %v9034_v31  ;;  %v9199_v19 = vadd.f32 %v6606_v0, %v9037_v59  ;;  %v7872_v0 = vld [vmem:[%s9896_s1 + $0x500] sm:$0xff]  }
 0x21b   : > { %v6544_v24 = vpop.f32.mrf.mxu0  ;;  %v6608_v35 = vpop.f32.mrf.mxu1  ;;  %7173 = vmatpush3.bf16.msra.mxu0 %v7820_v40  ;;  %v7799_v40 = vld [vmem:[%s8015_s10 + $0x81c] ss:$84 sps:$4 sm:$0xff]  }
 0x21c   : > { %v6545_v16 = vadd.f32 %v6544_v24, %v6543_v48  ;;  %v6609_v39 = vadd.f32 %v6608_v35, %v6607_v7  ;;  %7174 = vmatprep.subr.bf16.mxu0 %v7833_v15  ;;  %v7797_v35 = vld [vmem:[%s8015_s10 + $0x818] ss:$84 sps:$4 sm:$0xff]  }
 0x21d   : > { %v6546_v37 = vpop.f32.mrf.mxu0  ;;  %v6610_v10 = vpop.f32.mrf.mxu1  ;;  %4853 = vmatmul.mubr.bf16.gmra.mxu1 %v7782_v42  ;;  %4950 = vmatmul.mubr.bf16.gmra.mxu0 %v7785_v30 }
 0x21e   : > { %v9207_v31 = vadd.f32 %v6545_v16, %v9048_v53  ;;  %v9210_v59 = vadd.f32 %v6609_v39, %v9051_v14  ;;  %4860 = vmatprep.mubr.bf16.mxu1 %v7793_v26  ;;  %4957 = vmatprep.mubr.bf16.mxu0 %v7796_v2  ;;  %v7800_v16 = vld [vmem:[%s8015_s10 + $0x2e0] ss:$84 sps:$4 sm:$0xff]  }
 0x21f   : > { %v6547_v46 = vpop.f32.mrf.mxu0  ;;  %v6611_v34 = vpop.f32.mrf.mxu1  ;;  %7175 = vmatpush3.bf16.msra.mxu0 %v7833_v15 }
 0x220   : > { %v6548_v60 = vadd.f32 %v6547_v46, %v6546_v37  ;;  %v6612_v12 = vadd.f32 %v6611_v34, %v6610_v10  ;;  %7176 = vmatprep.subr.bf16.mxu0 %v7846_v45 }
 0x221   : > { %v6549_v50 = vpop.f32.mrf.mxu0  ;;  %v6613_v53 = vpop.f32.mrf.mxu1 }
 0x222   : > { %v9218_v14 = vadd.f32 %v6548_v60, %v9062_v21  ;;  %v9221_v62 = vadd.f32 %v6612_v12, %v9065_v5 }
 0x223   : > { %v6550_v56 = vpop.f32.mrf.mxu0  ;;  %v6614_v20 = vpop.f32.mrf.mxu1  ;;  %7177 = vmatpush3.bf16.msra.mxu0 %v7846_v45  ;;  %v7811_v45 = vld [vmem:[%s8015_s10 + $0x38c] ss:$84 sps:$4 sm:$0xff]  }
 0x224   : > { %v6551_v8 = vadd.f32 %v6550_v56, %v6549_v50  ;;  %v6615_v25 = vadd.f32 %v6614_v20, %v6613_v53  ;;  %7178 = vmatprep.subr.bf16.mxu0 %v7859_v58  ;;  %v7809_v56 = vld [vmem:[%s8015_s10 + $0x388] ss:$84 sps:$4 sm:$0xff]  }
 0x225   : > { %v6552_v15 = vpop.f32.mrf.mxu0  ;;  %v6616_v48 = vpop.f32.mrf.mxu1  ;;  %4861 = vmatmul.mubr.bf16.gmra.mxu1 %v7791_v51  ;;  %4958 = vmatmul.mubr.bf16.gmra.mxu0 %v7794_v9 }
 0x226   : > { %v9229_v21 = vadd.f32 %v6551_v8, %v9076_v3  ;;  %v9232_v5 = vadd.f32 %v6615_v25, %v9079_v6  ;;  %4868 = vmatprep.mubr.bf16.mxu1 %v7799_v40  ;;  %4965 = vmatprep.mubr.bf16.mxu0 %v7802_v13  ;;  %v7808_v6 = vld [vmem:[%s8015_s10 + $0x8c4] ss:$84 sps:$4 sm:$0xff]   ;;  %v7806_v13 = vld [vmem:[%s8015_s10 + $0x8c0] ss:$84 sps:$4 sm:$0xff]  }
 0x227   : > { %v6553_v7 = vpop.f32.mrf.mxu0  ;;  %v6617_v42 = vpop.f32.mrf.mxu1  ;;  %7179 = vmatpush3.bf16.msra.mxu0 %v7859_v58  ;;  %v7817_v25 = vld [vmem:[%s8015_s10 + $0x434] ss:$84 sps:$4 sm:$0xff]  }
 0x228   : > { %v6554_v30 = vadd.f32 %v6553_v7, %v6552_v15  ;;  %v6618_v26 = vadd.f32 %v6617_v42, %v6616_v48  ;;  %7180 = vmatprep.subr.bf16.mxu0 %v7872_v0 }
 0x229   : > { %v6555_v2 = vpop.f32.mrf.mxu0  ;;  %v6619_v24 = vpop.f32.mrf.mxu1 }
 0x22a   : > { %v9237_v3 = vadd.f32 %v6554_v30, %v9087_v22  ;;  %v9240_v39 = vadd.f32 %v6618_v26, %v9090_v41 }
 0x22b   : > { %v6556_v37 = vpop.f32.mrf.mxu0  ;;  %v6620_v10 = vpop.f32.mrf.mxu1  ;;  %7181 = vmatpush3.bf16.msra.mxu0 %v7872_v0 }
 0x22c   : > { %v6557_v46 = vadd.f32 %v6556_v37, %v6555_v2  ;;  %v6621_v34 = vadd.f32 %v6620_v10, %v6619_v24 }
 0x22d   : > { %v6558_v60 = vpop.f32.mrf.mxu0  ;;  %v6622_v12 = vpop.f32.mrf.mxu1  ;;  %4869 = vmatmul.mubr.bf16.gmra.mxu1 %v7797_v35  ;;  %4966 = vmatmul.mubr.bf16.gmra.mxu0 %v7800_v16 }
 0x22e   : > { %v9245_v22 = vadd.f32 %v6557_v46, %v9095_v23  ;;  %v9248_v41 = vadd.f32 %v6621_v34, %v9098_v28  ;;  %4876 = vmatprep.mubr.bf16.mxu1 %v7808_v6  ;;  %4973 = vmatprep.mubr.bf16.mxu0 %v7811_v45  ;;  %v7814_v23 = vld [vmem:[%s8015_s10 + $0x96c] ss:$84 sps:$4 sm:$0xff]   ;;  %v7812_v6 = vld [vmem:[%s8015_s10 + $0x968] ss:$84 sps:$4 sm:$0xff]   ;;  %v7815_v45 = vld [vmem:[%s8015_s10 + $0x430] ss:$84 sps:$4 sm:$0xff]  }
 0x22f   : > { %v6559_v58 = vpop.f32.mrf.mxu0  ;;  %v6623_v50 = vpop.f32.mrf.mxu1  ;;  %v7826_v46 = vld [vmem:[%s8015_s10 + $0x4dc] ss:$84 sps:$4 sm:$0xff]  }
 0x230   : > { %v6560_v53 = vadd.f32 %v6559_v58, %v6558_v60  ;;  %v6624_v51 = vadd.f32 %v6623_v50, %v6622_v12 }
 0x231   : > { %v6561_v9 = vpop.f32.mrf.mxu0  ;;  %v6625_v40 = vpop.f32.mrf.mxu1 }
 0x232   : > { %v9253_v20 = vadd.f32 %v6560_v53, %v9103_v17  ;;  %v9256_v8 = vadd.f32 %v6624_v51, %v9106_v11 }
 0x233   : > { %v6562_v28 = vpop.f32.mrf.mxu0  ;;  %v6626_v0 = vpop.f32.mrf.mxu1 }
 0x234   : > { %v6563_v15 = vadd.f32 %v6562_v28, %v6561_v9  ;;  %v6627_v48 = vadd.f32 %v6626_v0, %v6625_v40 }
 0x235   : > { %v6564_v7 = vpop.f32.mrf.mxu0  ;;  %v6628_v42 = vpop.f32.mrf.mxu1  ;;  %4877 = vmatmul.mubr.bf16.gmra.mxu1 %v7806_v13  ;;  %4974 = vmatmul.mubr.bf16.gmra.mxu0 %v7809_v56 }
 0x236   : > { %v9261_v17 = vadd.f32 %v6563_v15, %v9111_v61  ;;  %v9264_v11 = vadd.f32 %v6627_v48, %v9114_v1  ;;  %4884 = vmatprep.mubr.bf16.mxu1 %v7814_v23  ;;  %4981 = vmatprep.mubr.bf16.mxu0 %v7817_v25  ;;  %v7823_v61 = vld [vmem:[%s8015_s10 + $0xa14] ss:$84 sps:$4 sm:$0xff]   ;;  %v7821_v23 = vld [vmem:[%s8015_s10 + $0xa10] ss:$84 sps:$4 sm:$0xff]   ;;  %v7824_v25 = vld [vmem:[%s8015_s10 + $0x4d8] ss:$84 sps:$4 sm:$0xff]  }
 0x237   : > { %v6565_v30 = vpop.f32.mrf.mxu0  ;;  %v6629_v26 = vpop.f32.mrf.mxu1  ;;  %v7832_v15 = vld [vmem:[%s8015_s10 + $0x4c] ss:$84 sps:$4 sm:$0xff]  }
 0x238   : > { %v6566_v2 = vadd.f32 %v6565_v30, %v6564_v7  ;;  %v6630_v24 = vadd.f32 %v6629_v26, %v6628_v42 }
 0x239   : > { %v6567_v35 = vpop.f32.mrf.mxu0  ;;  %v6631_v16 = vpop.f32.mrf.mxu1 }
 0x23a   : > { %v9269_v37 = vadd.f32 %v6566_v2, %v9119_v57  ;;  %v9272_v10 = vadd.f32 %v6630_v24, %v9122_v55 }
 0x23b   : > { %v6568_v1 = vpop.f32.mrf.mxu0  ;;  %v6632_v34 = vpop.f32.mrf.mxu1 }
 0x23c   : > { %v6569_v60 = vadd.f32 %v6568_v1, %v6567_v35  ;;  %v6633_v12 = vadd.f32 %v6632_v34, %v6631_v16 }
 0x23d   : > { %v6570_v58 = vpop.f32.mrf.mxu0  ;;  %v6634_v50 = vpop.f32.mrf.mxu1  ;;  %4885 = vmatmul.mubr.bf16.gmra.mxu1 %v7812_v6  ;;  %4982 = vmatmul.mubr.bf16.gmra.mxu0 %v7815_v45 }
 0x23e   : > { %v9277_v57 = vadd.f32 %v6569_v60, %v9127_v36  ;;  %v9280_v55 = vadd.f32 %v6633_v12, %v9130_v52  ;;  %4892 = vmatprep.mubr.bf16.mxu1 %v7823_v61  ;;  %4989 = vmatprep.mubr.bf16.mxu0 %v7826_v46  ;;  %v7829_v36 = vld [vmem:[%s8015_s10 + $0x584] ss:$84 sps:$4 sm:$0xff]   ;;  %v7827_v61 = vld [vmem:[%s8015_s10 + $0x580] ss:$84 sps:$4 sm:$0xff]   ;;  %v7830_v46 = vld [vmem:[%s8015_s10 + $0x48] ss:$84 sps:$4 sm:$0xff]  }
 0x23f   : > { %v6571_v53 = vpop.f32.mrf.mxu0  ;;  %v6635_v51 = vpop.f32.mrf.mxu1  ;;  %v7839_v60 = vld [vmem:[%s8015_s10 + $0xf4] ss:$84 sps:$4 sm:$0xff]  }
 0x240   : > { %v6572_v9 = vadd.f32 %v6571_v53, %v6570_v58  ;;  %v6636_v40 = vadd.f32 %v6635_v51, %v6634_v50 }
 0x241   : > { %v6573_v13 = vpop.f32.mrf.mxu0  ;;  %v6637_v56 = vpop.f32.mrf.mxu1 }
 0x242   : > { %v9285_v28 = vadd.f32 %v6572_v9, %v9135_v63  ;;  %v9288_v0 = vadd.f32 %v6636_v40, %v9138_v4 }
 0x243   : > { %v6574_v52 = vpop.f32.mrf.mxu0  ;;  %v6638_v48 = vpop.f32.mrf.mxu1 }
 0x244   : > { %v6575_v7 = vadd.f32 %v6574_v52, %v6573_v13  ;;  %v6639_v42 = vadd.f32 %v6638_v48, %v6637_v56 }
 0x245   : > { %v6576_v30 = vpop.f32.mrf.mxu0  ;;  %v6640_v26 = vpop.f32.mrf.mxu1  ;;  %4893 = vmatmul.mubr.bf16.gmra.mxu1 %v7821_v23  ;;  %4990 = vmatmul.mubr.bf16.gmra.mxu0 %v7824_v25 }
 0x246   : > { %v9293_v63 = vadd.f32 %v6575_v7, %v9143_v32  ;;  %v9296_v4 = vadd.f32 %v6639_v42, %v9146_v33  ;;  %4997 = vmatprep.mubr.bf16.mxu0 %v7829_v36  ;;  %5094 = vmatprep.mubr.bf16.mxu1 %v7832_v15  ;;  %v7836_v32 = vld [vmem:[%s8015_s10 + $0x62c] ss:$84 sps:$4 sm:$0xff]   ;;  %v7834_v36 = vld [vmem:[%s8015_s10 + $0x628] ss:$84 sps:$4 sm:$0xff]   ;;  %v7837_v15 = vld [vmem:[%s8015_s10 + $0xf0] ss:$84 sps:$4 sm:$0xff]  }
 0x247   : > { %v6577_v2 = vpop.f32.mrf.mxu0  ;;  %v6641_v24 = vpop.f32.mrf.mxu1  ;;  %v7845_v7 = vld [vmem:[%s8015_s10 + $0x19c] ss:$84 sps:$4 sm:$0xff]  }
 0x248   : > { %v6578_v35 = vadd.f32 %v6577_v2, %v6576_v30  ;;  %v6642_v16 = vadd.f32 %v6641_v24, %v6640_v26 }
 0x249   : > { %v6579_v6 = vpop.f32.mrf.mxu0  ;;  %v6643_v45 = vpop.f32.mrf.mxu1 }
 0x24a   : > { %v9301_v1 = vadd.f32 %v6578_v35, %v9151_v47  ;;  %v9304_v34 = vadd.f32 %v6642_v16, %v9154_v38 }
 0x24b   : > { %v6580_v33 = vpop.f32.mrf.mxu0  ;;  %v6644_v12 = vpop.f32.mrf.mxu1 }
 0x24c   : > { %v6581_v58 = vadd.f32 %v6580_v33, %v6579_v6  ;;  %v6645_v50 = vadd.f32 %v6644_v12, %v6643_v45 }
 0x24d   : > { %v6646_v53 = vpop.f32.mrf.mxu1  ;;  %v6710_v51 = vpop.f32.mrf.mxu0  ;;  %4998 = vmatmul.mubr.bf16.gmra.mxu0 %v7827_v61  ;;  %5095 = vmatmul.mubr.bf16.vlgmr.msra.gmra.mxu1 %v7830_v46 }
 0x24e   : > { %v9309_v47 = vadd.f32 %v6581_v58, %v9162_v54  ;;  %v9312_v38 = vadd.f32 %v6645_v50, %v9165_v49  ;;  %5005 = vmatprep.mubr.bf16.mxu0 %v7836_v32  ;;  %5102 = vmatprep.mubr.bf16.mxu1 %v7839_v60  ;;  %v7842_v54 = vld [vmem:[%s8015_s10 + $0x6d4] ss:$84 sps:$4 sm:$0xff]   ;;  %v7840_v32 = vld [vmem:[%s8015_s10 + $0x6d0] ss:$84 sps:$4 sm:$0xff]   ;;  %v7843_v60 = vld [vmem:[%s8015_s10 + $0x198] ss:$84 sps:$4 sm:$0xff]  }
 0x24f   : > { %v6647_v9 = vpop.f32.mrf.mxu1  ;;  %v6711_v40 = vpop.f32.mrf.mxu0  ;;  %v7852_v58 = vld [vmem:[%s8015_s10 + $0x244] ss:$84 sps:$4 sm:$0xff]  }
 0x250   : > { %v6648_v13 = vadd.f32 %v6647_v9, %v6646_v53  ;;  %v6712_v56 = vadd.f32 %v6711_v40, %v6710_v51 }
 0x251   : > { %v6649_v23 = vpop.f32.mrf.mxu1  ;;  %v6713_v25 = vpop.f32.mrf.mxu0 }
 0x252   : > { %v9317_v52 = vadd.f32 %v6648_v13, %v9174_v44  ;;  %v9320_v48 = vadd.f32 %v6712_v56, %v9177_v27 }
 0x253   : > { %v6650_v49 = vpop.f32.mrf.mxu1  ;;  %v6714_v42 = vpop.f32.mrf.mxu0 }
 0x254   : > { %v6651_v30 = vadd.f32 %v6650_v49, %v6649_v23  ;;  %v6715_v26 = vadd.f32 %v6714_v42, %v6713_v25 }
 0x255   : > { %v6652_v2 = vpop.f32.mrf.mxu1  ;;  %v6716_v24 = vpop.f32.mrf.mxu0  ;;  %5006 = vmatmul.mubr.bf16.gmra.mxu0 %v7834_v36  ;;  %5103 = vmatmul.mubr.bf16.gmra.mxu1 %v7837_v15 }
 0x256   : > { %v9325_v44 = vadd.f32 %v6651_v30, %v9185_v43  ;;  %v9328_v27 = vadd.f32 %v6715_v26, %v9188_v29  ;;  %5013 = vmatprep.mubr.bf16.mxu0 %v7842_v54  ;;  %5110 = vmatprep.mubr.bf16.mxu1 %v7845_v7  ;;  %v7849_v43 = vld [vmem:[%s8015_s10 + $0x77c] ss:$84 sps:$4 sm:$0xff]   ;;  %v7847_v54 = vld [vmem:[%s8015_s10 + $0x778] ss:$84 sps:$4 sm:$0xff]   ;;  %v7850_v7 = vld [vmem:[%s8015_s10 + $0x240] ss:$84 sps:$4 sm:$0xff]  }
 0x257   : > { %v6653_v35 = vpop.f32.mrf.mxu1  ;;  %v6717_v16 = vpop.f32.mrf.mxu0  ;;  %v7858_v30 = vld [vmem:[%s8015_s10 + $0x2ec] ss:$84 sps:$4 sm:$0xff]  }
 0x258   : > { %v6654_v6 = vadd.f32 %v6653_v35, %v6652_v2  ;;  %v6718_v45 = vadd.f32 %v6717_v16, %v6716_v24 }
 0x259   : > { %v6655_v61 = vpop.f32.mrf.mxu1  ;;  %v6719_v46 = vpop.f32.mrf.mxu0 }
 0x25a   : > { %v9333_v33 = vadd.f32 %v6654_v6, %v9196_v18  ;;  %v9336_v12 = vadd.f32 %v6718_v45, %v9199_v19 }
 0x25b   : > { %v6656_v29 = vpop.f32.mrf.mxu1  ;;  %v6720_v50 = vpop.f32.mrf.mxu0 }
 0x25c   : > { %v6657_v53 = vadd.f32 %v6656_v29, %v6655_v61  ;;  %v6721_v51 = vadd.f32 %v6720_v50, %v6719_v46 }
 0x25d   : > { %v6658_v9 = vpop.f32.mrf.mxu1  ;;  %v6722_v40 = vpop.f32.mrf.mxu0  ;;  %5014 = vmatmul.mubr.bf16.gmra.mxu0 %v7840_v32  ;;  %5111 = vmatmul.mubr.bf16.gmra.mxu1 %v7843_v60 }
 0x25e   : > { %v9341_v18 = vadd.f32 %v6657_v53, %v9207_v31  ;;  %v9344_v19 = vadd.f32 %v6721_v51, %v9210_v59  ;;  %5021 = vmatprep.mubr.bf16.mxu0 %v7849_v43  ;;  %5118 = vmatprep.mubr.bf16.mxu1 %v7852_v58  ;;  %v7855_v31 = vld [vmem:[%s8015_s10 + $0x824] ss:$84 sps:$4 sm:$0xff]   ;;  %v7853_v43 = vld [vmem:[%s8015_s10 + $0x820] ss:$84 sps:$4 sm:$0xff]   ;;  %v7856_v58 = vld [vmem:[%s8015_s10 + $0x2e8] ss:$84 sps:$4 sm:$0xff]  }
 0x25f   : > { %v6659_v13 = vpop.f32.mrf.mxu1  ;;  %v6723_v56 = vpop.f32.mrf.mxu0  ;;  %v7865_v53 = vld [vmem:[%s8015_s10 + $0x394] ss:$84 sps:$4 sm:$0xff]  }
 0x260   : > { %v6660_v23 = vadd.f32 %v6659_v13, %v6658_v9  ;;  %v6724_v25 = vadd.f32 %v6723_v56, %v6722_v40 }
 0x261   : > { %v6661_v36 = vpop.f32.mrf.mxu1  ;;  %v6725_v15 = vpop.f32.mrf.mxu0 }
 0x262   : > { %v9349_v49 = vadd.f32 %v6660_v23, %v9218_v14  ;;  %v9352_v42 = vadd.f32 %v6724_v25, %v9221_v62 }
 0x263   : > { %v6662_v59 = vpop.f32.mrf.mxu1  ;;  %v6726_v26 = vpop.f32.mrf.mxu0 }
 0x264   : > { %v6663_v2 = vadd.f32 %v6662_v59, %v6661_v36  ;;  %v6727_v24 = vadd.f32 %v6726_v26, %v6725_v15 }
 0x265   : > { %v6664_v35 = vpop.f32.mrf.mxu1  ;;  %v6728_v16 = vpop.f32.mrf.mxu0  ;;  %5022 = vmatmul.mubr.bf16.gmra.mxu0 %v7847_v54  ;;  %5119 = vmatmul.mubr.bf16.gmra.mxu1 %v7850_v7 }
 0x266   : > { %v9357_v14 = vadd.f32 %v6663_v2, %v9229_v21  ;;  %v9360_v62 = vadd.f32 %v6727_v24, %v9232_v5  ;;  %5029 = vmatprep.mubr.bf16.mxu0 %v7855_v31  ;;  %5126 = vmatprep.mubr.bf16.mxu1 %v7858_v30  ;;  %v7862_v21 = vld [vmem:[%s8015_s10 + $0x8cc] ss:$84 sps:$4 sm:$0xff]   ;;  %v7860_v31 = vld [vmem:[%s8015_s10 + $0x8c8] ss:$84 sps:$4 sm:$0xff]   ;;  %v7863_v30 = vld [vmem:[%s8015_s10 + $0x390] ss:$84 sps:$4 sm:$0xff]  }
 0x267   : > { %v6665_v6 = vpop.f32.mrf.mxu1  ;;  %v6729_v45 = vpop.f32.mrf.mxu0  ;;  %v7871_v2 = vld [vmem:[%s8015_s10 + $0x43c] ss:$84 sps:$4 sm:$0xff]  }
 0x268   : > { %v6666_v61 = vadd.f32 %v6665_v6, %v6664_v35  ;;  %v6730_v46 = vadd.f32 %v6729_v45, %v6728_v16 }
 0x269   : > { %v6667_v32 = vpop.f32.mrf.mxu1  ;;  %v6731_v60 = vpop.f32.mrf.mxu0 }
 0x26a   : > { %v9365_v29 = vadd.f32 %v6666_v61, %v9237_v3  ;;  %v9368_v50 = vadd.f32 %v6730_v46, %v9240_v39 }
 0x26b   : > { %v6668_v5 = vpop.f32.mrf.mxu1  ;;  %v6732_v51 = vpop.f32.mrf.mxu0 }
 0x26c   : > { %v6669_v9 = vadd.f32 %v6668_v5, %v6667_v32  ;;  %v6733_v40 = vadd.f32 %v6732_v51, %v6731_v60 }
 0x26d   : > { %v6670_v13 = vpop.f32.mrf.mxu1  ;;  %v6734_v56 = vpop.f32.mrf.mxu0  ;;  %5030 = vmatmul.mubr.bf16.gmra.mxu0 %v7853_v43  ;;  %5127 = vmatmul.mubr.bf16.gmra.mxu1 %v7856_v58 }
 0x26e   : > { %v9373_v3 = vadd.f32 %v6669_v9, %v9245_v22  ;;  %v9376_v39 = vadd.f32 %v6733_v40, %v9248_v41  ;;  %5037 = vmatprep.mubr.bf16.mxu0 %v7862_v21  ;;  %5134 = vmatprep.mubr.bf16.mxu1 %v7865_v53  ;;  %v7868_v22 = vld [vmem:[%s8015_s10 + $0x974] ss:$84 sps:$4 sm:$0xff]   ;;  %v7866_v21 = vld [vmem:[%s8015_s10 + $0x970] ss:$84 sps:$4 sm:$0xff]   ;;  %v7869_v53 = vld [vmem:[%s8015_s10 + $0x438] ss:$84 sps:$4 sm:$0xff]  }
 0x26f   : > { %v6671_v23 = vpop.f32.mrf.mxu1  ;;  %v6735_v25 = vpop.f32.mrf.mxu0  ;;  %v7878_v9 = vld [vmem:[%s8015_s10 + $0x4e4] ss:$84 sps:$4 sm:$0xff]  }
 0x270   : > { %v6672_v36 = vadd.f32 %v6671_v23, %v6670_v13  ;;  %v6736_v15 = vadd.f32 %v6735_v25, %v6734_v56 }
 0x271   : > { %v6673_v54 = vpop.f32.mrf.mxu1  ;;  %v6737_v7 = vpop.f32.mrf.mxu0 }
 0x272   : > { %v9381_v59 = vadd.f32 %v6672_v36, %v9253_v20  ;;  %v9384_v26 = vadd.f32 %v6736_v15, %v9256_v8 }
 0x273   : > { %v6674_v41 = vpop.f32.mrf.mxu1  ;;  %v6738_v24 = vpop.f32.mrf.mxu0 }
 0x274   : > { %v6675_v35 = vadd.f32 %v6674_v41, %v6673_v54  ;;  %v6739_v16 = vadd.f32 %v6738_v24, %v6737_v7 }
 0x275   : > { %v6676_v6 = vpop.f32.mrf.mxu1  ;;  %v6740_v45 = vpop.f32.mrf.mxu0  ;;  %5038 = vmatmul.mubr.bf16.gmra.mxu0 %v7860_v31  ;;  %5135 = vmatmul.mubr.bf16.gmra.mxu1 %v7863_v30 }
 0x276   : > { %v9389_v20 = vadd.f32 %v6675_v35, %v9261_v17  ;;  %v9392_v8 = vadd.f32 %v6739_v16, %v9264_v11  ;;  %5045 = vmatprep.mubr.bf16.mxu0 %v7868_v22  ;;  %5142 = vmatprep.mubr.bf16.mxu1 %v7871_v2  ;;  %v7875_v17 = vld [vmem:[%s8015_s10 + $0xa1c] ss:$84 sps:$4 sm:$0xff]   ;;  %v7873_v22 = vld [vmem:[%s8015_s10 + $0xa18] ss:$84 sps:$4 sm:$0xff]   ;;  %v7876_v2 = vld [vmem:[%s8015_s10 + $0x4e0] ss:$84 sps:$4 sm:$0xff]  }
 0x277   : > { %v6677_v61 = vpop.f32.mrf.mxu1  ;;  %v6741_v46 = vpop.f32.mrf.mxu0  ;;  %v7882_v35 = vld [vmem:[%s8015_s10 + $0x50] ss:$84 sps:$4 sm:$0xff]  }
 0x278   : > { %v6678_v32 = vadd.f32 %v6677_v61, %v6676_v6  ;;  %v6742_v60 = vadd.f32 %v6741_v46, %v6740_v45 }
 0x279   : > { %v6679_v43 = vpop.f32.mrf.mxu1  ;;  %v6743_v58 = vpop.f32.mrf.mxu0 }
 0x27a   : > { %v9397_v5 = vadd.f32 %v6678_v32, %v9269_v37  ;;  %v9400_v51 = vadd.f32 %v6742_v60, %v9272_v10 }
 0x27b   : > { %v6680_v11 = vpop.f32.mrf.mxu1  ;;  %v6744_v40 = vpop.f32.mrf.mxu0 }
 0x27c   : > { %v6681_v13 = vadd.f32 %v6680_v11, %v6679_v43  ;;  %v6745_v56 = vadd.f32 %v6744_v40, %v6743_v58 }
 0x27d   : > { %v6682_v23 = vpop.f32.mrf.mxu1  ;;  %v6746_v25 = vpop.f32.mrf.mxu0  ;;  %5046 = vmatmul.mubr.bf16.gmra.mxu0 %v7866_v21  ;;  %5143 = vmatmul.mubr.bf16.gmra.mxu1 %v7869_v53 }
 0x27e   : > { %v9405_v37 = vadd.f32 %v6681_v13, %v9277_v57  ;;  %v9408_v10 = vadd.f32 %v6745_v56, %v9280_v55  ;;  %5053 = vmatprep.mubr.bf16.mxu0 %v7875_v17  ;;  %5150 = vmatprep.mubr.bf16.mxu1 %v7878_v9  ;;  %v7881_v57 = vld [vmem:[%s8015_s10 + $0x58c] ss:$84 sps:$4 sm:$0xff]   ;;  %v7879_v17 = vld [vmem:[%s8015_s10 + $0x588] ss:$84 sps:$4 sm:$0xff]  }
 0x27f   : > { %v6683_v36 = vpop.f32.mrf.mxu1  ;;  %v6747_v15 = vpop.f32.mrf.mxu0  ;;  %v7883_v9 = vld [vmem:[%s8015_s10 + $0xf8] ss:$84 sps:$4 sm:$0xff]   ;;  %v7887_v13 = vld [vmem:[%s8015_s10 + $0x1a0] ss:$84 sps:$4 sm:$0xff]  }
 0x280   : > { %v6684_v54 = vadd.f32 %v6683_v36, %v6682_v23  ;;  %v6748_v7 = vadd.f32 %v6747_v15, %v6746_v25 }
 0x281   : > { %v6685_v31 = vpop.f32.mrf.mxu1  ;;  %v6749_v30 = vpop.f32.mrf.mxu0 }
 0x282   : > { %v9413_v41 = vadd.f32 %v6684_v54, %v9285_v28  ;;  %v9416_v24 = vadd.f32 %v6748_v7, %v9288_v0 }
 0x283   : > { %v6686_v55 = vpop.f32.mrf.mxu1  ;;  %v6750_v16 = vpop.f32.mrf.mxu0 }
 0x284   : > { %v6687_v6 = vadd.f32 %v6686_v55, %v6685_v31  ;;  %v6751_v45 = vadd.f32 %v6750_v16, %v6749_v30 }
 0x285   : > { %v6688_v61 = vpop.f32.mrf.mxu1  ;;  %v6752_v46 = vpop.f32.mrf.mxu0  ;;  %5054 = vmatmul.mubr.bf16.gmra.mxu0 %v7873_v22  ;;  %5151 = vmatmul.mubr.bf16.gmra.mxu1 %v7876_v2 }
 0x286   : > { %v9421_v28 = vadd.f32 %v6687_v6, %v9293_v63  ;;  %v9424_v0 = vadd.f32 %v6751_v45, %v9296_v4  ;;  %5158 = vmatprep.mubr.bf16.mxu1 %v7881_v57  ;;  %7182 = vmatprep.mubr.bf16.mxu0 %v7882_v35  ;;  %v7886_v63 = vld [vmem:[%s8015_s10 + $0x634] ss:$84 sps:$4 sm:$0xff]   ;;  %v7884_v57 = vld [vmem:[%s8015_s10 + $0x630] ss:$84 sps:$4 sm:$0xff]  }
 0x287   : > { %v6689_v32 = vpop.f32.mrf.mxu1  ;;  %v6753_v60 = vpop.f32.mrf.mxu0  ;;  %v7888_v35 = vld [vmem:[%s8015_s10 + $0x248] ss:$84 sps:$4 sm:$0xff]   ;;  %v7892_v6 = vld [vmem:[%s8015_s10 + $0x2f0] ss:$84 sps:$4 sm:$0xff]  }
 0x288   : > { %v6690_v43 = vadd.f32 %v6689_v32, %v6688_v61  ;;  %v6754_v58 = vadd.f32 %v6753_v60, %v6752_v46 }
 0x289   : > { %v6691_v21 = vpop.f32.mrf.mxu1  ;;  %v6755_v53 = vpop.f32.mrf.mxu0 }
 0x28a   : > { %v9429_v11 = vadd.f32 %v6690_v43, %v9301_v1  ;;  %v9432_v40 = vadd.f32 %v6754_v58, %v9304_v34 }
 0x28b   : > { %v6692_v4 = vpop.f32.mrf.mxu1  ;;  %v6756_v56 = vpop.f32.mrf.mxu0 }
 0x28c   : > { %v6693_v23 = vadd.f32 %v6692_v4, %v6691_v21  ;;  %v6757_v25 = vadd.f32 %v6756_v56, %v6755_v53 }
 0x28d   : > { %v6758_v36 = vpop.f32.mrf.mxu0  ;;  %v6822_v15 = vpop.f32.mrf.mxu1  ;;  %5159 = vmatmul.mubr.bf16.gmra.mxu1 %v7879_v17  ;;  %7183 = vmatmul.mubr.bf16.vlgmr.msra.gmra.mxu0 %v7883_v9 }
 0x28e   : > { %v9437_v1 = vadd.f32 %v6693_v23, %v9309_v47  ;;  %v9440_v34 = vadd.f32 %v6757_v25, %v9312_v38  ;;  %5166 = vmatprep.mubr.bf16.mxu1 %v7886_v63  ;;  %7186 = vmatprep.mubr.bf16.mxu0 %v7887_v13  ;;  %v7891_v47 = vld [vmem:[%s8015_s10 + $0x6dc] ss:$84 sps:$4 sm:$0xff]   ;;  %v7889_v63 = vld [vmem:[%s8015_s10 + $0x6d8] ss:$84 sps:$4 sm:$0xff]   ;;  %v7897_v23 = vld [vmem:[%s8015_s10 + $0x440] ss:$84 sps:$4 sm:$0xff]  }
 0x28f   : > { %v6759_v54 = vpop.f32.mrf.mxu0  ;;  %v6823_v7 = vpop.f32.mrf.mxu1  ;;  %v7893_v13 = vld [vmem:[%s8015_s10 + $0x398] ss:$84 sps:$4 sm:$0xff]  }
 0x290   : > { %v6760_v31 = vadd.f32 %v6759_v54, %v6758_v36  ;;  %v6824_v30 = vadd.f32 %v6823_v7, %v6822_v15 }
 0x291   : > { %v6761_v22 = vpop.f32.mrf.mxu0  ;;  %v6825_v2 = vpop.f32.mrf.mxu1 }
 0x292   : > { %v9445_v55 = vadd.f32 %v6760_v31, %v9317_v52  ;;  %v9448_v16 = vadd.f32 %v6824_v30, %v9320_v48 }
 0x293   : > { %v6762_v38 = vpop.f32.mrf.mxu0  ;;  %v6826_v45 = vpop.f32.mrf.mxu1 }
 0x294   : > { %v6763_v61 = vadd.f32 %v6762_v38, %v6761_v22  ;;  %v6827_v46 = vadd.f32 %v6826_v45, %v6825_v2 }
 0x295   : > { %v6764_v32 = vpop.f32.mrf.mxu0  ;;  %v6828_v60 = vpop.f32.mrf.mxu1  ;;  %5167 = vmatmul.mubr.bf16.gmra.mxu1 %v7884_v57  ;;  %7187 = vmatmul.mubr.bf16.gmra.mxu0 %v7888_v35 }
 0x296   : > { %v9453_v52 = vadd.f32 %v6763_v61, %v9325_v44  ;;  %v9456_v48 = vadd.f32 %v6827_v46, %v9328_v27  ;;  %5174 = vmatprep.mubr.bf16.mxu1 %v7891_v47  ;;  %7190 = vmatprep.mubr.bf16.mxu0 %v7892_v6  ;;  %v7896_v44 = vld [vmem:[%s8015_s10 + $0x784] ss:$84 sps:$4 sm:$0xff]   ;;  %v7894_v47 = vld [vmem:[%s8015_s10 + $0x780] ss:$84 sps:$4 sm:$0xff]   ;;  %v7898_v6 = vld [vmem:[%s8015_s10 + $0x4e8] ss:$84 sps:$4 sm:$0xff]  }
 0x297   : > { %v6765_v43 = vpop.f32.mrf.mxu0  ;;  %v6829_v58 = vpop.f32.mrf.mxu1  ;;  %v7902_v61 = vld [vmem:[%s8015_s10 + $0x590] ss:$84 sps:$4 sm:$0xff]  }
 0x298   : > { %v6766_v21 = vadd.f32 %v6765_v43, %v6764_v32  ;;  %v6830_v53 = vadd.f32 %v6829_v58, %v6828_v60 }
 0x299   : > { %v6767_v17 = vpop.f32.mrf.mxu0  ;;  %v6831_v9 = vpop.f32.mrf.mxu1 }
 0x29a   : > { %v9461_v4 = vadd.f32 %v6766_v21, %v9333_v33  ;;  %v9464_v56 = vadd.f32 %v6830_v53, %v9336_v12 }
 0x29b   : > { %v6768_v27 = vpop.f32.mrf.mxu0  ;;  %v6832_v25 = vpop.f32.mrf.mxu1 }
 0x29c   : > { %v6769_v36 = vadd.f32 %v6768_v27, %v6767_v17  ;;  %v6833_v15 = vadd.f32 %v6832_v25, %v6831_v9 }
 0x29d   : > { %v6770_v54 = vpop.f32.mrf.mxu0  ;;  %v6834_v7 = vpop.f32.mrf.mxu1  ;;  %5175 = vmatmul.mubr.bf16.gmra.mxu1 %v7889_v63  ;;  %7191 = vmatmul.mubr.bf16.gmra.mxu0 %v7893_v13 }
 0x29e   : > { %v9469_v33 = vadd.f32 %v6769_v36, %v9341_v18  ;;  %v9472_v12 = vadd.f32 %v6833_v15, %v9344_v19  ;;  %5182 = vmatprep.mubr.bf16.mxu1 %v7896_v44  ;;  %7194 = vmatprep.mubr.bf16.mxu0 %v7897_v23  ;;  %v7901_v18 = vld [vmem:[%s8015_s10 + $0x82c] ss:$84 sps:$4 sm:$0xff]   ;;  %v7899_v44 = vld [vmem:[%s8015_s10 + $0x828] ss:$84 sps:$4 sm:$0xff]  }
 0x29f   : > { %v6771_v31 = vpop.f32.mrf.mxu0  ;;  %v6835_v30 = vpop.f32.mrf.mxu1  ;;  %v7903_v23 = vld [vmem:[%s8015_s10 + $0x638] ss:$84 sps:$4 sm:$0xff]   ;;  %v7907_v36 = vld [vmem:[%s8015_s10 + $0x6e0] ss:$84 sps:$4 sm:$0xff]  }
 0x2a0   : > { %v6772_v22 = vadd.f32 %v6771_v31, %v6770_v54  ;;  %v6836_v2 = vadd.f32 %v6835_v30, %v6834_v7 }
 0x2a1   : > { %v6773_v57 = vpop.f32.mrf.mxu0  ;;  %v6837_v35 = vpop.f32.mrf.mxu1 }
 0x2a2   : > { %v9477_v38 = vadd.f32 %v6772_v22, %v9349_v49  ;;  %v9480_v45 = vadd.f32 %v6836_v2, %v9352_v42 }
 0x2a3   : > { %v6774_v19 = vpop.f32.mrf.mxu0  ;;  %v6838_v46 = vpop.f32.mrf.mxu1 }
 0x2a4   : > { %v6775_v32 = vadd.f32 %v6774_v19, %v6773_v57  ;;  %v6839_v60 = vadd.f32 %v6838_v46, %v6837_v35 }
 0x2a5   : > { %v6776_v43 = vpop.f32.mrf.mxu0  ;;  %v6840_v58 = vpop.f32.mrf.mxu1  ;;  %5183 = vmatmul.mubr.bf16.gmra.mxu1 %v7894_v47  ;;  %7195 = vmatmul.mubr.bf16.gmra.mxu0 %v7898_v6 }
 0x2a6   : > { %v9485_v49 = vadd.f32 %v6775_v32, %v9357_v14  ;;  %v9488_v42 = vadd.f32 %v6839_v60, %v9360_v62  ;;  %5190 = vmatprep.mubr.bf16.mxu1 %v7901_v18  ;;  %7198 = vmatprep.mubr.bf16.mxu0 %v7902_v61  ;;  %v7906_v14 = vld [vmem:[%s8015_s10 + $0x8d4] ss:$84 sps:$4 sm:$0xff]   ;;  %v7904_v18 = vld [vmem:[%s8015_s10 + $0x8d0] ss:$84 sps:$4 sm:$0xff]  }
 0x2a7   : > { %v6777_v21 = vpop.f32.mrf.mxu0  ;;  %v6841_v53 = vpop.f32.mrf.mxu1  ;;  %v7908_v61 = vld [vmem:[%s8015_s10 + $0x788] ss:$84 sps:$4 sm:$0xff]   ;;  %v7912_v32 = vld [vmem:[%s8015_s10 + $0x830] ss:$84 sps:$4 sm:$0xff]  }
 0x2a8   : > { %v6778_v17 = vadd.f32 %v6777_v21, %v6776_v43  ;;  %v6842_v9 = vadd.f32 %v6841_v53, %v6840_v58 }
 0x2a9   : > { %v6779_v63 = vpop.f32.mrf.mxu0  ;;  %v6843_v13 = vpop.f32.mrf.mxu1 }
 0x2aa   : > { %v9493_v27 = vadd.f32 %v6778_v17, %v9365_v29  ;;  %v9496_v25 = vadd.f32 %v6842_v9, %v9368_v50 }
 0x2ab   : > { %v6780_v62 = vpop.f32.mrf.mxu0  ;;  %v6844_v15 = vpop.f32.mrf.mxu1 }
 0x2ac   : > { %v6781_v54 = vadd.f32 %v6780_v62, %v6779_v63  ;;  %v6845_v7 = vadd.f32 %v6844_v15, %v6843_v13 }
 0x2ad   : > { %v6782_v31 = vpop.f32.mrf.mxu0  ;;  %v6846_v30 = vpop.f32.mrf.mxu1  ;;  %5191 = vmatmul.mubr.bf16.gmra.mxu1 %v7899_v44  ;;  %7199 = vmatmul.mubr.bf16.gmra.mxu0 %v7903_v23 }
 0x2ae   : > { %v9501_v29 = vadd.f32 %v6781_v54, %v9373_v3  ;;  %v9504_v50 = vadd.f32 %v6845_v7, %v9376_v39  ;;  %5198 = vmatprep.mubr.bf16.mxu1 %v7906_v14  ;;  %7202 = vmatprep.mubr.bf16.mxu0 %v7907_v36  ;;  %v7911_v3 = vld [vmem:[%s8015_s10 + $0x97c] ss:$84 sps:$4 sm:$0xff]   ;;  %v7909_v14 = vld [vmem:[%s8015_s10 + $0x978] ss:$84 sps:$4 sm:$0xff]   ;;  %v7917_v54 = vld [vmem:[%s8015_s10 + $0x980] ss:$84 sps:$4 sm:$0xff]  }
 0x2af   : > { %v6783_v22 = vpop.f32.mrf.mxu0  ;;  %v6847_v2 = vpop.f32.mrf.mxu1  ;;  %v7913_v36 = vld [vmem:[%s8015_s10 + $0x8d8] ss:$84 sps:$4 sm:$0xff]  }
 0x2b0   : > { %v6784_v57 = vadd.f32 %v6783_v22, %v6782_v31  ;;  %v6848_v35 = vadd.f32 %v6847_v2, %v6846_v30 }
 0x2b1   : > { %v6785_v47 = vpop.f32.mrf.mxu0  ;;  %v6849_v6 = vpop.f32.mrf.mxu1 }
 0x2b2   : > { %v9509_v19 = vadd.f32 %v6784_v57, %v9381_v59  ;;  %v9512_v46 = vadd.f32 %v6848_v35, %v9384_v26 }
 0x2b3   : > { %v6786_v39 = vpop.f32.mrf.mxu0  ;;  %v6850_v60 = vpop.f32.mrf.mxu1 }
 0x2b4   : > { %v6787_v43 = vadd.f32 %v6786_v39, %v6785_v47  ;;  %v6851_v58 = vadd.f32 %v6850_v60, %v6849_v6 }
 0x2b5   : > { %v6788_v21 = vpop.f32.mrf.mxu0  ;;  %v6852_v53 = vpop.f32.mrf.mxu1  ;;  %5199 = vmatmul.mubr.bf16.gmra.mxu1 %v7904_v18  ;;  %7203 = vmatmul.mubr.bf16.gmra.mxu0 %v7908_v61 }
 0x2b6   : > { %v9517_v59 = vadd.f32 %v6787_v43, %v9389_v20  ;;  %v9520_v26 = vadd.f32 %v6851_v58, %v9392_v8  ;;  %5206 = vmatprep.mubr.bf16.mxu1 %v7911_v3  ;;  %7206 = vmatprep.mubr.bf16.mxu0 %v7912_v32  ;;  %v7916_v20 = vld [vmem:[%s8015_s10 + $0xa24] ss:$84 sps:$4 sm:$0xff]   ;;  %v7914_v3 = vld [vmem:[%s8015_s10 + $0xa20] ss:$84 sps:$4 sm:$0xff]   ;;  %v7918_v32 = vld [vmem:[%s8015_s10 + $0xa28] ss:$84 sps:$4 sm:$0xff]  }
 0x2b7   : > { %v6789_v17 = vpop.f32.mrf.mxu0  ;;  %v6853_v9 = vpop.f32.mrf.mxu1  ;;  %s6021_s10 = sshll.u32 %s9924_s12, 8 }
 0x2b8   : > { %v6790_v63 = vadd.f32 %v6789_v17, %v6788_v21  ;;  %v6854_v13 = vadd.f32 %v6853_v9, %v6852_v53  ;;  %s9782_s4 = scalar_lea.vmem %s9898_s3, %s6021_s10 }
 0x2b9   : > { %v6791_v44 = vpop.f32.mrf.mxu0  ;;  %v6855_v23 = vpop.f32.mrf.mxu1 }
 0x2ba   : > { %v9525_v62 = vadd.f32 %v6790_v63, %v9397_v5  ;;  %v9528_v15 = vadd.f32 %v6854_v13, %v9400_v51 }
 0x2bb   : > { %v6792_v8 = vpop.f32.mrf.mxu0  ;;  %v6856_v7 = vpop.f32.mrf.mxu1 }
 0x2bc   : > { %v6793_v31 = vadd.f32 %v6792_v8, %v6791_v44  ;;  %v6857_v30 = vadd.f32 %v6856_v7, %v6855_v23 }
 0x2bd   : > { %v6794_v22 = vpop.f32.mrf.mxu0  ;;  %v6858_v2 = vpop.f32.mrf.mxu1  ;;  %5207 = vmatmul.mubr.bf16.gmra.mxu1 %v7909_v14  ;;  %7207 = vmatmul.mubr.bf16.gmra.mxu0 %v7913_v36 }
 0x2be   : > { %v9533_v57 = vadd.f32 %v6793_v31, %v9405_v37  ;;  %v9536_v5 = vadd.f32 %v6857_v30, %v9408_v10  ;;  %5214 = vmatprep.mubr.bf16.mxu1 %v7916_v20  ;;  %7210 = vmatprep.mubr.bf16.mxu0 %v7917_v54 }
 0x2bf   : > { %v6795_v51 = vpop.f32.mrf.mxu0  ;;  %v6859_v35 = vpop.f32.mrf.mxu1 }
 0x2c0   : > { %v6796_v47 = vadd.f32 %v6795_v51, %v6794_v22  ;;  %v6860_v6 = vadd.f32 %v6859_v35, %v6858_v2 }
 0x2c1   : > { %v6797_v18 = vpop.f32.mrf.mxu0  ;;  %v6861_v61 = vpop.f32.mrf.mxu1 }
 0x2c2   : > { %v9541_v39 = vadd.f32 %v6796_v47, %v9413_v41  ;;  %v9544_v60 = vadd.f32 %v6860_v6, %v9416_v24 }
 0x2c3   : > { %v6798_v37 = vpop.f32.mrf.mxu0  ;;  %v6862_v43 = vpop.f32.mrf.mxu1 }
 0x2c4   : > { %v6799_v10 = vadd.f32 %v6798_v37, %v6797_v18  ;;  %v6863_v58 = vadd.f32 %v6862_v43, %v6861_v61 }
 0x2c5   : > { %v6800_v21 = vpop.f32.mrf.mxu0  ;;  %v6864_v53 = vpop.f32.mrf.mxu1  ;;  %5215 = vmatmul.mubr.bf16.gmra.mxu1 %v7914_v3  ;;  %7211 = vmatmul.mubr.bf16.gmra.mxu0 %v7918_v32 }
 0x2c6   : > { %v9547_v17 = vadd.f32 %v6799_v10, %v9421_v28  ;;  %v9550_v9 = vadd.f32 %v6863_v58, %v9424_v0 }
 0x2c7   : > { %v6801_v63 = vpop.f32.mrf.mxu0  ;;  %v6865_v41 = vpop.f32.mrf.mxu1 }
 0x2c8   : > { %v6802_v13 = vadd.f32 %v6801_v63, %v6800_v21  ;;  %v6866_v44 = vadd.f32 %v6865_v41, %v6864_v53 }
 0x2c9   : > { %v6803_v24 = vpop.f32.mrf.mxu0  ;;  %v6867_v23 = vpop.f32.mrf.mxu1 }
 0x2ca   : > { %v9553_v14 = vadd.f32 %v6802_v13, %v9429_v11  ;;  %v9556_v36 = vadd.f32 %v6866_v44, %v9432_v40 }
 0x2cb   : > { %v6804_v20 = vpop.f32.mrf.mxu0  ;;  %v6868_v54 = vpop.f32.mrf.mxu1 }
 0x2cc   : > { %v6805_v8 = vadd.f32 %v6804_v20, %v6803_v24  ;;  %v6869_v28 = vadd.f32 %v6868_v54, %v6867_v23 }
 0x2cd   : > { %v6870_v7 = vpop.f32.mrf.mxu1  ;;  %v6934_v31 = vpop.f32.mrf.mxu0 }
 0x2ce   : > { %v9559_v0 = vadd.f32 %v6805_v8, %v9437_v1  ;;  %v9562_v30 = vadd.f32 %v6869_v28, %v9440_v34 }
 0x2cf   : > { %v6871_v22 = vpop.f32.mrf.mxu1  ;;  %v6935_v2 = vpop.f32.mrf.mxu0 }
 0x2d0   : > { %v6872_v51 = vadd.f32 %v6871_v22, %v6870_v7  ;;  %v6936_v11 = vadd.f32 %v6935_v2, %v6934_v31 }
 0x2d1   : > { %v6873_v35 = vpop.f32.mrf.mxu1  ;;  %v6937_v47 = vpop.f32.mrf.mxu0 }
 0x2d2   : > { %v9565_v40 = vadd.f32 %v6872_v51, %v9445_v55  ;;  %v9568_v6 = vadd.f32 %v6936_v11, %v9448_v16 }
 0x2d3   : > { %v6874_v18 = vpop.f32.mrf.mxu1  ;;  %v6938_v61 = vpop.f32.mrf.mxu0 }
 0x2d4   : > { %v6875_v3 = vadd.f32 %v6874_v18, %v6873_v35  ;;  %v6939_v1 = vadd.f32 %v6938_v61, %v6937_v47 }
 0x2d5   : > { %v6876_v32 = vpop.f32.mrf.mxu1  ;;  %v6940_v37 = vpop.f32.mrf.mxu0 }
 0x2d6   : > { %v9571_v34 = vadd.f32 %v6875_v3, %v9453_v52  ;;  %v9574_v43 = vadd.f32 %v6939_v1, %v9456_v48 }
 0x2d7   : > { %v6877_v10 = vpop.f32.mrf.mxu1  ;;  %v6941_v58 = vpop.f32.mrf.mxu0 }
 0x2d8   : > { %v6878_v21 = vadd.f32 %v6877_v10, %v6876_v32  ;;  %v6942_v55 = vadd.f32 %v6941_v58, %v6940_v37 }
 0x2d9   : > { %v6879_v53 = vpop.f32.mrf.mxu1  ;;  %v6943_v63 = vpop.f32.mrf.mxu0 }
 0x2da   : > { %v9577_v16 = vadd.f32 %v6878_v21, %v9461_v4  ;;  %v9580_v41 = vadd.f32 %v6942_v55, %v9464_v56 }
 0x2db   : > { %v6880_v13 = vpop.f32.mrf.mxu1  ;;  %v6944_v44 = vpop.f32.mrf.mxu0 }
 0x2dc   : > { %v6881_v24 = vadd.f32 %v6880_v13, %v6879_v53  ;;  %v6945_v52 = vadd.f32 %v6944_v44, %v6943_v63 }
 0x2dd   : > { %v6882_v23 = vpop.f32.mrf.mxu1  ;;  %v6946_v20 = vpop.f32.mrf.mxu0 }
 0x2de   : > { %v9583_v48 = vadd.f32 %v6881_v24, %v9469_v33  ;;  %v9586_v54 = vadd.f32 %v6945_v52, %v9472_v12 }
 0x2df   : > { %v6883_v8 = vpop.f32.mrf.mxu1  ;;  %v6947_v28 = vpop.f32.mrf.mxu0 }
 0x2e0   : > { %v6884_v7 = vadd.f32 %v6883_v8, %v6882_v23  ;;  %v6948_v4 = vadd.f32 %v6947_v28, %v6946_v20 }
 0x2e1   : > { %v6885_v31 = vpop.f32.mrf.mxu1  ;;  %v6949_v22 = vpop.f32.mrf.mxu0 }
 0x2e2   : > { %v9589_v56 = vadd.f32 %v6884_v7, %v9477_v38  ;;  %v9592_v2 = vadd.f32 %v6948_v4, %v9480_v45 }
 0x2e3   : > { %v6886_v51 = vpop.f32.mrf.mxu1  ;;  %v6950_v11 = vpop.f32.mrf.mxu0 }
 0x2e4   : > { %v6887_v35 = vadd.f32 %v6886_v51, %v6885_v31  ;;  %v6951_v33 = vadd.f32 %v6950_v11, %v6949_v22 }
 0x2e5   : > { %v6888_v47 = vpop.f32.mrf.mxu1  ;;  %v6952_v18 = vpop.f32.mrf.mxu0 }
 0x2e6   : > { %v9595_v12 = vadd.f32 %v6887_v35, %v9485_v49  ;;  %v9598_v61 = vadd.f32 %v6951_v33, %v9488_v42 }
 0x2e7   : > { %v6889_v3 = vpop.f32.mrf.mxu1  ;;  %v6953_v1 = vpop.f32.mrf.mxu0 }
 0x2e8   : > { %v6890_v32 = vadd.f32 %v6889_v3, %v6888_v47  ;;  %v6954_v38 = vadd.f32 %v6953_v1, %v6952_v18 }
 0x2e9   : > { %v6891_v37 = vpop.f32.mrf.mxu1  ;;  %v6955_v10 = vpop.f32.mrf.mxu0 }
 0x2ea   : > { %v9601_v45 = vadd.f32 %v6890_v32, %v9493_v27  ;;  %v9604_v58 = vadd.f32 %v6954_v38, %v9496_v25 }
 0x2eb   : > { %v6892_v21 = vpop.f32.mrf.mxu1  ;;  %v6956_v55 = vpop.f32.mrf.mxu0 }
 0x2ec   : > { %v6893_v53 = vadd.f32 %v6892_v21, %v6891_v37  ;;  %v6957_v49 = vadd.f32 %v6956_v55, %v6955_v10 }
 0x2ed   : > { %v6894_v63 = vpop.f32.mrf.mxu1  ;;  %v6958_v13 = vpop.f32.mrf.mxu0 }
 0x2ee   : > { %v9607_v42 = vadd.f32 %v6893_v53, %v9501_v29  ;;  %v9610_v44 = vadd.f32 %v6957_v49, %v9504_v50 }
 0x2ef   : > { %v6895_v24 = vpop.f32.mrf.mxu1  ;;  %v6959_v52 = vpop.f32.mrf.mxu0 }
 0x2f0   : > { %v6896_v23 = vadd.f32 %v6895_v24, %v6894_v63  ;;  %v6960_v27 = vadd.f32 %v6959_v52, %v6958_v13 }
 0x2f1   : > { %v6897_v20 = vpop.f32.mrf.mxu1  ;;  %v6961_v8 = vpop.f32.mrf.mxu0 }
 0x2f2   : > { %v9613_v25 = vadd.f32 %v6896_v23, %v9509_v19  ;;  %v9616_v28 = vadd.f32 %v6960_v27, %v9512_v46 }
 0x2f3   : > { %v6898_v7 = vpop.f32.mrf.mxu1  ;;  %v6962_v4 = vpop.f32.mrf.mxu0 }
 0x2f4   : > { %v6899_v31 = vadd.f32 %v6898_v7, %v6897_v20  ;;  %v6963_v29 = vadd.f32 %v6962_v4, %v6961_v8 }
 0x2f5   : > { %v6900_v22 = vpop.f32.mrf.mxu1  ;;  %v6964_v51 = vpop.f32.mrf.mxu0 }
 0x2f6   : > { %v9619_v50 = vadd.f32 %v6899_v31, %v9517_v59  ;;  %v9622_v11 = vadd.f32 %v6963_v29, %v9520_v26 }
 0x2f7   : > { %v6901_v35 = vpop.f32.mrf.mxu1  ;;  %v6965_v33 = vpop.f32.mrf.mxu0 }
 0x2f8   : > { %v6902_v47 = vadd.f32 %v6901_v35, %v6900_v22  ;;  %v6966_v19 = vadd.f32 %v6965_v33, %v6964_v51 }
 0x2f9   : > { %v6903_v18 = vpop.f32.mrf.mxu1  ;;  %v6967_v3 = vpop.f32.mrf.mxu0 }
 0x2fa   : > { %v9625_v46 = vadd.f32 %v6902_v47, %v9525_v62  ;;  %v9628_v1 = vadd.f32 %v6966_v19, %v9528_v15 }
 0x2fb   : > { %v6904_v32 = vpop.f32.mrf.mxu1  ;;  %v6968_v38 = vpop.f32.mrf.mxu0 }
 0x2fc   : > { %v6905_v37 = vadd.f32 %v6904_v32, %v6903_v18  ;;  %v6969_v59 = vadd.f32 %v6968_v38, %v6967_v3 }
 0x2fd   : > { %v6906_v10 = vpop.f32.mrf.mxu1  ;;  %v6970_v21 = vpop.f32.mrf.mxu0 }
 0x2fe   : > { %v9631_v26 = vadd.f32 %v6905_v37, %v9533_v57  ;;  %v9634_v55 = vadd.f32 %v6969_v59, %v9536_v5 }
 0x2ff   : > { %v6907_v53 = vpop.f32.mrf.mxu1  ;;  %v6971_v49 = vpop.f32.mrf.mxu0 }
 0x300   : > { %v6908_v63 = vadd.f32 %v6907_v53, %v6906_v10  ;;  %v6972_v62 = vadd.f32 %v6971_v49, %v6970_v21 }
 0x301   : > { %v6909_v13 = vpop.f32.mrf.mxu1  ;;  %v6973_v24 = vpop.f32.mrf.mxu0 }
 0x302   : > { %v9637_v15 = vadd.f32 %v6908_v63, %v9541_v39  ;;  %v9640_v52 = vadd.f32 %v6972_v62, %v9544_v60 }
 0x303   : > { %v6910_v23 = vpop.f32.mrf.mxu1  ;;  %v6974_v27 = vpop.f32.mrf.mxu0 }
 0x304   : > { %v6911_v20 = vadd.f32 %v6910_v23, %v6909_v13  ;;  %v6975_v57 = vadd.f32 %v6974_v27, %v6973_v24 }
 0x305   : > { %v6912_v8 = vpop.f32.mrf.mxu1  ;;  %v6976_v7 = vpop.f32.mrf.mxu0 }
 0x306   : > { %v9643_v5 = vadd.f32 %v6911_v20, %v9547_v17  ;;  %v9646_v4 = vadd.f32 %v6975_v57, %v9550_v9 }
 0x307   : > { %v6913_v31 = vpop.f32.mrf.mxu1  ;;  %v6977_v29 = vpop.f32.mrf.mxu0 }
 0x308   : > { %v6914_v22 = vadd.f32 %v6913_v31, %v6912_v8  ;;  %v6978_v39 = vadd.f32 %v6977_v29, %v6976_v7 }
 0x309   : > { %v6915_v51 = vpop.f32.mrf.mxu1  ;;  %v6979_v35 = vpop.f32.mrf.mxu0 }
 0x30a   : > { %v9649_v60 = vadd.f32 %v6914_v22, %v9553_v14  ;;  %v9652_v33 = vadd.f32 %v6978_v39, %v9556_v36 }
 0x30b   : > { %v6916_v47 = vpop.f32.mrf.mxu1  ;;  %v6980_v19 = vpop.f32.mrf.mxu0 }
 0x30c   : > { %v6917_v18 = vadd.f32 %v6916_v47, %v6915_v51  ;;  %v6981_v17 = vadd.f32 %v6980_v19, %v6979_v35 }
 0x30d   : > { %v6982_v3 = vpop.f32.mrf.mxu0  ;;  %v9654_v32 = vpop.f32.mrf.mxu1 }
 0x30e   : > { %v9657_v9 = vadd.f32 %v6917_v18, %v9559_v0  ;;  %v9660_v38 = vadd.f32 %v6981_v17, %v9562_v30 }
 0x30f   : > { %v6983_v37 = vpop.f32.mrf.mxu0  ;;  %v9662_v59 = vpop.f32.mrf.mxu1 }
 0x310   : > { %v6984_v14 = vadd.f32 %v6983_v37, %v6982_v3 }
 0x311   : > { %v6985_v10 = vpop.f32.mrf.mxu0  ;;  %v9664_v36 = vpop.f32.mrf.mxu1 }
 0x312   : > { %v9667_v21 = vadd.f32 %v6984_v14, %v9565_v40 }
 0x313   : > { %v6986_v53 = vpop.f32.mrf.mxu0  ;;  %v9669_v49 = vpop.f32.mrf.mxu1 }
 0x314   : > { %v6987_v63 = vadd.f32 %v6986_v53, %v6985_v10 }
 0x315   : > { %v6988_v62 = vpop.f32.mrf.mxu0  ;;  %v9671_v0 = vpop.f32.mrf.mxu1 }
 0x316   : > { %v9674_v30 = vadd.f32 %v6987_v63, %v9571_v34 }
 0x317   : > { %v6989_v13 = vpop.f32.mrf.mxu0  ;;  %v9676_v24 = vpop.f32.mrf.mxu1 }
 0x318   : > { %9899 = vst [vmem:[#allocation2_spill] sm:$0xff] %v9674_v30  ;;  %v6990_v23 = vadd.f32 %v6989_v13, %v6988_v62 }
 0x319   : > { %v6991_v27 = vpop.f32.mrf.mxu0  ;;  %v9678_v20 = vpop.f32.mrf.mxu1 }
 0x31a   : > { %v9681_v40 = vadd.f32 %v6990_v23, %v9577_v16 }
 0x31b   : > { %v6992_v57 = vpop.f32.mrf.mxu0  ;;  %v9683_v8 = vpop.f32.mrf.mxu1 }
 0x31c   : > { %v6993_v7 = vadd.f32 %v6992_v57, %v6991_v27 }
 0x31d   : > { %v6994_v31 = vpop.f32.mrf.mxu0  ;;  %v9685_v29 = vpop.f32.mrf.mxu1 }
 0x31e   : > { %v9688_v34 = vadd.f32 %v6993_v7, %v9583_v48 }
 0x31f   : > { %v6995_v22 = vpop.f32.mrf.mxu0  ;;  %v9690_v39 = vpop.f32.mrf.mxu1 }
 0x320   : > { %v6996_v51 = vadd.f32 %v6995_v22, %v6994_v31 }
 0x321   : > { %v6997_v35 = vpop.f32.mrf.mxu0  ;;  %v9692_v47 = vpop.f32.mrf.mxu1 }
 0x322   : > { %v9695_v16 = vadd.f32 %v6996_v51, %v9589_v56 }
 0x323   : > { %v6998_v19 = vpop.f32.mrf.mxu0  ;;  %v9697_v18 = vpop.f32.mrf.mxu1 }
 0x324   : > { %9900 = vst [vmem:[#allocation3_spill] sm:$0xff] %v9695_v16  ;;  %v6999_v17 = vadd.f32 %v6998_v19, %v6997_v35 }
 0x325   : > { %v7000_v3 = vpop.f32.mrf.mxu0  ;;  %v9699_v37 = vpop.f32.mrf.mxu1 }
 0x326   : > { %v9702_v48 = vadd.f32 %v6999_v17, %v9595_v12 }
 0x327   : > { %v7001_v14 = vpop.f32.mrf.mxu0  ;;  %v9704_v10 = vpop.f32.mrf.mxu1 }
 0x328   : > { %9901 = vst [vmem:[#allocation4_spill] sm:$0xff] %v9702_v48  ;;  %v7002_v53 = vadd.f32 %v7001_v14, %v7000_v3 }
 0x329   : > { %v7003_v63 = vpop.f32.mrf.mxu0  ;;  %v9706_v62 = vpop.f32.mrf.mxu1 }
 0x32a   : > { %v9709_v56 = vadd.f32 %v7002_v53, %v9601_v45 }
 0x32b   : > { %v7004_v13 = vpop.f32.mrf.mxu0  ;;  %v9711_v23 = vpop.f32.mrf.mxu1 }
 0x32c   : > { %9902 = vst [vmem:[#allocation5_spill] sm:$0xff] %v9709_v56  ;;  %v7005_v27 = vadd.f32 %v7004_v13, %v7003_v63 }
 0x32d   : > { %v7006_v57 = vpop.f32.mrf.mxu0  ;;  %v9713_v7 = vpop.f32.mrf.mxu1 }
 0x32e   : > { %v9716_v12 = vadd.f32 %v7005_v27, %v9607_v42 }
 0x32f   : > { %v7007_v31 = vpop.f32.mrf.mxu0  ;;  %v9718_v22 = vpop.f32.mrf.mxu1 }
 0x330   : > { %9903 = vst [vmem:[#allocation6_spill] sm:$0xff] %v9716_v12  ;;  %v7008_v51 = vadd.f32 %v7007_v31, %v7006_v57 }
 0x331   : > { %v7009_v35 = vpop.f32.mrf.mxu0  ;;  %v9720_v19 = vpop.f32.mrf.mxu1 }
 0x332   : > { %v9723_v45 = vadd.f32 %v7008_v51, %v9613_v25 }
 0x333   : > { %v7010_v17 = vpop.f32.mrf.mxu0  ;;  %v9725_v3 = vpop.f32.mrf.mxu1 }
 0x334   : > { %9904 = vst [vmem:[#allocation7_spill] sm:$0xff] %v9723_v45  ;;  %v7011_v14 = vadd.f32 %v7010_v17, %v7009_v35 }
 0x335   : > { %v7012_v53 = vpop.f32.mrf.mxu0  ;;  %v9727_v63 = vpop.f32.mrf.mxu1 }
 0x336   : > { %v9730_v42 = vadd.f32 %v7011_v14, %v9619_v50 }
 0x337   : > { %v7013_v13 = vpop.f32.mrf.mxu0  ;;  %v9732_v27 = vpop.f32.mrf.mxu1 }
 0x338   : > { %9905 = vst [vmem:[#allocation8_spill] sm:$0xff] %v9730_v42  ;;  %v7014_v57 = vadd.f32 %v7013_v13, %v7012_v53 }
 0x339   : > { %v7015_v31 = vpop.f32.mrf.mxu0  ;;  %v9734_v48 = vpop.f32.mrf.mxu1 }
 0x33a   : > { %v9737_v25 = vadd.f32 %v7014_v57, %v9625_v46 }
 0x33b   : > { %v7016_v51 = vpop.f32.mrf.mxu0  ;;  %v9739_v45 = vpop.f32.mrf.mxu1 }
 0x33c   : > { %9906 = vst [vmem:[#allocation9_spill] sm:$0xff] %v9737_v25  ;;  %v7017_v35 = vadd.f32 %v7016_v51, %v7015_v31 }
 0x33d   : > { %v7018_v17 = vpop.f32.mrf.mxu0  ;;  %v9741_v12 = vpop.f32.mrf.mxu1 }
 0x33e   : > { %v9744_v50 = vadd.f32 %v7017_v35, %v9631_v26 }
 0x33f   : > { %v7019_v14 = vpop.f32.mrf.mxu0  ;;  %v9746_v42 = vpop.f32.mrf.mxu1 }
 0x340   : > { %9907 = vst [vmem:[#allocation10_spill] sm:$0xff] %v9744_v50  ;;  %v7020_v53 = vadd.f32 %v7019_v14, %v7018_v17  ;;  %v7054_v17 = vadd.f32 %v9676_v24, %v9671_v0 }
 0x341   : > { %v7021_v13 = vpop.f32.mrf.mxu0  ;;  %v9748_v16 = vpop.f32.mrf.mxu1 }
 0x342   : > { %v9751_v46 = vadd.f32 %v7020_v53, %v9637_v15  ;;  %v7048_v53 = vadd.f32 %v9662_v59, %v9654_v32  ;;  %v5105_v0 = vadd.f32 %v7054_v17, %v9580_v41  ;;  %v7051_v32 = vadd.f32 %v9669_v49, %v9664_v36 }
 0x343   : > { %v7022_v57 = vpop.f32.mrf.mxu0  ;;  %v9753_v25 = vpop.f32.mrf.mxu1 }
 0x344   : > { %v7023_v31 = vadd.f32 %v7022_v57, %v7021_v13  ;;  %v5100_v49 = vadd.f32 %v7051_v32, %v9574_v43 }
 0x345   : > { %v7024_v51 = vpop.f32.mrf.mxu0  ;;  %v9755_v56 = vpop.f32.mrf.mxu1 }
 0x346   : > { %v9758_v26 = vadd.f32 %v7023_v31, %v9643_v5  ;;  %v7057_v31 = vadd.f32 %v9683_v8, %v9678_v20 }
 0x347   : > { %v7025_v35 = vpop.f32.mrf.mxu0  ;;  %v9760_v50 = vpop.f32.mrf.mxu1 }
 0x348   : > { %9908 = vst [vmem:[#allocation11_spill] sm:$0xff] %v9758_v26  ;;  %v7026_v14 = vadd.f32 %v7025_v35, %v7024_v51  ;;  %v7066_v51 = vadd.f32 %v9704_v10, %v9699_v37  ;;  %v5108_v17 = vadd.f32 %v7057_v31, %v9586_v54  ;;  %v7069_v37 = vadd.f32 %v9711_v23, %v9706_v62 }
 0x349   : > { %v7027_v30 = vpop.f32.mrf.mxu0  ;;  %v9764_v15 = vpop.f32.mrf.mxu1  ;;  %v7078_v62 = vadd.f32 %v9732_v27, %v9727_v63  ;;  %v7081_v63 = vadd.f32 %v9739_v45, %v9734_v48  ;;  %v7090_v48 = vadd.f32 %v9760_v50, %v9755_v56 }
 0x34a   : > { %v9769_v13 = vadd.f32 %v7026_v14, %v9649_v60  ;;  %v5121_v10 = vadd.f32 %v7066_v51, %v9604_v58  ;;  %v5124_v58 = vadd.f32 %v7069_v37, %v9610_v44 }
 0x34b   : > { %v7028_v57 = vpop.f32.mrf.mxu0  ;;  %v9772_v5 = vpop.f32.mrf.mxu1  ;;  %v5137_v44 = vadd.f32 %v7078_v62, %v9628_v1  ;;  %v5140_v1 = vadd.f32 %v7081_v63, %v9634_v55  ;;  %v5153_v55 = vadd.f32 %v7090_v48, %v9652_v33  ;;  %v9909_v63 = vld [vmem:[#allocation2_spill] sm:$0xff]  ;;  %v9911_v48 = vld [vmem:[#allocation3_spill] sm:$0xff] }
 0x34c   : > { %v7029_v26 = vadd.f32 %v7028_v57, %v7027_v30  ;;  %v5097_v30 = vadd.f32 %v7048_v53, %v9568_v6  ;;  %v7093_v56 = vadd.f32 %v9772_v5, %v9764_v15 }
 0x34d   : > { %v9777_v24 = vpop.f32.mrf.mxu1  ;;  %v7184_v60 = vpop.f32.mrf.mxu0 }
 0x34e   : > { %v9787_v59 = vadd.f32 %v7029_v26, %v9657_v9  ;;  %v5266_v20 = vadd.f32 %v7184_v60, %v5105_v0  ;;  %v7060_v9 = vadd.f32 %v9690_v39, %v9685_v29  ;;  %v7063_v29 = vadd.f32 %v9697_v18, %v9692_v47 }
 0x34f   : > { %v9790_v41 = vpop.f32.mrf.mxu1  ;;  %v5257_v8 = vpop.f32.mrf.mxu0  ;;  %v7072_v47 = vadd.f32 %v9718_v22, %v9713_v7  ;;  %v7075_v7 = vadd.f32 %v9725_v3, %v9720_v19  ;;  %v7084_v19 = vadd.f32 %v9746_v42, %v9741_v12  ;;  %v7087_v12 = vadd.f32 %v9753_v25, %v9748_v16 }
 0x350   : > { %5386 = vst [vmem:[%s9782_s4 + $0x10] sm:$0xff] %v5266_v20  ;;  %v5258_v35 = vadd.f32 %v5257_v8, %v5097_v30  ;;  %v5113_v43 = vadd.f32 %v7060_v9, %v9592_v2  ;;  %v5116_v2 = vadd.f32 %v7063_v29, %v9598_v61  ;;  %v5156_v5 = vadd.f32 %v7093_v56, %v9660_v38 }
 0x351   : > { %v9796_v14 = vpop.f32.mrf.mxu1  ;;  %v7185_v36 = vpop.f32.mrf.mxu0  ;;  %v5129_v61 = vadd.f32 %v7072_v47, %v9616_v28  ;;  %v5132_v28 = vadd.f32 %v7075_v7, %v9622_v11  ;;  %v5145_v11 = vadd.f32 %v7084_v19, %v9640_v52  ;;  %v5148_v25 = vadd.f32 %v7087_v12, %v9646_v4  ;;  %v9912_v19 = vld [vmem:[#allocation6_spill] sm:$0xff] }
 0x352   : > { %5384 = vst [vmem:[%s9782_s4] sm:$0xff] %v5258_v35  ;;  %v5269_v6 = vadd.f32 %v7185_v36, %v5108_v17 }
 0x353   : > { %v9802_v26 = vpop.f32.mrf.mxu1  ;;  %v5260_v53 = vpop.f32.mrf.mxu0 }
 0x354   : > { %5387 = vst [vmem:[%s9782_s4 + $0x18] sm:$0xff] %v5269_v6  ;;  %v5261_v54 = vadd.f32 %v5260_v53, %v5100_v49 }
 0x355   : > { %v7100_v57 = vpop.f32.mrf.mxu1  ;;  %v7188_v31 = vpop.f32.mrf.mxu0 }
 0x356   : > { %5385 = vst [vmem:[%s9782_s4 + $0x8] sm:$0xff] %v5261_v54  ;;  %v5282_v39 = vadd.f32 %v7188_v31, %v5121_v10 }
 0x357   : > { %v7101_v0 = vpop.f32.mrf.mxu1  ;;  %v5273_v60 = vpop.f32.mrf.mxu0 }
 0x358   : > { %5390 = vst [vmem:[%s9782_s4 + $0x30] sm:$0xff] %v5282_v39  ;;  %v5274_v23 = vadd.f32 %v5273_v60, %v5113_v43  ;;  %v7102_v29 = vadd.f32 %v7101_v0, %v7100_v57  ;;  %v7096_v43 = vadd.f32 %v9790_v41, %v9777_v24 }
 0x359   : > { %v7103_v32 = vpop.f32.mrf.mxu1  ;;  %v7189_v20 = vpop.f32.mrf.mxu0 }
 0x35a   : > { %5388 = vst [vmem:[%s9782_s4 + $0x20] sm:$0xff] %v5274_v23  ;;  %v5285_v18 = vadd.f32 %v7189_v20, %v5124_v58  ;;  %v5169_v0 = vadd.f32 %v7102_v29, %v9681_v40  ;;  %v7099_v58 = vadd.f32 %v9802_v26, %v9796_v14  ;;  %v5161_v41 = vadd.f32 %v7096_v43, %v9667_v21 }
 0x35b   : > { %v7104_v30 = vpop.f32.mrf.mxu1  ;;  %v5276_v8 = vpop.f32.mrf.mxu0 }
 0x35c   : > { %5391 = vst [vmem:[%s9782_s4 + $0x38] sm:$0xff] %v5285_v18  ;;  %v5277_v27 = vadd.f32 %v5276_v8, %v5116_v2  ;;  %v7105_v62 = vadd.f32 %v7104_v30, %v7103_v32  ;;  %v5164_v14 = vadd.f32 %v7099_v58, %v9909_v63 }
 0x35d   : > { %v7106_v51 = vpop.f32.mrf.mxu1  ;;  %v7192_v35 = vpop.f32.mrf.mxu0 }
 0x35e   : > { %5389 = vst [vmem:[%s9782_s4 + $0x28] sm:$0xff] %v5277_v27  ;;  %v5298_v22 = vadd.f32 %v7192_v35, %v5137_v44  ;;  %v5172_v18 = vadd.f32 %v7105_v62, %v9688_v34  ;;  %v9910_v35 = vld [vmem:[#allocation5_spill] sm:$0xff] }
 0x35f   : > { %v7107_v17 = vpop.f32.mrf.mxu1  ;;  %v5289_v36 = vpop.f32.mrf.mxu0 }
 0x360   : > { %5394 = vst [vmem:[%s9782_s4 + $0x50] sm:$0xff] %v5298_v22  ;;  %v5290_v45 = vadd.f32 %v5289_v36, %v5129_v61  ;;  %v7108_v30 = vadd.f32 %v7107_v17, %v7106_v51 }
 0x361   : > { %v7109_v9 = vpop.f32.mrf.mxu1  ;;  %v7193_v6 = vpop.f32.mrf.mxu0 }
 0x362   : > { %5392 = vst [vmem:[%s9782_s4 + $0x40] sm:$0xff] %v5290_v45  ;;  %v5301_v3 = vadd.f32 %v7193_v6, %v5140_v1  ;;  %v5177_v51 = vadd.f32 %v7108_v30, %v9911_v48 }
 0x363   : > { %v7110_v49 = vpop.f32.mrf.mxu1  ;;  %v5292_v53 = vpop.f32.mrf.mxu0 }
 0x364   : > { %5395 = vst [vmem:[%s9782_s4 + $0x58] sm:$0xff] %v5301_v3  ;;  %v5293_v50 = vadd.f32 %v5292_v53, %v5132_v28  ;;  %v7111_v34 = vadd.f32 %v7110_v49, %v7109_v9 }
 0x365   : > { %v7112_v37 = vpop.f32.mrf.mxu1  ;;  %v7196_v54 = vpop.f32.mrf.mxu0 }
 0x366   : > { %5393 = vst [vmem:[%s9782_s4 + $0x48] sm:$0xff] %v5293_v50  ;;  %v5314_v42 = vadd.f32 %v7196_v54, %v5153_v55  ;;  %v9913_v55 = vld [vmem:[#allocation4_spill] sm:$0xff] }
 0x367   : > { %v7113_v10 = vpop.f32.mrf.mxu1  ;;  %v5305_v31 = vpop.f32.mrf.mxu0  ;;  %v5180_v9 = vadd.f32 %v7111_v34, %v9913_v55 }
 0x368   : > { %5398 = vst [vmem:[%s9782_s4 + $0x70] sm:$0xff] %v5314_v42  ;;  %v5306_v15 = vadd.f32 %v5305_v31, %v5145_v11  ;;  %v7114_v47 = vadd.f32 %v7113_v10, %v7112_v37  ;;  %v9914_v42 = vld [vmem:[#allocation9_spill] sm:$0xff] }
 0x369   : > { %v7115_v33 = vpop.f32.mrf.mxu1  ;;  %v7197_v39 = vpop.f32.mrf.mxu0 }
 0x36a   : > { %5396 = vst [vmem:[%s9782_s4 + $0x60] sm:$0xff] %v5306_v15  ;;  %v5317_v16 = vadd.f32 %v7197_v39, %v5156_v5  ;;  %v5185_v7 = vadd.f32 %v7114_v47, %v9910_v35  ;;  %v9915_v5 = vld [vmem:[#allocation7_spill] sm:$0xff] }
 0x36b   : > { %v7116_v52 = vpop.f32.mrf.mxu1  ;;  %v5308_v60 = vpop.f32.mrf.mxu0 }
 0x36c   : > { %5399 = vst [vmem:[%s9782_s4 + $0x78] sm:$0xff] %v5317_v16  ;;  %v5309_v57 = vadd.f32 %v5308_v60, %v5148_v25  ;;  %v7117_v21 = vadd.f32 %v7116_v52, %v7115_v33  ;;  %v9916_v25 = vld [vmem:[#allocation10_spill] sm:$0xff] }
 0x36d   : > { %v7118_v38 = vpop.f32.mrf.mxu1  ;;  %v7200_v23 = vpop.f32.mrf.mxu0 }
 0x36e   : > { %5397 = vst [vmem:[%s9782_s4 + $0x68] sm:$0xff] %v5309_v57  ;;  %v5330_v24 = vadd.f32 %v7200_v23, %v5169_v0  ;;  %v5188_v3 = vadd.f32 %v7117_v21, %v9912_v19 }
 0x36f   : > { %v7119_v4 = vpop.f32.mrf.mxu1  ;;  %v5321_v20 = vpop.f32.mrf.mxu0 }
 0x370   : > { %5402 = vst [vmem:[%s9782_s4 + $0x90] sm:$0xff] %v5330_v24  ;;  %v5322_v32 = vadd.f32 %v5321_v20, %v5161_v41  ;;  %v7120_v56 = vadd.f32 %v7119_v4, %v7118_v38  ;;  %v9917_v38 = vld [vmem:[#allocation8_spill] sm:$0xff] }
 0x371   : > { %v7121_v40 = vpop.f32.mrf.mxu1  ;;  %v7201_v2 = vpop.f32.mrf.mxu0 }
 0x372   : > { %5400 = vst [vmem:[%s9782_s4 + $0x80] sm:$0xff] %v5322_v32  ;;  %v5333_v8 = vadd.f32 %v7201_v2, %v5172_v18  ;;  %v5193_v33 = vadd.f32 %v7120_v56, %v9915_v5 }
 0x373   : > { %v7122_v26 = vpop.f32.mrf.mxu1  ;;  %v5324_v27 = vpop.f32.mrf.mxu0 }
 0x374   : > { %5403 = vst [vmem:[%s9782_s4 + $0x98] sm:$0xff] %v5333_v8  ;;  %v5325_v44 = vadd.f32 %v5324_v27, %v5164_v14  ;;  %v7123_v29 = vadd.f32 %v7122_v26, %v7121_v40  ;;  %v9918_v26 = vld [vmem:[#allocation11_spill] sm:$0xff] }
 0x375   : > { %v7124_v22 = vpop.f32.mrf.mxu1  ;;  %v7204_v61 = vpop.f32.mrf.mxu0 }
 0x376   : > { %5401 = vst [vmem:[%s9782_s4 + $0x88] sm:$0xff] %v5325_v44  ;;  %v5346_v36 = vadd.f32 %v7204_v61, %v5185_v7  ;;  %v5196_v23 = vadd.f32 %v7123_v29, %v9917_v38 }
 0x377   : > { %v7125_v17 = vpop.f32.mrf.mxu1  ;;  %v5337_v45 = vpop.f32.mrf.mxu0 }
 0x378   : > { %5406 = vst [vmem:[%s9782_s4 + $0xb0] sm:$0xff] %v5346_v36  ;;  %v7126_v1 = vadd.f32 %v7125_v17, %v7124_v22  ;;  %v5338_v6 = vadd.f32 %v5337_v45, %v5177_v51 }
 0x379   : > { %v7127_v28 = vpop.f32.mrf.mxu1  ;;  %v7205_v53 = vpop.f32.mrf.mxu0 }
 0x37a   : > { %5404 = vst [vmem:[%s9782_s4 + $0xa0] sm:$0xff] %v5338_v6  ;;  %v5349_v50 = vadd.f32 %v7205_v53, %v5188_v3  ;;  %v5201_v11 = vadd.f32 %v7126_v1, %v9914_v42 }
 0x37b   : > { %v7128_v49 = vpop.f32.mrf.mxu1  ;;  %v5340_v37 = vpop.f32.mrf.mxu0 }
 0x37c   : > { %5407 = vst [vmem:[%s9782_s4 + $0xb8] sm:$0xff] %v5349_v50  ;;  %v7129_v54 = vadd.f32 %v7128_v49, %v7127_v28  ;;  %v5341_v12 = vadd.f32 %v5340_v37, %v5180_v9 }
 0x37d   : > { %v7130_v10 = vpop.f32.mrf.mxu1  ;;  %v7208_v31 = vpop.f32.mrf.mxu0 }
 0x37e   : > { %5405 = vst [vmem:[%s9782_s4 + $0xa8] sm:$0xff] %v5341_v12  ;;  %v5362_v15 = vadd.f32 %v7208_v31, %v5201_v11  ;;  %v5204_v52 = vadd.f32 %v7129_v54, %v9916_v25 }
 0x37f   : > { %v7131_v39 = vpop.f32.mrf.mxu1  ;;  %v5353_v43 = vpop.f32.mrf.mxu0 }
 0x380   : > { %5410 = vst [vmem:[%s9782_s4 + $0xd0] sm:$0xff] %v5362_v15  ;;  %v5354_v16 = vadd.f32 %v5353_v43, %v5193_v33  ;;  %v7132_v57 = vadd.f32 %v7131_v39, %v7130_v10 }
 0x381   : > { %v7133_v60 = vpop.f32.mrf.mxu1  ;;  %v7209_v62 = vpop.f32.mrf.mxu0 }
 0x382   : > { %5408 = vst [vmem:[%s9782_s4 + $0xc0] sm:$0xff] %v5354_v16  ;;  %v5365_v0 = vadd.f32 %v7209_v62, %v5204_v52  ;;  %v5209_v32 = vadd.f32 %v7132_v57, %v9751_v46 }
 0x383   : > { %v7134_v58 = vpop.f32.mrf.mxu1  ;;  %v5356_v24 = vpop.f32.mrf.mxu0 }
 0x384   : > { %5411 = vst [vmem:[%s9782_s4 + $0xd8] sm:$0xff] %v5365_v0  ;;  %v5357_v41 = vadd.f32 %v5356_v24, %v5196_v23  ;;  %v7135_v47 = vadd.f32 %v7134_v58, %v7133_v60 }
 0x385   : > { %v7136_v4 = vpop.f32.mrf.mxu1  ;;  %v7212_v20 = vpop.f32.mrf.mxu0 }
 0x386   : > { %5409 = vst [vmem:[%s9782_s4 + $0xc8] sm:$0xff] %v5357_v41  ;;  %v5212_v27 = vadd.f32 %v7135_v47, %v9918_v26 }
 0x387   : > { %v7137_v18 = vpop.f32.mrf.mxu1  ;;  %v5369_v40 = vpop.f32.mrf.mxu0 }
 0x388   : > { %v7138_v2 = vadd.f32 %v7137_v18, %v7136_v4  ;;  %v5370_v30 = vadd.f32 %v5369_v40, %v5209_v32 }
 0x389   : > { %v7139_v8 = vpop.f32.mrf.mxu1  ;;  %v7213_v63 = vpop.f32.mrf.mxu0 }
 0x38a   : > { %v5217_v14 = vadd.f32 %v7138_v2, %v9769_v13  ;;  %5412 = vst [vmem:[%s9782_s4 + $0xe0] sm:$0xff] %v5370_v30 }
 0x38b   : > { %v7140_v21 = vpop.f32.mrf.mxu1  ;;  %v5372_v44 = vpop.f32.mrf.mxu0 }
 0x38c   : > { %v5378_v35 = vadd.f32 %v7212_v20, %v5217_v14  ;;  %v7141_v7 = vadd.f32 %v7140_v21, %v7139_v8  ;;  %v5373_v22 = vadd.f32 %v5372_v44, %v5212_v27 }
 0x38e   : > { %5414 = vst [vmem:[%s9782_s4 + $0xf0] sm:$0xff] %v5378_v35  ;;  %v5220_v46 = vadd.f32 %v7141_v7, %v9787_v59  ;;  %5413 = vst [vmem:[%s9782_s4 + $0xe8] sm:$0xff] %v5373_v22 }
 0x390   : > { %v5381_v61 = vadd.f32 %v7213_v63, %v5220_v46 }
 0x392   : > { %5415 = vst [vmem:[%s9782_s4 + $0xf8] sm:$0xff] %v5381_v61 }
 0x393 PF: > { %s13_s14 = sadd.s32 1, %s7942_s14   ;;  %s9919_s12 = smov %s7938_s13 }
 0x394   : > { %p10_p5 = scmp.ge.s32.totalorder %s13_s14, 4   ;;  %s9920_s13 = smov %s9922_s15 }
 0x396   :  { %12 = sbr.rel (!%p10_p5) target bundleno = 2 (0x2), region = 62 }

</bundles_post_ra>
